<compile_context>
chip_gen: v7x
topology: tpu7x:2x2x1
jax: 0.10.0
libtpu: 0.0.40
codegen_flags: <defaults>
</compile_context>

<pallas_src>
import functools

import numpy as np

import jax
import jax.numpy as jnp
from jax.experimental import pallas as pl
from jax.experimental.pallas import tpu as pltpu

NZ = 16          # latent dim (nz)
NGF = 16         # base channel count (ngf)
MAX_TM = 512     # max row-tile per grid step
VMEM_LIMIT = 32 * 1024 * 1024


def _tile_rows(m):
    return m if m <= MAX_TM else MAX_TM


# ----------------------------------------------------------------------------
# Pallas kernels
# ----------------------------------------------------------------------------
def _matmul_act_kernel(x_ref, w_ref, o_ref, *, act):
    # o = act(x @ w), f32 accumulate on the MXU, activation in f32.
    acc = jnp.dot(x_ref[...], w_ref[...], preferred_element_type=jnp.float32)
    if act == "relu":
        acc = jnp.maximum(acc, 0.0)
    elif act == "tanh":
        acc = jnp.tanh(acc)
    o_ref[...] = acc.astype(o_ref.dtype)


def pallas_matmul_act(x, w, *, act, out_dtype):
    """Row-tiled fused matmul + activation. x:(M,K) bf16, w:(K,N) bf16."""
    m, k = x.shape
    k2, n = w.shape
    assert k == k2
    tm = _tile_rows(m)
    kern = functools.partial(_matmul_act_kernel, act=act)
    return pl.pallas_call(
        kern,
        out_shape=jax.ShapeDtypeStruct((m, n), out_dtype),
        grid=(pl.cdiv(m, tm),),
        in_specs=[
            pl.BlockSpec((tm, k), lambda i: (i, 0)),
            pl.BlockSpec((k, n), lambda i: (0, 0)),   # resident weight block
        ],
        out_specs=pl.BlockSpec((tm, n), lambda i: (i, 0)),
        compiler_params=pltpu.CompilerParams(
            dimension_semantics=("parallel",),
            vmem_limit_bytes=VMEM_LIMIT,
        ),
    )(x, w)


def _convt_rows_kernel(x_ref, xu_ref, xd_ref, w_ref, even_ref, odd_ref, *, act):
    # even out row 2m   = x[m] @ M1 + x[m-1] @ M3
    # odd  out row 2m+1 = x[m] @ M2 + x[m+1] @ M0
    f32 = jnp.float32
    x = x_ref[...]
    e = jnp.dot(x, w_ref[1], preferred_element_type=f32)
    e = e + jnp.dot(xu_ref[...], w_ref[3], preferred_element_type=f32)
    o = jnp.dot(x, w_ref[2], preferred_element_type=f32)
    o = o + jnp.dot(xd_ref[...], w_ref[0], preferred_element_type=f32)
    if act == "relu":
        e = jnp.maximum(e, 0.0)
        o = jnp.maximum(o, 0.0)
    else:  # tanh
        e = jnp.tanh(e)
        o = jnp.tanh(o)
    even_ref[...] = e.astype(even_ref.dtype)
    odd_ref[...] = o.astype(odd_ref.dtype)


def pallas_convt_rows(x, xu, xd, w4, *, act, out_dtype):
    """Stride-2 transposed-conv core. x/xu/xd:(M,K) bf16, w4:(4,K,N) bf16."""
    m, k = x.shape
    four, k2, n = w4.shape
    assert four == 4 and k == k2
    tm = _tile_rows(m)
    kern = functools.partial(_convt_rows_kernel, act=act)
    row_spec = pl.BlockSpec((tm, k), lambda i: (i, 0))
    out_spec = pl.BlockSpec((tm, n), lambda i: (i, 0))
    return pl.pallas_call(
        kern,
        out_shape=(jax.ShapeDtypeStruct((m, n), out_dtype),
                   jax.ShapeDtypeStruct((m, n), out_dtype)),
        grid=(pl.cdiv(m, tm),),
        in_specs=[row_spec, row_spec, row_spec,
                  pl.BlockSpec((4, k, n), lambda i: (0, 0, 0))],
        out_specs=(out_spec, out_spec),
        compiler_params=pltpu.CompilerParams(
            dimension_semantics=("parallel",),
            vmem_limit_bytes=VMEM_LIMIT,
        ),
    )(x, xu, xd, w4)


# ----------------------------------------------------------------------------
# Plain-JAX glue (tiny, between kernels)
# ----------------------------------------------------------------------------
def _row_shifted(x2d, batch, h):
    """xu[b*h+m] = x[b, m-1] (0 at m=0); xd[b*h+m] = x[b, m+1] (0 at m=h-1)."""
    m, k = x2d.shape
    x3 = x2d.reshape(batch, h, k)
    zero = jnp.zeros((batch, 1, k), x2d.dtype)
    xu = jnp.concatenate([zero, x3[:, :h - 1, :]], axis=1).reshape(m, k)
    xd = jnp.concatenate([x3[:, 1:, :], zero], axis=1).reshape(m, k)
    return xu, xd


def _convt_layer(x2d, w4, *, batch, h_in, act, out_dtype):
    """One ConvTranspose2d(k=4, s=2, p=1) layer in row layout.

    x2d: (batch*h_in, w_in*c_in) -> (batch*2*h_in, 2*w_in*c_out)
    """
    xu, xd = _row_shifted(x2d, batch, h_in)
    even, odd = pallas_convt_rows(x2d, xu, xd, w4, act=act, out_dtype=out_dtype)
    n = even.shape[1]
    # interleave: out row 2m <- even[m], out row 2m+1 <- odd[m]
    return jnp.stack([even, odd], axis=1).reshape(2 * x2d.shape[0], n)


def generator_forward(z, params):
    """z: (B, nz, 1, 1) float32 (PyTorch NCHW). Returns (B, ngf, 32, 32) f32."""
    b = z.shape[0]
    z2 = z.reshape(b, NZ).astype(jnp.bfloat16)
    # layer 1: ConvTranspose2d(nz, 8*ngf, 4, 1, 0) on a 1x1 map == (B,16)@(16,2048)
    h = pallas_matmul_act(z2, params["w1"], act="relu", out_dtype=jnp.bfloat16)
    h = h.reshape(b * 4, 4 * 8 * NGF)              # row layout: H=4, W=4, C=128
    # layer 2: 128 -> 64, 4x4 -> 8x8
    h = _convt_layer(h, params["w2"], batch=b, h_in=4, act="relu", out_dtype=jnp.bfloat16)
    # layer 3: 64 -> 32, 8x8 -> 16x16
    h = _convt_layer(h, params["w3"], batch=b, h_in=8, act="relu", out_dtype=jnp.bfloat16)
    # layer 4: 32 -> 16, 16x16 -> 32x32, Tanh (final output in f32)
    h = _convt_layer(h, params["w4"], batch=b, h_in=16, act="tanh", out_dtype=jnp.float32)
    # row layout (B*32, 32*16) -> NCHW (B, 16, 32, 32)
    return h.reshape(b, 32, 32, NGF).transpose(0, 3, 1, 2)


# ----------------------------------------------------------------------------
# Weight packing (host-side, one-time)
# ----------------------------------------------------------------------------
def _build_row_weight(w_cikk, w_in):
    """PyTorch ConvTranspose2d weight (Cin, Cout, 4, 4), stride 2, pad 1 ->
    (4, w_in*Cin, 2*w_in*Cout) block-banded row matrices:
       M_kh[iw*Cin + c, ow*Cout + o] = W[c, o, kh, kw]  with kw = ow + 1 - 2*iw
    """
    w = np.asarray(w_cikk, dtype=np.float32)
    cin, cout, _, _ = w.shape
    w_out = 2 * w_in
    mats = np.zeros((4, w_in * cin, w_out * cout), np.float32)
    for kh in range(4):
        for iw in range(w_in):
            for kw in range(4):
                ow = 2 * iw - 1 + kw
                if 0 <= ow < w_out:
                    mats[kh, iw * cin:(iw + 1) * cin,
                         ow * cout:(ow + 1) * cout] = w[:, :, kh, kw]
    return jnp.asarray(mats)


def init_params(key, dtype=jnp.bfloat16):
    k1, k2, k3, k4 = jax.random.split(key, 4)
    scale = 0.1  # synthetic init (no checkpoint load)
    raw = {
        "w1": jax.random.normal(k1, (NZ, NGF * 8, 4, 4), jnp.float32) * scale,
        "w2": jax.random.normal(k2, (NGF * 8, NGF * 4, 4, 4), jnp.float32) * scale,
        "w3": jax.random.normal(k3, (NGF * 4, NGF * 2, 4, 4), jnp.float32) * scale,
        "w4": jax.random.normal(k4, (NGF * 2, NGF, 4, 4), jnp.float32) * scale,
    }
    packed = {
        # layer-1 weight as a plain matmul matrix; column order (kh, kw, cout) so
        # the (B, 2048) output reshapes straight into the (B*4, 512) row layout.
        "w1": jnp.transpose(raw["w1"], (0, 2, 3, 1)).reshape(NZ, 4 * 4 * NGF * 8).astype(dtype),
        "w2": _build_row_weight(raw["w2"], w_in=4).astype(dtype),
        "w3": _build_row_weight(raw["w3"], w_in=8).astype(dtype),
        "w4": _build_row_weight(raw["w4"], w_in=16).astype(dtype),
    }
    return raw, packed


# ----------------------------------------------------------------------------
# Plain-XLA reference (for the in-script correctness check)
# ----------------------------------------------------------------------------
def _convt_ref(x, w, stride, pad):
    """PyTorch ConvTranspose2d(bias=False), NCHW, via the dilated-conv identity."""
    k = w.shape[2]
    wf = jnp.transpose(jnp.flip(w, (2, 3)), (1, 0, 2, 3))   # (Cout, Cin, k, k)
    return jax.lax.conv_general_dilated(
        x, wf, window_strides=(1, 1),
        padding=[(k - 1 - pad, k - 1 - pad)] * 2,
        lhs_dilation=(stride, stride),
        dimension_numbers=("NCHW", "OIHW", "NCHW"))


def generator_reference(z, raw):
    # Mirror the Pallas path's bf16 operand rounding, but do all math in f32.
    q = lambda a: a.astype(jnp.bfloat16).astype(jnp.float32)
    h = jax.nn.relu(_convt_ref(q(z), q(raw["w1"]), 1, 0))
    h = jax.nn.relu(_convt_ref(q(h), q(raw["w2"]), 2, 1))
    h = jax.nn.relu(_convt_ref(q(h), q(raw["w3"]), 2, 1))
    return jnp.tanh(_convt_ref(q(h), q(raw["w4"]), 2, 1))


if __name__ == "__main__":
    key = jax.random.PRNGKey(0)
    pkey, zkey = jax.random.split(key)
    raw, params = init_params(pkey)

    batch = 2
    # layout: z is NCHW (B, nz=16, 1, 1), the standard DCGAN generator input.
    z = jax.random.normal(zkey, (batch, NZ, 1, 1), jnp.float32)

    fwd = jax.jit(generator_forward)
    out = fwd(z, params)
    jax.block_until_ready(out)
    assert out.shape == (batch, NGF, 32, 32), out.shape

    ref = jax.jit(generator_reference)(z, raw)
    max_err = float(jnp.max(jnp.abs(out - ref)))
    assert max_err < 3e-2, f"mismatch vs XLA reference: {max_err}"

    print("KERNEL_OK")
</pallas_src>

<mosaic_0001>
module attributes {stable_mosaic.version = 11 : i64} {
  func.func @_matmul_act_kernel(%arg0: i32, %arg1: memref<2x16xbf16, #tpu.memory_space<vmem>>, %arg2: memref<16x2048xbf16, #tpu.memory_space<vmem>>, %arg3: memref<2x2048xbf16, #tpu.memory_space<vmem>>) attributes {dimension_semantics = [#tpu.dimension_semantics<parallel>], iteration_bounds = array<i64: 1>, scalar_prefetch = 0 : i64, scratch_operands = 0 : i64, tpu.core_type = #tpu.core_type<tc>, window_params = [{transform_indices = @transform_0, window_bounds = array<i64: 2, 16>}, {pipeline_mode = #tpu.pipeline_mode<synchronous>, transform_indices = @transform_1, window_bounds = array<i64: 16, 2048>}, {transform_indices = @transform_2, window_bounds = array<i64: 2, 2048>}]} {
    %c0 = arith.constant 0 : index
    %c0_0 = arith.constant 0 : index
    %0 = vector.load %arg1[%c0, %c0_0] : memref<2x16xbf16, #tpu.memory_space<vmem>>, vector<2x16xbf16>
    %c0_1 = arith.constant 0 : index
    %c0_2 = arith.constant 0 : index
    %1 = vector.load %arg2[%c0_1, %c0_2] : memref<16x2048xbf16, #tpu.memory_space<vmem>>, vector<16x2048xbf16>
    %cst = arith.constant dense<0.000000e+00> : vector<2x2048xf32>
    %2 = tpu.matmul %0, %1, %cst {dimension_numbers = #tpu.dot_dimension_numbers<[1], [0], [0], [1], [0, 0, 1, 1], [], []>} : vector<2x16xbf16>, vector<16x2048xbf16>, vector<2x2048xf32> -> vector<2x2048xf32>
    %cst_3 = arith.constant 0.000000e+00 : f32
    %3 = vector.broadcast %cst_3 : f32 to vector<2x2048xf32>
    %4 = arith.maximumf %2, %3 : vector<2x2048xf32>
    %5 = arith.truncf %4 : vector<2x2048xf32> to vector<2x2048xbf16>
    %c0_4 = arith.constant 0 : index
    %c0_5 = arith.constant 0 : index
    %6 = vector.load %arg3[%c0_4, %c0_5] : memref<2x2048xbf16, #tpu.memory_space<vmem>>, vector<2x2048xbf16>
    tpu.vector_store %arg3[%c0_4, %c0_5], %5 {strides = array<i32>} : memref<2x2048xbf16, #tpu.memory_space<vmem>>, vector<2x2048xbf16>,
    return
  }
  func.func @transform_0(%arg0: i32) -> (i32, i32) {
    %c0_i32 = arith.constant 0 : i32
    %c0_i32_0 = arith.constant 0 : i32
    return %arg0, %c0_i32 : i32, i32
  }
  func.func @transform_1(%arg0: i32) -> (i32, i32) {
    %c0_i32 = arith.constant 0 : i32
    %c0_i32_0 = arith.constant 0 : i32
    %c0_i32_1 = arith.constant 0 : i32
    return %c0_i32, %c0_i32_0 : i32, i32
  }
  func.func @transform_2(%arg0: i32) -> (i32, i32) {
    %c0_i32 = arith.constant 0 : i32
    %c0_i32_0 = arith.constant 0 : i32
    return %arg0, %c0_i32 : i32, i32
  }
}

module attributes {stable_mosaic.version = 11 : i64} {
  func.func @_convt_rows_kernel(%arg0: i32, %arg1: memref<16x512xbf16, #tpu.memory_space<vmem>>, %arg2: memref<16x512xbf16, #tpu.memory_space<vmem>>, %arg3: memref<16x512xbf16, #tpu.memory_space<vmem>>, %arg4: memref<4x512x512xbf16, #tpu.memory_space<vmem>>, %arg5: memref<16x512xbf16, #tpu.memory_space<vmem>>, %arg6: memref<16x512xbf16, #tpu.memory_space<vmem>>) attributes {dimension_semantics = [#tpu.dimension_semantics<parallel>], iteration_bounds = array<i64: 1>, scalar_prefetch = 0 : i64, scratch_operands = 0 : i64, tpu.core_type = #tpu.core_type<tc>, window_params = [{transform_indices = @transform_0, window_bounds = array<i64: 16, 512>}, {transform_indices = @transform_1, window_bounds = array<i64: 16, 512>}, {transform_indices = @transform_2, window_bounds = array<i64: 16, 512>}, {pipeline_mode = #tpu.pipeline_mode<synchronous>, transform_indices = @transform_3, window_bounds = array<i64: 4, 512, 512>}, {transform_indices = @transform_4, window_bounds = array<i64: 16, 512>}, {transform_indices = @transform_5, window_bounds = array<i64: 16, 512>}]} {
    %c0 = arith.constant 0 : index
    %c0_0 = arith.constant 0 : index
    %0 = vector.load %arg1[%c0, %c0_0] : memref<16x512xbf16, #tpu.memory_space<vmem>>, vector<16x512xbf16>
    %c1 = arith.constant 1 : index
    %c0_1 = arith.constant 0 : index
    %c0_2 = arith.constant 0 : index
    %1 = vector.load %arg4[%c1, %c0_1, %c0_2] : memref<4x512x512xbf16, #tpu.memory_space<vmem>>, vector<1x512x512xbf16>
    %2 = vector.shape_cast %1 : vector<1x512x512xbf16> to vector<512x512xbf16>
    %cst = arith.constant dense<0.000000e+00> : vector<16x512xf32>
    %3 = tpu.matmul %0, %2, %cst {dimension_numbers = #tpu.dot_dimension_numbers<[1], [0], [0], [1], [0, 0, 1, 1], [], []>} : vector<16x512xbf16>, vector<512x512xbf16>, vector<16x512xf32> -> vector<16x512xf32>
    %c0_3 = arith.constant 0 : index
    %c0_4 = arith.constant 0 : index
    %4 = vector.load %arg2[%c0_3, %c0_4] : memref<16x512xbf16, #tpu.memory_space<vmem>>, vector<16x512xbf16>
    %c3 = arith.constant 3 : index
    %c0_5 = arith.constant 0 : index
    %c0_6 = arith.constant 0 : index
    %5 = vector.load %arg4[%c3, %c0_5, %c0_6] : memref<4x512x512xbf16, #tpu.memory_space<vmem>>, vector<1x512x512xbf16>
    %6 = vector.shape_cast %5 : vector<1x512x512xbf16> to vector<512x512xbf16>
    %cst_7 = arith.constant dense<0.000000e+00> : vector<16x512xf32>
    %7 = tpu.matmul %4, %6, %cst_7 {dimension_numbers = #tpu.dot_dimension_numbers<[1], [0], [0], [1], [0, 0, 1, 1], [], []>} : vector<16x512xbf16>, vector<512x512xbf16>, vector<16x512xf32> -> vector<16x512xf32>
    %8 = arith.addf %3, %7 : vector<16x512xf32>
    %c2 = arith.constant 2 : index
    %c0_8 = arith.constant 0 : index
    %c0_9 = arith.constant 0 : index
    %9 = vector.load %arg4[%c2, %c0_8, %c0_9] : memref<4x512x512xbf16, #tpu.memory_space<vmem>>, vector<1x512x512xbf16>
    %10 = vector.shape_cast %9 : vector<1x512x512xbf16> to vector<512x512xbf16>
    %cst_10 = arith.constant dense<0.000000e+00> : vector<16x512xf32>
    %11 = tpu.matmul %0, %10, %cst_10 {dimension_numbers = #tpu.dot_dimension_numbers<[1], [0], [0], [1], [0, 0, 1, 1], [], []>} : vector<16x512xbf16>, vector<512x512xbf16>, vector<16x512xf32> -> vector<16x512xf32>
    %c0_11 = arith.constant 0 : index
    %c0_12 = arith.constant 0 : index
    %12 = vector.load %arg3[%c0_11, %c0_12] : memref<16x512xbf16, #tpu.memory_space<vmem>>, vector<16x512xbf16>
    %c0_13 = arith.constant 0 : index
    %c0_14 = arith.constant 0 : index
    %c0_15 = arith.constant 0 : index
    %13 = vector.load %arg4[%c0_13, %c0_14, %c0_15] : memref<4x512x512xbf16, #tpu.memory_space<vmem>>, vector<1x512x512xbf16>
    %14 = vector.shape_cast %13 : vector<1x512x512xbf16> to vector<512x512xbf16>
    %cst_16 = arith.constant dense<0.000000e+00> : vector<16x512xf32>
    %15 = tpu.matmul %12, %14, %cst_16 {dimension_numbers = #tpu.dot_dimension_numbers<[1], [0], [0], [1], [0, 0, 1, 1], [], []>} : vector<16x512xbf16>, vector<512x512xbf16>, vector<16x512xf32> -> vector<16x512xf32>
    %16 = arith.addf %11, %15 : vector<16x512xf32>
    %cst_17 = arith.constant 0.000000e+00 : f32
    %17 = vector.broadcast %cst_17 : f32 to vector<16x512xf32>
    %18 = arith.maximumf %8, %17 : vector<16x512xf32>
    %cst_18 = arith.constant 0.000000e+00 : f32
    %19 = vector.broadcast %cst_18 : f32 to vector<16x512xf32>
    %20 = arith.maximumf %16, %19 : vector<16x512xf32>
    %21 = arith.truncf %18 : vector<16x512xf32> to vector<16x512xbf16>
    %c0_19 = arith.constant 0 : index
    %c0_20 = arith.constant 0 : index
    %22 = vector.load %arg5[%c0_19, %c0_20] : memref<16x512xbf16, #tpu.memory_space<vmem>>, vector<16x512xbf16>
    tpu.vector_store %arg5[%c0_19, %c0_20], %21 {strides = array<i32>} : memref<16x512xbf16, #tpu.memory_space<vmem>>, vector<16x512xbf16>,
    %23 = arith.truncf %20 : vector<16x512xf32> to vector<16x512xbf16>
    %c0_21 = arith.constant 0 : index
    %c0_22 = arith.constant 0 : index
    %24 = vector.load %arg6[%c0_21, %c0_22] : memref<16x512xbf16, #tpu.memory_space<vmem>>, vector<16x512xbf16>
    tpu.vector_store %arg6[%c0_21, %c0_22], %23 {strides = array<i32>} : memref<16x512xbf16, #tpu.memory_space<vmem>>, vector<16x512xbf16>,
    return
  }
  func.func @transform_0(%arg0: i32) -> (i32, i32) {
    %c0_i32 = arith.constant 0 : i32
    %c0_i32_0 = arith.constant 0 : i32
    return %arg0, %c0_i32 : i32, i32
  }
  func.func @transform_1(%arg0: i32) -> (i32, i32) {
    %c0_i32 = arith.constant 0 : i32
    %c0_i32_0 = arith.constant 0 : i32
    return %arg0, %c0_i32 : i32, i32
  }
  func.func @transform_2(%arg0: i32) -> (i32, i32) {
    %c0_i32 = arith.constant 0 : i32
    %c0_i32_0 = arith.constant 0 : i32
    return %arg0, %c0_i32 : i32, i32
  }
  func.func @transform_3(%arg0: i32) -> (i32, i32, i32) {
    %c0_i32 = arith.constant 0 : i32
    %c0_i32_0 = arith.constant 0 : i32
    %c0_i32_1 = arith.constant 0 : i32
    %c0_i32_2 = arith.constant 0 : i32
    return %c0_i32, %c0_i32_0, %c0_i32_1 : i32, i32, i32
  }
  func.func @transform_4(%arg0: i32) -> (i32, i32) {
    %c0_i32 = arith.constant 0 : i32
    %c0_i32_0 = arith.constant 0 : i32
    return %arg0, %c0_i32 : i32, i32
  }
  func.func @transform_5(%arg0: i32) -> (i32, i32) {
    %c0_i32 = arith.constant 0 : i32
    %c0_i32_0 = arith.constant 0 : i32
    return %arg0, %c0_i32 : i32, i32
  }
}

module attributes {stable_mosaic.version = 11 : i64} {
  func.func @_convt_rows_kernel(%arg0: i32, %arg1: memref<8x512xbf16, #tpu.memory_space<vmem>>, %arg2: memref<8x512xbf16, #tpu.memory_space<vmem>>, %arg3: memref<8x512xbf16, #tpu.memory_space<vmem>>, %arg4: memref<4x512x512xbf16, #tpu.memory_space<vmem>>, %arg5: memref<8x512xbf16, #tpu.memory_space<vmem>>, %arg6: memref<8x512xbf16, #tpu.memory_space<vmem>>) attributes {dimension_semantics = [#tpu.dimension_semantics<parallel>], iteration_bounds = array<i64: 1>, scalar_prefetch = 0 : i64, scratch_operands = 0 : i64, tpu.core_type = #tpu.core_type<tc>, window_params = [{transform_indices = @transform_0, window_bounds = array<i64: 8, 512>}, {transform_indices = @transform_1, window_bounds = array<i64: 8, 512>}, {transform_indices = @transform_2, window_bounds = array<i64: 8, 512>}, {pipeline_mode = #tpu.pipeline_mode<synchronous>, transform_indices = @transform_3, window_bounds = array<i64: 4, 512, 512>}, {transform_indices = @transform_4, window_bounds = array<i64: 8, 512>}, {transform_indices = @transform_5, window_bounds = array<i64: 8, 512>}]} {
    %c0 = arith.constant 0 : index
    %c0_0 = arith.constant 0 : index
    %0 = vector.load %arg1[%c0, %c0_0] : memref<8x512xbf16, #tpu.memory_space<vmem>>, vector<8x512xbf16>
    %c1 = arith.constant 1 : index
    %c0_1 = arith.constant 0 : index
    %c0_2 = arith.constant 0 : index
    %1 = vector.load %arg4[%c1, %c0_1, %c0_2] : memref<4x512x512xbf16, #tpu.memory_space<vmem>>, vector<1x512x512xbf16>
    %2 = vector.shape_cast %1 : vector<1x512x512xbf16> to vector<512x512xbf16>
    %cst = arith.constant dense<0.000000e+00> : vector<8x512xf32>
    %3 = tpu.matmul %0, %2, %cst {dimension_numbers = #tpu.dot_dimension_numbers<[1], [0], [0], [1], [0, 0, 1, 1], [], []>} : vector<8x512xbf16>, vector<512x512xbf16>, vector<8x512xf32> -> vector<8x512xf32>
    %c0_3 = arith.constant 0 : index
    %c0_4 = arith.constant 0 : index
    %4 = vector.load %arg2[%c0_3, %c0_4] : memref<8x512xbf16, #tpu.memory_space<vmem>>, vector<8x512xbf16>
    %c3 = arith.constant 3 : index
    %c0_5 = arith.constant 0 : index
    %c0_6 = arith.constant 0 : index
    %5 = vector.load %arg4[%c3, %c0_5, %c0_6] : memref<4x512x512xbf16, #tpu.memory_space<vmem>>, vector<1x512x512xbf16>
    %6 = vector.shape_cast %5 : vector<1x512x512xbf16> to vector<512x512xbf16>
    %cst_7 = arith.constant dense<0.000000e+00> : vector<8x512xf32>
    %7 = tpu.matmul %4, %6, %cst_7 {dimension_numbers = #tpu.dot_dimension_numbers<[1], [0], [0], [1], [0, 0, 1, 1], [], []>} : vector<8x512xbf16>, vector<512x512xbf16>, vector<8x512xf32> -> vector<8x512xf32>
    %8 = arith.addf %3, %7 : vector<8x512xf32>
    %c2 = arith.constant 2 : index
    %c0_8 = arith.constant 0 : index
    %c0_9 = arith.constant 0 : index
    %9 = vector.load %arg4[%c2, %c0_8, %c0_9] : memref<4x512x512xbf16, #tpu.memory_space<vmem>>, vector<1x512x512xbf16>
    %10 = vector.shape_cast %9 : vector<1x512x512xbf16> to vector<512x512xbf16>
    %cst_10 = arith.constant dense<0.000000e+00> : vector<8x512xf32>
    %11 = tpu.matmul %0, %10, %cst_10 {dimension_numbers = #tpu.dot_dimension_numbers<[1], [0], [0], [1], [0, 0, 1, 1], [], []>} : vector<8x512xbf16>, vector<512x512xbf16>, vector<8x512xf32> -> vector<8x512xf32>
    %c0_11 = arith.constant 0 : index
    %c0_12 = arith.constant 0 : index
    %12 = vector.load %arg3[%c0_11, %c0_12] : memref<8x512xbf16, #tpu.memory_space<vmem>>, vector<8x512xbf16>
    %c0_13 = arith.constant 0 : index
    %c0_14 = arith.constant 0 : index
    %c0_15 = arith.constant 0 : index
    %13 = vector.load %arg4[%c0_13, %c0_14, %c0_15] : memref<4x512x512xbf16, #tpu.memory_space<vmem>>, vector<1x512x512xbf16>
    %14 = vector.shape_cast %13 : vector<1x512x512xbf16> to vector<512x512xbf16>
    %cst_16 = arith.constant dense<0.000000e+00> : vector<8x512xf32>
    %15 = tpu.matmul %12, %14, %cst_16 {dimension_numbers = #tpu.dot_dimension_numbers<[1], [0], [0], [1], [0, 0, 1, 1], [], []>} : vector<8x512xbf16>, vector<512x512xbf16>, vector<8x512xf32> -> vector<8x512xf32>
    %16 = arith.addf %11, %15 : vector<8x512xf32>
    %cst_17 = arith.constant 0.000000e+00 : f32
    %17 = vector.broadcast %cst_17 : f32 to vector<8x512xf32>
    %18 = arith.maximumf %8, %17 : vector<8x512xf32>
    %cst_18 = arith.constant 0.000000e+00 : f32
    %19 = vector.broadcast %cst_18 : f32 to vector<8x512xf32>
    %20 = arith.maximumf %16, %19 : vector<8x512xf32>
    %21 = arith.truncf %18 : vector<8x512xf32> to vector<8x512xbf16>
    %c0_19 = arith.constant 0 : index
    %c0_20 = arith.constant 0 : index
    %22 = vector.load %arg5[%c0_19, %c0_20] : memref<8x512xbf16, #tpu.memory_space<vmem>>, vector<8x512xbf16>
    tpu.vector_store %arg5[%c0_19, %c0_20], %21 {strides = array<i32>} : memref<8x512xbf16, #tpu.memory_space<vmem>>, vector<8x512xbf16>,
    %23 = arith.truncf %20 : vector<8x512xf32> to vector<8x512xbf16>
    %c0_21 = arith.constant 0 : index
    %c0_22 = arith.constant 0 : index
    %24 = vector.load %arg6[%c0_21, %c0_22] : memref<8x512xbf16, #tpu.memory_space<vmem>>, vector<8x512xbf16>
    tpu.vector_store %arg6[%c0_21, %c0_22], %23 {strides = array<i32>} : memref<8x512xbf16, #tpu.memory_space<vmem>>, vector<8x512xbf16>,
    return
  }
  func.func @transform_0(%arg0: i32) -> (i32, i32) {
    %c0_i32 = arith.constant 0 : i32
    %c0_i32_0 = arith.constant 0 : i32
    return %arg0, %c0_i32 : i32, i32
  }
  func.func @transform_1(%arg0: i32) -> (i32, i32) {
    %c0_i32 = arith.constant 0 : i32
    %c0_i32_0 = arith.constant 0 : i32
    return %arg0, %c0_i32 : i32, i32
  }
  func.func @transform_2(%arg0: i32) -> (i32, i32) {
    %c0_i32 = arith.constant 0 : i32
    %c0_i32_0 = arith.constant 0 : i32
    return %arg0, %c0_i32 : i32, i32
  }
  func.func @transform_3(%arg0: i32) -> (i32, i32, i32) {
    %c0_i32 = arith.constant 0 : i32
    %c0_i32_0 = arith.constant 0 : i32
    %c0_i32_1 = arith.constant 0 : i32
    %c0_i32_2 = arith.constant 0 : i32
    return %c0_i32, %c0_i32_0, %c0_i32_1 : i32, i32, i32
  }
  func.func @transform_4(%arg0: i32) -> (i32, i32) {
    %c0_i32 = arith.constant 0 : i32
    %c0_i32_0 = arith.constant 0 : i32
    return %arg0, %c0_i32 : i32, i32
  }
  func.func @transform_5(%arg0: i32) -> (i32, i32) {
    %c0_i32 = arith.constant 0 : i32
    %c0_i32_0 = arith.constant 0 : i32
    return %arg0, %c0_i32 : i32, i32
  }
}

module attributes {stable_mosaic.version = 11 : i64} {
  func.func @_convt_rows_kernel(%arg0: i32, %arg1: memref<32x512xbf16, #tpu.memory_space<vmem>>, %arg2: memref<32x512xbf16, #tpu.memory_space<vmem>>, %arg3: memref<32x512xbf16, #tpu.memory_space<vmem>>, %arg4: memref<4x512x512xbf16, #tpu.memory_space<vmem>>, %arg5: memref<32x512xf32, #tpu.memory_space<vmem>>, %arg6: memref<32x512xf32, #tpu.memory_space<vmem>>) attributes {dimension_semantics = [#tpu.dimension_semantics<parallel>], iteration_bounds = array<i64: 1>, scalar_prefetch = 0 : i64, scratch_operands = 0 : i64, tpu.core_type = #tpu.core_type<tc>, window_params = [{transform_indices = @transform_0, window_bounds = array<i64: 32, 512>}, {transform_indices = @transform_1, window_bounds = array<i64: 32, 512>}, {transform_indices = @transform_2, window_bounds = array<i64: 32, 512>}, {pipeline_mode = #tpu.pipeline_mode<synchronous>, transform_indices = @transform_3, window_bounds = array<i64: 4, 512, 512>}, {transform_indices = @transform_4, window_bounds = array<i64: 32, 512>}, {transform_indices = @transform_5, window_bounds = array<i64: 32, 512>}]} {
    %c0 = arith.constant 0 : index
    %c0_0 = arith.constant 0 : index
    %0 = vector.load %arg1[%c0, %c0_0] : memref<32x512xbf16, #tpu.memory_space<vmem>>, vector<32x512xbf16>
    %c1 = arith.constant 1 : index
    %c0_1 = arith.constant 0 : index
    %c0_2 = arith.constant 0 : index
    %1 = vector.load %arg4[%c1, %c0_1, %c0_2] : memref<4x512x512xbf16, #tpu.memory_space<vmem>>, vector<1x512x512xbf16>
    %2 = vector.shape_cast %1 : vector<1x512x512xbf16> to vector<512x512xbf16>
    %cst = arith.constant dense<0.000000e+00> : vector<32x512xf32>
    %3 = tpu.matmul %0, %2, %cst {dimension_numbers = #tpu.dot_dimension_numbers<[1], [0], [0], [1], [0, 0, 1, 1], [], []>} : vector<32x512xbf16>, vector<512x512xbf16>, vector<32x512xf32> -> vector<32x512xf32>
    %c0_3 = arith.constant 0 : index
    %c0_4 = arith.constant 0 : index
    %4 = vector.load %arg2[%c0_3, %c0_4] : memref<32x512xbf16, #tpu.memory_space<vmem>>, vector<32x512xbf16>
    %c3 = arith.constant 3 : index
    %c0_5 = arith.constant 0 : index
    %c0_6 = arith.constant 0 : index
    %5 = vector.load %arg4[%c3, %c0_5, %c0_6] : memref<4x512x512xbf16, #tpu.memory_space<vmem>>, vector<1x512x512xbf16>
    %6 = vector.shape_cast %5 : vector<1x512x512xbf16> to vector<512x512xbf16>
    %cst_7 = arith.constant dense<0.000000e+00> : vector<32x512xf32>
    %7 = tpu.matmul %4, %6, %cst_7 {dimension_numbers = #tpu.dot_dimension_numbers<[1], [0], [0], [1], [0, 0, 1, 1], [], []>} : vector<32x512xbf16>, vector<512x512xbf16>, vector<32x512xf32> -> vector<32x512xf32>
    %8 = arith.addf %3, %7 : vector<32x512xf32>
    %c2 = arith.constant 2 : index
    %c0_8 = arith.constant 0 : index
    %c0_9 = arith.constant 0 : index
    %9 = vector.load %arg4[%c2, %c0_8, %c0_9] : memref<4x512x512xbf16, #tpu.memory_space<vmem>>, vector<1x512x512xbf16>
    %10 = vector.shape_cast %9 : vector<1x512x512xbf16> to vector<512x512xbf16>
    %cst_10 = arith.constant dense<0.000000e+00> : vector<32x512xf32>
    %11 = tpu.matmul %0, %10, %cst_10 {dimension_numbers = #tpu.dot_dimension_numbers<[1], [0], [0], [1], [0, 0, 1, 1], [], []>} : vector<32x512xbf16>, vector<512x512xbf16>, vector<32x512xf32> -> vector<32x512xf32>
    %c0_11 = arith.constant 0 : index
    %c0_12 = arith.constant 0 : index
    %12 = vector.load %arg3[%c0_11, %c0_12] : memref<32x512xbf16, #tpu.memory_space<vmem>>, vector<32x512xbf16>
    %c0_13 = arith.constant 0 : index
    %c0_14 = arith.constant 0 : index
    %c0_15 = arith.constant 0 : index
    %13 = vector.load %arg4[%c0_13, %c0_14, %c0_15] : memref<4x512x512xbf16, #tpu.memory_space<vmem>>, vector<1x512x512xbf16>
    %14 = vector.shape_cast %13 : vector<1x512x512xbf16> to vector<512x512xbf16>
    %cst_16 = arith.constant dense<0.000000e+00> : vector<32x512xf32>
    %15 = tpu.matmul %12, %14, %cst_16 {dimension_numbers = #tpu.dot_dimension_numbers<[1], [0], [0], [1], [0, 0, 1, 1], [], []>} : vector<32x512xbf16>, vector<512x512xbf16>, vector<32x512xf32> -> vector<32x512xf32>
    %16 = arith.addf %11, %15 : vector<32x512xf32>
    %17 = math.tanh %8 : vector<32x512xf32>
    %18 = math.tanh %16 : vector<32x512xf32>
    %c0_17 = arith.constant 0 : index
    %c0_18 = arith.constant 0 : index
    %19 = vector.load %arg5[%c0_17, %c0_18] : memref<32x512xf32, #tpu.memory_space<vmem>>, vector<32x512xf32>
    tpu.vector_store %arg5[%c0_17, %c0_18], %17 {strides = array<i32>} : memref<32x512xf32, #tpu.memory_space<vmem>>, vector<32x512xf32>,
    %c0_19 = arith.constant 0 : index
    %c0_20 = arith.constant 0 : index
    %20 = vector.load %arg6[%c0_19, %c0_20] : memref<32x512xf32, #tpu.memory_space<vmem>>, vector<32x512xf32>
    tpu.vector_store %arg6[%c0_19, %c0_20], %18 {strides = array<i32>} : memref<32x512xf32, #tpu.memory_space<vmem>>, vector<32x512xf32>,
    return
  }
  func.func @transform_0(%arg0: i32) -> (i32, i32) {
    %c0_i32 = arith.constant 0 : i32
    %c0_i32_0 = arith.constant 0 : i32
    return %arg0, %c0_i32 : i32, i32
  }
  func.func @transform_1(%arg0: i32) -> (i32, i32) {
    %c0_i32 = arith.constant 0 : i32
    %c0_i32_0 = arith.constant 0 : i32
    return %arg0, %c0_i32 : i32, i32
  }
  func.func @transform_2(%arg0: i32) -> (i32, i32) {
    %c0_i32 = arith.constant 0 : i32
    %c0_i32_0 = arith.constant 0 : i32
    return %arg0, %c0_i32 : i32, i32
  }
  func.func @transform_3(%arg0: i32) -> (i32, i32, i32) {
    %c0_i32 = arith.constant 0 : i32
    %c0_i32_0 = arith.constant 0 : i32
    %c0_i32_1 = arith.constant 0 : i32
    %c0_i32_2 = arith.constant 0 : i32
    return %c0_i32, %c0_i32_0, %c0_i32_1 : i32, i32, i32
  }
  func.func @transform_4(%arg0: i32) -> (i32, i32) {
    %c0_i32 = arith.constant 0 : i32
    %c0_i32_0 = arith.constant 0 : i32
    return %arg0, %c0_i32 : i32, i32
  }
  func.func @transform_5(%arg0: i32) -> (i32, i32) {
    %c0_i32 = arith.constant 0 : i32
    %c0_i32_0 = arith.constant 0 : i32
    return %arg0, %c0_i32 : i32, i32
  }
}

</mosaic_0001>

<bundles_post_ra>
// kernel: generator_forward.4
= control target key start
LH: loop header
LB: loop body
LE: loop exit
PB: predicated region body
PF: predicated region fallthrough
CT: control target
= control target key end

     0   :  { %7 = vsyncpa [#allocation3], 0  ;;  %s671_s9 = smov [#allocation2]   ;;  %s742_s0 = inlined_call_operand.vmem [shape: bf16[2,16], index: 0, kind: input, shape index: {}]   ;;  %s743_s1 = inlined_call_operand.hbm [shape: bf16[16,2048], index: 1, kind: input, shape index: {}]   ;;  %s744_s2 = inlined_call_operand.vmem [shape: bf16[2,2048], index: 2, kind: output, shape index: {}]  }
   0x1   :  { %s15_s10 = sshll.u32 %s671_s9, 4  ;;  %s647_s13 = scalar_lea.hbm %s743_s1, 2048  ;;  %s16_s10 = int_to_ptr.vmem [resolvable:$true] %s15_s10 }
   0x2   :  { %p648_p0 = scmp.ne.s32.totalorder %s743_s1, %s647_s13  ;;  %p651_p1 = scmp.lt.u32.totalorder %s647_s13, %s743_s1 }
   0x4   :  { %p653_p2 = pnand %p651_p1, %p648_p0 }
   0x6   :  { %656 = shalt.err (!%p653_p2)
}
   0x7   :  { %s657_s18 = scalar_lea.vmem %s16_s10, 2048  ;;  %p662_p4 = scmp.lt.s32.totalorder %s16_s10, %s16_s10 }
   0x8   :  { %p658_p3 = scmp.ne.s32.totalorder %s16_s10, %s657_s18  ;;  %p663_p5 = scmp.lt.s32.totalorder %s657_s18, %s657_s18 }
   0xa   :  { %p664_p6 = por %p663_p5, %p662_p4 }
   0xc   :  { %p665_p7 = pnand %p664_p6, %p658_p3 }
   0xe   :  { %668 = shalt.err (!%p665_p7)
}
   0xf   :  { %s672_s19 = smov 1024   ;;  %s673_s20 = smov 64  }
  0x10   :  { %21 = dma.hbm_to_vmem [thread:$0]  %s743_s1, 2048, %s16_s10, [#allocation3], %s672_s19, %s672_s19, %s673_s20  }
  0x11   :  { %669 = dma.done.wait [#allocation3], 2048  }
  0x12   :  { %670 = vsyncadd [#allocation3], 4294965248  ;;  %v674_v0 = vmov 0   ;;  %v27_v1 = vld [vmem:[#allocation2] sm:$0xff]  ;;  %v28_v3 = vld [vmem:[#allocation2 + $0x8] sm:$0xff]  ;;  %vm123_vm0 = vcmask 130048   ;;  %v510_v36 = vlaneseq }
  0x13   :  { %159 = vmatprep.mubr.bf16.mxu0 %v674_v0  ;;  %200 = vmatprep.mubr.bf16.mxu1 %v674_v0  ;;  %v35_v2 = vld [vmem:[#allocation2 + $0x40] sm:$0xff]  ;;  %v36_v5 = vld [vmem:[#allocation2 + $0x48] sm:$0xff]  ;;  %v29_v7 = vld [vmem:[#allocation2 + $0x10] sm:$0xff]  ;;  %v675_v34 = vmov 1966171168  }
  0x14   :  { %v611_v4 = vcombine.high %v27_v1, %v35_v2  ;;  %v610_v6 = vcombine.low %v27_v1, %v35_v2  ;;  %v613_v8 = vcombine.high %v28_v3, %v36_v5  ;;  %v612_v9 = vcombine.low %v28_v3, %v36_v5  ;;  %v37_v10 = vld [vmem:[#allocation2 + $0x50] sm:$0xff]  ;;  %v30_v11 = vld [vmem:[#allocation2 + $0x18] sm:$0xff]  ;;  %v31_v15 = vld [vmem:[#allocation2 + $0x20] sm:$0xff] }
  0x15   :  { %v38_v12 = vld [vmem:[#allocation2 + $0x58] sm:$0xff]  ;;  %v615_v13 = vcombine.high %v29_v7, %v37_v10  ;;  %v39_v16 = vld [vmem:[#allocation2 + $0x60] sm:$0xff]  ;;  %v614_v18 = vcombine.low %v29_v7, %v37_v10  ;;  %v32_v19 = vld [vmem:[#allocation2 + $0x28] sm:$0xff]  ;;  %v508_v35 = vunpack.c.l.s4 %v675_v34  ;;  %v511_v38 = vshrl.u32 %v510_v36, 7 }
  0x16   :  { %127 = vmatprep.subr.bf16.mxu0 %v611_v4  ;;  %v617_v14 = vcombine.high %v30_v11, %v38_v12  ;;  %168 = vmatprep.subr.bf16.mxu1 %v613_v8  ;;  %v26_v17 = vld [vmem:[%s742_s0] sm:$0x1]  ;;  %v40_v20 = vld [vmem:[#allocation2 + $0x68] sm:$0xff]  ;;  %v616_v21 = vcombine.low %v30_v11, %v38_v12  ;;  %v619_v22 = vcombine.high %v31_v15, %v39_v16  ;;  %v33_v24 = vld [vmem:[#allocation2 + $0x30] sm:$0xff] }
  0x17   :  { %128 = vmatpush1.bf16.msra.mxu0 %v610_v6  ;;  %169 = vmatpush1.bf16.msra.mxu1 %v612_v9  ;;  %v621_v23 = vcombine.high %v32_v19, %v40_v20  ;;  %v41_v25 = vld [vmem:[#allocation2 + $0x70] sm:$0xff]  ;;  %v618_v26 = vcombine.low %v31_v15, %v39_v16  ;;  %v34_v27 = vld [vmem:[#allocation2 + $0x38] sm:$0xff]  ;;  %v620_v29 = vcombine.low %v32_v19, %v40_v20  ;;  %v509_v37 = vunpack.c.0.s8 %v508_v35 }
  0x18   :  { %209 = vmatprep.subr.bf16.mxu0 %v615_v13  ;;  %250 = vmatprep.subr.bf16.mxu1 %v617_v14  ;;  %v42_v28 = vld [vmem:[#allocation2 + $0x78] sm:$0xff]  ;;  %v623_v30 = vcombine.high %v33_v24, %v41_v25  ;;  %v622_v32 = vcombine.low %v33_v24, %v41_v25 }
  0x19   :  { %v625_v31 = vcombine.high %v34_v27, %v42_v28  ;;  %v624_v33 = vcombine.low %v34_v27, %v42_v28  ;;  %v722_v45 = vsub.s32 %v509_v37, %v511_v38 }
  0x1a   :  { %626 = vmatmul.mubr.msk.bf16.vlgmr.msra.gmra.mrb[0].mxu0 %vm123_vm0, %v26_v17  ;;  %627 = vmatmul.mubr.msk.bf16.vlgmr.msra.gmra.mrb[0].mxu1 %vm123_vm0, %v26_v17 }
  0x1b   :  { %210 = vmatpush1.bf16.msra.mxu0 %v614_v18  ;;  %251 = vmatpush1.bf16.msra.mxu1 %v616_v21 }
  0x1c   :  { %241 = vmatprep.mubr.bf16.mxu0 %v674_v0  ;;  %282 = vmatprep.mubr.bf16.mxu1 %v674_v0 }
  0x1d   :  { %291 = vmatprep.subr.bf16.mxu0 %v619_v22  ;;  %332 = vmatprep.subr.bf16.mxu1 %v621_v23 }
  0x22   :  { %628 = vmatmul.mubr.msk.bf16.vlgmr.msra.gmra.mrb[4].mxu0 %vm123_vm0, %v26_v17  ;;  %629 = vmatmul.mubr.msk.bf16.vlgmr.msra.gmra.mrb[4].mxu1 %vm123_vm0, %v26_v17 }
  0x23   :  { %292 = vmatpush1.bf16.msra.mxu0 %v618_v26  ;;  %333 = vmatpush1.bf16.msra.mxu1 %v620_v29 }
  0x24   :  { %323 = vmatprep.mubr.bf16.mxu0 %v674_v0  ;;  %364 = vmatprep.mubr.bf16.mxu1 %v674_v0 }
  0x25   :  { %373 = vmatprep.subr.bf16.mxu0 %v623_v30  ;;  %414 = vmatprep.subr.bf16.mxu1 %v625_v31 }
  0x2a   :  { %630 = vmatmul.mubr.msk.bf16.vlgmr.msra.gmra.mrb[8].mxu0 %vm123_vm0, %v26_v17  ;;  %631 = vmatmul.mubr.msk.bf16.vlgmr.msra.gmra.mrb[8].mxu1 %vm123_vm0, %v26_v17 }
  0x2b   :  { %374 = vmatpush1.bf16.msra.mxu0 %v622_v32  ;;  %415 = vmatpush1.bf16.msra.mxu1 %v624_v33 }
  0x2c   :  { %405 = vmatprep.mubr.bf16.mxu0 %v674_v0  ;;  %446 = vmatprep.mubr.bf16.mxu1 %v674_v0 }
  0x32   :  { %632 = vmatmul.mubr.msk.bf16.vlgmr.msra.gmra.mrb[12].mxu0 %vm123_vm0, %v26_v17  ;;  %633 = vmatmul.mubr.msk.bf16.vlgmr.msra.gmra.mrb[12].mxu1 %vm123_vm0, %v26_v17 }
  0xed   :  { %v161_v39 = vpop.f32.mrb[0].mxu0  ;;  %v202_v41 = vpop.f32.mrb[0].mxu1 }
  0xee   :  { %v455_v40 = vmax.f32 %v161_v39, 0.0  ;;  %v163_v42 = vpop.f32.mrb[1].mxu0  ;;  %v457_v43 = vmax.f32 %v202_v41, 0.0  ;;  %v204_v46 = vpop.f32.mrb[1].mxu1 }
  0xef   :  { %v456_v44 = vmax.f32 %v163_v42, 0.0  ;;  %v165_v47 = vpop.f32.mrb[2].mxu0  ;;  %v458_v48 = vmax.f32 %v204_v46, 0.0  ;;  %v206_v49 = vpop.f32.mrb[2].mxu1 }
  0xf0   :  { %v166_v50 = vpop.f32.mrb[3].mxu0  ;;  %v207_v52 = vpop.f32.mrb[3].mxu1 }
  0xf1   :  { %v634_v51 = vpack.c.bf16 %v456_v44, %v455_v40  ;;  %v635_v53 = vpack.c.bf16 %v458_v48, %v457_v43 }
  0xf3   :  { %v513_v54 = vrot.slane %v634_v51, %v722_v45  ;;  %v520_v55 = vrot.slane %v635_v53, %v722_v45 }
  0xf5   :  { %v243_v56 = vpop.f32.mrb[4].mxu0  ;;  %v535_v57 = vcombine.low %v513_v54, %v520_v55  ;;  %v284_v59 = vpop.f32.mrb[4].mxu1 }
  0xf6   :  { %v459_v58 = vmax.f32 %v243_v56, 0.0  ;;  %v245_v60 = vpop.f32.mrb[5].mxu0  ;;  %v461_v61 = vmax.f32 %v284_v59, 0.0  ;;  %v286_v63 = vpop.f32.mrb[5].mxu1 }
  0xf7   :  { %v460_v62 = vmax.f32 %v245_v60, 0.0  ;;  %v247_v0 = vpop.f32.mrb[6].mxu0  ;;  %v462_v1 = vmax.f32 %v286_v63, 0.0  ;;  %v288_v2 = vpop.f32.mrb[6].mxu1  ;;  %v543_v18 = vrot.slane %v535_v57, %v722_v45 }
  0xf8   :  { %v248_v3 = vpop.f32.mrb[7].mxu0  ;;  %v289_v5 = vpop.f32.mrb[7].mxu1 }
  0xf9   :  { %v636_v4 = vpack.c.bf16 %v460_v62, %v459_v58  ;;  %v637_v6 = vpack.c.bf16 %v462_v1, %v461_v61 }
  0xfb   :  { %v527_v7 = vrot.slane %v636_v4, %v722_v45  ;;  %v534_v8 = vrot.slane %v637_v6, %v722_v45 }
  0xfd   :  { %v325_v9 = vpop.f32.mrb[8].mxu0  ;;  %v536_v10 = vcombine.low %v527_v7, %v534_v8  ;;  %v366_v12 = vpop.f32.mrb[8].mxu1 }
  0xfe   :  { %v463_v11 = vmax.f32 %v325_v9, 0.0  ;;  %v327_v13 = vpop.f32.mrb[9].mxu0  ;;  %v465_v14 = vmax.f32 %v366_v12, 0.0  ;;  %v368_v16 = vpop.f32.mrb[9].mxu1 }
  0xff   :  { %v464_v15 = vmax.f32 %v327_v13, 0.0  ;;  %v329_v17 = vpop.f32.mrb[10].mxu0  ;;  %v550_v19 = vrot.slane %v536_v10, %v722_v45  ;;  %v466_v20 = vmax.f32 %v368_v16, 0.0  ;;  %v370_v21 = vpop.f32.mrb[10].mxu1 }
 0x100   :  { %v330_v22 = vpop.f32.mrb[11].mxu0  ;;  %v371_v24 = vpop.f32.mrb[11].mxu1 }
 0x101   :  { %v638_v23 = vpack.c.bf16 %v464_v15, %v463_v11  ;;  %v551_v25 = vcombine.low %v543_v18, %v550_v19  ;;  %v639_v26 = vpack.c.bf16 %v466_v20, %v465_v14 }
 0x103   :  { %v562_v27 = vrot.slane %v638_v23, %v722_v45  ;;  %603 = vst [vmem:[%s744_s2] sm:$0xff] %v551_v25  ;;  %v569_v28 = vrot.slane %v639_v26, %v722_v45 }
 0x105   :  { %v407_v29 = vpop.f32.mrb[12].mxu0  ;;  %v584_v30 = vcombine.low %v562_v27, %v569_v28  ;;  %v448_v32 = vpop.f32.mrb[12].mxu1 }
 0x106   :  { %v467_v31 = vmax.f32 %v407_v29, 0.0  ;;  %v409_v33 = vpop.f32.mrb[13].mxu0  ;;  %v469_v34 = vmax.f32 %v448_v32, 0.0  ;;  %v450_v36 = vpop.f32.mrb[13].mxu1 }
 0x107   :  { %v468_v35 = vmax.f32 %v409_v33, 0.0  ;;  %v411_v37 = vpop.f32.mrb[14].mxu0  ;;  %v470_v38 = vmax.f32 %v450_v36, 0.0  ;;  %v452_v39 = vpop.f32.mrb[14].mxu1  ;;  %v592_v48 = vrot.slane %v584_v30, %v722_v45 }
 0x108   :  { %v412_v40 = vpop.f32.mrb[15].mxu0  ;;  %v453_v42 = vpop.f32.mrb[15].mxu1 }
 0x109   :  { %v640_v41 = vpack.c.bf16 %v468_v35, %v467_v31  ;;  %v641_v43 = vpack.c.bf16 %v470_v38, %v469_v34 }
 0x10b   :  { %v576_v44 = vrot.slane %v640_v41, %v722_v45  ;;  %v583_v46 = vrot.slane %v641_v43, %v722_v45 }
 0x10d   :  { %v585_v47 = vcombine.low %v576_v44, %v583_v46 }
 0x10f   :  { %v599_v49 = vrot.slane %v585_v47, %v722_v45 }
 0x111   :  { %v600_v50 = vcombine.low %v592_v48, %v599_v49 }
 0x113   :  { %604 = vst [vmem:[%s744_s2 + $0x8] sm:$0xff] %v600_v50 }
 0x114   :  { %609 = vsyncpa [#allocation3], 1 }

// kernel: generator_forward.6
= control target key start
LH: loop header
LB: loop body
LE: loop exit
PB: predicated region body
PF: predicated region fallthrough
CT: control target
= control target key end

     0   :  { %s7334_s3 = inlined_call_operand.vmem [shape: bf16[4,512,512], index: 3, kind: input, shape index: {}]   ;;  %s7335_s1 = inlined_call_operand.vmem [shape: bf16[16,512], index: 1, kind: input, shape index: {}]   ;;  %s7336_s0 = inlined_call_operand.vmem [shape: bf16[16,512], index: 0, kind: input, shape index: {}]   ;;  %s7337_s2 = inlined_call_operand.vmem [shape: bf16[16,512], index: 2, kind: input, shape index: {}]   ;;  %s7338_s4 = inlined_call_operand.vmem [shape: bf16[16,512], index: 4, kind: output, shape index: {0}]   ;;  %s7339_s5 = inlined_call_operand.vmem [shape: bf16[16,512], index: 5, kind: output, shape index: {1}]  }
   0x1   :  { %v4906_v0 = vld [vmem:[%s7334_s3 + $0xc04] ss:$16 sps:$4 sm:$0xff]   ;;  %v4908_v1 = vld [vmem:[%s7334_s3 + $0xc0c] ss:$16 sps:$4 sm:$0xff]   ;;  %v4910_v2 = vld [vmem:[%s7334_s3 + $0xc00] ss:$16 sps:$4 sm:$0xff]  }
   0x2   :  { %945 = vmatprep.subr.bf16.mxu0 %v4906_v0  ;;  %v4911_v3 = vld [vmem:[%s7334_s3 + $0xc08] ss:$16 sps:$4 sm:$0xff]   ;;  %1031 = vmatprep.subr.bf16.mxu1 %v4908_v1  ;;  %v4912_v4 = vld [vmem:[%s7334_s3 + $0xc24] ss:$16 sps:$4 sm:$0xff]   ;;  %v4914_v5 = vld [vmem:[%s7334_s3 + $0xc2c] ss:$16 sps:$4 sm:$0xff]  }
   0x3   :  { %946 = vmatpush1.bf16.msra.mxu0 %v4910_v2  ;;  %1032 = vmatpush1.bf16.msra.mxu1 %v4911_v3  ;;  %v4916_v6 = vld [vmem:[%s7334_s3 + $0xc20] ss:$16 sps:$4 sm:$0xff]   ;;  %v4917_v7 = vld [vmem:[%s7334_s3 + $0xc28] ss:$16 sps:$4 sm:$0xff]   ;;  %v4918_v8 = vld [vmem:[%s7334_s3 + $0xc44] ss:$16 sps:$4 sm:$0xff]  }
   0x4   :  { %947 = vmatprep.subr.bf16.mxu0 %v4912_v4  ;;  %1033 = vmatprep.subr.bf16.mxu1 %v4914_v5  ;;  %v4920_v9 = vld [vmem:[%s7334_s3 + $0xc4c] ss:$16 sps:$4 sm:$0xff]   ;;  %v4922_v10 = vld [vmem:[%s7334_s3 + $0xc40] ss:$16 sps:$4 sm:$0xff]   ;;  %v4923_v11 = vld [vmem:[%s7334_s3 + $0xc48] ss:$16 sps:$4 sm:$0xff]  }
   0x5   :  { %v4924_v12 = vld [vmem:[%s7334_s3 + $0xc64] ss:$16 sps:$4 sm:$0xff]   ;;  %v4926_v13 = vld [vmem:[%s7334_s3 + $0xc6c] ss:$16 sps:$4 sm:$0xff]   ;;  %v4928_v14 = vld [vmem:[%s7334_s3 + $0xc60] ss:$16 sps:$4 sm:$0xff]  }
   0x6   :  { %v4929_v15 = vld [vmem:[%s7334_s3 + $0xc68] ss:$16 sps:$4 sm:$0xff]   ;;  %v4930_v16 = vld [vmem:[%s7334_s3 + $0xc84] ss:$16 sps:$4 sm:$0xff]   ;;  %v4932_v17 = vld [vmem:[%s7334_s3 + $0xc8c] ss:$16 sps:$4 sm:$0xff]  }
   0x7   :  { %948 = vmatpush1.bf16.msra.mxu0 %v4916_v6  ;;  %1034 = vmatpush1.bf16.msra.mxu1 %v4917_v7  ;;  %v4934_v18 = vld [vmem:[%s7334_s3 + $0xc80] ss:$16 sps:$4 sm:$0xff]   ;;  %v4935_v19 = vld [vmem:[%s7334_s3 + $0xc88] ss:$16 sps:$4 sm:$0xff]   ;;  %v4936_v20 = vld [vmem:[%s7334_s3 + $0xca4] ss:$16 sps:$4 sm:$0xff]  }
   0x8   :  { %949 = vmatprep.subr.bf16.mxu0 %v4918_v8  ;;  %1035 = vmatprep.subr.bf16.mxu1 %v4920_v9  ;;  %v4938_v21 = vld [vmem:[%s7334_s3 + $0xcac] ss:$16 sps:$4 sm:$0xff]   ;;  %v4940_v22 = vld [vmem:[%s7334_s3 + $0xca0] ss:$16 sps:$4 sm:$0xff]   ;;  %v4941_v23 = vld [vmem:[%s7334_s3 + $0xca8] ss:$16 sps:$4 sm:$0xff]  }
   0x9   :  { %v4942_v24 = vld [vmem:[%s7334_s3 + $0xcc4] ss:$16 sps:$4 sm:$0xff]   ;;  %v4944_v25 = vld [vmem:[%s7334_s3 + $0xccc] ss:$16 sps:$4 sm:$0xff]   ;;  %v4946_v26 = vld [vmem:[%s7334_s3 + $0xcc0] ss:$16 sps:$4 sm:$0xff]  }
   0xa   :  { %v4947_v27 = vld [vmem:[%s7334_s3 + $0xcc8] ss:$16 sps:$4 sm:$0xff]   ;;  %v4948_v28 = vld [vmem:[%s7334_s3 + $0xce4] ss:$16 sps:$4 sm:$0xff]   ;;  %v4950_v29 = vld [vmem:[%s7334_s3 + $0xcec] ss:$16 sps:$4 sm:$0xff]  }
   0xb   :  { %950 = vmatpush1.bf16.msra.mxu0 %v4922_v10  ;;  %1036 = vmatpush1.bf16.msra.mxu1 %v4923_v11  ;;  %v4952_v30 = vld [vmem:[%s7334_s3 + $0xce0] ss:$16 sps:$4 sm:$0xff]   ;;  %v4953_v31 = vld [vmem:[%s7334_s3 + $0xce8] ss:$16 sps:$4 sm:$0xff]   ;;  %v4954_v32 = vld [vmem:[%s7334_s3 + $0xd04] ss:$16 sps:$4 sm:$0xff]  }
   0xc   :  { %951 = vmatprep.subr.bf16.mxu0 %v4924_v12  ;;  %1037 = vmatprep.subr.bf16.mxu1 %v4926_v13  ;;  %v4956_v33 = vld [vmem:[%s7334_s3 + $0xd0c] ss:$16 sps:$4 sm:$0xff]   ;;  %v4958_v34 = vld [vmem:[%s7334_s3 + $0xd00] ss:$16 sps:$4 sm:$0xff]   ;;  %v4959_v35 = vld [vmem:[%s7334_s3 + $0xd08] ss:$16 sps:$4 sm:$0xff]  }
   0xd   :  { %v4960_v36 = vld [vmem:[%s7334_s3 + $0xd24] ss:$16 sps:$4 sm:$0xff]   ;;  %v4962_v37 = vld [vmem:[%s7334_s3 + $0xd2c] ss:$16 sps:$4 sm:$0xff]   ;;  %v4964_v38 = vld [vmem:[%s7334_s3 + $0xd20] ss:$16 sps:$4 sm:$0xff]  }
   0xe   :  { %v4965_v39 = vld [vmem:[%s7334_s3 + $0xd28] ss:$16 sps:$4 sm:$0xff]   ;;  %v4966_v40 = vld [vmem:[%s7334_s3 + $0xd44] ss:$16 sps:$4 sm:$0xff]   ;;  %v4968_v41 = vld [vmem:[%s7334_s3 + $0xd4c] ss:$16 sps:$4 sm:$0xff]  }
   0xf   :  { %952 = vmatpush1.bf16.msra.mxu0 %v4928_v14  ;;  %1038 = vmatpush1.bf16.msra.mxu1 %v4929_v15  ;;  %v4970_v42 = vld [vmem:[%s7334_s3 + $0xd40] ss:$16 sps:$4 sm:$0xff]   ;;  %v4971_v43 = vld [vmem:[%s7334_s3 + $0xd48] ss:$16 sps:$4 sm:$0xff]   ;;  %v4972_v44 = vld [vmem:[%s7334_s3 + $0xd64] ss:$16 sps:$4 sm:$0xff]  }
  0x10   :  { %953 = vmatprep.subr.bf16.mxu0 %v4930_v16  ;;  %1039 = vmatprep.subr.bf16.mxu1 %v4932_v17  ;;  %v4974_v45 = vld [vmem:[%s7334_s3 + $0xd6c] ss:$16 sps:$4 sm:$0xff]   ;;  %v4976_v46 = vld [vmem:[%s7334_s3 + $0xd60] ss:$16 sps:$4 sm:$0xff]   ;;  %v4977_v47 = vld [vmem:[%s7334_s3 + $0xd68] ss:$16 sps:$4 sm:$0xff]  }
  0x11   :  { %v5004_v48 = vld [vmem:[%s7335_s1 + $0x4] ss:$16 sps:$4 sm:$0xff]   ;;  %v4980_v50 = vld [vmem:[%s7334_s3 + $0xd8c] ss:$16 sps:$4 sm:$0xff]   ;;  %v4982_v51 = vld [vmem:[%s7334_s3 + $0xd80] ss:$16 sps:$4 sm:$0xff]  }
  0x12   :  { %v4978_v49 = vld [vmem:[%s7334_s3 + $0xd84] ss:$16 sps:$4 sm:$0xff]   ;;  %977 = vmatprep.mubr.bf16.mxu0 %v5004_v48  ;;  %1063 = vmatprep.mubr.bf16.mxu1 %v5004_v48  ;;  %v4983_v52 = vld [vmem:[%s7334_s3 + $0xd88] ss:$16 sps:$4 sm:$0xff]   ;;  %v4986_v54 = vld [vmem:[%s7334_s3 + $0xdac] ss:$16 sps:$4 sm:$0xff]  }
  0x13   :  { %954 = vmatpush1.bf16.msra.mxu0 %v4934_v18  ;;  %1040 = vmatpush1.bf16.msra.mxu1 %v4935_v19  ;;  %v4984_v53 = vld [vmem:[%s7334_s3 + $0xda4] ss:$16 sps:$4 sm:$0xff]   ;;  %v4988_v55 = vld [vmem:[%s7334_s3 + $0xda0] ss:$16 sps:$4 sm:$0xff]   ;;  %v4989_v56 = vld [vmem:[%s7334_s3 + $0xda8] ss:$16 sps:$4 sm:$0xff]  }
  0x14   :  { %955 = vmatprep.subr.bf16.mxu0 %v4936_v20  ;;  %1041 = vmatprep.subr.bf16.mxu1 %v4938_v21  ;;  %v4990_v57 = vld [vmem:[%s7334_s3 + $0xdc4] ss:$16 sps:$4 sm:$0xff]   ;;  %v4992_v58 = vld [vmem:[%s7334_s3 + $0xdcc] ss:$16 sps:$4 sm:$0xff]   ;;  %v4994_v59 = vld [vmem:[%s7334_s3 + $0xdc0] ss:$16 sps:$4 sm:$0xff]  }
  0x15   :  { %v4995_v60 = vld [vmem:[%s7334_s3 + $0xdc8] ss:$16 sps:$4 sm:$0xff]   ;;  %v4996_v61 = vld [vmem:[%s7334_s3 + $0xde4] ss:$16 sps:$4 sm:$0xff]   ;;  %v4998_v62 = vld [vmem:[%s7334_s3 + $0xdec] ss:$16 sps:$4 sm:$0xff]  }
  0x16   :  { %v5000_v63 = vld [vmem:[%s7334_s3 + $0xde0] ss:$16 sps:$4 sm:$0xff]   ;;  %v5001_v0 = vld [vmem:[%s7334_s3 + $0xde8] ss:$16 sps:$4 sm:$0xff]   ;;  %v5007_v1 = vld [vmem:[%s7334_s3 + $0xe04] ss:$16 sps:$4 sm:$0xff]  }
  0x17   :  { %956 = vmatpush1.bf16.msra.mxu0 %v4940_v22  ;;  %1042 = vmatpush1.bf16.msra.mxu1 %v4941_v23  ;;  %v5010_v2 = vld [vmem:[%s7334_s3 + $0xe0c] ss:$16 sps:$4 sm:$0xff]   ;;  %v5002_v3 = vld [vmem:[%s7335_s1] ss:$16 sps:$4 sm:$0xff]   ;;  %v5008_v5 = vld [vmem:[%s7334_s3 + $0xe08] ss:$16 sps:$4 sm:$0xff]  }
  0x18   :  { %957 = vmatprep.subr.bf16.mxu0 %v4942_v24  ;;  %1043 = vmatprep.subr.bf16.mxu1 %v4944_v25  ;;  %v5005_v4 = vld [vmem:[%s7334_s3 + $0xe00] ss:$16 sps:$4 sm:$0xff]   ;;  %v5013_v6 = vld [vmem:[%s7334_s3 + $0xe24] ss:$16 sps:$4 sm:$0xff]   ;;  %v5016_v7 = vld [vmem:[%s7334_s3 + $0xe2c] ss:$16 sps:$4 sm:$0xff]  }
  0x19   :  { %v5011_v8 = vld [vmem:[%s7334_s3 + $0xe20] ss:$16 sps:$4 sm:$0xff]   ;;  %v5014_v9 = vld [vmem:[%s7334_s3 + $0xe28] ss:$16 sps:$4 sm:$0xff]   ;;  %v5019_v10 = vld [vmem:[%s7334_s3 + $0xe44] ss:$16 sps:$4 sm:$0xff]  }
  0x1a   :  { %v5022_v11 = vld [vmem:[%s7334_s3 + $0xe4c] ss:$16 sps:$4 sm:$0xff]   ;;  %v5017_v12 = vld [vmem:[%s7334_s3 + $0xe40] ss:$16 sps:$4 sm:$0xff]   ;;  %v5020_v13 = vld [vmem:[%s7334_s3 + $0xe48] ss:$16 sps:$4 sm:$0xff]  }
  0x1b   :  { %958 = vmatpush1.bf16.msra.mxu0 %v4946_v26  ;;  %1044 = vmatpush1.bf16.msra.mxu1 %v4947_v27  ;;  %v5025_v14 = vld [vmem:[%s7334_s3 + $0xe64] ss:$16 sps:$4 sm:$0xff]   ;;  %v5028_v15 = vld [vmem:[%s7334_s3 + $0xe6c] ss:$16 sps:$4 sm:$0xff]   ;;  %v5023_v16 = vld [vmem:[%s7334_s3 + $0xe60] ss:$16 sps:$4 sm:$0xff]  }
  0x1c   :  { %959 = vmatprep.subr.bf16.mxu0 %v4948_v28  ;;  %1045 = vmatprep.subr.bf16.mxu1 %v4950_v29  ;;  %v5026_v17 = vld [vmem:[%s7334_s3 + $0xe68] ss:$16 sps:$4 sm:$0xff]   ;;  %v5031_v18 = vld [vmem:[%s7334_s3 + $0xe84] ss:$16 sps:$4 sm:$0xff]   ;;  %v5034_v19 = vld [vmem:[%s7334_s3 + $0xe8c] ss:$16 sps:$4 sm:$0xff]  }
  0x1d   :  { %v5029_v20 = vld [vmem:[%s7334_s3 + $0xe80] ss:$16 sps:$4 sm:$0xff]   ;;  %v5032_v21 = vld [vmem:[%s7334_s3 + $0xe88] ss:$16 sps:$4 sm:$0xff]   ;;  %v5037_v22 = vld [vmem:[%s7334_s3 + $0xea4] ss:$16 sps:$4 sm:$0xff]  }
  0x1e   :  { %v5040_v23 = vld [vmem:[%s7334_s3 + $0xeac] ss:$16 sps:$4 sm:$0xff]   ;;  %v5035_v24 = vld [vmem:[%s7334_s3 + $0xea0] ss:$16 sps:$4 sm:$0xff]   ;;  %v5038_v25 = vld [vmem:[%s7334_s3 + $0xea8] ss:$16 sps:$4 sm:$0xff]  }
  0x1f   :  { %960 = vmatpush1.bf16.msra.mxu0 %v4952_v30  ;;  %1046 = vmatpush1.bf16.msra.mxu1 %v4953_v31  ;;  %v5043_v26 = vld [vmem:[%s7334_s3 + $0xec4] ss:$16 sps:$4 sm:$0xff]   ;;  %v5046_v27 = vld [vmem:[%s7334_s3 + $0xecc] ss:$16 sps:$4 sm:$0xff]   ;;  %v5041_v28 = vld [vmem:[%s7334_s3 + $0xec0] ss:$16 sps:$4 sm:$0xff]  }
  0x20   :  { %961 = vmatprep.subr.bf16.mxu0 %v4954_v32  ;;  %1047 = vmatprep.subr.bf16.mxu1 %v4956_v33  ;;  %v5044_v29 = vld [vmem:[%s7334_s3 + $0xec8] ss:$16 sps:$4 sm:$0xff]   ;;  %v5103_v30 = vld [vmem:[%s7335_s1 + $0xc] ss:$16 sps:$4 sm:$0xff]   ;;  %v5049_v31 = vld [vmem:[%s7334_s3 + $0xee4] ss:$16 sps:$4 sm:$0xff]  }
  0x21   :  { %v5052_v32 = vld [vmem:[%s7334_s3 + $0xeec] ss:$16 sps:$4 sm:$0xff]   ;;  %v5047_v33 = vld [vmem:[%s7334_s3 + $0xee0] ss:$16 sps:$4 sm:$0xff]  }
  0x22   :  { %v5076_v48 = vld [vmem:[%s7334_s3 + $0xf6c] ss:$16 sps:$4 sm:$0xff]  }
  0x23   :  { %962 = vmatpush1.bf16.msra.mxu0 %v4958_v34  ;;  %1048 = vmatpush1.bf16.msra.mxu1 %v4959_v35  ;;  %v5050_v34 = vld [vmem:[%s7334_s3 + $0xee8] ss:$16 sps:$4 sm:$0xff]   ;;  %v5055_v35 = vld [vmem:[%s7334_s3 + $0xf04] ss:$16 sps:$4 sm:$0xff]  }
  0x24   :  { %963 = vmatprep.subr.bf16.mxu0 %v4960_v36  ;;  %1049 = vmatprep.subr.bf16.mxu1 %v4962_v37  ;;  %v5058_v36 = vld [vmem:[%s7334_s3 + $0xf0c] ss:$16 sps:$4 sm:$0xff]   ;;  %v5053_v37 = vld [vmem:[%s7334_s3 + $0xf00] ss:$16 sps:$4 sm:$0xff]  }
  0x27   :  { %964 = vmatpush1.bf16.msra.mxu0 %v4964_v38  ;;  %1050 = vmatpush1.bf16.msra.mxu1 %v4965_v39  ;;  %v5056_v38 = vld [vmem:[%s7334_s3 + $0xf08] ss:$16 sps:$4 sm:$0xff]   ;;  %v5061_v39 = vld [vmem:[%s7334_s3 + $0xf24] ss:$16 sps:$4 sm:$0xff]  }
  0x28   :  { %965 = vmatprep.subr.bf16.mxu0 %v4966_v40  ;;  %1051 = vmatprep.subr.bf16.mxu1 %v4968_v41  ;;  %v5064_v40 = vld [vmem:[%s7334_s3 + $0xf2c] ss:$16 sps:$4 sm:$0xff]   ;;  %v5059_v41 = vld [vmem:[%s7334_s3 + $0xf20] ss:$16 sps:$4 sm:$0xff]  }
  0x2b   :  { %966 = vmatpush1.bf16.msra.mxu0 %v4970_v42  ;;  %1052 = vmatpush1.bf16.msra.mxu1 %v4971_v43  ;;  %v5062_v42 = vld [vmem:[%s7334_s3 + $0xf28] ss:$16 sps:$4 sm:$0xff]   ;;  %v5067_v43 = vld [vmem:[%s7334_s3 + $0xf44] ss:$16 sps:$4 sm:$0xff]  }
  0x2c   :  { %967 = vmatprep.subr.bf16.mxu0 %v4972_v44  ;;  %1053 = vmatprep.subr.bf16.mxu1 %v4974_v45  ;;  %v5070_v44 = vld [vmem:[%s7334_s3 + $0xf4c] ss:$16 sps:$4 sm:$0xff]   ;;  %v5065_v45 = vld [vmem:[%s7334_s3 + $0xf40] ss:$16 sps:$4 sm:$0xff]  }
  0x2f   :  { %968 = vmatpush1.bf16.msra.mxu0 %v4976_v46  ;;  %1054 = vmatpush1.bf16.msra.mxu1 %v4977_v47  ;;  %v5068_v46 = vld [vmem:[%s7334_s3 + $0xf48] ss:$16 sps:$4 sm:$0xff]   ;;  %v5073_v47 = vld [vmem:[%s7334_s3 + $0xf64] ss:$16 sps:$4 sm:$0xff]  }
  0x30   :  { %969 = vmatprep.subr.bf16.mxu0 %v4978_v49  ;;  %1055 = vmatprep.subr.bf16.mxu1 %v4980_v50  ;;  %v5071_v49 = vld [vmem:[%s7334_s3 + $0xf60] ss:$16 sps:$4 sm:$0xff]   ;;  %v5074_v50 = vld [vmem:[%s7334_s3 + $0xf68] ss:$16 sps:$4 sm:$0xff]  }
  0x33   :  { %970 = vmatpush1.bf16.msra.mxu0 %v4982_v51  ;;  %1056 = vmatpush1.bf16.msra.mxu1 %v4983_v52  ;;  %v5079_v51 = vld [vmem:[%s7334_s3 + $0xf84] ss:$16 sps:$4 sm:$0xff]   ;;  %v5082_v52 = vld [vmem:[%s7334_s3 + $0xf8c] ss:$16 sps:$4 sm:$0xff]  }
  0x34   :  { %971 = vmatprep.subr.bf16.mxu0 %v4984_v53  ;;  %1057 = vmatprep.subr.bf16.mxu1 %v4986_v54  ;;  %v5077_v53 = vld [vmem:[%s7334_s3 + $0xf80] ss:$16 sps:$4 sm:$0xff]   ;;  %v5080_v54 = vld [vmem:[%s7334_s3 + $0xf88] ss:$16 sps:$4 sm:$0xff]  }
  0x37   :  { %972 = vmatpush1.bf16.msra.mxu0 %v4988_v55  ;;  %1058 = vmatpush1.bf16.msra.mxu1 %v4989_v56  ;;  %v5085_v55 = vld [vmem:[%s7334_s3 + $0xfa4] ss:$16 sps:$4 sm:$0xff]   ;;  %v5088_v56 = vld [vmem:[%s7334_s3 + $0xfac] ss:$16 sps:$4 sm:$0xff]  }
  0x38   :  { %973 = vmatprep.subr.bf16.mxu0 %v4990_v57  ;;  %1059 = vmatprep.subr.bf16.mxu1 %v4992_v58  ;;  %v5083_v57 = vld [vmem:[%s7334_s3 + $0xfa0] ss:$16 sps:$4 sm:$0xff]   ;;  %v5086_v58 = vld [vmem:[%s7334_s3 + $0xfa8] ss:$16 sps:$4 sm:$0xff]  }
  0x3b   :  { %974 = vmatpush1.bf16.msra.mxu0 %v4994_v59  ;;  %1060 = vmatpush1.bf16.msra.mxu1 %v4995_v60  ;;  %v5091_v59 = vld [vmem:[%s7334_s3 + $0xfc4] ss:$16 sps:$4 sm:$0xff]   ;;  %v5094_v60 = vld [vmem:[%s7334_s3 + $0xfcc] ss:$16 sps:$4 sm:$0xff]  }
  0x3c   :  { %975 = vmatprep.subr.bf16.mxu0 %v4996_v61  ;;  %1061 = vmatprep.subr.bf16.mxu1 %v4998_v62  ;;  %v5089_v61 = vld [vmem:[%s7334_s3 + $0xfc0] ss:$16 sps:$4 sm:$0xff]   ;;  %v5092_v62 = vld [vmem:[%s7334_s3 + $0xfc8] ss:$16 sps:$4 sm:$0xff]  }
  0x3f   :  { %976 = vmatpush1.bf16.msra.mxu0 %v5000_v63  ;;  %1062 = vmatpush1.bf16.msra.mxu1 %v5001_v0  ;;  %v5097_v63 = vld [vmem:[%s7334_s3 + $0xfe4] ss:$16 sps:$4 sm:$0xff]   ;;  %v5100_v0 = vld [vmem:[%s7334_s3 + $0xfec] ss:$16 sps:$4 sm:$0xff]  }
  0x40   :  { %988 = vmatprep.subr.bf16.mxu0 %v5007_v1  ;;  %1074 = vmatprep.subr.bf16.mxu1 %v5010_v2  ;;  %v5095_v1 = vld [vmem:[%s7334_s3 + $0xfe0] ss:$16 sps:$4 sm:$0xff]   ;;  %v5098_v2 = vld [vmem:[%s7334_s3 + $0xfe8] ss:$16 sps:$4 sm:$0xff]  }
  0x42   :  { %978 = vmatmul.mubr.bf16.vlgmr.msra.gmra.mrb[0].mxu0 %v5002_v3  ;;  %1064 = vmatmul.mubr.bf16.vlgmr.msra.gmra.mrb[0].mxu1 %v5002_v3  ;;  %v5106_v3 = vld [vmem:[%s7334_s3 + $0x404] ss:$16 sps:$4 sm:$0xff]  }
  0x43   :  { %989 = vmatpush1.bf16.msra.mxu0 %v5005_v4  ;;  %1075 = vmatpush1.bf16.msra.mxu1 %v5008_v5  ;;  %v5109_v4 = vld [vmem:[%s7334_s3 + $0x40c] ss:$16 sps:$4 sm:$0xff]   ;;  %v5101_v5 = vld [vmem:[%s7335_s1 + $0x8] ss:$16 sps:$4 sm:$0xff]  }
  0x44   :  { %990 = vmatprep.subr.bf16.mxu0 %v5013_v6  ;;  %1076 = vmatprep.subr.bf16.mxu1 %v5016_v7  ;;  %v5104_v6 = vld [vmem:[%s7334_s3 + $0x400] ss:$16 sps:$4 sm:$0xff]   ;;  %v5107_v7 = vld [vmem:[%s7334_s3 + $0x408] ss:$16 sps:$4 sm:$0xff]  }
  0x45   :  { %1020 = vmatprep.mubr.bf16.mxu0 %v5103_v30  ;;  %1106 = vmatprep.mubr.bf16.mxu1 %v5103_v30  ;;  %v5145_v30 = vld [vmem:[%s7334_s3 + $0x4cc] ss:$16 sps:$4 sm:$0xff]  }
  0x47   :  { %991 = vmatpush1.bf16.msra.mxu0 %v5011_v8  ;;  %1077 = vmatpush1.bf16.msra.mxu1 %v5014_v9  ;;  %v5112_v8 = vld [vmem:[%s7334_s3 + $0x424] ss:$16 sps:$4 sm:$0xff]   ;;  %v5115_v9 = vld [vmem:[%s7334_s3 + $0x42c] ss:$16 sps:$4 sm:$0xff]  }
  0x48   :  { %992 = vmatprep.subr.bf16.mxu0 %v5019_v10  ;;  %1078 = vmatprep.subr.bf16.mxu1 %v5022_v11  ;;  %v5110_v10 = vld [vmem:[%s7334_s3 + $0x420] ss:$16 sps:$4 sm:$0xff]   ;;  %v5200_v11 = vld [vmem:[%s7336_s0 + $0x4] ss:$16 sps:$4 sm:$0xff]  }
  0x4b   :  { %993 = vmatpush1.bf16.msra.mxu0 %v5017_v12  ;;  %1079 = vmatpush1.bf16.msra.mxu1 %v5020_v13  ;;  %v5113_v12 = vld [vmem:[%s7334_s3 + $0x428] ss:$16 sps:$4 sm:$0xff]   ;;  %v5118_v13 = vld [vmem:[%s7334_s3 + $0x444] ss:$16 sps:$4 sm:$0xff]  }
  0x4c   :  { %994 = vmatprep.subr.bf16.mxu0 %v5025_v14  ;;  %1080 = vmatprep.subr.bf16.mxu1 %v5028_v15  ;;  %v5121_v14 = vld [vmem:[%s7334_s3 + $0x44c] ss:$16 sps:$4 sm:$0xff]   ;;  %v5116_v15 = vld [vmem:[%s7334_s3 + $0x440] ss:$16 sps:$4 sm:$0xff]  }
  0x4f   :  { %995 = vmatpush1.bf16.msra.mxu0 %v5023_v16  ;;  %1081 = vmatpush1.bf16.msra.mxu1 %v5026_v17  ;;  %v5119_v16 = vld [vmem:[%s7334_s3 + $0x448] ss:$16 sps:$4 sm:$0xff]   ;;  %v5124_v17 = vld [vmem:[%s7334_s3 + $0x464] ss:$16 sps:$4 sm:$0xff]  }
  0x50   :  { %996 = vmatprep.subr.bf16.mxu0 %v5031_v18  ;;  %1082 = vmatprep.subr.bf16.mxu1 %v5034_v19  ;;  %v5127_v18 = vld [vmem:[%s7334_s3 + $0x46c] ss:$16 sps:$4 sm:$0xff]   ;;  %v5122_v19 = vld [vmem:[%s7334_s3 + $0x460] ss:$16 sps:$4 sm:$0xff]  }
  0x53   :  { %997 = vmatpush1.bf16.msra.mxu0 %v5029_v20  ;;  %1083 = vmatpush1.bf16.msra.mxu1 %v5032_v21  ;;  %v5125_v20 = vld [vmem:[%s7334_s3 + $0x468] ss:$16 sps:$4 sm:$0xff]   ;;  %v5130_v21 = vld [vmem:[%s7334_s3 + $0x484] ss:$16 sps:$4 sm:$0xff]  }
  0x54   :  { %998 = vmatprep.subr.bf16.mxu0 %v5037_v22  ;;  %1084 = vmatprep.subr.bf16.mxu1 %v5040_v23  ;;  %v5133_v22 = vld [vmem:[%s7334_s3 + $0x48c] ss:$16 sps:$4 sm:$0xff]   ;;  %v5128_v23 = vld [vmem:[%s7334_s3 + $0x480] ss:$16 sps:$4 sm:$0xff]  }
  0x57   :  { %999 = vmatpush1.bf16.msra.mxu0 %v5035_v24  ;;  %1085 = vmatpush1.bf16.msra.mxu1 %v5038_v25  ;;  %v5131_v24 = vld [vmem:[%s7334_s3 + $0x488] ss:$16 sps:$4 sm:$0xff]   ;;  %v5136_v25 = vld [vmem:[%s7334_s3 + $0x4a4] ss:$16 sps:$4 sm:$0xff]  }
  0x58   :  { %1000 = vmatprep.subr.bf16.mxu0 %v5043_v26  ;;  %1086 = vmatprep.subr.bf16.mxu1 %v5046_v27  ;;  %v5139_v26 = vld [vmem:[%s7334_s3 + $0x4ac] ss:$16 sps:$4 sm:$0xff]   ;;  %v5134_v27 = vld [vmem:[%s7334_s3 + $0x4a0] ss:$16 sps:$4 sm:$0xff]  }
  0x5b   :  { %1001 = vmatpush1.bf16.msra.mxu0 %v5041_v28  ;;  %1087 = vmatpush1.bf16.msra.mxu1 %v5044_v29  ;;  %v5137_v28 = vld [vmem:[%s7334_s3 + $0x4a8] ss:$16 sps:$4 sm:$0xff]   ;;  %v5142_v29 = vld [vmem:[%s7334_s3 + $0x4c4] ss:$16 sps:$4 sm:$0xff]  }
  0x5c   :  { %1002 = vmatprep.subr.bf16.mxu0 %v5049_v31  ;;  %1088 = vmatprep.subr.bf16.mxu1 %v5052_v32  ;;  %v5140_v31 = vld [vmem:[%s7334_s3 + $0x4c0] ss:$16 sps:$4 sm:$0xff]   ;;  %v5143_v32 = vld [vmem:[%s7334_s3 + $0x4c8] ss:$16 sps:$4 sm:$0xff]  }
  0x5f   :  { %1003 = vmatpush1.bf16.msra.mxu0 %v5047_v33  ;;  %1089 = vmatpush1.bf16.msra.mxu1 %v5050_v34  ;;  %v5148_v33 = vld [vmem:[%s7334_s3 + $0x4e4] ss:$16 sps:$4 sm:$0xff]   ;;  %v5151_v34 = vld [vmem:[%s7334_s3 + $0x4ec] ss:$16 sps:$4 sm:$0xff]  }
  0x60   :  { %1004 = vmatprep.subr.bf16.mxu0 %v5055_v35  ;;  %1090 = vmatprep.subr.bf16.mxu1 %v5058_v36  ;;  %v5146_v35 = vld [vmem:[%s7334_s3 + $0x4e0] ss:$16 sps:$4 sm:$0xff]   ;;  %v5149_v36 = vld [vmem:[%s7334_s3 + $0x4e8] ss:$16 sps:$4 sm:$0xff]  }
  0x63   :  { %1005 = vmatpush1.bf16.msra.mxu0 %v5053_v37  ;;  %1091 = vmatpush1.bf16.msra.mxu1 %v5056_v38  ;;  %v5154_v37 = vld [vmem:[%s7334_s3 + $0x504] ss:$16 sps:$4 sm:$0xff]   ;;  %v5157_v38 = vld [vmem:[%s7334_s3 + $0x50c] ss:$16 sps:$4 sm:$0xff]  }
  0x64   :  { %1006 = vmatprep.subr.bf16.mxu0 %v5061_v39  ;;  %1092 = vmatprep.subr.bf16.mxu1 %v5064_v40  ;;  %v5152_v39 = vld [vmem:[%s7334_s3 + $0x500] ss:$16 sps:$4 sm:$0xff]   ;;  %v5155_v40 = vld [vmem:[%s7334_s3 + $0x508] ss:$16 sps:$4 sm:$0xff]  }
  0x67   :  { %1007 = vmatpush1.bf16.msra.mxu0 %v5059_v41  ;;  %1093 = vmatpush1.bf16.msra.mxu1 %v5062_v42  ;;  %v5160_v41 = vld [vmem:[%s7334_s3 + $0x524] ss:$16 sps:$4 sm:$0xff]   ;;  %v5163_v42 = vld [vmem:[%s7334_s3 + $0x52c] ss:$16 sps:$4 sm:$0xff]  }
  0x68   :  { %1008 = vmatprep.subr.bf16.mxu0 %v5067_v43  ;;  %1094 = vmatprep.subr.bf16.mxu1 %v5070_v44  ;;  %v5158_v43 = vld [vmem:[%s7334_s3 + $0x520] ss:$16 sps:$4 sm:$0xff]   ;;  %v5161_v44 = vld [vmem:[%s7334_s3 + $0x528] ss:$16 sps:$4 sm:$0xff]  }
  0x6b   :  { %1009 = vmatpush1.bf16.msra.mxu0 %v5065_v45  ;;  %1095 = vmatpush1.bf16.msra.mxu1 %v5068_v46  ;;  %v5166_v45 = vld [vmem:[%s7334_s3 + $0x544] ss:$16 sps:$4 sm:$0xff]   ;;  %v5169_v46 = vld [vmem:[%s7334_s3 + $0x54c] ss:$16 sps:$4 sm:$0xff]  }
  0x6c   :  { %1010 = vmatprep.subr.bf16.mxu0 %v5073_v47  ;;  %1096 = vmatprep.subr.bf16.mxu1 %v5076_v48  ;;  %v5164_v47 = vld [vmem:[%s7334_s3 + $0x540] ss:$16 sps:$4 sm:$0xff]   ;;  %v5167_v48 = vld [vmem:[%s7334_s3 + $0x548] ss:$16 sps:$4 sm:$0xff]  }
  0x6f   :  { %1011 = vmatpush1.bf16.msra.mxu0 %v5071_v49  ;;  %1097 = vmatpush1.bf16.msra.mxu1 %v5074_v50  ;;  %v5172_v49 = vld [vmem:[%s7334_s3 + $0x564] ss:$16 sps:$4 sm:$0xff]   ;;  %v5175_v50 = vld [vmem:[%s7334_s3 + $0x56c] ss:$16 sps:$4 sm:$0xff]  }
  0x70   :  { %1012 = vmatprep.subr.bf16.mxu0 %v5079_v51  ;;  %1098 = vmatprep.subr.bf16.mxu1 %v5082_v52  ;;  %v5170_v51 = vld [vmem:[%s7334_s3 + $0x560] ss:$16 sps:$4 sm:$0xff]   ;;  %v5173_v52 = vld [vmem:[%s7334_s3 + $0x568] ss:$16 sps:$4 sm:$0xff]  }
  0x73   :  { %1013 = vmatpush1.bf16.msra.mxu0 %v5077_v53  ;;  %1099 = vmatpush1.bf16.msra.mxu1 %v5080_v54  ;;  %v5178_v53 = vld [vmem:[%s7334_s3 + $0x584] ss:$16 sps:$4 sm:$0xff]   ;;  %v5181_v54 = vld [vmem:[%s7334_s3 + $0x58c] ss:$16 sps:$4 sm:$0xff]  }
  0x74   :  { %1014 = vmatprep.subr.bf16.mxu0 %v5085_v55  ;;  %1100 = vmatprep.subr.bf16.mxu1 %v5088_v56  ;;  %v5176_v55 = vld [vmem:[%s7334_s3 + $0x580] ss:$16 sps:$4 sm:$0xff]   ;;  %v5179_v56 = vld [vmem:[%s7334_s3 + $0x588] ss:$16 sps:$4 sm:$0xff]  }
  0x77   :  { %1015 = vmatpush1.bf16.msra.mxu0 %v5083_v57  ;;  %1101 = vmatpush1.bf16.msra.mxu1 %v5086_v58  ;;  %v5184_v57 = vld [vmem:[%s7334_s3 + $0x5a4] ss:$16 sps:$4 sm:$0xff]   ;;  %v5187_v58 = vld [vmem:[%s7334_s3 + $0x5ac] ss:$16 sps:$4 sm:$0xff]  }
  0x78   :  { %1016 = vmatprep.subr.bf16.mxu0 %v5091_v59  ;;  %1102 = vmatprep.subr.bf16.mxu1 %v5094_v60  ;;  %v5182_v59 = vld [vmem:[%s7334_s3 + $0x5a0] ss:$16 sps:$4 sm:$0xff]   ;;  %v5185_v60 = vld [vmem:[%s7334_s3 + $0x5a8] ss:$16 sps:$4 sm:$0xff]  }
  0x7b   :  { %1017 = vmatpush1.bf16.msra.mxu0 %v5089_v61  ;;  %1103 = vmatpush1.bf16.msra.mxu1 %v5092_v62  ;;  %v5190_v61 = vld [vmem:[%s7334_s3 + $0x5c4] ss:$16 sps:$4 sm:$0xff]   ;;  %v5193_v62 = vld [vmem:[%s7334_s3 + $0x5cc] ss:$16 sps:$4 sm:$0xff]  }
  0x7c   :  { %1018 = vmatprep.subr.bf16.mxu0 %v5097_v63  ;;  %1104 = vmatprep.subr.bf16.mxu1 %v5100_v0  ;;  %v5188_v63 = vld [vmem:[%s7334_s3 + $0x5c0] ss:$16 sps:$4 sm:$0xff]   ;;  %v5191_v0 = vld [vmem:[%s7334_s3 + $0x5c8] ss:$16 sps:$4 sm:$0xff]  }
  0x7f   :  { %1019 = vmatpush1.bf16.msra.mxu0 %v5095_v1  ;;  %1105 = vmatpush1.bf16.msra.mxu1 %v5098_v2  ;;  %v5196_v1 = vld [vmem:[%s7334_s3 + $0x5e4] ss:$16 sps:$4 sm:$0xff]   ;;  %v5199_v2 = vld [vmem:[%s7334_s3 + $0x5ec] ss:$16 sps:$4 sm:$0xff]  }
  0x80   :  { %1777 = vmatprep.subr.bf16.mxu0 %v5106_v3  ;;  %1863 = vmatprep.subr.bf16.mxu1 %v5109_v4  ;;  %v5194_v3 = vld [vmem:[%s7334_s3 + $0x5e0] ss:$16 sps:$4 sm:$0xff]   ;;  %v5197_v4 = vld [vmem:[%s7334_s3 + $0x5e8] ss:$16 sps:$4 sm:$0xff]  }
  0x82   :  { %1021 = vmatmul.mubr.bf16.vlgmr.msra.gmra.mrb[0].mxu0 %v5101_v5  ;;  %1107 = vmatmul.mubr.bf16.vlgmr.msra.gmra.mrb[0].mxu1 %v5101_v5  ;;  %v5204_v5 = vld [vmem:[%s7334_s3 + $0x604] ss:$16 sps:$4 sm:$0xff]  }
  0x83   :  { %1778 = vmatpush1.bf16.msra.mxu0 %v5104_v6  ;;  %1864 = vmatpush1.bf16.msra.mxu1 %v5107_v7  ;;  %v5207_v6 = vld [vmem:[%s7334_s3 + $0x60c] ss:$16 sps:$4 sm:$0xff]   ;;  %v5202_v7 = vld [vmem:[%s7334_s3 + $0x600] ss:$16 sps:$4 sm:$0xff]  }
  0x84   :  { %1779 = vmatprep.subr.bf16.mxu0 %v5112_v8  ;;  %1865 = vmatprep.subr.bf16.mxu1 %v5115_v9  ;;  %v5205_v8 = vld [vmem:[%s7334_s3 + $0x608] ss:$16 sps:$4 sm:$0xff]   ;;  %v5208_v9 = vld [vmem:[%s7336_s0] ss:$16 sps:$4 sm:$0xff]  }
  0x85   :  { %1809 = vmatprep.mubr.bf16.mxu0 %v5200_v11  ;;  %1895 = vmatprep.mubr.bf16.mxu1 %v5200_v11  ;;  %v5214_v11 = vld [vmem:[%s7334_s3 + $0x62c] ss:$16 sps:$4 sm:$0xff]  }
  0x87   :  { %1780 = vmatpush1.bf16.msra.mxu0 %v5110_v10  ;;  %1866 = vmatpush1.bf16.msra.mxu1 %v5113_v12  ;;  %v5211_v10 = vld [vmem:[%s7334_s3 + $0x624] ss:$16 sps:$4 sm:$0xff]   ;;  %v5299_v12 = vld [vmem:[%s7336_s0 + $0xc] ss:$16 sps:$4 sm:$0xff]  }
  0x88   :  { %1781 = vmatprep.subr.bf16.mxu0 %v5118_v13  ;;  %1867 = vmatprep.subr.bf16.mxu1 %v5121_v14  ;;  %v5209_v13 = vld [vmem:[%s7334_s3 + $0x620] ss:$16 sps:$4 sm:$0xff]   ;;  %v5212_v14 = vld [vmem:[%s7334_s3 + $0x628] ss:$16 sps:$4 sm:$0xff]  }
  0x8b   :  { %1782 = vmatpush1.bf16.msra.mxu0 %v5116_v15  ;;  %1868 = vmatpush1.bf16.msra.mxu1 %v5119_v16  ;;  %v5217_v15 = vld [vmem:[%s7334_s3 + $0x644] ss:$16 sps:$4 sm:$0xff]   ;;  %v5220_v16 = vld [vmem:[%s7334_s3 + $0x64c] ss:$16 sps:$4 sm:$0xff]  }
  0x8c   :  { %1783 = vmatprep.subr.bf16.mxu0 %v5124_v17  ;;  %1869 = vmatprep.subr.bf16.mxu1 %v5127_v18  ;;  %v5215_v17 = vld [vmem:[%s7334_s3 + $0x640] ss:$16 sps:$4 sm:$0xff]   ;;  %v5218_v18 = vld [vmem:[%s7334_s3 + $0x648] ss:$16 sps:$4 sm:$0xff]  }
  0x8f   :  { %1784 = vmatpush1.bf16.msra.mxu0 %v5122_v19  ;;  %1870 = vmatpush1.bf16.msra.mxu1 %v5125_v20  ;;  %v5223_v19 = vld [vmem:[%s7334_s3 + $0x664] ss:$16 sps:$4 sm:$0xff]   ;;  %v5226_v20 = vld [vmem:[%s7334_s3 + $0x66c] ss:$16 sps:$4 sm:$0xff]  }
  0x90   :  { %1785 = vmatprep.subr.bf16.mxu0 %v5130_v21  ;;  %1871 = vmatprep.subr.bf16.mxu1 %v5133_v22  ;;  %v5221_v21 = vld [vmem:[%s7334_s3 + $0x660] ss:$16 sps:$4 sm:$0xff]   ;;  %v5224_v22 = vld [vmem:[%s7334_s3 + $0x668] ss:$16 sps:$4 sm:$0xff]  }
  0x93   :  { %1786 = vmatpush1.bf16.msra.mxu0 %v5128_v23  ;;  %1872 = vmatpush1.bf16.msra.mxu1 %v5131_v24  ;;  %v5229_v23 = vld [vmem:[%s7334_s3 + $0x684] ss:$16 sps:$4 sm:$0xff]   ;;  %v5232_v24 = vld [vmem:[%s7334_s3 + $0x68c] ss:$16 sps:$4 sm:$0xff]  }
  0x94   :  { %1787 = vmatprep.subr.bf16.mxu0 %v5136_v25  ;;  %1873 = vmatprep.subr.bf16.mxu1 %v5139_v26  ;;  %v5227_v25 = vld [vmem:[%s7334_s3 + $0x680] ss:$16 sps:$4 sm:$0xff]   ;;  %v5230_v26 = vld [vmem:[%s7334_s3 + $0x688] ss:$16 sps:$4 sm:$0xff]  }
  0x97   :  { %1788 = vmatpush1.bf16.msra.mxu0 %v5134_v27  ;;  %1874 = vmatpush1.bf16.msra.mxu1 %v5137_v28  ;;  %v5235_v27 = vld [vmem:[%s7334_s3 + $0x6a4] ss:$16 sps:$4 sm:$0xff]   ;;  %v5238_v28 = vld [vmem:[%s7334_s3 + $0x6ac] ss:$16 sps:$4 sm:$0xff]  }
  0x98   :  { %1789 = vmatprep.subr.bf16.mxu0 %v5142_v29  ;;  %1875 = vmatprep.subr.bf16.mxu1 %v5145_v30  ;;  %v5233_v29 = vld [vmem:[%s7334_s3 + $0x6a0] ss:$16 sps:$4 sm:$0xff]   ;;  %v5236_v30 = vld [vmem:[%s7334_s3 + $0x6a8] ss:$16 sps:$4 sm:$0xff]  }
  0x9b   :  { %1790 = vmatpush1.bf16.msra.mxu0 %v5140_v31  ;;  %1876 = vmatpush1.bf16.msra.mxu1 %v5143_v32  ;;  %v5241_v31 = vld [vmem:[%s7334_s3 + $0x6c4] ss:$16 sps:$4 sm:$0xff]   ;;  %v5244_v32 = vld [vmem:[%s7334_s3 + $0x6cc] ss:$16 sps:$4 sm:$0xff]  }
  0x9c   :  { %1791 = vmatprep.subr.bf16.mxu0 %v5148_v33  ;;  %1877 = vmatprep.subr.bf16.mxu1 %v5151_v34  ;;  %v5239_v33 = vld [vmem:[%s7334_s3 + $0x6c0] ss:$16 sps:$4 sm:$0xff]   ;;  %v5242_v34 = vld [vmem:[%s7334_s3 + $0x6c8] ss:$16 sps:$4 sm:$0xff]  }
  0x9f   :  { %1792 = vmatpush1.bf16.msra.mxu0 %v5146_v35  ;;  %1878 = vmatpush1.bf16.msra.mxu1 %v5149_v36  ;;  %v5247_v35 = vld [vmem:[%s7334_s3 + $0x6e4] ss:$16 sps:$4 sm:$0xff]   ;;  %v5250_v36 = vld [vmem:[%s7334_s3 + $0x6ec] ss:$16 sps:$4 sm:$0xff]  }
  0xa0   :  { %1793 = vmatprep.subr.bf16.mxu0 %v5154_v37  ;;  %1879 = vmatprep.subr.bf16.mxu1 %v5157_v38  ;;  %v5245_v37 = vld [vmem:[%s7334_s3 + $0x6e0] ss:$16 sps:$4 sm:$0xff]   ;;  %v5248_v38 = vld [vmem:[%s7334_s3 + $0x6e8] ss:$16 sps:$4 sm:$0xff]  }
  0xa3   :  { %1794 = vmatpush1.bf16.msra.mxu0 %v5152_v39  ;;  %1880 = vmatpush1.bf16.msra.mxu1 %v5155_v40  ;;  %v5253_v39 = vld [vmem:[%s7334_s3 + $0x704] ss:$16 sps:$4 sm:$0xff]   ;;  %v5256_v40 = vld [vmem:[%s7334_s3 + $0x70c] ss:$16 sps:$4 sm:$0xff]  }
  0xa4   :  { %1795 = vmatprep.subr.bf16.mxu0 %v5160_v41  ;;  %1881 = vmatprep.subr.bf16.mxu1 %v5163_v42  ;;  %v5251_v41 = vld [vmem:[%s7334_s3 + $0x700] ss:$16 sps:$4 sm:$0xff]   ;;  %v5254_v42 = vld [vmem:[%s7334_s3 + $0x708] ss:$16 sps:$4 sm:$0xff]  }
  0xa7   :  { %1796 = vmatpush1.bf16.msra.mxu0 %v5158_v43  ;;  %1882 = vmatpush1.bf16.msra.mxu1 %v5161_v44  ;;  %v5259_v43 = vld [vmem:[%s7334_s3 + $0x724] ss:$16 sps:$4 sm:$0xff]   ;;  %v5262_v44 = vld [vmem:[%s7334_s3 + $0x72c] ss:$16 sps:$4 sm:$0xff]  }
  0xa8   :  { %1797 = vmatprep.subr.bf16.mxu0 %v5166_v45  ;;  %1883 = vmatprep.subr.bf16.mxu1 %v5169_v46  ;;  %v5257_v45 = vld [vmem:[%s7334_s3 + $0x720] ss:$16 sps:$4 sm:$0xff]   ;;  %v5260_v46 = vld [vmem:[%s7334_s3 + $0x728] ss:$16 sps:$4 sm:$0xff]  }
  0xab   :  { %1798 = vmatpush1.bf16.msra.mxu0 %v5164_v47  ;;  %1884 = vmatpush1.bf16.msra.mxu1 %v5167_v48  ;;  %v5265_v47 = vld [vmem:[%s7334_s3 + $0x744] ss:$16 sps:$4 sm:$0xff]   ;;  %v5268_v48 = vld [vmem:[%s7334_s3 + $0x74c] ss:$16 sps:$4 sm:$0xff]  }
  0xac   :  { %1799 = vmatprep.subr.bf16.mxu0 %v5172_v49  ;;  %1885 = vmatprep.subr.bf16.mxu1 %v5175_v50  ;;  %v5263_v49 = vld [vmem:[%s7334_s3 + $0x740] ss:$16 sps:$4 sm:$0xff]   ;;  %v5266_v50 = vld [vmem:[%s7334_s3 + $0x748] ss:$16 sps:$4 sm:$0xff]  }
  0xaf   :  { %1800 = vmatpush1.bf16.msra.mxu0 %v5170_v51  ;;  %1886 = vmatpush1.bf16.msra.mxu1 %v5173_v52  ;;  %v5271_v51 = vld [vmem:[%s7334_s3 + $0x764] ss:$16 sps:$4 sm:$0xff]   ;;  %v5274_v52 = vld [vmem:[%s7334_s3 + $0x76c] ss:$16 sps:$4 sm:$0xff]  }
  0xb0   :  { %1801 = vmatprep.subr.bf16.mxu0 %v5178_v53  ;;  %1887 = vmatprep.subr.bf16.mxu1 %v5181_v54  ;;  %v5269_v53 = vld [vmem:[%s7334_s3 + $0x760] ss:$16 sps:$4 sm:$0xff]   ;;  %v5272_v54 = vld [vmem:[%s7334_s3 + $0x768] ss:$16 sps:$4 sm:$0xff]  }
  0xb3   :  { %1802 = vmatpush1.bf16.msra.mxu0 %v5176_v55  ;;  %1888 = vmatpush1.bf16.msra.mxu1 %v5179_v56  ;;  %v5277_v55 = vld [vmem:[%s7334_s3 + $0x784] ss:$16 sps:$4 sm:$0xff]   ;;  %v5280_v56 = vld [vmem:[%s7334_s3 + $0x78c] ss:$16 sps:$4 sm:$0xff]  }
  0xb4   :  { %1803 = vmatprep.subr.bf16.mxu0 %v5184_v57  ;;  %1889 = vmatprep.subr.bf16.mxu1 %v5187_v58  ;;  %v5275_v57 = vld [vmem:[%s7334_s3 + $0x780] ss:$16 sps:$4 sm:$0xff]   ;;  %v5278_v58 = vld [vmem:[%s7334_s3 + $0x788] ss:$16 sps:$4 sm:$0xff]  }
  0xb7   :  { %1804 = vmatpush1.bf16.msra.mxu0 %v5182_v59  ;;  %1890 = vmatpush1.bf16.msra.mxu1 %v5185_v60  ;;  %v5283_v59 = vld [vmem:[%s7334_s3 + $0x7a4] ss:$16 sps:$4 sm:$0xff]   ;;  %v5286_v60 = vld [vmem:[%s7334_s3 + $0x7ac] ss:$16 sps:$4 sm:$0xff]  }
  0xb8   :  { %1805 = vmatprep.subr.bf16.mxu0 %v5190_v61  ;;  %1891 = vmatprep.subr.bf16.mxu1 %v5193_v62  ;;  %v5281_v61 = vld [vmem:[%s7334_s3 + $0x7a0] ss:$16 sps:$4 sm:$0xff]   ;;  %v5284_v62 = vld [vmem:[%s7334_s3 + $0x7a8] ss:$16 sps:$4 sm:$0xff]  }
  0xbb   :  { %1806 = vmatpush1.bf16.msra.mxu0 %v5188_v63  ;;  %1892 = vmatpush1.bf16.msra.mxu1 %v5191_v0  ;;  %v5289_v63 = vld [vmem:[%s7334_s3 + $0x7c4] ss:$16 sps:$4 sm:$0xff]   ;;  %v5292_v0 = vld [vmem:[%s7334_s3 + $0x7cc] ss:$16 sps:$4 sm:$0xff]  }
  0xbc   :  { %1807 = vmatprep.subr.bf16.mxu0 %v5196_v1  ;;  %1893 = vmatprep.subr.bf16.mxu1 %v5199_v2  ;;  %v5287_v1 = vld [vmem:[%s7334_s3 + $0x7c0] ss:$16 sps:$4 sm:$0xff]   ;;  %v5290_v2 = vld [vmem:[%s7334_s3 + $0x7c8] ss:$16 sps:$4 sm:$0xff]  }
  0xbf   :  { %1808 = vmatpush1.bf16.msra.mxu0 %v5194_v3  ;;  %1894 = vmatpush1.bf16.msra.mxu1 %v5197_v4  ;;  %v5295_v3 = vld [vmem:[%s7334_s3 + $0x7e4] ss:$16 sps:$4 sm:$0xff]   ;;  %v5298_v4 = vld [vmem:[%s7334_s3 + $0x7ec] ss:$16 sps:$4 sm:$0xff]  }
  0xc0   :  { %1820 = vmatprep.subr.bf16.mxu0 %v5204_v5  ;;  %1906 = vmatprep.subr.bf16.mxu1 %v5207_v6  ;;  %v5293_v5 = vld [vmem:[%s7334_s3 + $0x7e0] ss:$16 sps:$4 sm:$0xff]   ;;  %v5296_v6 = vld [vmem:[%s7334_s3 + $0x7e8] ss:$16 sps:$4 sm:$0xff]  }
  0xc2   :  { %1810 = vmatmul.mubr.bf16.vlgmr.msra.gmra.mrb[0].mxu0 %v5208_v9  ;;  %1896 = vmatmul.mubr.bf16.vlgmr.msra.gmra.mrb[0].mxu1 %v5208_v9  ;;  %v5301_v9 = vld [vmem:[%s7336_s0 + $0x8] ss:$16 sps:$4 sm:$0xff]  }
  0xc3   :  { %1821 = vmatpush1.bf16.msra.mxu0 %v5202_v7  ;;  %1907 = vmatpush1.bf16.msra.mxu1 %v5205_v8  ;;  %v5304_v7 = vld [vmem:[%s7334_s3 + $0x4] ss:$16 sps:$4 sm:$0xff]   ;;  %v5307_v8 = vld [vmem:[%s7334_s3 + $0xc] ss:$16 sps:$4 sm:$0xff]  }
  0xc4   :  { %1822 = vmatprep.subr.bf16.mxu0 %v5211_v10  ;;  %1908 = vmatprep.subr.bf16.mxu1 %v5214_v11  ;;  %v5302_v10 = vld [vmem:[%s7334_s3] ss:$16 sps:$4 sm:$0xff]   ;;  %v5305_v11 = vld [vmem:[%s7334_s3 + $0x8] ss:$16 sps:$4 sm:$0xff]  }
  0xc5   :  { %1852 = vmatprep.mubr.bf16.mxu0 %v5299_v12  ;;  %1938 = vmatprep.mubr.bf16.mxu1 %v5299_v12  ;;  %v5310_v12 = vld [vmem:[%s7334_s3 + $0x24] ss:$16 sps:$4 sm:$0xff]  }
  0xc7   :  { %1823 = vmatpush1.bf16.msra.mxu0 %v5209_v13  ;;  %1909 = vmatpush1.bf16.msra.mxu1 %v5212_v14  ;;  %v5313_v13 = vld [vmem:[%s7334_s3 + $0x2c] ss:$16 sps:$4 sm:$0xff]   ;;  %v5400_v14 = vld [vmem:[%s7337_s2 + $0x4] ss:$16 sps:$4 sm:$0xff]  }
  0xc8   :  { %1824 = vmatprep.subr.bf16.mxu0 %v5217_v15  ;;  %1910 = vmatprep.subr.bf16.mxu1 %v5220_v16  ;;  %v5308_v15 = vld [vmem:[%s7334_s3 + $0x20] ss:$16 sps:$4 sm:$0xff]   ;;  %v5311_v16 = vld [vmem:[%s7334_s3 + $0x28] ss:$16 sps:$4 sm:$0xff]  }
  0xcb   :  { %1825 = vmatpush1.bf16.msra.mxu0 %v5215_v17  ;;  %1911 = vmatpush1.bf16.msra.mxu1 %v5218_v18  ;;  %v5316_v17 = vld [vmem:[%s7334_s3 + $0x44] ss:$16 sps:$4 sm:$0xff]   ;;  %v5319_v18 = vld [vmem:[%s7334_s3 + $0x4c] ss:$16 sps:$4 sm:$0xff]  }
  0xcc   :  { %1826 = vmatprep.subr.bf16.mxu0 %v5223_v19  ;;  %1912 = vmatprep.subr.bf16.mxu1 %v5226_v20  ;;  %v5314_v19 = vld [vmem:[%s7334_s3 + $0x40] ss:$16 sps:$4 sm:$0xff]   ;;  %v5317_v20 = vld [vmem:[%s7334_s3 + $0x48] ss:$16 sps:$4 sm:$0xff]  }
  0xcf   :  { %1827 = vmatpush1.bf16.msra.mxu0 %v5221_v21  ;;  %1913 = vmatpush1.bf16.msra.mxu1 %v5224_v22  ;;  %v5322_v21 = vld [vmem:[%s7334_s3 + $0x64] ss:$16 sps:$4 sm:$0xff]   ;;  %v5325_v22 = vld [vmem:[%s7334_s3 + $0x6c] ss:$16 sps:$4 sm:$0xff]  }
  0xd0   :  { %1828 = vmatprep.subr.bf16.mxu0 %v5229_v23  ;;  %1914 = vmatprep.subr.bf16.mxu1 %v5232_v24  ;;  %v5320_v23 = vld [vmem:[%s7334_s3 + $0x60] ss:$16 sps:$4 sm:$0xff]   ;;  %v5323_v24 = vld [vmem:[%s7334_s3 + $0x68] ss:$16 sps:$4 sm:$0xff]  }
  0xd3   :  { %1829 = vmatpush1.bf16.msra.mxu0 %v5227_v25  ;;  %1915 = vmatpush1.bf16.msra.mxu1 %v5230_v26  ;;  %v5328_v25 = vld [vmem:[%s7334_s3 + $0x84] ss:$16 sps:$4 sm:$0xff]   ;;  %v5331_v26 = vld [vmem:[%s7334_s3 + $0x8c] ss:$16 sps:$4 sm:$0xff]  }
  0xd4   :  { %1830 = vmatprep.subr.bf16.mxu0 %v5235_v27  ;;  %1916 = vmatprep.subr.bf16.mxu1 %v5238_v28  ;;  %v5326_v27 = vld [vmem:[%s7334_s3 + $0x80] ss:$16 sps:$4 sm:$0xff]   ;;  %v5329_v28 = vld [vmem:[%s7334_s3 + $0x88] ss:$16 sps:$4 sm:$0xff]  }
  0xd7   :  { %1831 = vmatpush1.bf16.msra.mxu0 %v5233_v29  ;;  %1917 = vmatpush1.bf16.msra.mxu1 %v5236_v30  ;;  %v5334_v29 = vld [vmem:[%s7334_s3 + $0xa4] ss:$16 sps:$4 sm:$0xff]   ;;  %v5337_v30 = vld [vmem:[%s7334_s3 + $0xac] ss:$16 sps:$4 sm:$0xff]  }
  0xd8   :  { %1832 = vmatprep.subr.bf16.mxu0 %v5241_v31  ;;  %1918 = vmatprep.subr.bf16.mxu1 %v5244_v32  ;;  %v5332_v31 = vld [vmem:[%s7334_s3 + $0xa0] ss:$16 sps:$4 sm:$0xff]   ;;  %v5335_v32 = vld [vmem:[%s7334_s3 + $0xa8] ss:$16 sps:$4 sm:$0xff]  }
  0xdb   :  { %1833 = vmatpush1.bf16.msra.mxu0 %v5239_v33  ;;  %1919 = vmatpush1.bf16.msra.mxu1 %v5242_v34  ;;  %v5340_v33 = vld [vmem:[%s7334_s3 + $0xc4] ss:$16 sps:$4 sm:$0xff]   ;;  %v5343_v34 = vld [vmem:[%s7334_s3 + $0xcc] ss:$16 sps:$4 sm:$0xff]  }
  0xdc   :  { %1834 = vmatprep.subr.bf16.mxu0 %v5247_v35  ;;  %1920 = vmatprep.subr.bf16.mxu1 %v5250_v36  ;;  %v5338_v35 = vld [vmem:[%s7334_s3 + $0xc0] ss:$16 sps:$4 sm:$0xff]   ;;  %v5341_v36 = vld [vmem:[%s7334_s3 + $0xc8] ss:$16 sps:$4 sm:$0xff]  }
  0xdf   :  { %1835 = vmatpush1.bf16.msra.mxu0 %v5245_v37  ;;  %1921 = vmatpush1.bf16.msra.mxu1 %v5248_v38  ;;  %v5346_v37 = vld [vmem:[%s7334_s3 + $0xe4] ss:$16 sps:$4 sm:$0xff]   ;;  %v5349_v38 = vld [vmem:[%s7334_s3 + $0xec] ss:$16 sps:$4 sm:$0xff]  }
  0xe0   :  { %1836 = vmatprep.subr.bf16.mxu0 %v5253_v39  ;;  %1922 = vmatprep.subr.bf16.mxu1 %v5256_v40  ;;  %v5344_v39 = vld [vmem:[%s7334_s3 + $0xe0] ss:$16 sps:$4 sm:$0xff]   ;;  %v5347_v40 = vld [vmem:[%s7334_s3 + $0xe8] ss:$16 sps:$4 sm:$0xff]  }
  0xe3   :  { %1837 = vmatpush1.bf16.msra.mxu0 %v5251_v41  ;;  %1923 = vmatpush1.bf16.msra.mxu1 %v5254_v42  ;;  %v5352_v41 = vld [vmem:[%s7334_s3 + $0x104] ss:$16 sps:$4 sm:$0xff]   ;;  %v5355_v42 = vld [vmem:[%s7334_s3 + $0x10c] ss:$16 sps:$4 sm:$0xff]  }
  0xe4   :  { %1838 = vmatprep.subr.bf16.mxu0 %v5259_v43  ;;  %1924 = vmatprep.subr.bf16.mxu1 %v5262_v44  ;;  %v5350_v43 = vld [vmem:[%s7334_s3 + $0x100] ss:$16 sps:$4 sm:$0xff]   ;;  %v5353_v44 = vld [vmem:[%s7334_s3 + $0x108] ss:$16 sps:$4 sm:$0xff]  }
  0xe7   :  { %1839 = vmatpush1.bf16.msra.mxu0 %v5257_v45  ;;  %1925 = vmatpush1.bf16.msra.mxu1 %v5260_v46  ;;  %v5358_v45 = vld [vmem:[%s7334_s3 + $0x124] ss:$16 sps:$4 sm:$0xff]   ;;  %v5361_v46 = vld [vmem:[%s7334_s3 + $0x12c] ss:$16 sps:$4 sm:$0xff]  }
  0xe8   :  { %1840 = vmatprep.subr.bf16.mxu0 %v5265_v47  ;;  %1926 = vmatprep.subr.bf16.mxu1 %v5268_v48  ;;  %v5356_v47 = vld [vmem:[%s7334_s3 + $0x120] ss:$16 sps:$4 sm:$0xff]   ;;  %v5359_v48 = vld [vmem:[%s7334_s3 + $0x128] ss:$16 sps:$4 sm:$0xff]  }
  0xeb   :  { %1841 = vmatpush1.bf16.msra.mxu0 %v5263_v49  ;;  %1927 = vmatpush1.bf16.msra.mxu1 %v5266_v50  ;;  %v5364_v49 = vld [vmem:[%s7334_s3 + $0x144] ss:$16 sps:$4 sm:$0xff]   ;;  %v5367_v50 = vld [vmem:[%s7334_s3 + $0x14c] ss:$16 sps:$4 sm:$0xff]  }
  0xec   :  { %1842 = vmatprep.subr.bf16.mxu0 %v5271_v51  ;;  %1928 = vmatprep.subr.bf16.mxu1 %v5274_v52  ;;  %v5362_v51 = vld [vmem:[%s7334_s3 + $0x140] ss:$16 sps:$4 sm:$0xff]   ;;  %v5365_v52 = vld [vmem:[%s7334_s3 + $0x148] ss:$16 sps:$4 sm:$0xff]  }
  0xef   :  { %1843 = vmatpush1.bf16.msra.mxu0 %v5269_v53  ;;  %1929 = vmatpush1.bf16.msra.mxu1 %v5272_v54  ;;  %v5370_v53 = vld [vmem:[%s7334_s3 + $0x164] ss:$16 sps:$4 sm:$0xff]   ;;  %v5373_v54 = vld [vmem:[%s7334_s3 + $0x16c] ss:$16 sps:$4 sm:$0xff]  }
  0xf0   :  { %1844 = vmatprep.subr.bf16.mxu0 %v5277_v55  ;;  %1930 = vmatprep.subr.bf16.mxu1 %v5280_v56  ;;  %v5368_v55 = vld [vmem:[%s7334_s3 + $0x160] ss:$16 sps:$4 sm:$0xff]   ;;  %v5371_v56 = vld [vmem:[%s7334_s3 + $0x168] ss:$16 sps:$4 sm:$0xff]  }
  0xf3   :  { %1845 = vmatpush1.bf16.msra.mxu0 %v5275_v57  ;;  %1931 = vmatpush1.bf16.msra.mxu1 %v5278_v58  ;;  %v5376_v57 = vld [vmem:[%s7334_s3 + $0x184] ss:$16 sps:$4 sm:$0xff]   ;;  %v5379_v58 = vld [vmem:[%s7334_s3 + $0x18c] ss:$16 sps:$4 sm:$0xff]  }
  0xf4   :  { %1846 = vmatprep.subr.bf16.mxu0 %v5283_v59  ;;  %1932 = vmatprep.subr.bf16.mxu1 %v5286_v60  ;;  %v5374_v59 = vld [vmem:[%s7334_s3 + $0x180] ss:$16 sps:$4 sm:$0xff]   ;;  %v5377_v60 = vld [vmem:[%s7334_s3 + $0x188] ss:$16 sps:$4 sm:$0xff]  }
  0xf7   :  { %1847 = vmatpush1.bf16.msra.mxu0 %v5281_v61  ;;  %1933 = vmatpush1.bf16.msra.mxu1 %v5284_v62  ;;  %v5382_v61 = vld [vmem:[%s7334_s3 + $0x1a4] ss:$16 sps:$4 sm:$0xff]   ;;  %v5385_v62 = vld [vmem:[%s7334_s3 + $0x1ac] ss:$16 sps:$4 sm:$0xff]  }
  0xf8   :  { %1848 = vmatprep.subr.bf16.mxu0 %v5289_v63  ;;  %1934 = vmatprep.subr.bf16.mxu1 %v5292_v0  ;;  %v5380_v63 = vld [vmem:[%s7334_s3 + $0x1a0] ss:$16 sps:$4 sm:$0xff]   ;;  %v5383_v0 = vld [vmem:[%s7334_s3 + $0x1a8] ss:$16 sps:$4 sm:$0xff]  }
  0xfb   :  { %1849 = vmatpush1.bf16.msra.mxu0 %v5287_v1  ;;  %1935 = vmatpush1.bf16.msra.mxu1 %v5290_v2  ;;  %v5388_v1 = vld [vmem:[%s7334_s3 + $0x1c4] ss:$16 sps:$4 sm:$0xff]   ;;  %v5391_v2 = vld [vmem:[%s7334_s3 + $0x1cc] ss:$16 sps:$4 sm:$0xff]  }
  0xfc   :  { %1850 = vmatprep.subr.bf16.mxu0 %v5295_v3  ;;  %1936 = vmatprep.subr.bf16.mxu1 %v5298_v4  ;;  %v5386_v3 = vld [vmem:[%s7334_s3 + $0x1c0] ss:$16 sps:$4 sm:$0xff]   ;;  %v5389_v4 = vld [vmem:[%s7334_s3 + $0x1c8] ss:$16 sps:$4 sm:$0xff]  }
  0xff   :  { %1851 = vmatpush1.bf16.msra.mxu0 %v5293_v5  ;;  %1937 = vmatpush1.bf16.msra.mxu1 %v5296_v6  ;;  %v5394_v5 = vld [vmem:[%s7334_s3 + $0x1e4] ss:$16 sps:$4 sm:$0xff]   ;;  %v5397_v6 = vld [vmem:[%s7334_s3 + $0x1ec] ss:$16 sps:$4 sm:$0xff]  }
 0x100   :  { %2870 = vmatprep.subr.bf16.mxu0 %v5304_v7  ;;  %2956 = vmatprep.subr.bf16.mxu1 %v5307_v8  ;;  %v5392_v7 = vld [vmem:[%s7334_s3 + $0x1e0] ss:$16 sps:$4 sm:$0xff]   ;;  %v5395_v8 = vld [vmem:[%s7334_s3 + $0x1e8] ss:$16 sps:$4 sm:$0xff]  }
 0x102   :  { %1853 = vmatmul.mubr.bf16.vlgmr.msra.gmra.mrb[0].mxu0 %v5301_v9  ;;  %1939 = vmatmul.mubr.bf16.vlgmr.msra.gmra.mrb[0].mxu1 %v5301_v9  ;;  %v5398_v9 = vld [vmem:[%s7337_s2] ss:$16 sps:$4 sm:$0xff]  }
 0x103   :  { %2871 = vmatpush1.bf16.msra.mxu0 %v5302_v10  ;;  %2957 = vmatpush1.bf16.msra.mxu1 %v5305_v11  ;;  %v5403_v10 = vld [vmem:[%s7334_s3 + $0x204] ss:$16 sps:$4 sm:$0xff]   ;;  %v5406_v11 = vld [vmem:[%s7334_s3 + $0x20c] ss:$16 sps:$4 sm:$0xff]  }
 0x104   :  { %2872 = vmatprep.subr.bf16.mxu0 %v5310_v12  ;;  %2958 = vmatprep.subr.bf16.mxu1 %v5313_v13  ;;  %v5401_v12 = vld [vmem:[%s7334_s3 + $0x200] ss:$16 sps:$4 sm:$0xff]   ;;  %v5404_v13 = vld [vmem:[%s7334_s3 + $0x208] ss:$16 sps:$4 sm:$0xff]  }
 0x105   :  { %2902 = vmatprep.mubr.bf16.mxu0 %v5400_v14  ;;  %2988 = vmatprep.mubr.bf16.mxu1 %v5400_v14  ;;  %v5409_v14 = vld [vmem:[%s7334_s3 + $0x224] ss:$16 sps:$4 sm:$0xff]  }
 0x107   :  { %2873 = vmatpush1.bf16.msra.mxu0 %v5308_v15  ;;  %2959 = vmatpush1.bf16.msra.mxu1 %v5311_v16  ;;  %v5412_v15 = vld [vmem:[%s7334_s3 + $0x22c] ss:$16 sps:$4 sm:$0xff]  }
 0x108   :  { %2874 = vmatprep.subr.bf16.mxu0 %v5316_v17  ;;  %2960 = vmatprep.subr.bf16.mxu1 %v5319_v18  ;;  %v5499_v16 = vld [vmem:[%s7337_s2 + $0xc] ss:$16 sps:$4 sm:$0xff]   ;;  %v5407_v17 = vld [vmem:[%s7334_s3 + $0x220] ss:$16 sps:$4 sm:$0xff]   ;;  %v5410_v18 = vld [vmem:[%s7334_s3 + $0x228] ss:$16 sps:$4 sm:$0xff]  }
 0x10b   :  { %2875 = vmatpush1.bf16.msra.mxu0 %v5314_v19  ;;  %2961 = vmatpush1.bf16.msra.mxu1 %v5317_v20  ;;  %v5415_v19 = vld [vmem:[%s7334_s3 + $0x244] ss:$16 sps:$4 sm:$0xff]   ;;  %v5418_v20 = vld [vmem:[%s7334_s3 + $0x24c] ss:$16 sps:$4 sm:$0xff]  }
 0x10c   :  { %2876 = vmatprep.subr.bf16.mxu0 %v5322_v21  ;;  %2962 = vmatprep.subr.bf16.mxu1 %v5325_v22  ;;  %v5413_v21 = vld [vmem:[%s7334_s3 + $0x240] ss:$16 sps:$4 sm:$0xff]   ;;  %v5416_v22 = vld [vmem:[%s7334_s3 + $0x248] ss:$16 sps:$4 sm:$0xff]  }
 0x10f   :  { %2877 = vmatpush1.bf16.msra.mxu0 %v5320_v23  ;;  %2963 = vmatpush1.bf16.msra.mxu1 %v5323_v24  ;;  %v5421_v23 = vld [vmem:[%s7334_s3 + $0x264] ss:$16 sps:$4 sm:$0xff]   ;;  %v5424_v24 = vld [vmem:[%s7334_s3 + $0x26c] ss:$16 sps:$4 sm:$0xff]  }
 0x110   :  { %2878 = vmatprep.subr.bf16.mxu0 %v5328_v25  ;;  %2964 = vmatprep.subr.bf16.mxu1 %v5331_v26  ;;  %v5419_v25 = vld [vmem:[%s7334_s3 + $0x260] ss:$16 sps:$4 sm:$0xff]   ;;  %v5422_v26 = vld [vmem:[%s7334_s3 + $0x268] ss:$16 sps:$4 sm:$0xff]  }
 0x113   :  { %2879 = vmatpush1.bf16.msra.mxu0 %v5326_v27  ;;  %2965 = vmatpush1.bf16.msra.mxu1 %v5329_v28  ;;  %v5427_v27 = vld [vmem:[%s7334_s3 + $0x284] ss:$16 sps:$4 sm:$0xff]   ;;  %v5430_v28 = vld [vmem:[%s7334_s3 + $0x28c] ss:$16 sps:$4 sm:$0xff]  }
 0x114   :  { %2880 = vmatprep.subr.bf16.mxu0 %v5334_v29  ;;  %2966 = vmatprep.subr.bf16.mxu1 %v5337_v30  ;;  %v5425_v29 = vld [vmem:[%s7334_s3 + $0x280] ss:$16 sps:$4 sm:$0xff]   ;;  %v5428_v30 = vld [vmem:[%s7334_s3 + $0x288] ss:$16 sps:$4 sm:$0xff]  }
 0x117   :  { %2881 = vmatpush1.bf16.msra.mxu0 %v5332_v31  ;;  %2967 = vmatpush1.bf16.msra.mxu1 %v5335_v32  ;;  %v5433_v31 = vld [vmem:[%s7334_s3 + $0x2a4] ss:$16 sps:$4 sm:$0xff]   ;;  %v5436_v32 = vld [vmem:[%s7334_s3 + $0x2ac] ss:$16 sps:$4 sm:$0xff]  }
 0x118   :  { %2882 = vmatprep.subr.bf16.mxu0 %v5340_v33  ;;  %2968 = vmatprep.subr.bf16.mxu1 %v5343_v34  ;;  %v5431_v33 = vld [vmem:[%s7334_s3 + $0x2a0] ss:$16 sps:$4 sm:$0xff]   ;;  %v5434_v34 = vld [vmem:[%s7334_s3 + $0x2a8] ss:$16 sps:$4 sm:$0xff]  }
 0x11b   :  { %2883 = vmatpush1.bf16.msra.mxu0 %v5338_v35  ;;  %2969 = vmatpush1.bf16.msra.mxu1 %v5341_v36  ;;  %v5439_v35 = vld [vmem:[%s7334_s3 + $0x2c4] ss:$16 sps:$4 sm:$0xff]   ;;  %v5442_v36 = vld [vmem:[%s7334_s3 + $0x2cc] ss:$16 sps:$4 sm:$0xff]  }
 0x11c   :  { %2884 = vmatprep.subr.bf16.mxu0 %v5346_v37  ;;  %2970 = vmatprep.subr.bf16.mxu1 %v5349_v38  ;;  %v5437_v37 = vld [vmem:[%s7334_s3 + $0x2c0] ss:$16 sps:$4 sm:$0xff]   ;;  %v5440_v38 = vld [vmem:[%s7334_s3 + $0x2c8] ss:$16 sps:$4 sm:$0xff]  }
 0x11f   :  { %2885 = vmatpush1.bf16.msra.mxu0 %v5344_v39  ;;  %2971 = vmatpush1.bf16.msra.mxu1 %v5347_v40  ;;  %v5445_v39 = vld [vmem:[%s7334_s3 + $0x2e4] ss:$16 sps:$4 sm:$0xff]   ;;  %v5448_v40 = vld [vmem:[%s7334_s3 + $0x2ec] ss:$16 sps:$4 sm:$0xff]  }
 0x120   :  { %2886 = vmatprep.subr.bf16.mxu0 %v5352_v41  ;;  %2972 = vmatprep.subr.bf16.mxu1 %v5355_v42  ;;  %v5443_v41 = vld [vmem:[%s7334_s3 + $0x2e0] ss:$16 sps:$4 sm:$0xff]   ;;  %v5446_v42 = vld [vmem:[%s7334_s3 + $0x2e8] ss:$16 sps:$4 sm:$0xff]  }
 0x123   :  { %2887 = vmatpush1.bf16.msra.mxu0 %v5350_v43  ;;  %2973 = vmatpush1.bf16.msra.mxu1 %v5353_v44  ;;  %v5451_v43 = vld [vmem:[%s7334_s3 + $0x304] ss:$16 sps:$4 sm:$0xff]   ;;  %v5454_v44 = vld [vmem:[%s7334_s3 + $0x30c] ss:$16 sps:$4 sm:$0xff]  }
 0x124   :  { %2888 = vmatprep.subr.bf16.mxu0 %v5358_v45  ;;  %2974 = vmatprep.subr.bf16.mxu1 %v5361_v46  ;;  %v5449_v45 = vld [vmem:[%s7334_s3 + $0x300] ss:$16 sps:$4 sm:$0xff]   ;;  %v5452_v46 = vld [vmem:[%s7334_s3 + $0x308] ss:$16 sps:$4 sm:$0xff]  }
 0x127   :  { %2889 = vmatpush1.bf16.msra.mxu0 %v5356_v47  ;;  %2975 = vmatpush1.bf16.msra.mxu1 %v5359_v48  ;;  %v5457_v47 = vld [vmem:[%s7334_s3 + $0x324] ss:$16 sps:$4 sm:$0xff]   ;;  %v5460_v48 = vld [vmem:[%s7334_s3 + $0x32c] ss:$16 sps:$4 sm:$0xff]  }
 0x128   :  { %2890 = vmatprep.subr.bf16.mxu0 %v5364_v49  ;;  %2976 = vmatprep.subr.bf16.mxu1 %v5367_v50  ;;  %v5455_v49 = vld [vmem:[%s7334_s3 + $0x320] ss:$16 sps:$4 sm:$0xff]   ;;  %v5458_v50 = vld [vmem:[%s7334_s3 + $0x328] ss:$16 sps:$4 sm:$0xff]  }
 0x12b   :  { %2891 = vmatpush1.bf16.msra.mxu0 %v5362_v51  ;;  %2977 = vmatpush1.bf16.msra.mxu1 %v5365_v52  ;;  %v5463_v51 = vld [vmem:[%s7334_s3 + $0x344] ss:$16 sps:$4 sm:$0xff]   ;;  %v5466_v52 = vld [vmem:[%s7334_s3 + $0x34c] ss:$16 sps:$4 sm:$0xff]  }
 0x12c   :  { %2892 = vmatprep.subr.bf16.mxu0 %v5370_v53  ;;  %2978 = vmatprep.subr.bf16.mxu1 %v5373_v54  ;;  %v5461_v53 = vld [vmem:[%s7334_s3 + $0x340] ss:$16 sps:$4 sm:$0xff]   ;;  %v5464_v54 = vld [vmem:[%s7334_s3 + $0x348] ss:$16 sps:$4 sm:$0xff]  }
 0x12f   :  { %2893 = vmatpush1.bf16.msra.mxu0 %v5368_v55  ;;  %2979 = vmatpush1.bf16.msra.mxu1 %v5371_v56  ;;  %v5469_v55 = vld [vmem:[%s7334_s3 + $0x364] ss:$16 sps:$4 sm:$0xff]   ;;  %v5472_v56 = vld [vmem:[%s7334_s3 + $0x36c] ss:$16 sps:$4 sm:$0xff]  }
 0x130   :  { %2894 = vmatprep.subr.bf16.mxu0 %v5376_v57  ;;  %2980 = vmatprep.subr.bf16.mxu1 %v5379_v58  ;;  %v5467_v57 = vld [vmem:[%s7334_s3 + $0x360] ss:$16 sps:$4 sm:$0xff]   ;;  %v5470_v58 = vld [vmem:[%s7334_s3 + $0x368] ss:$16 sps:$4 sm:$0xff]  }
 0x133   :  { %2895 = vmatpush1.bf16.msra.mxu0 %v5374_v59  ;;  %2981 = vmatpush1.bf16.msra.mxu1 %v5377_v60  ;;  %v5475_v59 = vld [vmem:[%s7334_s3 + $0x384] ss:$16 sps:$4 sm:$0xff]   ;;  %v5478_v60 = vld [vmem:[%s7334_s3 + $0x38c] ss:$16 sps:$4 sm:$0xff]  }
 0x134   :  { %2896 = vmatprep.subr.bf16.mxu0 %v5382_v61  ;;  %2982 = vmatprep.subr.bf16.mxu1 %v5385_v62  ;;  %v5473_v61 = vld [vmem:[%s7334_s3 + $0x380] ss:$16 sps:$4 sm:$0xff]   ;;  %v5476_v62 = vld [vmem:[%s7334_s3 + $0x388] ss:$16 sps:$4 sm:$0xff]  }
 0x137   :  { %2897 = vmatpush1.bf16.msra.mxu0 %v5380_v63  ;;  %2983 = vmatpush1.bf16.msra.mxu1 %v5383_v0  ;;  %v5481_v63 = vld [vmem:[%s7334_s3 + $0x3a4] ss:$16 sps:$4 sm:$0xff]   ;;  %v5484_v0 = vld [vmem:[%s7334_s3 + $0x3ac] ss:$16 sps:$4 sm:$0xff]  }
 0x138   :  { %2898 = vmatprep.subr.bf16.mxu0 %v5388_v1  ;;  %2984 = vmatprep.subr.bf16.mxu1 %v5391_v2  ;;  %v5479_v1 = vld [vmem:[%s7334_s3 + $0x3a0] ss:$16 sps:$4 sm:$0xff]   ;;  %v5482_v2 = vld [vmem:[%s7334_s3 + $0x3a8] ss:$16 sps:$4 sm:$0xff]  }
 0x13b   :  { %2899 = vmatpush1.bf16.msra.mxu0 %v5386_v3  ;;  %2985 = vmatpush1.bf16.msra.mxu1 %v5389_v4  ;;  %v5487_v3 = vld [vmem:[%s7334_s3 + $0x3c4] ss:$16 sps:$4 sm:$0xff]   ;;  %v5490_v4 = vld [vmem:[%s7334_s3 + $0x3cc] ss:$16 sps:$4 sm:$0xff]  }
 0x13c   :  { %2900 = vmatprep.subr.bf16.mxu0 %v5394_v5  ;;  %2986 = vmatprep.subr.bf16.mxu1 %v5397_v6  ;;  %v5485_v5 = vld [vmem:[%s7334_s3 + $0x3c0] ss:$16 sps:$4 sm:$0xff]   ;;  %v5488_v6 = vld [vmem:[%s7334_s3 + $0x3c8] ss:$16 sps:$4 sm:$0xff]  }
 0x13f   :  { %2901 = vmatpush1.bf16.msra.mxu0 %v5392_v7  ;;  %2987 = vmatpush1.bf16.msra.mxu1 %v5395_v8  ;;  %v5493_v7 = vld [vmem:[%s7334_s3 + $0x3e4] ss:$16 sps:$4 sm:$0xff]   ;;  %v5496_v8 = vld [vmem:[%s7334_s3 + $0x3ec] ss:$16 sps:$4 sm:$0xff]  }
 0x140   :  { %2913 = vmatprep.subr.bf16.mxu0 %v5403_v10  ;;  %2999 = vmatprep.subr.bf16.mxu1 %v5406_v11  ;;  %v5494_v10 = vld [vmem:[%s7334_s3 + $0x3e8] ss:$16 sps:$4 sm:$0xff]   ;;  %v5502_v11 = vld [vmem:[%s7334_s3 + $0x804] ss:$16 sps:$4 sm:$0xff]  }
 0x142   :  { %2903 = vmatmul.mubr.bf16.vlgmr.msra.gmra.mrb[4].mxu0 %v5398_v9  ;;  %2989 = vmatmul.mubr.bf16.vlgmr.msra.gmra.mrb[4].mxu1 %v5398_v9  ;;  %v5491_v9 = vld [vmem:[%s7334_s3 + $0x3e0] ss:$16 sps:$4 sm:$0xff]  }
 0x143   :  { %2914 = vmatpush1.bf16.msra.mxu0 %v5401_v12  ;;  %3000 = vmatpush1.bf16.msra.mxu1 %v5404_v13  ;;  %v5505_v12 = vld [vmem:[%s7334_s3 + $0x80c] ss:$16 sps:$4 sm:$0xff]   ;;  %v5497_v13 = vld [vmem:[%s7337_s2 + $0x8] ss:$16 sps:$4 sm:$0xff]  }
 0x144   :  { %2915 = vmatprep.subr.bf16.mxu0 %v5409_v14  ;;  %3001 = vmatprep.subr.bf16.mxu1 %v5412_v15  ;;  %v5500_v14 = vld [vmem:[%s7334_s3 + $0x800] ss:$16 sps:$4 sm:$0xff]   ;;  %v5503_v15 = vld [vmem:[%s7334_s3 + $0x808] ss:$16 sps:$4 sm:$0xff]  }
 0x145   :  { %2945 = vmatprep.mubr.bf16.mxu0 %v5499_v16  ;;  %3031 = vmatprep.mubr.bf16.mxu1 %v5499_v16  ;;  %v5508_v16 = vld [vmem:[%s7334_s3 + $0x824] ss:$16 sps:$4 sm:$0xff]  }
 0x147   :  { %2916 = vmatpush1.bf16.msra.mxu0 %v5407_v17  ;;  %3002 = vmatpush1.bf16.msra.mxu1 %v5410_v18  ;;  %v5511_v17 = vld [vmem:[%s7334_s3 + $0x82c] ss:$16 sps:$4 sm:$0xff]   ;;  %v5506_v18 = vld [vmem:[%s7334_s3 + $0x820] ss:$16 sps:$4 sm:$0xff]  }
 0x148   :  { %2917 = vmatprep.subr.bf16.mxu0 %v5415_v19  ;;  %3003 = vmatprep.subr.bf16.mxu1 %v5418_v20  ;;  %v5509_v19 = vld [vmem:[%s7334_s3 + $0x828] ss:$16 sps:$4 sm:$0xff]   ;;  %v5514_v20 = vld [vmem:[%s7334_s3 + $0x844] ss:$16 sps:$4 sm:$0xff]  }
 0x14b   :  { %2918 = vmatpush1.bf16.msra.mxu0 %v5413_v21  ;;  %3004 = vmatpush1.bf16.msra.mxu1 %v5416_v22  ;;  %v5517_v21 = vld [vmem:[%s7334_s3 + $0x84c] ss:$16 sps:$4 sm:$0xff]   ;;  %v5692_v22 = vld [vmem:[%s7336_s0 + $0x4] ss:$16 sps:$4 sm:$0xff]  }
 0x14c   :  { %2919 = vmatprep.subr.bf16.mxu0 %v5421_v23  ;;  %3005 = vmatprep.subr.bf16.mxu1 %v5424_v24  ;;  %v5512_v23 = vld [vmem:[%s7334_s3 + $0x840] ss:$16 sps:$4 sm:$0xff]   ;;  %v5515_v24 = vld [vmem:[%s7334_s3 + $0x848] ss:$16 sps:$4 sm:$0xff]  }
 0x14f   :  { %2920 = vmatpush1.bf16.msra.mxu0 %v5419_v25  ;;  %3006 = vmatpush1.bf16.msra.mxu1 %v5422_v26  ;;  %v5520_v25 = vld [vmem:[%s7334_s3 + $0x864] ss:$16 sps:$4 sm:$0xff]   ;;  %v5523_v26 = vld [vmem:[%s7334_s3 + $0x86c] ss:$16 sps:$4 sm:$0xff]  }
 0x150   :  { %2921 = vmatprep.subr.bf16.mxu0 %v5427_v27  ;;  %3007 = vmatprep.subr.bf16.mxu1 %v5430_v28  ;;  %v5518_v27 = vld [vmem:[%s7334_s3 + $0x860] ss:$16 sps:$4 sm:$0xff]   ;;  %v5521_v28 = vld [vmem:[%s7334_s3 + $0x868] ss:$16 sps:$4 sm:$0xff]  }
 0x153   :  { %2922 = vmatpush1.bf16.msra.mxu0 %v5425_v29  ;;  %3008 = vmatpush1.bf16.msra.mxu1 %v5428_v30  ;;  %v5526_v29 = vld [vmem:[%s7334_s3 + $0x884] ss:$16 sps:$4 sm:$0xff]   ;;  %v5529_v30 = vld [vmem:[%s7334_s3 + $0x88c] ss:$16 sps:$4 sm:$0xff]  }
 0x154   :  { %2923 = vmatprep.subr.bf16.mxu0 %v5433_v31  ;;  %3009 = vmatprep.subr.bf16.mxu1 %v5436_v32  ;;  %v5524_v31 = vld [vmem:[%s7334_s3 + $0x880] ss:$16 sps:$4 sm:$0xff]   ;;  %v5527_v32 = vld [vmem:[%s7334_s3 + $0x888] ss:$16 sps:$4 sm:$0xff]  }
 0x157   :  { %2924 = vmatpush1.bf16.msra.mxu0 %v5431_v33  ;;  %3010 = vmatpush1.bf16.msra.mxu1 %v5434_v34  ;;  %v5532_v33 = vld [vmem:[%s7334_s3 + $0x8a4] ss:$16 sps:$4 sm:$0xff]   ;;  %v5535_v34 = vld [vmem:[%s7334_s3 + $0x8ac] ss:$16 sps:$4 sm:$0xff]  }
 0x158   :  { %2925 = vmatprep.subr.bf16.mxu0 %v5439_v35  ;;  %3011 = vmatprep.subr.bf16.mxu1 %v5442_v36  ;;  %v5530_v35 = vld [vmem:[%s7334_s3 + $0x8a0] ss:$16 sps:$4 sm:$0xff]   ;;  %v5533_v36 = vld [vmem:[%s7334_s3 + $0x8a8] ss:$16 sps:$4 sm:$0xff]  }
 0x15b   :  { %2926 = vmatpush1.bf16.msra.mxu0 %v5437_v37  ;;  %3012 = vmatpush1.bf16.msra.mxu1 %v5440_v38  ;;  %v5538_v37 = vld [vmem:[%s7334_s3 + $0x8c4] ss:$16 sps:$4 sm:$0xff]   ;;  %v5541_v38 = vld [vmem:[%s7334_s3 + $0x8cc] ss:$16 sps:$4 sm:$0xff]  }
 0x15c   :  { %2927 = vmatprep.subr.bf16.mxu0 %v5445_v39  ;;  %3013 = vmatprep.subr.bf16.mxu1 %v5448_v40  ;;  %v5536_v39 = vld [vmem:[%s7334_s3 + $0x8c0] ss:$16 sps:$4 sm:$0xff]   ;;  %v5539_v40 = vld [vmem:[%s7334_s3 + $0x8c8] ss:$16 sps:$4 sm:$0xff]  }
 0x15f   :  { %2928 = vmatpush1.bf16.msra.mxu0 %v5443_v41  ;;  %3014 = vmatpush1.bf16.msra.mxu1 %v5446_v42  ;;  %v5544_v41 = vld [vmem:[%s7334_s3 + $0x8e4] ss:$16 sps:$4 sm:$0xff]   ;;  %v5547_v42 = vld [vmem:[%s7334_s3 + $0x8ec] ss:$16 sps:$4 sm:$0xff]  }
 0x160   :  { %2929 = vmatprep.subr.bf16.mxu0 %v5451_v43  ;;  %3015 = vmatprep.subr.bf16.mxu1 %v5454_v44  ;;  %v5542_v43 = vld [vmem:[%s7334_s3 + $0x8e0] ss:$16 sps:$4 sm:$0xff]   ;;  %v5545_v44 = vld [vmem:[%s7334_s3 + $0x8e8] ss:$16 sps:$4 sm:$0xff]  }
 0x163   :  { %2930 = vmatpush1.bf16.msra.mxu0 %v5449_v45  ;;  %3016 = vmatpush1.bf16.msra.mxu1 %v5452_v46  ;;  %v5550_v45 = vld [vmem:[%s7334_s3 + $0x904] ss:$16 sps:$4 sm:$0xff]   ;;  %v5553_v46 = vld [vmem:[%s7334_s3 + $0x90c] ss:$16 sps:$4 sm:$0xff]  }
 0x164   :  { %2931 = vmatprep.subr.bf16.mxu0 %v5457_v47  ;;  %3017 = vmatprep.subr.bf16.mxu1 %v5460_v48  ;;  %v5548_v47 = vld [vmem:[%s7334_s3 + $0x900] ss:$16 sps:$4 sm:$0xff]   ;;  %v5551_v48 = vld [vmem:[%s7334_s3 + $0x908] ss:$16 sps:$4 sm:$0xff]  }
 0x167   :  { %2932 = vmatpush1.bf16.msra.mxu0 %v5455_v49  ;;  %3018 = vmatpush1.bf16.msra.mxu1 %v5458_v50  ;;  %v5556_v49 = vld [vmem:[%s7334_s3 + $0x924] ss:$16 sps:$4 sm:$0xff]   ;;  %v5559_v50 = vld [vmem:[%s7334_s3 + $0x92c] ss:$16 sps:$4 sm:$0xff]  }
 0x168   :  { %2933 = vmatprep.subr.bf16.mxu0 %v5463_v51  ;;  %3019 = vmatprep.subr.bf16.mxu1 %v5466_v52  ;;  %v5554_v51 = vld [vmem:[%s7334_s3 + $0x920] ss:$16 sps:$4 sm:$0xff]   ;;  %v5557_v52 = vld [vmem:[%s7334_s3 + $0x928] ss:$16 sps:$4 sm:$0xff]  }
 0x16b   :  { %2934 = vmatpush1.bf16.msra.mxu0 %v5461_v53  ;;  %3020 = vmatpush1.bf16.msra.mxu1 %v5464_v54  ;;  %v5562_v53 = vld [vmem:[%s7334_s3 + $0x944] ss:$16 sps:$4 sm:$0xff]   ;;  %v5565_v54 = vld [vmem:[%s7334_s3 + $0x94c] ss:$16 sps:$4 sm:$0xff]  }
 0x16c   :  { %2935 = vmatprep.subr.bf16.mxu0 %v5469_v55  ;;  %3021 = vmatprep.subr.bf16.mxu1 %v5472_v56  ;;  %v5560_v55 = vld [vmem:[%s7334_s3 + $0x940] ss:$16 sps:$4 sm:$0xff]   ;;  %v5563_v56 = vld [vmem:[%s7334_s3 + $0x948] ss:$16 sps:$4 sm:$0xff]  }
 0x16f   :  { %2936 = vmatpush1.bf16.msra.mxu0 %v5467_v57  ;;  %3022 = vmatpush1.bf16.msra.mxu1 %v5470_v58  ;;  %v5568_v57 = vld [vmem:[%s7334_s3 + $0x964] ss:$16 sps:$4 sm:$0xff]   ;;  %v5571_v58 = vld [vmem:[%s7334_s3 + $0x96c] ss:$16 sps:$4 sm:$0xff]  }
 0x170   :  { %2937 = vmatprep.subr.bf16.mxu0 %v5475_v59  ;;  %3023 = vmatprep.subr.bf16.mxu1 %v5478_v60  ;;  %v5566_v59 = vld [vmem:[%s7334_s3 + $0x960] ss:$16 sps:$4 sm:$0xff]   ;;  %v5569_v60 = vld [vmem:[%s7334_s3 + $0x968] ss:$16 sps:$4 sm:$0xff]  }
 0x173   :  { %2938 = vmatpush1.bf16.msra.mxu0 %v5473_v61  ;;  %3024 = vmatpush1.bf16.msra.mxu1 %v5476_v62  ;;  %v5574_v61 = vld [vmem:[%s7334_s3 + $0x984] ss:$16 sps:$4 sm:$0xff]   ;;  %v5577_v62 = vld [vmem:[%s7334_s3 + $0x98c] ss:$16 sps:$4 sm:$0xff]  }
 0x174   :  { %2939 = vmatprep.subr.bf16.mxu0 %v5481_v63  ;;  %3025 = vmatprep.subr.bf16.mxu1 %v5484_v0  ;;  %v5572_v63 = vld [vmem:[%s7334_s3 + $0x980] ss:$16 sps:$4 sm:$0xff]   ;;  %v5575_v0 = vld [vmem:[%s7334_s3 + $0x988] ss:$16 sps:$4 sm:$0xff]  }
 0x177   :  { %2940 = vmatpush1.bf16.msra.mxu0 %v5479_v1  ;;  %3026 = vmatpush1.bf16.msra.mxu1 %v5482_v2  ;;  %v5580_v1 = vld [vmem:[%s7334_s3 + $0x9a4] ss:$16 sps:$4 sm:$0xff]   ;;  %v5583_v2 = vld [vmem:[%s7334_s3 + $0x9ac] ss:$16 sps:$4 sm:$0xff]  }
 0x178   :  { %2941 = vmatprep.subr.bf16.mxu0 %v5487_v3  ;;  %3027 = vmatprep.subr.bf16.mxu1 %v5490_v4  ;;  %v5578_v3 = vld [vmem:[%s7334_s3 + $0x9a0] ss:$16 sps:$4 sm:$0xff]   ;;  %v5581_v4 = vld [vmem:[%s7334_s3 + $0x9a8] ss:$16 sps:$4 sm:$0xff]  }
 0x17b   :  { %2942 = vmatpush1.bf16.msra.mxu0 %v5485_v5  ;;  %3028 = vmatpush1.bf16.msra.mxu1 %v5488_v6  ;;  %v5586_v5 = vld [vmem:[%s7334_s3 + $0x9c4] ss:$16 sps:$4 sm:$0xff]   ;;  %v5589_v6 = vld [vmem:[%s7334_s3 + $0x9cc] ss:$16 sps:$4 sm:$0xff]  }
 0x17c   :  { %2943 = vmatprep.subr.bf16.mxu0 %v5493_v7  ;;  %3029 = vmatprep.subr.bf16.mxu1 %v5496_v8  ;;  %v5584_v7 = vld [vmem:[%s7334_s3 + $0x9c0] ss:$16 sps:$4 sm:$0xff]   ;;  %v5587_v8 = vld [vmem:[%s7334_s3 + $0x9c8] ss:$16 sps:$4 sm:$0xff]  }
 0x17f   :  { %2944 = vmatpush1.bf16.msra.mxu0 %v5491_v9  ;;  %3030 = vmatpush1.bf16.msra.mxu1 %v5494_v10  ;;  %v5592_v9 = vld [vmem:[%s7334_s3 + $0x9e4] ss:$16 sps:$4 sm:$0xff]   ;;  %v5595_v10 = vld [vmem:[%s7334_s3 + $0x9ec] ss:$16 sps:$4 sm:$0xff]  }
 0x180   :  { %3682 = vmatprep.subr.bf16.mxu0 %v5502_v11  ;;  %3768 = vmatprep.subr.bf16.mxu1 %v5505_v12  ;;  %v5590_v11 = vld [vmem:[%s7334_s3 + $0x9e0] ss:$16 sps:$4 sm:$0xff]   ;;  %v5593_v12 = vld [vmem:[%s7334_s3 + $0x9e8] ss:$16 sps:$4 sm:$0xff]  }
 0x182   :  { %2946 = vmatmul.mubr.bf16.vlgmr.msra.gmra.mrb[4].mxu0 %v5497_v13  ;;  %3032 = vmatmul.mubr.bf16.vlgmr.msra.gmra.mrb[4].mxu1 %v5497_v13  ;;  %v5598_v13 = vld [vmem:[%s7334_s3 + $0xa04] ss:$16 sps:$4 sm:$0xff]  }
 0x183   :  { %3683 = vmatpush1.bf16.msra.mxu0 %v5500_v14  ;;  %3769 = vmatpush1.bf16.msra.mxu1 %v5503_v15  ;;  %v5601_v14 = vld [vmem:[%s7334_s3 + $0xa0c] ss:$16 sps:$4 sm:$0xff]   ;;  %v5596_v15 = vld [vmem:[%s7334_s3 + $0xa00] ss:$16 sps:$4 sm:$0xff]  }
 0x184   :  { %3684 = vmatprep.subr.bf16.mxu0 %v5508_v16  ;;  %3770 = vmatprep.subr.bf16.mxu1 %v5511_v17  ;;  %v5599_v16 = vld [vmem:[%s7334_s3 + $0xa08] ss:$16 sps:$4 sm:$0xff]   ;;  %v5604_v17 = vld [vmem:[%s7334_s3 + $0xa24] ss:$16 sps:$4 sm:$0xff]  }
 0x185   :  { %3714 = vmatprep.mubr.bf16.mxu0 %v5692_v22  ;;  %3800 = vmatprep.mubr.bf16.mxu1 %v5692_v22  ;;  %v5610_v22 = vld [vmem:[%s7334_s3 + $0xa44] ss:$16 sps:$4 sm:$0xff]  }
 0x187   :  { %3685 = vmatpush1.bf16.msra.mxu0 %v5506_v18  ;;  %3771 = vmatpush1.bf16.msra.mxu1 %v5509_v19  ;;  %v5607_v18 = vld [vmem:[%s7334_s3 + $0xa2c] ss:$16 sps:$4 sm:$0xff]   ;;  %v5693_v19 = vld [vmem:[%s7336_s0] ss:$16 sps:$4 sm:$0xff]  }
 0x188   :  { %3686 = vmatprep.subr.bf16.mxu0 %v5514_v20  ;;  %3772 = vmatprep.subr.bf16.mxu1 %v5517_v21  ;;  %v5602_v20 = vld [vmem:[%s7334_s3 + $0xa20] ss:$16 sps:$4 sm:$0xff]   ;;  %v5605_v21 = vld [vmem:[%s7334_s3 + $0xa28] ss:$16 sps:$4 sm:$0xff]  }
 0x18b   :  { %3687 = vmatpush1.bf16.msra.mxu0 %v5512_v23  ;;  %3773 = vmatpush1.bf16.msra.mxu1 %v5515_v24  ;;  %v5613_v23 = vld [vmem:[%s7334_s3 + $0xa4c] ss:$16 sps:$4 sm:$0xff]  }
 0x18c   :  { %3688 = vmatprep.subr.bf16.mxu0 %v5520_v25  ;;  %3774 = vmatprep.subr.bf16.mxu1 %v5523_v26  ;;  %v5694_v24 = vld [vmem:[%s7336_s0 + $0xc] ss:$16 sps:$4 sm:$0xff]   ;;  %v5608_v25 = vld [vmem:[%s7334_s3 + $0xa40] ss:$16 sps:$4 sm:$0xff]   ;;  %v5611_v26 = vld [vmem:[%s7334_s3 + $0xa48] ss:$16 sps:$4 sm:$0xff]  }
 0x18f   :  { %3689 = vmatpush1.bf16.msra.mxu0 %v5518_v27  ;;  %3775 = vmatpush1.bf16.msra.mxu1 %v5521_v28  ;;  %v5616_v27 = vld [vmem:[%s7334_s3 + $0xa64] ss:$16 sps:$4 sm:$0xff]   ;;  %v5619_v28 = vld [vmem:[%s7334_s3 + $0xa6c] ss:$16 sps:$4 sm:$0xff]  }
 0x190   :  { %3690 = vmatprep.subr.bf16.mxu0 %v5526_v29  ;;  %3776 = vmatprep.subr.bf16.mxu1 %v5529_v30  ;;  %v5614_v29 = vld [vmem:[%s7334_s3 + $0xa60] ss:$16 sps:$4 sm:$0xff]   ;;  %v5617_v30 = vld [vmem:[%s7334_s3 + $0xa68] ss:$16 sps:$4 sm:$0xff]  }
 0x193   :  { %3691 = vmatpush1.bf16.msra.mxu0 %v5524_v31  ;;  %3777 = vmatpush1.bf16.msra.mxu1 %v5527_v32  ;;  %v5622_v31 = vld [vmem:[%s7334_s3 + $0xa84] ss:$16 sps:$4 sm:$0xff]   ;;  %v5625_v32 = vld [vmem:[%s7334_s3 + $0xa8c] ss:$16 sps:$4 sm:$0xff]  }
 0x194   :  { %3692 = vmatprep.subr.bf16.mxu0 %v5532_v33  ;;  %3778 = vmatprep.subr.bf16.mxu1 %v5535_v34  ;;  %v5620_v33 = vld [vmem:[%s7334_s3 + $0xa80] ss:$16 sps:$4 sm:$0xff]   ;;  %v5623_v34 = vld [vmem:[%s7334_s3 + $0xa88] ss:$16 sps:$4 sm:$0xff]  }
 0x197   :  { %3693 = vmatpush1.bf16.msra.mxu0 %v5530_v35  ;;  %3779 = vmatpush1.bf16.msra.mxu1 %v5533_v36  ;;  %v5628_v35 = vld [vmem:[%s7334_s3 + $0xaa4] ss:$16 sps:$4 sm:$0xff]   ;;  %v5631_v36 = vld [vmem:[%s7334_s3 + $0xaac] ss:$16 sps:$4 sm:$0xff]  }
 0x198   :  { %3694 = vmatprep.subr.bf16.mxu0 %v5538_v37  ;;  %3780 = vmatprep.subr.bf16.mxu1 %v5541_v38  ;;  %v5626_v37 = vld [vmem:[%s7334_s3 + $0xaa0] ss:$16 sps:$4 sm:$0xff]   ;;  %v5629_v38 = vld [vmem:[%s7334_s3 + $0xaa8] ss:$16 sps:$4 sm:$0xff]  }
 0x19b   :  { %3695 = vmatpush1.bf16.msra.mxu0 %v5536_v39  ;;  %3781 = vmatpush1.bf16.msra.mxu1 %v5539_v40  ;;  %v5634_v39 = vld [vmem:[%s7334_s3 + $0xac4] ss:$16 sps:$4 sm:$0xff]   ;;  %v5637_v40 = vld [vmem:[%s7334_s3 + $0xacc] ss:$16 sps:$4 sm:$0xff]  }
 0x19c   :  { %3696 = vmatprep.subr.bf16.mxu0 %v5544_v41  ;;  %3782 = vmatprep.subr.bf16.mxu1 %v5547_v42 }
 0x19f   :  { %3697 = vmatpush1.bf16.msra.mxu0 %v5542_v43  ;;  %3783 = vmatpush1.bf16.msra.mxu1 %v5545_v44  ;;  %v5632_v43 = vld [vmem:[%s7334_s3 + $0xac0] ss:$16 sps:$4 sm:$0xff]  }
 0x1a0   :  { %3698 = vmatprep.subr.bf16.mxu0 %v5550_v45  ;;  %3784 = vmatprep.subr.bf16.mxu1 %v5553_v46 }
 0x1a3   :  { %3699 = vmatpush1.bf16.msra.mxu0 %v5548_v47  ;;  %3785 = vmatpush1.bf16.msra.mxu1 %v5551_v48  ;;  %v5635_v48 = vld [vmem:[%s7334_s3 + $0xac8] ss:$16 sps:$4 sm:$0xff]  }
 0x1a4   :  { %3700 = vmatprep.subr.bf16.mxu0 %v5556_v49  ;;  %3786 = vmatprep.subr.bf16.mxu1 %v5559_v50 }
 0x1a7   :  { %3701 = vmatpush1.bf16.msra.mxu0 %v5554_v51  ;;  %3787 = vmatpush1.bf16.msra.mxu1 %v5557_v52 }
 0x1a8   :  { %3702 = vmatprep.subr.bf16.mxu0 %v5562_v53  ;;  %3788 = vmatprep.subr.bf16.mxu1 %v5565_v54  ;;  %v5640_v53 = vld [vmem:[%s7334_s3 + $0xae4] ss:$16 sps:$4 sm:$0xff]  }
 0x1ab   :  { %3703 = vmatpush1.bf16.msra.mxu0 %v5560_v55  ;;  %3789 = vmatpush1.bf16.msra.mxu1 %v5563_v56 }
 0x1ac   :  { %3704 = vmatprep.subr.bf16.mxu0 %v5568_v57  ;;  %3790 = vmatprep.subr.bf16.mxu1 %v5571_v58  ;;  %v5643_v58 = vld [vmem:[%s7334_s3 + $0xaec] ss:$16 sps:$4 sm:$0xff]  }
 0x1af   :  { %3705 = vmatpush1.bf16.msra.mxu0 %v5566_v59  ;;  %3791 = vmatpush1.bf16.msra.mxu1 %v5569_v60 }
 0x1b0   :  { %3706 = vmatprep.subr.bf16.mxu0 %v5574_v61  ;;  %3792 = vmatprep.subr.bf16.mxu1 %v5577_v62 }
 0x1b3   :  { %3707 = vmatpush1.bf16.msra.mxu0 %v5572_v63  ;;  %3793 = vmatpush1.bf16.msra.mxu1 %v5575_v0 }
 0x1b4   :  { %3708 = vmatprep.subr.bf16.mxu0 %v5580_v1  ;;  %3794 = vmatprep.subr.bf16.mxu1 %v5583_v2  ;;  %v5638_v1 = vld [vmem:[%s7334_s3 + $0xae0] ss:$16 sps:$4 sm:$0xff]   ;;  %v5641_v2 = vld [vmem:[%s7334_s3 + $0xae8] ss:$16 sps:$4 sm:$0xff]  }
 0x1b7   :  { %3709 = vmatpush1.bf16.msra.mxu0 %v5578_v3  ;;  %3795 = vmatpush1.bf16.msra.mxu1 %v5581_v4  ;;  %v5646_v3 = vld [vmem:[%s7334_s3 + $0xb04] ss:$16 sps:$4 sm:$0xff]   ;;  %v5649_v4 = vld [vmem:[%s7334_s3 + $0xb0c] ss:$16 sps:$4 sm:$0xff]  }
 0x1b8   :  { %3710 = vmatprep.subr.bf16.mxu0 %v5586_v5  ;;  %3796 = vmatprep.subr.bf16.mxu1 %v5589_v6  ;;  %v5644_v5 = vld [vmem:[%s7334_s3 + $0xb00] ss:$16 sps:$4 sm:$0xff]   ;;  %v5647_v6 = vld [vmem:[%s7334_s3 + $0xb08] ss:$16 sps:$4 sm:$0xff]  }
 0x1bb   :  { %3711 = vmatpush1.bf16.msra.mxu0 %v5584_v7  ;;  %3797 = vmatpush1.bf16.msra.mxu1 %v5587_v8  ;;  %v5652_v7 = vld [vmem:[%s7334_s3 + $0xb24] ss:$16 sps:$4 sm:$0xff]   ;;  %v5655_v8 = vld [vmem:[%s7334_s3 + $0xb2c] ss:$16 sps:$4 sm:$0xff]  }
 0x1bc   :  { %3712 = vmatprep.subr.bf16.mxu0 %v5592_v9  ;;  %3798 = vmatprep.subr.bf16.mxu1 %v5595_v10  ;;  %v5650_v9 = vld [vmem:[%s7334_s3 + $0xb20] ss:$16 sps:$4 sm:$0xff]   ;;  %v5653_v10 = vld [vmem:[%s7334_s3 + $0xb28] ss:$16 sps:$4 sm:$0xff]  }
 0x1bf   :  { %3713 = vmatpush1.bf16.msra.mxu0 %v5590_v11  ;;  %3799 = vmatpush1.bf16.msra.mxu1 %v5593_v12  ;;  %v5658_v11 = vld [vmem:[%s7334_s3 + $0xb44] ss:$16 sps:$4 sm:$0xff]   ;;  %v5661_v12 = vld [vmem:[%s7334_s3 + $0xb4c] ss:$16 sps:$4 sm:$0xff]  }
 0x1c0   :  { %3725 = vmatprep.subr.bf16.mxu0 %v5598_v13  ;;  %3811 = vmatprep.subr.bf16.mxu1 %v5601_v14  ;;  %v5656_v13 = vld [vmem:[%s7334_s3 + $0xb40] ss:$16 sps:$4 sm:$0xff]   ;;  %v5659_v14 = vld [vmem:[%s7334_s3 + $0xb48] ss:$16 sps:$4 sm:$0xff]  }
 0x1c2   :  { %3715 = vmatmul.mubr.bf16.vlgmr.msra.gmra.mrb[4].mxu0 %v5693_v19  ;;  %3801 = vmatmul.mubr.bf16.vlgmr.msra.gmra.mrb[4].mxu1 %v5693_v19  ;;  %v5670_v19 = vld [vmem:[%s7334_s3 + $0xb84] ss:$16 sps:$4 sm:$0xff]  }
 0x1c3   :  { %3726 = vmatpush1.bf16.msra.mxu0 %v5596_v15  ;;  %3812 = vmatpush1.bf16.msra.mxu1 %v5599_v16  ;;  %v5664_v15 = vld [vmem:[%s7334_s3 + $0xb64] ss:$16 sps:$4 sm:$0xff]   ;;  %v5667_v16 = vld [vmem:[%s7334_s3 + $0xb6c] ss:$16 sps:$4 sm:$0xff]  }
 0x1c4   :  { %3727 = vmatprep.subr.bf16.mxu0 %v5604_v17  ;;  %3813 = vmatprep.subr.bf16.mxu1 %v5607_v18  ;;  %v5662_v17 = vld [vmem:[%s7334_s3 + $0xb60] ss:$16 sps:$4 sm:$0xff]   ;;  %v5665_v18 = vld [vmem:[%s7334_s3 + $0xb68] ss:$16 sps:$4 sm:$0xff]  }
 0x1c5   :  { %3757 = vmatprep.mubr.bf16.mxu0 %v5694_v24  ;;  %3843 = vmatprep.mubr.bf16.mxu1 %v5694_v24  ;;  %v5679_v24 = vld [vmem:[%s7334_s3 + $0xbac] ss:$16 sps:$4 sm:$0xff]  }
 0x1c7   :  { %3728 = vmatpush1.bf16.msra.mxu0 %v5602_v20  ;;  %3814 = vmatpush1.bf16.msra.mxu1 %v5605_v21  ;;  %v5673_v20 = vld [vmem:[%s7334_s3 + $0xb8c] ss:$16 sps:$4 sm:$0xff]   ;;  %v5668_v21 = vld [vmem:[%s7334_s3 + $0xb80] ss:$16 sps:$4 sm:$0xff]  }
 0x1c8   :  { %3729 = vmatprep.subr.bf16.mxu0 %v5610_v22  ;;  %3815 = vmatprep.subr.bf16.mxu1 %v5613_v23  ;;  %v5671_v22 = vld [vmem:[%s7334_s3 + $0xb88] ss:$16 sps:$4 sm:$0xff]   ;;  %v5676_v23 = vld [vmem:[%s7334_s3 + $0xba4] ss:$16 sps:$4 sm:$0xff]  }
 0x1cb   :  { %3730 = vmatpush1.bf16.msra.mxu0 %v5608_v25  ;;  %3816 = vmatpush1.bf16.msra.mxu1 %v5611_v26  ;;  %v5674_v25 = vld [vmem:[%s7334_s3 + $0xba0] ss:$16 sps:$4 sm:$0xff]   ;;  %v5677_v26 = vld [vmem:[%s7334_s3 + $0xba8] ss:$16 sps:$4 sm:$0xff]  }
 0x1cc   :  { %3731 = vmatprep.subr.bf16.mxu0 %v5616_v27  ;;  %3817 = vmatprep.subr.bf16.mxu1 %v5619_v28  ;;  %v5682_v27 = vld [vmem:[%s7334_s3 + $0xbc4] ss:$16 sps:$4 sm:$0xff]   ;;  %v5685_v28 = vld [vmem:[%s7334_s3 + $0xbcc] ss:$16 sps:$4 sm:$0xff]  }
 0x1cf   :  { %3732 = vmatpush1.bf16.msra.mxu0 %v5614_v29  ;;  %3818 = vmatpush1.bf16.msra.mxu1 %v5617_v30  ;;  %v5680_v29 = vld [vmem:[%s7334_s3 + $0xbc0] ss:$16 sps:$4 sm:$0xff]   ;;  %v5683_v30 = vld [vmem:[%s7334_s3 + $0xbc8] ss:$16 sps:$4 sm:$0xff]  }
 0x1d0   :  { %3733 = vmatprep.subr.bf16.mxu0 %v5622_v31  ;;  %3819 = vmatprep.subr.bf16.mxu1 %v5625_v32  ;;  %v5688_v31 = vld [vmem:[%s7334_s3 + $0xbe4] ss:$16 sps:$4 sm:$0xff]   ;;  %v5691_v32 = vld [vmem:[%s7334_s3 + $0xbec] ss:$16 sps:$4 sm:$0xff]  }
 0x1d3   :  { %3734 = vmatpush1.bf16.msra.mxu0 %v5620_v33  ;;  %3820 = vmatpush1.bf16.msra.mxu1 %v5623_v34  ;;  %v5686_v33 = vld [vmem:[%s7334_s3 + $0xbe0] ss:$16 sps:$4 sm:$0xff]   ;;  %v5689_v34 = vld [vmem:[%s7334_s3 + $0xbe8] ss:$16 sps:$4 sm:$0xff]  }
 0x1d4   :  { %3735 = vmatprep.subr.bf16.mxu0 %v5628_v35  ;;  %3821 = vmatprep.subr.bf16.mxu1 %v5631_v36  ;;  %v5695_v35 = vld [vmem:[%s7336_s0 + $0x8] ss:$16 sps:$4 sm:$0xff]  }
 0x1d5   :  { %v1854_v41 = vpop.f32.mrb[0].mxu0  ;;  %v1940_v42 = vpop.f32.mrb[0].mxu1 }
 0x1d6   :  { %v3854_v44 = vmax.f32 %v1854_v41, 0.0  ;;  %v3856_v45 = vmax.f32 %v1940_v42, 0.0  ;;  %v1856_v46 = vpop.f32.mrb[1].mxu0  ;;  %v1942_v47 = vpop.f32.mrb[1].mxu1 }
 0x1d7   :  { %v3855_v49 = vmax.f32 %v1856_v46, 0.0  ;;  %v3857_v50 = vmax.f32 %v1942_v47, 0.0  ;;  %v1858_v51 = vpop.f32.mrb[2].mxu0  ;;  %v1944_v52 = vpop.f32.mrb[2].mxu1  ;;  %3736 = vmatpush1.bf16.msra.mxu0 %v5626_v37  ;;  %3822 = vmatpush1.bf16.msra.mxu1 %v5629_v38 }
 0x1d8   :  { %v3858_v54 = vmax.f32 %v1858_v51, 0.0  ;;  %v3860_v55 = vmax.f32 %v1944_v52, 0.0  ;;  %v1860_v56 = vpop.f32.mrb[3].mxu0  ;;  %v1946_v57 = vpop.f32.mrb[3].mxu1  ;;  %3737 = vmatprep.subr.bf16.mxu0 %v5634_v39  ;;  %3823 = vmatprep.subr.bf16.mxu1 %v5637_v40 }
 0x1d9   :  { %v4850_v59 = vpack.c.bf16 %v3855_v49, %v3854_v44  ;;  %v4851_v60 = vpack.c.bf16 %v3857_v50, %v3856_v45  ;;  %v3859_v61 = vmax.f32 %v1860_v56, 0.0  ;;  %v3861_v62 = vmax.f32 %v1946_v57, 0.0 }
 0x1db   :  { %3894 = vst [vmem:[%s7338_s4] sm:$0xff] %v4850_v59  ;;  %3895 = vst [vmem:[%s7338_s4 + $0x8] sm:$0xff] %v4851_v60  ;;  %v4852_v63 = vpack.c.bf16 %v3859_v61, %v3858_v54  ;;  %v4853_v0 = vpack.c.bf16 %v3861_v62, %v3860_v55  ;;  %3738 = vmatpush1.bf16.msra.mxu0 %v5632_v43  ;;  %3824 = vmatpush1.bf16.msra.mxu1 %v5635_v48 }
 0x1dc   :  { %3739 = vmatprep.subr.bf16.mxu0 %v5640_v53  ;;  %3825 = vmatprep.subr.bf16.mxu1 %v5643_v58 }
 0x1dd   :  { %3896 = vst [vmem:[%s7338_s4 + $0x10] sm:$0xff] %v4852_v63  ;;  %3897 = vst [vmem:[%s7338_s4 + $0x18] sm:$0xff] %v4853_v0 }
 0x1df   :  { %3740 = vmatpush1.bf16.msra.mxu0 %v5638_v1  ;;  %3826 = vmatpush1.bf16.msra.mxu1 %v5641_v2 }
 0x1e0   :  { %3741 = vmatprep.subr.bf16.mxu0 %v5646_v3  ;;  %3827 = vmatprep.subr.bf16.mxu1 %v5649_v4 }
 0x1e3   :  { %3742 = vmatpush1.bf16.msra.mxu0 %v5644_v5  ;;  %3828 = vmatpush1.bf16.msra.mxu1 %v5647_v6 }
 0x1e4   :  { %3743 = vmatprep.subr.bf16.mxu0 %v5652_v7  ;;  %3829 = vmatprep.subr.bf16.mxu1 %v5655_v8 }
 0x1e7   :  { %3744 = vmatpush1.bf16.msra.mxu0 %v5650_v9  ;;  %3830 = vmatpush1.bf16.msra.mxu1 %v5653_v10 }
 0x1e8   :  { %3745 = vmatprep.subr.bf16.mxu0 %v5658_v11  ;;  %3831 = vmatprep.subr.bf16.mxu1 %v5661_v12 }
 0x1eb   :  { %3746 = vmatpush1.bf16.msra.mxu0 %v5656_v13  ;;  %3832 = vmatpush1.bf16.msra.mxu1 %v5659_v14 }
 0x1ec   :  { %3747 = vmatprep.subr.bf16.mxu0 %v5664_v15  ;;  %3833 = vmatprep.subr.bf16.mxu1 %v5667_v16 }
 0x1ef   :  { %3748 = vmatpush1.bf16.msra.mxu0 %v5662_v17  ;;  %3834 = vmatpush1.bf16.msra.mxu1 %v5665_v18 }
 0x1f0   :  { %3749 = vmatprep.subr.bf16.mxu0 %v5670_v19  ;;  %3835 = vmatprep.subr.bf16.mxu1 %v5673_v20 }
 0x1f3   :  { %3750 = vmatpush1.bf16.msra.mxu0 %v5668_v21  ;;  %3836 = vmatpush1.bf16.msra.mxu1 %v5671_v22 }
 0x1f4   :  { %3751 = vmatprep.subr.bf16.mxu0 %v5676_v23  ;;  %3837 = vmatprep.subr.bf16.mxu1 %v5679_v24 }
 0x1f7   :  { %3752 = vmatpush1.bf16.msra.mxu0 %v5674_v25  ;;  %3838 = vmatpush1.bf16.msra.mxu1 %v5677_v26 }
 0x1f8   :  { %3753 = vmatprep.subr.bf16.mxu0 %v5682_v27  ;;  %3839 = vmatprep.subr.bf16.mxu1 %v5685_v28 }
 0x1fb   :  { %3754 = vmatpush1.bf16.msra.mxu0 %v5680_v29  ;;  %3840 = vmatpush1.bf16.msra.mxu1 %v5683_v30 }
 0x1fc   :  { %3755 = vmatprep.subr.bf16.mxu0 %v5688_v31  ;;  %3841 = vmatprep.subr.bf16.mxu1 %v5691_v32 }
 0x1ff   :  { %3756 = vmatpush1.bf16.msra.mxu0 %v5686_v33  ;;  %3842 = vmatpush1.bf16.msra.mxu1 %v5689_v34 }
 0x202   :  { %3758 = vmatmul.mubr.bf16.vlgmr.msra.gmra.mrb[4].mxu0 %v5695_v35  ;;  %3844 = vmatmul.mubr.bf16.vlgmr.msra.gmra.mrb[4].mxu1 %v5695_v35 }
 0x2d5   :  { %v3759_v36 = vpop.f32.mrb[4].mxu0  ;;  %v3845_v37 = vpop.f32.mrb[4].mxu1 }
 0x2d6   :  { %v3862_v38 = vmax.f32 %v3759_v36, 0.0  ;;  %v3864_v39 = vmax.f32 %v3845_v37, 0.0  ;;  %v3761_v40 = vpop.f32.mrb[5].mxu0  ;;  %v3847_v41 = vpop.f32.mrb[5].mxu1 }
 0x2d7   :  { %v3863_v42 = vmax.f32 %v3761_v40, 0.0  ;;  %v3865_v43 = vmax.f32 %v3847_v41, 0.0  ;;  %v3763_v44 = vpop.f32.mrb[6].mxu0  ;;  %v3849_v45 = vpop.f32.mrb[6].mxu1 }
 0x2d8   :  { %v3866_v46 = vmax.f32 %v3763_v44, 0.0  ;;  %v3868_v47 = vmax.f32 %v3849_v45, 0.0  ;;  %v3765_v48 = vpop.f32.mrb[7].mxu0  ;;  %v3851_v49 = vpop.f32.mrb[7].mxu1 }
 0x2d9   :  { %v4854_v50 = vpack.c.bf16 %v3863_v42, %v3862_v38  ;;  %v4855_v51 = vpack.c.bf16 %v3865_v43, %v3864_v39  ;;  %v3867_v52 = vmax.f32 %v3765_v48, 0.0  ;;  %v3869_v53 = vmax.f32 %v3851_v49, 0.0 }
 0x2db   :  { %3922 = vst [vmem:[%s7339_s5] sm:$0xff] %v4854_v50  ;;  %3923 = vst [vmem:[%s7339_s5 + $0x8] sm:$0xff] %v4855_v51  ;;  %v4856_v54 = vpack.c.bf16 %v3867_v52, %v3866_v46  ;;  %v4857_v55 = vpack.c.bf16 %v3869_v53, %v3868_v47 }
 0x2dd   :  { %3924 = vst [vmem:[%s7339_s5 + $0x10] sm:$0xff] %v4856_v54  ;;  %3925 = vst [vmem:[%s7339_s5 + $0x18] sm:$0xff] %v4857_v55 }

// kernel: generator_forward.5
= control target key start
LH: loop header
LB: loop body
LE: loop exit
PB: predicated region body
PF: predicated region fallthrough
CT: control target
= control target key end

     0   :  { %11 = vsyncpa [#allocation3], 0  ;;  %s5252_s18 = smov [#allocation2]   ;;  %s5381_s0 = inlined_call_operand.vmem [shape: bf16[8,512], index: 0, kind: input, shape index: {}]   ;;  %s5382_s1 = inlined_call_operand.vmem [shape: bf16[8,512], index: 1, kind: input, shape index: {}]   ;;  %s5383_s2 = inlined_call_operand.vmem [shape: bf16[8,512], index: 2, kind: input, shape index: {}]   ;;  %s5384_s3 = inlined_call_operand.hbm [shape: bf16[4,512,512], index: 3, kind: input, shape index: {}]   ;;  %s5385_s4 = inlined_call_operand.vmem [shape: bf16[8,512], index: 4, kind: output, shape index: {0}]   ;;  %s5386_s5 = inlined_call_operand.vmem [shape: bf16[8,512], index: 5, kind: output, shape index: {1}]  }
   0x1   :  { %s23_s19 = sshll.u32 %s5252_s18, 4  ;;  %s5228_s22 = scalar_lea.hbm %s5384_s3, 65536  ;;  %s24_s19 = int_to_ptr.vmem [resolvable:$true] %s23_s19 }
   0x2   :  { %p5229_p0 = scmp.ne.s32.totalorder %s5384_s3, %s5228_s22  ;;  %p5232_p1 = scmp.lt.u32.totalorder %s5228_s22, %s5384_s3 }
   0x4   :  { %p5234_p2 = pnand %p5232_p1, %p5229_p0 }
   0x6   :  { %5237 = shalt.err (!%p5234_p2)
}
   0x7   :  { %s5238_s27 = scalar_lea.vmem %s24_s19, 65536  ;;  %p5243_p4 = scmp.lt.s32.totalorder %s24_s19, %s24_s19 }
   0x8   :  { %p5239_p3 = scmp.ne.s32.totalorder %s24_s19, %s5238_s27  ;;  %p5244_p5 = scmp.lt.s32.totalorder %s5238_s27, %s5238_s27 }
   0xa   :  { %p5245_p6 = por %p5244_p5, %p5243_p4 }
   0xc   :  { %p5246_p7 = pnand %p5245_p6, %p5239_p3 }
   0xe   :  { %5249 = shalt.err (!%p5246_p7)
}
   0xf   :  { %s5253_s28 = smov 256   ;;  %s5254_s29 = smov 16  }
  0x10   :  { %29 = dma.hbm_to_vmem [thread:$0]  %s5384_s3, 65536, %s24_s19, [#allocation3], %s5253_s28, %s5253_s28, %s5254_s29  }
  0x11   :  { %5250 = dma.done.wait [#allocation3], 65536  }
  0x12   :  { %5251 = vsyncadd [#allocation3], 4294901760  ;;  %v4448_v0 = vld [vmem:[#allocation2 + $0xc04] ss:$16 sps:$4 sm:$0xff]   ;;  %v4450_v1 = vld [vmem:[#allocation2 + $0xc0c] ss:$16 sps:$4 sm:$0xff]  }
  0x13   :  { %949 = vmatprep.subr.bf16.mxu0 %v4448_v0  ;;  %v4452_v2 = vld [vmem:[#allocation2 + $0xc00] ss:$16 sps:$4 sm:$0xff]   ;;  %v4453_v3 = vld [vmem:[#allocation2 + $0xc08] ss:$16 sps:$4 sm:$0xff]   ;;  %1031 = vmatprep.subr.bf16.mxu1 %v4450_v1  ;;  %v4454_v4 = vld [vmem:[#allocation2 + $0xc24] ss:$16 sps:$4 sm:$0xff]  }
  0x14   :  { %950 = vmatpush1.bf16.msra.mxu0 %v4452_v2  ;;  %1032 = vmatpush1.bf16.msra.mxu1 %v4453_v3  ;;  %v4456_v5 = vld [vmem:[#allocation2 + $0xc2c] ss:$16 sps:$4 sm:$0xff]   ;;  %v4458_v6 = vld [vmem:[#allocation2 + $0xc20] ss:$16 sps:$4 sm:$0xff]   ;;  %v4459_v7 = vld [vmem:[#allocation2 + $0xc28] ss:$16 sps:$4 sm:$0xff]  }
  0x15   :  { %951 = vmatprep.subr.bf16.mxu0 %v4454_v4  ;;  %1033 = vmatprep.subr.bf16.mxu1 %v4456_v5  ;;  %v4460_v8 = vld [vmem:[#allocation2 + $0xc44] ss:$16 sps:$4 sm:$0xff]   ;;  %v4462_v9 = vld [vmem:[#allocation2 + $0xc4c] ss:$16 sps:$4 sm:$0xff]   ;;  %v4464_v10 = vld [vmem:[#allocation2 + $0xc40] ss:$16 sps:$4 sm:$0xff]  }
  0x16   :  { %v4465_v11 = vld [vmem:[#allocation2 + $0xc48] ss:$16 sps:$4 sm:$0xff]   ;;  %v4466_v12 = vld [vmem:[#allocation2 + $0xc64] ss:$16 sps:$4 sm:$0xff]   ;;  %v4468_v13 = vld [vmem:[#allocation2 + $0xc6c] ss:$16 sps:$4 sm:$0xff]  }
  0x17   :  { %v4470_v14 = vld [vmem:[#allocation2 + $0xc60] ss:$16 sps:$4 sm:$0xff]   ;;  %v4471_v15 = vld [vmem:[#allocation2 + $0xc68] ss:$16 sps:$4 sm:$0xff]   ;;  %v4472_v16 = vld [vmem:[#allocation2 + $0xc84] ss:$16 sps:$4 sm:$0xff]  }
  0x18   :  { %952 = vmatpush1.bf16.msra.mxu0 %v4458_v6  ;;  %1034 = vmatpush1.bf16.msra.mxu1 %v4459_v7  ;;  %v4474_v17 = vld [vmem:[#allocation2 + $0xc8c] ss:$16 sps:$4 sm:$0xff]   ;;  %v4476_v18 = vld [vmem:[#allocation2 + $0xc80] ss:$16 sps:$4 sm:$0xff]   ;;  %v4477_v19 = vld [vmem:[#allocation2 + $0xc88] ss:$16 sps:$4 sm:$0xff]  }
  0x19   :  { %953 = vmatprep.subr.bf16.mxu0 %v4460_v8  ;;  %1035 = vmatprep.subr.bf16.mxu1 %v4462_v9  ;;  %v4478_v20 = vld [vmem:[#allocation2 + $0xca4] ss:$16 sps:$4 sm:$0xff]   ;;  %v4480_v21 = vld [vmem:[#allocation2 + $0xcac] ss:$16 sps:$4 sm:$0xff]   ;;  %v4482_v22 = vld [vmem:[#allocation2 + $0xca0] ss:$16 sps:$4 sm:$0xff]  }
  0x1a   :  { %v4483_v23 = vld [vmem:[#allocation2 + $0xca8] ss:$16 sps:$4 sm:$0xff]   ;;  %v4484_v24 = vld [vmem:[#allocation2 + $0xcc4] ss:$16 sps:$4 sm:$0xff]   ;;  %v4486_v25 = vld [vmem:[#allocation2 + $0xccc] ss:$16 sps:$4 sm:$0xff]  }
  0x1b   :  { %v4488_v26 = vld [vmem:[#allocation2 + $0xcc0] ss:$16 sps:$4 sm:$0xff]   ;;  %v4489_v27 = vld [vmem:[#allocation2 + $0xcc8] ss:$16 sps:$4 sm:$0xff]   ;;  %v4490_v28 = vld [vmem:[#allocation2 + $0xce4] ss:$16 sps:$4 sm:$0xff]  }
  0x1c   :  { %954 = vmatpush1.bf16.msra.mxu0 %v4464_v10  ;;  %1036 = vmatpush1.bf16.msra.mxu1 %v4465_v11  ;;  %v4492_v29 = vld [vmem:[#allocation2 + $0xcec] ss:$16 sps:$4 sm:$0xff]   ;;  %v4494_v30 = vld [vmem:[#allocation2 + $0xce0] ss:$16 sps:$4 sm:$0xff]   ;;  %v4495_v31 = vld [vmem:[#allocation2 + $0xce8] ss:$16 sps:$4 sm:$0xff]  }
  0x1d   :  { %955 = vmatprep.subr.bf16.mxu0 %v4466_v12  ;;  %1037 = vmatprep.subr.bf16.mxu1 %v4468_v13  ;;  %v4496_v32 = vld [vmem:[#allocation2 + $0xd04] ss:$16 sps:$4 sm:$0xff]   ;;  %v4498_v33 = vld [vmem:[#allocation2 + $0xd0c] ss:$16 sps:$4 sm:$0xff]   ;;  %v4500_v34 = vld [vmem:[#allocation2 + $0xd00] ss:$16 sps:$4 sm:$0xff]  }
  0x1e   :  { %v4501_v35 = vld [vmem:[#allocation2 + $0xd08] ss:$16 sps:$4 sm:$0xff]   ;;  %v4502_v36 = vld [vmem:[#allocation2 + $0xd24] ss:$16 sps:$4 sm:$0xff]   ;;  %v4504_v37 = vld [vmem:[#allocation2 + $0xd2c] ss:$16 sps:$4 sm:$0xff]  }
  0x1f   :  { %v4506_v38 = vld [vmem:[#allocation2 + $0xd20] ss:$16 sps:$4 sm:$0xff]   ;;  %v4507_v39 = vld [vmem:[#allocation2 + $0xd28] ss:$16 sps:$4 sm:$0xff]   ;;  %v4508_v40 = vld [vmem:[#allocation2 + $0xd44] ss:$16 sps:$4 sm:$0xff]  }
  0x20   :  { %956 = vmatpush1.bf16.msra.mxu0 %v4470_v14  ;;  %1038 = vmatpush1.bf16.msra.mxu1 %v4471_v15  ;;  %v4510_v41 = vld [vmem:[#allocation2 + $0xd4c] ss:$16 sps:$4 sm:$0xff]   ;;  %v4512_v42 = vld [vmem:[#allocation2 + $0xd40] ss:$16 sps:$4 sm:$0xff]   ;;  %v4513_v43 = vld [vmem:[#allocation2 + $0xd48] ss:$16 sps:$4 sm:$0xff]  }
  0x21   :  { %957 = vmatprep.subr.bf16.mxu0 %v4472_v16  ;;  %1039 = vmatprep.subr.bf16.mxu1 %v4474_v17  ;;  %v4514_v44 = vld [vmem:[#allocation2 + $0xd64] ss:$16 sps:$4 sm:$0xff]   ;;  %v4516_v45 = vld [vmem:[#allocation2 + $0xd6c] ss:$16 sps:$4 sm:$0xff]   ;;  %v4518_v47 = vld [vmem:[#allocation2 + $0xd60] ss:$16 sps:$4 sm:$0xff]  }
  0x22   :  { %v164_v46 = vld [vmem:[%s5382_s1] sm:$0xff]  ;;  %v4519_v49 = vld [vmem:[#allocation2 + $0xd68] ss:$16 sps:$4 sm:$0xff]   ;;  %v4522_v51 = vld [vmem:[#allocation2 + $0xd8c] ss:$16 sps:$4 sm:$0xff]  }
  0x23   :  { %v3866_v48 = vcombine.high %v164_v46, %v164_v46  ;;  %v4520_v50 = vld [vmem:[#allocation2 + $0xd84] ss:$16 sps:$4 sm:$0xff]   ;;  %v4524_v52 = vld [vmem:[#allocation2 + $0xd80] ss:$16 sps:$4 sm:$0xff]   ;;  %v4525_v53 = vld [vmem:[#allocation2 + $0xd88] ss:$16 sps:$4 sm:$0xff]   ;;  %v3865_v4 = vcombine.low %v164_v46, %v164_v46 }
  0x24   :  { %958 = vmatpush1.bf16.msra.mxu0 %v4476_v18  ;;  %1040 = vmatpush1.bf16.msra.mxu1 %v4477_v19  ;;  %v4526_v54 = vld [vmem:[#allocation2 + $0xda4] ss:$16 sps:$4 sm:$0xff]   ;;  %v4528_v55 = vld [vmem:[#allocation2 + $0xdac] ss:$16 sps:$4 sm:$0xff]   ;;  %v4530_v56 = vld [vmem:[#allocation2 + $0xda0] ss:$16 sps:$4 sm:$0xff]  }
  0x25   :  { %959 = vmatprep.subr.bf16.mxu0 %v4478_v20  ;;  %1041 = vmatprep.subr.bf16.mxu1 %v4480_v21  ;;  %v4531_v57 = vld [vmem:[#allocation2 + $0xda8] ss:$16 sps:$4 sm:$0xff]   ;;  %v4532_v58 = vld [vmem:[#allocation2 + $0xdc4] ss:$16 sps:$4 sm:$0xff]   ;;  %v4534_v59 = vld [vmem:[#allocation2 + $0xdcc] ss:$16 sps:$4 sm:$0xff]  }
  0x26   :  { %981 = vmatprep.mubr.bf16.mxu0 %v3866_v48  ;;  %1063 = vmatprep.mubr.bf16.mxu1 %v3866_v48  ;;  %v4536_v60 = vld [vmem:[#allocation2 + $0xdc0] ss:$16 sps:$4 sm:$0xff]   ;;  %v4537_v61 = vld [vmem:[#allocation2 + $0xdc8] ss:$16 sps:$4 sm:$0xff]   ;;  %v4538_v62 = vld [vmem:[#allocation2 + $0xde4] ss:$16 sps:$4 sm:$0xff]  }
  0x27   :  { %v4540_v63 = vld [vmem:[#allocation2 + $0xdec] ss:$16 sps:$4 sm:$0xff]   ;;  %v4542_v0 = vld [vmem:[#allocation2 + $0xde0] ss:$16 sps:$4 sm:$0xff]   ;;  %v4543_v1 = vld [vmem:[#allocation2 + $0xde8] ss:$16 sps:$4 sm:$0xff]  }
  0x28   :  { %960 = vmatpush1.bf16.msra.mxu0 %v4482_v22  ;;  %1042 = vmatpush1.bf16.msra.mxu1 %v4483_v23  ;;  %v4548_v2 = vld [vmem:[#allocation2 + $0xe04] ss:$16 sps:$4 sm:$0xff]   ;;  %v4551_v3 = vld [vmem:[#allocation2 + $0xe0c] ss:$16 sps:$4 sm:$0xff]   ;;  %v4546_v5 = vld [vmem:[#allocation2 + $0xe00] ss:$16 sps:$4 sm:$0xff]  }
  0x29   :  { %961 = vmatprep.subr.bf16.mxu0 %v4484_v24  ;;  %1043 = vmatprep.subr.bf16.mxu1 %v4486_v25  ;;  %v4549_v6 = vld [vmem:[#allocation2 + $0xe08] ss:$16 sps:$4 sm:$0xff]   ;;  %v4554_v7 = vld [vmem:[#allocation2 + $0xe24] ss:$16 sps:$4 sm:$0xff]   ;;  %v4557_v8 = vld [vmem:[#allocation2 + $0xe2c] ss:$16 sps:$4 sm:$0xff]  }
  0x2a   :  { %v4552_v9 = vld [vmem:[#allocation2 + $0xe20] ss:$16 sps:$4 sm:$0xff]   ;;  %v4555_v10 = vld [vmem:[#allocation2 + $0xe28] ss:$16 sps:$4 sm:$0xff]   ;;  %v4560_v11 = vld [vmem:[#allocation2 + $0xe44] ss:$16 sps:$4 sm:$0xff]  }
  0x2b   :  { %v4563_v12 = vld [vmem:[#allocation2 + $0xe4c] ss:$16 sps:$4 sm:$0xff]   ;;  %v4558_v13 = vld [vmem:[#allocation2 + $0xe40] ss:$16 sps:$4 sm:$0xff]   ;;  %v4561_v14 = vld [vmem:[#allocation2 + $0xe48] ss:$16 sps:$4 sm:$0xff]  }
  0x2c   :  { %962 = vmatpush1.bf16.msra.mxu0 %v4488_v26  ;;  %1044 = vmatpush1.bf16.msra.mxu1 %v4489_v27  ;;  %v4566_v15 = vld [vmem:[#allocation2 + $0xe64] ss:$16 sps:$4 sm:$0xff]   ;;  %v4569_v16 = vld [vmem:[#allocation2 + $0xe6c] ss:$16 sps:$4 sm:$0xff]   ;;  %v4564_v17 = vld [vmem:[#allocation2 + $0xe60] ss:$16 sps:$4 sm:$0xff]  }
  0x2d   :  { %963 = vmatprep.subr.bf16.mxu0 %v4490_v28  ;;  %1045 = vmatprep.subr.bf16.mxu1 %v4492_v29  ;;  %v4567_v18 = vld [vmem:[#allocation2 + $0xe68] ss:$16 sps:$4 sm:$0xff]   ;;  %v4572_v19 = vld [vmem:[#allocation2 + $0xe84] ss:$16 sps:$4 sm:$0xff]   ;;  %v4575_v20 = vld [vmem:[#allocation2 + $0xe8c] ss:$16 sps:$4 sm:$0xff]  }
  0x2e   :  { %v4570_v21 = vld [vmem:[#allocation2 + $0xe80] ss:$16 sps:$4 sm:$0xff]   ;;  %v4573_v22 = vld [vmem:[#allocation2 + $0xe88] ss:$16 sps:$4 sm:$0xff]   ;;  %v4578_v23 = vld [vmem:[#allocation2 + $0xea4] ss:$16 sps:$4 sm:$0xff]  }
  0x2f   :  { %v4581_v24 = vld [vmem:[#allocation2 + $0xeac] ss:$16 sps:$4 sm:$0xff]   ;;  %v4576_v25 = vld [vmem:[#allocation2 + $0xea0] ss:$16 sps:$4 sm:$0xff]   ;;  %v4579_v26 = vld [vmem:[#allocation2 + $0xea8] ss:$16 sps:$4 sm:$0xff]  }
  0x30   :  { %964 = vmatpush1.bf16.msra.mxu0 %v4494_v30  ;;  %1046 = vmatpush1.bf16.msra.mxu1 %v4495_v31  ;;  %v4584_v27 = vld [vmem:[#allocation2 + $0xec4] ss:$16 sps:$4 sm:$0xff]   ;;  %v4587_v28 = vld [vmem:[#allocation2 + $0xecc] ss:$16 sps:$4 sm:$0xff]   ;;  %v4582_v31 = vld [vmem:[#allocation2 + $0xec0] ss:$16 sps:$4 sm:$0xff]  }
  0x31   :  { %965 = vmatprep.subr.bf16.mxu0 %v4496_v32  ;;  %1047 = vmatprep.subr.bf16.mxu1 %v4498_v33  ;;  %v5303_v29 = vld [vmem:[%s5382_s1 + $0x8] sm:$0xff]  ;;  %v4590_v33 = vld [vmem:[#allocation2 + $0xee4] ss:$16 sps:$4 sm:$0xff]  }
  0x32   :  { %v3868_v30 = vcombine.high %v5303_v29, %v5303_v29  ;;  %v4585_v32 = vld [vmem:[#allocation2 + $0xec8] ss:$16 sps:$4 sm:$0xff]   ;;  %v4611_v46 = vld [vmem:[#allocation2 + $0xf4c] ss:$16 sps:$4 sm:$0xff]  }
  0x33   :  { %v4609_v48 = vld [vmem:[#allocation2 + $0xf48] ss:$16 sps:$4 sm:$0xff]  }
  0x34   :  { %966 = vmatpush1.bf16.msra.mxu0 %v4500_v34  ;;  %1048 = vmatpush1.bf16.msra.mxu1 %v4501_v35  ;;  %v4593_v34 = vld [vmem:[#allocation2 + $0xeec] ss:$16 sps:$4 sm:$0xff]   ;;  %v4588_v35 = vld [vmem:[#allocation2 + $0xee0] ss:$16 sps:$4 sm:$0xff]  }
  0x35   :  { %967 = vmatprep.subr.bf16.mxu0 %v4502_v36  ;;  %1049 = vmatprep.subr.bf16.mxu1 %v4504_v37  ;;  %v4591_v36 = vld [vmem:[#allocation2 + $0xee8] ss:$16 sps:$4 sm:$0xff]   ;;  %v4596_v37 = vld [vmem:[#allocation2 + $0xf04] ss:$16 sps:$4 sm:$0xff]  }
  0x38   :  { %968 = vmatpush1.bf16.msra.mxu0 %v4506_v38  ;;  %1050 = vmatpush1.bf16.msra.mxu1 %v4507_v39  ;;  %v4599_v38 = vld [vmem:[#allocation2 + $0xf0c] ss:$16 sps:$4 sm:$0xff]   ;;  %v4594_v39 = vld [vmem:[#allocation2 + $0xf00] ss:$16 sps:$4 sm:$0xff]  }
  0x39   :  { %969 = vmatprep.subr.bf16.mxu0 %v4508_v40  ;;  %1051 = vmatprep.subr.bf16.mxu1 %v4510_v41  ;;  %v4597_v40 = vld [vmem:[#allocation2 + $0xf08] ss:$16 sps:$4 sm:$0xff]   ;;  %v4602_v41 = vld [vmem:[#allocation2 + $0xf24] ss:$16 sps:$4 sm:$0xff]  }
  0x3c   :  { %970 = vmatpush1.bf16.msra.mxu0 %v4512_v42  ;;  %1052 = vmatpush1.bf16.msra.mxu1 %v4513_v43  ;;  %v4605_v42 = vld [vmem:[#allocation2 + $0xf2c] ss:$16 sps:$4 sm:$0xff]   ;;  %v4600_v43 = vld [vmem:[#allocation2 + $0xf20] ss:$16 sps:$4 sm:$0xff]  }
  0x3d   :  { %971 = vmatprep.subr.bf16.mxu0 %v4514_v44  ;;  %1053 = vmatprep.subr.bf16.mxu1 %v4516_v45  ;;  %v4603_v44 = vld [vmem:[#allocation2 + $0xf28] ss:$16 sps:$4 sm:$0xff]   ;;  %v4608_v45 = vld [vmem:[#allocation2 + $0xf44] ss:$16 sps:$4 sm:$0xff]  }
  0x40   :  { %972 = vmatpush1.bf16.msra.mxu0 %v4518_v47  ;;  %1054 = vmatpush1.bf16.msra.mxu1 %v4519_v49  ;;  %v4606_v47 = vld [vmem:[#allocation2 + $0xf40] ss:$16 sps:$4 sm:$0xff]   ;;  %v4614_v49 = vld [vmem:[#allocation2 + $0xf64] ss:$16 sps:$4 sm:$0xff]  }
  0x41   :  { %973 = vmatprep.subr.bf16.mxu0 %v4520_v50  ;;  %1055 = vmatprep.subr.bf16.mxu1 %v4522_v51  ;;  %v4617_v50 = vld [vmem:[#allocation2 + $0xf6c] ss:$16 sps:$4 sm:$0xff]   ;;  %v4612_v51 = vld [vmem:[#allocation2 + $0xf60] ss:$16 sps:$4 sm:$0xff]  }
  0x44   :  { %974 = vmatpush1.bf16.msra.mxu0 %v4524_v52  ;;  %1056 = vmatpush1.bf16.msra.mxu1 %v4525_v53  ;;  %v4615_v52 = vld [vmem:[#allocation2 + $0xf68] ss:$16 sps:$4 sm:$0xff]   ;;  %v4620_v53 = vld [vmem:[#allocation2 + $0xf84] ss:$16 sps:$4 sm:$0xff]  }
  0x45   :  { %975 = vmatprep.subr.bf16.mxu0 %v4526_v54  ;;  %1057 = vmatprep.subr.bf16.mxu1 %v4528_v55  ;;  %v4623_v54 = vld [vmem:[#allocation2 + $0xf8c] ss:$16 sps:$4 sm:$0xff]   ;;  %v4618_v55 = vld [vmem:[#allocation2 + $0xf80] ss:$16 sps:$4 sm:$0xff]  }
  0x48   :  { %976 = vmatpush1.bf16.msra.mxu0 %v4530_v56  ;;  %1058 = vmatpush1.bf16.msra.mxu1 %v4531_v57  ;;  %v4621_v56 = vld [vmem:[#allocation2 + $0xf88] ss:$16 sps:$4 sm:$0xff]   ;;  %v4626_v57 = vld [vmem:[#allocation2 + $0xfa4] ss:$16 sps:$4 sm:$0xff]  }
  0x49   :  { %977 = vmatprep.subr.bf16.mxu0 %v4532_v58  ;;  %1059 = vmatprep.subr.bf16.mxu1 %v4534_v59  ;;  %v4629_v58 = vld [vmem:[#allocation2 + $0xfac] ss:$16 sps:$4 sm:$0xff]   ;;  %v4624_v59 = vld [vmem:[#allocation2 + $0xfa0] ss:$16 sps:$4 sm:$0xff]  }
  0x4c   :  { %978 = vmatpush1.bf16.msra.mxu0 %v4536_v60  ;;  %1060 = vmatpush1.bf16.msra.mxu1 %v4537_v61  ;;  %v4627_v60 = vld [vmem:[#allocation2 + $0xfa8] ss:$16 sps:$4 sm:$0xff]   ;;  %v4632_v61 = vld [vmem:[#allocation2 + $0xfc4] ss:$16 sps:$4 sm:$0xff]  }
  0x4d   :  { %979 = vmatprep.subr.bf16.mxu0 %v4538_v62  ;;  %1061 = vmatprep.subr.bf16.mxu1 %v4540_v63  ;;  %v4635_v62 = vld [vmem:[#allocation2 + $0xfcc] ss:$16 sps:$4 sm:$0xff]   ;;  %v4630_v63 = vld [vmem:[#allocation2 + $0xfc0] ss:$16 sps:$4 sm:$0xff]  }
  0x50   :  { %980 = vmatpush1.bf16.msra.mxu0 %v4542_v0  ;;  %1062 = vmatpush1.bf16.msra.mxu1 %v4543_v1  ;;  %v4633_v0 = vld [vmem:[#allocation2 + $0xfc8] ss:$16 sps:$4 sm:$0xff]   ;;  %v4638_v1 = vld [vmem:[#allocation2 + $0xfe4] ss:$16 sps:$4 sm:$0xff]  }
  0x51   :  { %990 = vmatprep.subr.bf16.mxu0 %v4548_v2  ;;  %1072 = vmatprep.subr.bf16.mxu1 %v4551_v3  ;;  %v4641_v2 = vld [vmem:[#allocation2 + $0xfec] ss:$16 sps:$4 sm:$0xff]   ;;  %v4636_v3 = vld [vmem:[#allocation2 + $0xfe0] ss:$16 sps:$4 sm:$0xff]  }
  0x53   :  { %982 = vmatmul.mubr.bf16.vlgmr.msra.gmra.mrb[0].mxu0 %v3865_v4  ;;  %1064 = vmatmul.mubr.bf16.vlgmr.msra.gmra.mrb[0].mxu1 %v3865_v4  ;;  %v4639_v4 = vld [vmem:[#allocation2 + $0xfe8] ss:$16 sps:$4 sm:$0xff]  }
  0x54   :  { %991 = vmatpush1.bf16.msra.mxu0 %v4546_v5  ;;  %1073 = vmatpush1.bf16.msra.mxu1 %v4549_v6  ;;  %v4646_v5 = vld [vmem:[#allocation2 + $0x404] ss:$16 sps:$4 sm:$0xff]   ;;  %v4649_v6 = vld [vmem:[#allocation2 + $0x40c] ss:$16 sps:$4 sm:$0xff]  }
  0x55   :  { %992 = vmatprep.subr.bf16.mxu0 %v4554_v7  ;;  %1074 = vmatprep.subr.bf16.mxu1 %v4557_v8  ;;  %v3867_v7 = vcombine.low %v5303_v29, %v5303_v29  ;;  %v4644_v8 = vld [vmem:[#allocation2 + $0x400] ss:$16 sps:$4 sm:$0xff]   ;;  %v4679_v29 = vld [vmem:[#allocation2 + $0x4ac] ss:$16 sps:$4 sm:$0xff]  }
  0x56   :  { %1022 = vmatprep.mubr.bf16.mxu0 %v3868_v30  ;;  %1104 = vmatprep.mubr.bf16.mxu1 %v3868_v30  ;;  %v4674_v30 = vld [vmem:[#allocation2 + $0x4a0] ss:$16 sps:$4 sm:$0xff]  }
  0x58   :  { %993 = vmatpush1.bf16.msra.mxu0 %v4552_v9  ;;  %1075 = vmatpush1.bf16.msra.mxu1 %v4555_v10  ;;  %v4647_v9 = vld [vmem:[#allocation2 + $0x408] ss:$16 sps:$4 sm:$0xff]   ;;  %v4652_v10 = vld [vmem:[#allocation2 + $0x424] ss:$16 sps:$4 sm:$0xff]  }
  0x59   :  { %994 = vmatprep.subr.bf16.mxu0 %v4560_v11  ;;  %1076 = vmatprep.subr.bf16.mxu1 %v4563_v12  ;;  %v5312_v11 = vld [vmem:[%s5381_s0] sm:$0xff]  ;;  %v4655_v12 = vld [vmem:[#allocation2 + $0x42c] ss:$16 sps:$4 sm:$0xff]  }
  0x5c   :  { %995 = vmatpush1.bf16.msra.mxu0 %v4558_v13  ;;  %1077 = vmatpush1.bf16.msra.mxu1 %v4561_v14  ;;  %v5316_v13 = vcombine.high %v5312_v11, %v5312_v11  ;;  %v4650_v14 = vld [vmem:[#allocation2 + $0x420] ss:$16 sps:$4 sm:$0xff]  }
  0x5d   :  { %996 = vmatprep.subr.bf16.mxu0 %v4566_v15  ;;  %1078 = vmatprep.subr.bf16.mxu1 %v4569_v16  ;;  %v4653_v15 = vld [vmem:[#allocation2 + $0x428] ss:$16 sps:$4 sm:$0xff]   ;;  %v4658_v16 = vld [vmem:[#allocation2 + $0x444] ss:$16 sps:$4 sm:$0xff]  }
  0x60   :  { %997 = vmatpush1.bf16.msra.mxu0 %v4564_v17  ;;  %1079 = vmatpush1.bf16.msra.mxu1 %v4567_v18  ;;  %v4661_v17 = vld [vmem:[#allocation2 + $0x44c] ss:$16 sps:$4 sm:$0xff]   ;;  %v4656_v18 = vld [vmem:[#allocation2 + $0x440] ss:$16 sps:$4 sm:$0xff]  }
  0x61   :  { %998 = vmatprep.subr.bf16.mxu0 %v4572_v19  ;;  %1080 = vmatprep.subr.bf16.mxu1 %v4575_v20  ;;  %v4659_v19 = vld [vmem:[#allocation2 + $0x448] ss:$16 sps:$4 sm:$0xff]   ;;  %v4664_v20 = vld [vmem:[#allocation2 + $0x464] ss:$16 sps:$4 sm:$0xff]  }
  0x64   :  { %999 = vmatpush1.bf16.msra.mxu0 %v4570_v21  ;;  %1081 = vmatpush1.bf16.msra.mxu1 %v4573_v22  ;;  %v4667_v21 = vld [vmem:[#allocation2 + $0x46c] ss:$16 sps:$4 sm:$0xff]   ;;  %v4662_v22 = vld [vmem:[#allocation2 + $0x460] ss:$16 sps:$4 sm:$0xff]  }
  0x65   :  { %1000 = vmatprep.subr.bf16.mxu0 %v4578_v23  ;;  %1082 = vmatprep.subr.bf16.mxu1 %v4581_v24  ;;  %v4665_v23 = vld [vmem:[#allocation2 + $0x468] ss:$16 sps:$4 sm:$0xff]   ;;  %v4670_v24 = vld [vmem:[#allocation2 + $0x484] ss:$16 sps:$4 sm:$0xff]  }
  0x68   :  { %1001 = vmatpush1.bf16.msra.mxu0 %v4576_v25  ;;  %1083 = vmatpush1.bf16.msra.mxu1 %v4579_v26  ;;  %v4673_v25 = vld [vmem:[#allocation2 + $0x48c] ss:$16 sps:$4 sm:$0xff]   ;;  %v4668_v26 = vld [vmem:[#allocation2 + $0x480] ss:$16 sps:$4 sm:$0xff]  }
  0x69   :  { %1002 = vmatprep.subr.bf16.mxu0 %v4584_v27  ;;  %1084 = vmatprep.subr.bf16.mxu1 %v4587_v28  ;;  %v4671_v27 = vld [vmem:[#allocation2 + $0x488] ss:$16 sps:$4 sm:$0xff]   ;;  %v4676_v28 = vld [vmem:[#allocation2 + $0x4a4] ss:$16 sps:$4 sm:$0xff]  }
  0x6c   :  { %1003 = vmatpush1.bf16.msra.mxu0 %v4582_v31  ;;  %1085 = vmatpush1.bf16.msra.mxu1 %v4585_v32  ;;  %v4677_v31 = vld [vmem:[#allocation2 + $0x4a8] ss:$16 sps:$4 sm:$0xff]   ;;  %v4682_v32 = vld [vmem:[#allocation2 + $0x4c4] ss:$16 sps:$4 sm:$0xff]  }
  0x6d   :  { %1004 = vmatprep.subr.bf16.mxu0 %v4590_v33  ;;  %1086 = vmatprep.subr.bf16.mxu1 %v4593_v34  ;;  %v4685_v33 = vld [vmem:[#allocation2 + $0x4cc] ss:$16 sps:$4 sm:$0xff]   ;;  %v4680_v34 = vld [vmem:[#allocation2 + $0x4c0] ss:$16 sps:$4 sm:$0xff]  }
  0x70   :  { %1005 = vmatpush1.bf16.msra.mxu0 %v4588_v35  ;;  %1087 = vmatpush1.bf16.msra.mxu1 %v4591_v36  ;;  %v4683_v35 = vld [vmem:[#allocation2 + $0x4c8] ss:$16 sps:$4 sm:$0xff]   ;;  %v4688_v36 = vld [vmem:[#allocation2 + $0x4e4] ss:$16 sps:$4 sm:$0xff]  }
  0x71   :  { %1006 = vmatprep.subr.bf16.mxu0 %v4596_v37  ;;  %1088 = vmatprep.subr.bf16.mxu1 %v4599_v38  ;;  %v4691_v37 = vld [vmem:[#allocation2 + $0x4ec] ss:$16 sps:$4 sm:$0xff]   ;;  %v4686_v38 = vld [vmem:[#allocation2 + $0x4e0] ss:$16 sps:$4 sm:$0xff]  }
  0x74   :  { %1007 = vmatpush1.bf16.msra.mxu0 %v4594_v39  ;;  %1089 = vmatpush1.bf16.msra.mxu1 %v4597_v40  ;;  %v4689_v39 = vld [vmem:[#allocation2 + $0x4e8] ss:$16 sps:$4 sm:$0xff]   ;;  %v4694_v40 = vld [vmem:[#allocation2 + $0x504] ss:$16 sps:$4 sm:$0xff]  }
  0x75   :  { %1008 = vmatprep.subr.bf16.mxu0 %v4602_v41  ;;  %1090 = vmatprep.subr.bf16.mxu1 %v4605_v42  ;;  %v4697_v41 = vld [vmem:[#allocation2 + $0x50c] ss:$16 sps:$4 sm:$0xff]   ;;  %v4692_v42 = vld [vmem:[#allocation2 + $0x500] ss:$16 sps:$4 sm:$0xff]  }
  0x78   :  { %1009 = vmatpush1.bf16.msra.mxu0 %v4600_v43  ;;  %1091 = vmatpush1.bf16.msra.mxu1 %v4603_v44  ;;  %v4695_v43 = vld [vmem:[#allocation2 + $0x508] ss:$16 sps:$4 sm:$0xff]   ;;  %v4700_v44 = vld [vmem:[#allocation2 + $0x524] ss:$16 sps:$4 sm:$0xff]  }
  0x79   :  { %1010 = vmatprep.subr.bf16.mxu0 %v4608_v45  ;;  %1092 = vmatprep.subr.bf16.mxu1 %v4611_v46  ;;  %v4703_v45 = vld [vmem:[#allocation2 + $0x52c] ss:$16 sps:$4 sm:$0xff]   ;;  %v4698_v46 = vld [vmem:[#allocation2 + $0x520] ss:$16 sps:$4 sm:$0xff]  }
  0x7c   :  { %1011 = vmatpush1.bf16.msra.mxu0 %v4606_v47  ;;  %1093 = vmatpush1.bf16.msra.mxu1 %v4609_v48  ;;  %v4701_v47 = vld [vmem:[#allocation2 + $0x528] ss:$16 sps:$4 sm:$0xff]   ;;  %v4706_v48 = vld [vmem:[#allocation2 + $0x544] ss:$16 sps:$4 sm:$0xff]  }
  0x7d   :  { %1012 = vmatprep.subr.bf16.mxu0 %v4614_v49  ;;  %1094 = vmatprep.subr.bf16.mxu1 %v4617_v50  ;;  %v4709_v49 = vld [vmem:[#allocation2 + $0x54c] ss:$16 sps:$4 sm:$0xff]   ;;  %v4704_v50 = vld [vmem:[#allocation2 + $0x540] ss:$16 sps:$4 sm:$0xff]  }
  0x80   :  { %1013 = vmatpush1.bf16.msra.mxu0 %v4612_v51  ;;  %1095 = vmatpush1.bf16.msra.mxu1 %v4615_v52  ;;  %v4707_v51 = vld [vmem:[#allocation2 + $0x548] ss:$16 sps:$4 sm:$0xff]   ;;  %v4712_v52 = vld [vmem:[#allocation2 + $0x564] ss:$16 sps:$4 sm:$0xff]  }
  0x81   :  { %1014 = vmatprep.subr.bf16.mxu0 %v4620_v53  ;;  %1096 = vmatprep.subr.bf16.mxu1 %v4623_v54  ;;  %v4715_v53 = vld [vmem:[#allocation2 + $0x56c] ss:$16 sps:$4 sm:$0xff]   ;;  %v4710_v54 = vld [vmem:[#allocation2 + $0x560] ss:$16 sps:$4 sm:$0xff]  }
  0x84   :  { %1015 = vmatpush1.bf16.msra.mxu0 %v4618_v55  ;;  %1097 = vmatpush1.bf16.msra.mxu1 %v4621_v56  ;;  %v4713_v55 = vld [vmem:[#allocation2 + $0x568] ss:$16 sps:$4 sm:$0xff]   ;;  %v4718_v56 = vld [vmem:[#allocation2 + $0x584] ss:$16 sps:$4 sm:$0xff]  }
  0x85   :  { %1016 = vmatprep.subr.bf16.mxu0 %v4626_v57  ;;  %1098 = vmatprep.subr.bf16.mxu1 %v4629_v58  ;;  %v4721_v57 = vld [vmem:[#allocation2 + $0x58c] ss:$16 sps:$4 sm:$0xff]   ;;  %v4716_v58 = vld [vmem:[#allocation2 + $0x580] ss:$16 sps:$4 sm:$0xff]  }
  0x88   :  { %1017 = vmatpush1.bf16.msra.mxu0 %v4624_v59  ;;  %1099 = vmatpush1.bf16.msra.mxu1 %v4627_v60  ;;  %v4719_v59 = vld [vmem:[#allocation2 + $0x588] ss:$16 sps:$4 sm:$0xff]   ;;  %v4724_v60 = vld [vmem:[#allocation2 + $0x5a4] ss:$16 sps:$4 sm:$0xff]  }
  0x89   :  { %1018 = vmatprep.subr.bf16.mxu0 %v4632_v61  ;;  %1100 = vmatprep.subr.bf16.mxu1 %v4635_v62  ;;  %v4727_v61 = vld [vmem:[#allocation2 + $0x5ac] ss:$16 sps:$4 sm:$0xff]   ;;  %v4722_v62 = vld [vmem:[#allocation2 + $0x5a0] ss:$16 sps:$4 sm:$0xff]  }
  0x8c   :  { %1019 = vmatpush1.bf16.msra.mxu0 %v4630_v63  ;;  %1101 = vmatpush1.bf16.msra.mxu1 %v4633_v0  ;;  %v4725_v63 = vld [vmem:[#allocation2 + $0x5a8] ss:$16 sps:$4 sm:$0xff]   ;;  %v4730_v0 = vld [vmem:[#allocation2 + $0x5c4] ss:$16 sps:$4 sm:$0xff]  }
  0x8d   :  { %1020 = vmatprep.subr.bf16.mxu0 %v4638_v1  ;;  %1102 = vmatprep.subr.bf16.mxu1 %v4641_v2  ;;  %v4733_v1 = vld [vmem:[#allocation2 + $0x5cc] ss:$16 sps:$4 sm:$0xff]   ;;  %v4728_v2 = vld [vmem:[#allocation2 + $0x5c0] ss:$16 sps:$4 sm:$0xff]  }
  0x90   :  { %1021 = vmatpush1.bf16.msra.mxu0 %v4636_v3  ;;  %1103 = vmatpush1.bf16.msra.mxu1 %v4639_v4  ;;  %v4731_v3 = vld [vmem:[#allocation2 + $0x5c8] ss:$16 sps:$4 sm:$0xff]   ;;  %v4736_v4 = vld [vmem:[#allocation2 + $0x5e4] ss:$16 sps:$4 sm:$0xff]  }
  0x91   :  { %1767 = vmatprep.subr.bf16.mxu0 %v4646_v5  ;;  %1849 = vmatprep.subr.bf16.mxu1 %v4649_v6  ;;  %v4739_v5 = vld [vmem:[#allocation2 + $0x5ec] ss:$16 sps:$4 sm:$0xff]   ;;  %v4734_v6 = vld [vmem:[#allocation2 + $0x5e0] ss:$16 sps:$4 sm:$0xff]  }
  0x93   :  { %1023 = vmatmul.mubr.bf16.vlgmr.msra.gmra.mrb[0].mxu0 %v3867_v7  ;;  %1105 = vmatmul.mubr.bf16.vlgmr.msra.gmra.mrb[0].mxu1 %v3867_v7  ;;  %v4737_v7 = vld [vmem:[#allocation2 + $0x5e8] ss:$16 sps:$4 sm:$0xff]  }
  0x94   :  { %1768 = vmatpush1.bf16.msra.mxu0 %v4644_v8  ;;  %1850 = vmatpush1.bf16.msra.mxu1 %v4647_v9  ;;  %v4743_v8 = vld [vmem:[#allocation2 + $0x604] ss:$16 sps:$4 sm:$0xff]   ;;  %v4746_v9 = vld [vmem:[#allocation2 + $0x60c] ss:$16 sps:$4 sm:$0xff]  }
  0x95   :  { %1769 = vmatprep.subr.bf16.mxu0 %v4652_v10  ;;  %1851 = vmatprep.subr.bf16.mxu1 %v4655_v12  ;;  %v4741_v10 = vld [vmem:[#allocation2 + $0x600] ss:$16 sps:$4 sm:$0xff]   ;;  %v4744_v12 = vld [vmem:[#allocation2 + $0x608] ss:$16 sps:$4 sm:$0xff]  }
  0x96   :  { %1799 = vmatprep.mubr.bf16.mxu0 %v5316_v13  ;;  %1881 = vmatprep.mubr.bf16.mxu1 %v5316_v13 }
  0x98   :  { %1770 = vmatpush1.bf16.msra.mxu0 %v4650_v14  ;;  %1852 = vmatpush1.bf16.msra.mxu1 %v4653_v15  ;;  %v5322_v14 = vcombine.low %v5312_v11, %v5312_v11  ;;  %v5327_v15 = vld [vmem:[%s5381_s0 + $0x8] sm:$0xff]  ;;  %v4748_v11 = vld [vmem:[#allocation2 + $0x620] ss:$16 sps:$4 sm:$0xff]  }
  0x99   :  { %1771 = vmatprep.subr.bf16.mxu0 %v4658_v16  ;;  %1853 = vmatprep.subr.bf16.mxu1 %v4661_v17  ;;  %v4750_v16 = vld [vmem:[#allocation2 + $0x624] ss:$16 sps:$4 sm:$0xff]   ;;  %v4753_v17 = vld [vmem:[#allocation2 + $0x62c] ss:$16 sps:$4 sm:$0xff]  }
  0x9c   :  { %1772 = vmatpush1.bf16.msra.mxu0 %v4656_v18  ;;  %1854 = vmatpush1.bf16.msra.mxu1 %v4659_v19  ;;  %v5331_v18 = vcombine.high %v5327_v15, %v5327_v15  ;;  %v4751_v19 = vld [vmem:[#allocation2 + $0x628] ss:$16 sps:$4 sm:$0xff]  }
  0x9d   :  { %1773 = vmatprep.subr.bf16.mxu0 %v4664_v20  ;;  %1855 = vmatprep.subr.bf16.mxu1 %v4667_v21  ;;  %v4756_v20 = vld [vmem:[#allocation2 + $0x644] ss:$16 sps:$4 sm:$0xff]   ;;  %v4759_v21 = vld [vmem:[#allocation2 + $0x64c] ss:$16 sps:$4 sm:$0xff]  }
  0xa0   :  { %1774 = vmatpush1.bf16.msra.mxu0 %v4662_v22  ;;  %1856 = vmatpush1.bf16.msra.mxu1 %v4665_v23  ;;  %v4754_v22 = vld [vmem:[#allocation2 + $0x640] ss:$16 sps:$4 sm:$0xff]   ;;  %v4757_v23 = vld [vmem:[#allocation2 + $0x648] ss:$16 sps:$4 sm:$0xff]  }
  0xa1   :  { %1775 = vmatprep.subr.bf16.mxu0 %v4670_v24  ;;  %1857 = vmatprep.subr.bf16.mxu1 %v4673_v25  ;;  %v4762_v24 = vld [vmem:[#allocation2 + $0x664] ss:$16 sps:$4 sm:$0xff]   ;;  %v4765_v25 = vld [vmem:[#allocation2 + $0x66c] ss:$16 sps:$4 sm:$0xff]  }
  0xa4   :  { %1776 = vmatpush1.bf16.msra.mxu0 %v4668_v26  ;;  %1858 = vmatpush1.bf16.msra.mxu1 %v4671_v27  ;;  %v4760_v26 = vld [vmem:[#allocation2 + $0x660] ss:$16 sps:$4 sm:$0xff]   ;;  %v4763_v27 = vld [vmem:[#allocation2 + $0x668] ss:$16 sps:$4 sm:$0xff]  }
  0xa5   :  { %1777 = vmatprep.subr.bf16.mxu0 %v4676_v28  ;;  %1859 = vmatprep.subr.bf16.mxu1 %v4679_v29  ;;  %v4768_v28 = vld [vmem:[#allocation2 + $0x684] ss:$16 sps:$4 sm:$0xff]   ;;  %v4771_v29 = vld [vmem:[#allocation2 + $0x68c] ss:$16 sps:$4 sm:$0xff]  }
  0xa8   :  { %1778 = vmatpush1.bf16.msra.mxu0 %v4674_v30  ;;  %1860 = vmatpush1.bf16.msra.mxu1 %v4677_v31  ;;  %v4766_v30 = vld [vmem:[#allocation2 + $0x680] ss:$16 sps:$4 sm:$0xff]   ;;  %v4769_v31 = vld [vmem:[#allocation2 + $0x688] ss:$16 sps:$4 sm:$0xff]  }
  0xa9   :  { %1779 = vmatprep.subr.bf16.mxu0 %v4682_v32  ;;  %1861 = vmatprep.subr.bf16.mxu1 %v4685_v33  ;;  %v4774_v32 = vld [vmem:[#allocation2 + $0x6a4] ss:$16 sps:$4 sm:$0xff]   ;;  %v4777_v33 = vld [vmem:[#allocation2 + $0x6ac] ss:$16 sps:$4 sm:$0xff]  }
  0xac   :  { %1780 = vmatpush1.bf16.msra.mxu0 %v4680_v34  ;;  %1862 = vmatpush1.bf16.msra.mxu1 %v4683_v35  ;;  %v4772_v34 = vld [vmem:[#allocation2 + $0x6a0] ss:$16 sps:$4 sm:$0xff]   ;;  %v4775_v35 = vld [vmem:[#allocation2 + $0x6a8] ss:$16 sps:$4 sm:$0xff]  }
  0xad   :  { %1781 = vmatprep.subr.bf16.mxu0 %v4688_v36  ;;  %1863 = vmatprep.subr.bf16.mxu1 %v4691_v37  ;;  %v4780_v36 = vld [vmem:[#allocation2 + $0x6c4] ss:$16 sps:$4 sm:$0xff]   ;;  %v4783_v37 = vld [vmem:[#allocation2 + $0x6cc] ss:$16 sps:$4 sm:$0xff]  }
  0xb0   :  { %1782 = vmatpush1.bf16.msra.mxu0 %v4686_v38  ;;  %1864 = vmatpush1.bf16.msra.mxu1 %v4689_v39  ;;  %v4778_v38 = vld [vmem:[#allocation2 + $0x6c0] ss:$16 sps:$4 sm:$0xff]   ;;  %v4781_v39 = vld [vmem:[#allocation2 + $0x6c8] ss:$16 sps:$4 sm:$0xff]  }
  0xb1   :  { %1783 = vmatprep.subr.bf16.mxu0 %v4694_v40  ;;  %1865 = vmatprep.subr.bf16.mxu1 %v4697_v41  ;;  %v4786_v40 = vld [vmem:[#allocation2 + $0x6e4] ss:$16 sps:$4 sm:$0xff]   ;;  %v4789_v41 = vld [vmem:[#allocation2 + $0x6ec] ss:$16 sps:$4 sm:$0xff]  }
  0xb4   :  { %1784 = vmatpush1.bf16.msra.mxu0 %v4692_v42  ;;  %1866 = vmatpush1.bf16.msra.mxu1 %v4695_v43  ;;  %v4784_v42 = vld [vmem:[#allocation2 + $0x6e0] ss:$16 sps:$4 sm:$0xff]   ;;  %v4787_v43 = vld [vmem:[#allocation2 + $0x6e8] ss:$16 sps:$4 sm:$0xff]  }
  0xb5   :  { %1785 = vmatprep.subr.bf16.mxu0 %v4700_v44  ;;  %1867 = vmatprep.subr.bf16.mxu1 %v4703_v45  ;;  %v4792_v44 = vld [vmem:[#allocation2 + $0x704] ss:$16 sps:$4 sm:$0xff]   ;;  %v4795_v45 = vld [vmem:[#allocation2 + $0x70c] ss:$16 sps:$4 sm:$0xff]  }
  0xb8   :  { %1786 = vmatpush1.bf16.msra.mxu0 %v4698_v46  ;;  %1868 = vmatpush1.bf16.msra.mxu1 %v4701_v47  ;;  %v4790_v46 = vld [vmem:[#allocation2 + $0x700] ss:$16 sps:$4 sm:$0xff]   ;;  %v4793_v47 = vld [vmem:[#allocation2 + $0x708] ss:$16 sps:$4 sm:$0xff]  }
  0xb9   :  { %1787 = vmatprep.subr.bf16.mxu0 %v4706_v48  ;;  %1869 = vmatprep.subr.bf16.mxu1 %v4709_v49  ;;  %v4798_v48 = vld [vmem:[#allocation2 + $0x724] ss:$16 sps:$4 sm:$0xff]   ;;  %v4801_v49 = vld [vmem:[#allocation2 + $0x72c] ss:$16 sps:$4 sm:$0xff]  }
  0xbc   :  { %1788 = vmatpush1.bf16.msra.mxu0 %v4704_v50  ;;  %1870 = vmatpush1.bf16.msra.mxu1 %v4707_v51  ;;  %v4796_v50 = vld [vmem:[#allocation2 + $0x720] ss:$16 sps:$4 sm:$0xff]   ;;  %v4799_v51 = vld [vmem:[#allocation2 + $0x728] ss:$16 sps:$4 sm:$0xff]  }
  0xbd   :  { %1789 = vmatprep.subr.bf16.mxu0 %v4712_v52  ;;  %1871 = vmatprep.subr.bf16.mxu1 %v4715_v53  ;;  %v4804_v52 = vld [vmem:[#allocation2 + $0x744] ss:$16 sps:$4 sm:$0xff]   ;;  %v4807_v53 = vld [vmem:[#allocation2 + $0x74c] ss:$16 sps:$4 sm:$0xff]  }
  0xc0   :  { %1790 = vmatpush1.bf16.msra.mxu0 %v4710_v54  ;;  %1872 = vmatpush1.bf16.msra.mxu1 %v4713_v55  ;;  %v4802_v54 = vld [vmem:[#allocation2 + $0x740] ss:$16 sps:$4 sm:$0xff]   ;;  %v4805_v55 = vld [vmem:[#allocation2 + $0x748] ss:$16 sps:$4 sm:$0xff]  }
  0xc1   :  { %1791 = vmatprep.subr.bf16.mxu0 %v4718_v56  ;;  %1873 = vmatprep.subr.bf16.mxu1 %v4721_v57  ;;  %v4810_v56 = vld [vmem:[#allocation2 + $0x764] ss:$16 sps:$4 sm:$0xff]   ;;  %v4813_v57 = vld [vmem:[#allocation2 + $0x76c] ss:$16 sps:$4 sm:$0xff]  }
  0xc4   :  { %1792 = vmatpush1.bf16.msra.mxu0 %v4716_v58  ;;  %1874 = vmatpush1.bf16.msra.mxu1 %v4719_v59  ;;  %v4808_v58 = vld [vmem:[#allocation2 + $0x760] ss:$16 sps:$4 sm:$0xff]   ;;  %v4811_v59 = vld [vmem:[#allocation2 + $0x768] ss:$16 sps:$4 sm:$0xff]  }
  0xc5   :  { %1793 = vmatprep.subr.bf16.mxu0 %v4724_v60  ;;  %1875 = vmatprep.subr.bf16.mxu1 %v4727_v61  ;;  %v4816_v60 = vld [vmem:[#allocation2 + $0x784] ss:$16 sps:$4 sm:$0xff]   ;;  %v4819_v61 = vld [vmem:[#allocation2 + $0x78c] ss:$16 sps:$4 sm:$0xff]  }
  0xc8   :  { %1794 = vmatpush1.bf16.msra.mxu0 %v4722_v62  ;;  %1876 = vmatpush1.bf16.msra.mxu1 %v4725_v63  ;;  %v4814_v62 = vld [vmem:[#allocation2 + $0x780] ss:$16 sps:$4 sm:$0xff]   ;;  %v4817_v63 = vld [vmem:[#allocation2 + $0x788] ss:$16 sps:$4 sm:$0xff]  }
  0xc9   :  { %1795 = vmatprep.subr.bf16.mxu0 %v4730_v0  ;;  %1877 = vmatprep.subr.bf16.mxu1 %v4733_v1  ;;  %v4822_v0 = vld [vmem:[#allocation2 + $0x7a4] ss:$16 sps:$4 sm:$0xff]   ;;  %v4825_v1 = vld [vmem:[#allocation2 + $0x7ac] ss:$16 sps:$4 sm:$0xff]  }
  0xcc   :  { %1796 = vmatpush1.bf16.msra.mxu0 %v4728_v2  ;;  %1878 = vmatpush1.bf16.msra.mxu1 %v4731_v3  ;;  %v4820_v2 = vld [vmem:[#allocation2 + $0x7a0] ss:$16 sps:$4 sm:$0xff]   ;;  %v4823_v3 = vld [vmem:[#allocation2 + $0x7a8] ss:$16 sps:$4 sm:$0xff]  }
  0xcd   :  { %1797 = vmatprep.subr.bf16.mxu0 %v4736_v4  ;;  %1879 = vmatprep.subr.bf16.mxu1 %v4739_v5  ;;  %v4828_v4 = vld [vmem:[#allocation2 + $0x7c4] ss:$16 sps:$4 sm:$0xff]   ;;  %v4831_v5 = vld [vmem:[#allocation2 + $0x7cc] ss:$16 sps:$4 sm:$0xff]  }
  0xd0   :  { %1798 = vmatpush1.bf16.msra.mxu0 %v4734_v6  ;;  %1880 = vmatpush1.bf16.msra.mxu1 %v4737_v7  ;;  %v4826_v6 = vld [vmem:[#allocation2 + $0x7c0] ss:$16 sps:$4 sm:$0xff]   ;;  %v4829_v7 = vld [vmem:[#allocation2 + $0x7c8] ss:$16 sps:$4 sm:$0xff]  }
  0xd1   :  { %1808 = vmatprep.subr.bf16.mxu0 %v4743_v8  ;;  %1890 = vmatprep.subr.bf16.mxu1 %v4746_v9  ;;  %v4834_v8 = vld [vmem:[#allocation2 + $0x7e4] ss:$16 sps:$4 sm:$0xff]   ;;  %v4837_v9 = vld [vmem:[#allocation2 + $0x7ec] ss:$16 sps:$4 sm:$0xff]  }
  0xd3   :  { %1800 = vmatmul.mubr.bf16.vlgmr.msra.gmra.mrb[0].mxu0 %v5322_v14  ;;  %1882 = vmatmul.mubr.bf16.vlgmr.msra.gmra.mrb[0].mxu1 %v5322_v14 }
  0xd4   :  { %1809 = vmatpush1.bf16.msra.mxu0 %v4741_v10  ;;  %1891 = vmatpush1.bf16.msra.mxu1 %v4744_v12  ;;  %v4832_v10 = vld [vmem:[#allocation2 + $0x7e0] ss:$16 sps:$4 sm:$0xff]   ;;  %v4835_v12 = vld [vmem:[#allocation2 + $0x7e8] ss:$16 sps:$4 sm:$0xff]  }
  0xd5   :  { %1810 = vmatprep.subr.bf16.mxu0 %v4750_v16  ;;  %1892 = vmatprep.subr.bf16.mxu1 %v4753_v17  ;;  %v4842_v16 = vld [vmem:[#allocation2 + $0x4] ss:$16 sps:$4 sm:$0xff]   ;;  %v4845_v17 = vld [vmem:[#allocation2 + $0xc] ss:$16 sps:$4 sm:$0xff]  }
  0xd6   :  { %1840 = vmatprep.mubr.bf16.mxu0 %v5331_v18  ;;  %1922 = vmatprep.mubr.bf16.mxu1 %v5331_v18 }
  0xd8   :  { %1811 = vmatpush1.bf16.msra.mxu0 %v4748_v11  ;;  %1893 = vmatpush1.bf16.msra.mxu1 %v4751_v19  ;;  %v4840_v11 = vld [vmem:[#allocation2] ss:$16 sps:$4 sm:$0xff]   ;;  %v5339_v19 = vcombine.low %v5327_v15, %v5327_v15 }
  0xd9   :  { %1812 = vmatprep.subr.bf16.mxu0 %v4756_v20  ;;  %1894 = vmatprep.subr.bf16.mxu1 %v4759_v21  ;;  %v5344_v20 = vld [vmem:[%s5383_s2] sm:$0xff]  ;;  %v4843_v21 = vld [vmem:[#allocation2 + $0x8] ss:$16 sps:$4 sm:$0xff]  }
  0xda   :  { %v4846_v15 = vld [vmem:[#allocation2 + $0x20] ss:$16 sps:$4 sm:$0xff]  }
  0xdc   :  { %1813 = vmatpush1.bf16.msra.mxu0 %v4754_v22  ;;  %1895 = vmatpush1.bf16.msra.mxu1 %v4757_v23  ;;  %v4848_v22 = vld [vmem:[#allocation2 + $0x24] ss:$16 sps:$4 sm:$0xff]   ;;  %v4851_v23 = vld [vmem:[#allocation2 + $0x2c] ss:$16 sps:$4 sm:$0xff]  }
  0xdd   :  { %1814 = vmatprep.subr.bf16.mxu0 %v4762_v24  ;;  %1896 = vmatprep.subr.bf16.mxu1 %v4765_v25  ;;  %v4130_v24 = vcombine.high %v5344_v20, %v5344_v20  ;;  %v4849_v25 = vld [vmem:[#allocation2 + $0x28] ss:$16 sps:$4 sm:$0xff]  }
  0xe0   :  { %1815 = vmatpush1.bf16.msra.mxu0 %v4760_v26  ;;  %1897 = vmatpush1.bf16.msra.mxu1 %v4763_v27  ;;  %v4854_v26 = vld [vmem:[#allocation2 + $0x44] ss:$16 sps:$4 sm:$0xff]   ;;  %v4857_v27 = vld [vmem:[#allocation2 + $0x4c] ss:$16 sps:$4 sm:$0xff]  }
  0xe1   :  { %1816 = vmatprep.subr.bf16.mxu0 %v4768_v28  ;;  %1898 = vmatprep.subr.bf16.mxu1 %v4771_v29  ;;  %v4852_v28 = vld [vmem:[#allocation2 + $0x40] ss:$16 sps:$4 sm:$0xff]   ;;  %v4855_v29 = vld [vmem:[#allocation2 + $0x48] ss:$16 sps:$4 sm:$0xff]  }
  0xe4   :  { %1817 = vmatpush1.bf16.msra.mxu0 %v4766_v30  ;;  %1899 = vmatpush1.bf16.msra.mxu1 %v4769_v31  ;;  %v4860_v30 = vld [vmem:[#allocation2 + $0x64] ss:$16 sps:$4 sm:$0xff]   ;;  %v4863_v31 = vld [vmem:[#allocation2 + $0x6c] ss:$16 sps:$4 sm:$0xff]  }
  0xe5   :  { %1818 = vmatprep.subr.bf16.mxu0 %v4774_v32  ;;  %1900 = vmatprep.subr.bf16.mxu1 %v4777_v33  ;;  %v4858_v32 = vld [vmem:[#allocation2 + $0x60] ss:$16 sps:$4 sm:$0xff]   ;;  %v4861_v33 = vld [vmem:[#allocation2 + $0x68] ss:$16 sps:$4 sm:$0xff]  }
  0xe8   :  { %1819 = vmatpush1.bf16.msra.mxu0 %v4772_v34  ;;  %1901 = vmatpush1.bf16.msra.mxu1 %v4775_v35  ;;  %v4866_v34 = vld [vmem:[#allocation2 + $0x84] ss:$16 sps:$4 sm:$0xff]   ;;  %v4869_v35 = vld [vmem:[#allocation2 + $0x8c] ss:$16 sps:$4 sm:$0xff]  }
  0xe9   :  { %1820 = vmatprep.subr.bf16.mxu0 %v4780_v36  ;;  %1902 = vmatprep.subr.bf16.mxu1 %v4783_v37  ;;  %v4864_v36 = vld [vmem:[#allocation2 + $0x80] ss:$16 sps:$4 sm:$0xff]   ;;  %v4867_v37 = vld [vmem:[#allocation2 + $0x88] ss:$16 sps:$4 sm:$0xff]  }
  0xec   :  { %1821 = vmatpush1.bf16.msra.mxu0 %v4778_v38  ;;  %1903 = vmatpush1.bf16.msra.mxu1 %v4781_v39  ;;  %v4872_v38 = vld [vmem:[#allocation2 + $0xa4] ss:$16 sps:$4 sm:$0xff]   ;;  %v4875_v39 = vld [vmem:[#allocation2 + $0xac] ss:$16 sps:$4 sm:$0xff]  }
  0xed   :  { %1822 = vmatprep.subr.bf16.mxu0 %v4786_v40  ;;  %1904 = vmatprep.subr.bf16.mxu1 %v4789_v41  ;;  %v4870_v40 = vld [vmem:[#allocation2 + $0xa0] ss:$16 sps:$4 sm:$0xff]   ;;  %v4873_v41 = vld [vmem:[#allocation2 + $0xa8] ss:$16 sps:$4 sm:$0xff]  }
  0xf0   :  { %1823 = vmatpush1.bf16.msra.mxu0 %v4784_v42  ;;  %1905 = vmatpush1.bf16.msra.mxu1 %v4787_v43  ;;  %v4878_v42 = vld [vmem:[#allocation2 + $0xc4] ss:$16 sps:$4 sm:$0xff]   ;;  %v4881_v43 = vld [vmem:[#allocation2 + $0xcc] ss:$16 sps:$4 sm:$0xff]  }
  0xf1   :  { %1824 = vmatprep.subr.bf16.mxu0 %v4792_v44  ;;  %1906 = vmatprep.subr.bf16.mxu1 %v4795_v45  ;;  %v4876_v44 = vld [vmem:[#allocation2 + $0xc0] ss:$16 sps:$4 sm:$0xff]   ;;  %v4879_v45 = vld [vmem:[#allocation2 + $0xc8] ss:$16 sps:$4 sm:$0xff]  }
  0xf4   :  { %1825 = vmatpush1.bf16.msra.mxu0 %v4790_v46  ;;  %1907 = vmatpush1.bf16.msra.mxu1 %v4793_v47  ;;  %v4884_v46 = vld [vmem:[#allocation2 + $0xe4] ss:$16 sps:$4 sm:$0xff]   ;;  %v4887_v47 = vld [vmem:[#allocation2 + $0xec] ss:$16 sps:$4 sm:$0xff]  }
  0xf5   :  { %1826 = vmatprep.subr.bf16.mxu0 %v4798_v48  ;;  %1908 = vmatprep.subr.bf16.mxu1 %v4801_v49  ;;  %v4882_v48 = vld [vmem:[#allocation2 + $0xe0] ss:$16 sps:$4 sm:$0xff]   ;;  %v4885_v49 = vld [vmem:[#allocation2 + $0xe8] ss:$16 sps:$4 sm:$0xff]  }
  0xf8   :  { %1827 = vmatpush1.bf16.msra.mxu0 %v4796_v50  ;;  %1909 = vmatpush1.bf16.msra.mxu1 %v4799_v51  ;;  %v4890_v50 = vld [vmem:[#allocation2 + $0x104] ss:$16 sps:$4 sm:$0xff]   ;;  %v4893_v51 = vld [vmem:[#allocation2 + $0x10c] ss:$16 sps:$4 sm:$0xff]  }
  0xf9   :  { %1828 = vmatprep.subr.bf16.mxu0 %v4804_v52  ;;  %1910 = vmatprep.subr.bf16.mxu1 %v4807_v53  ;;  %v4888_v52 = vld [vmem:[#allocation2 + $0x100] ss:$16 sps:$4 sm:$0xff]   ;;  %v4891_v53 = vld [vmem:[#allocation2 + $0x108] ss:$16 sps:$4 sm:$0xff]  }
  0xfc   :  { %1829 = vmatpush1.bf16.msra.mxu0 %v4802_v54  ;;  %1911 = vmatpush1.bf16.msra.mxu1 %v4805_v55  ;;  %v4896_v54 = vld [vmem:[#allocation2 + $0x124] ss:$16 sps:$4 sm:$0xff]   ;;  %v4899_v55 = vld [vmem:[#allocation2 + $0x12c] ss:$16 sps:$4 sm:$0xff]  }
  0xfd   :  { %1830 = vmatprep.subr.bf16.mxu0 %v4810_v56  ;;  %1912 = vmatprep.subr.bf16.mxu1 %v4813_v57  ;;  %v4894_v56 = vld [vmem:[#allocation2 + $0x120] ss:$16 sps:$4 sm:$0xff]   ;;  %v4897_v57 = vld [vmem:[#allocation2 + $0x128] ss:$16 sps:$4 sm:$0xff]  }
 0x100   :  { %1831 = vmatpush1.bf16.msra.mxu0 %v4808_v58  ;;  %1913 = vmatpush1.bf16.msra.mxu1 %v4811_v59  ;;  %v4902_v58 = vld [vmem:[#allocation2 + $0x144] ss:$16 sps:$4 sm:$0xff]   ;;  %v4905_v59 = vld [vmem:[#allocation2 + $0x14c] ss:$16 sps:$4 sm:$0xff]  }
 0x101   :  { %1832 = vmatprep.subr.bf16.mxu0 %v4816_v60  ;;  %1914 = vmatprep.subr.bf16.mxu1 %v4819_v61  ;;  %v4900_v60 = vld [vmem:[#allocation2 + $0x140] ss:$16 sps:$4 sm:$0xff]   ;;  %v4903_v61 = vld [vmem:[#allocation2 + $0x148] ss:$16 sps:$4 sm:$0xff]  }
 0x104   :  { %1833 = vmatpush1.bf16.msra.mxu0 %v4814_v62  ;;  %1915 = vmatpush1.bf16.msra.mxu1 %v4817_v63  ;;  %v4908_v62 = vld [vmem:[#allocation2 + $0x164] ss:$16 sps:$4 sm:$0xff]   ;;  %v4911_v63 = vld [vmem:[#allocation2 + $0x16c] ss:$16 sps:$4 sm:$0xff]  }
 0x105   :  { %1834 = vmatprep.subr.bf16.mxu0 %v4822_v0  ;;  %1916 = vmatprep.subr.bf16.mxu1 %v4825_v1  ;;  %v4906_v0 = vld [vmem:[#allocation2 + $0x160] ss:$16 sps:$4 sm:$0xff]   ;;  %v4909_v1 = vld [vmem:[#allocation2 + $0x168] ss:$16 sps:$4 sm:$0xff]  }
 0x108   :  { %1835 = vmatpush1.bf16.msra.mxu0 %v4820_v2  ;;  %1917 = vmatpush1.bf16.msra.mxu1 %v4823_v3  ;;  %v4914_v2 = vld [vmem:[#allocation2 + $0x184] ss:$16 sps:$4 sm:$0xff]   ;;  %v4917_v3 = vld [vmem:[#allocation2 + $0x18c] ss:$16 sps:$4 sm:$0xff]  }
 0x109   :  { %1836 = vmatprep.subr.bf16.mxu0 %v4828_v4  ;;  %1918 = vmatprep.subr.bf16.mxu1 %v4831_v5  ;;  %v4912_v4 = vld [vmem:[#allocation2 + $0x180] ss:$16 sps:$4 sm:$0xff]   ;;  %v4915_v5 = vld [vmem:[#allocation2 + $0x188] ss:$16 sps:$4 sm:$0xff]  }
 0x10c   :  { %1837 = vmatpush1.bf16.msra.mxu0 %v4826_v6  ;;  %1919 = vmatpush1.bf16.msra.mxu1 %v4829_v7  ;;  %v4920_v6 = vld [vmem:[#allocation2 + $0x1a4] ss:$16 sps:$4 sm:$0xff]   ;;  %v4923_v7 = vld [vmem:[#allocation2 + $0x1ac] ss:$16 sps:$4 sm:$0xff]  }
 0x10d   :  { %1838 = vmatprep.subr.bf16.mxu0 %v4834_v8  ;;  %1920 = vmatprep.subr.bf16.mxu1 %v4837_v9  ;;  %v4918_v8 = vld [vmem:[#allocation2 + $0x1a0] ss:$16 sps:$4 sm:$0xff]   ;;  %v4921_v9 = vld [vmem:[#allocation2 + $0x1a8] ss:$16 sps:$4 sm:$0xff]  }
 0x110   :  { %1839 = vmatpush1.bf16.msra.mxu0 %v4832_v10  ;;  %1921 = vmatpush1.bf16.msra.mxu1 %v4835_v12  ;;  %v4926_v10 = vld [vmem:[#allocation2 + $0x1c4] ss:$16 sps:$4 sm:$0xff]   ;;  %v4929_v12 = vld [vmem:[#allocation2 + $0x1cc] ss:$16 sps:$4 sm:$0xff]  }
 0x111   :  { %2844 = vmatprep.subr.bf16.mxu0 %v4842_v16  ;;  %2926 = vmatprep.subr.bf16.mxu1 %v4845_v17  ;;  %v4924_v16 = vld [vmem:[#allocation2 + $0x1c0] ss:$16 sps:$4 sm:$0xff]   ;;  %v4927_v17 = vld [vmem:[#allocation2 + $0x1c8] ss:$16 sps:$4 sm:$0xff]  }
 0x113   :  { %1841 = vmatmul.mubr.bf16.vlgmr.msra.gmra.mrb[0].mxu0 %v5339_v19  ;;  %1923 = vmatmul.mubr.bf16.vlgmr.msra.gmra.mrb[0].mxu1 %v5339_v19 }
 0x114   :  { %2845 = vmatpush1.bf16.msra.mxu0 %v4840_v11  ;;  %2927 = vmatpush1.bf16.msra.mxu1 %v4843_v21  ;;  %v4932_v11 = vld [vmem:[#allocation2 + $0x1e4] ss:$16 sps:$4 sm:$0xff]   ;;  %v4935_v21 = vld [vmem:[#allocation2 + $0x1ec] ss:$16 sps:$4 sm:$0xff]  }
 0x115   :  { %2846 = vmatprep.subr.bf16.mxu0 %v4848_v22  ;;  %2928 = vmatprep.subr.bf16.mxu1 %v4851_v23  ;;  %v4930_v22 = vld [vmem:[#allocation2 + $0x1e0] ss:$16 sps:$4 sm:$0xff]   ;;  %v4933_v23 = vld [vmem:[#allocation2 + $0x1e8] ss:$16 sps:$4 sm:$0xff]  }
 0x116   :  { %2876 = vmatprep.mubr.bf16.mxu0 %v4130_v24  ;;  %2958 = vmatprep.mubr.bf16.mxu1 %v4130_v24  ;;  %v4940_v24 = vld [vmem:[#allocation2 + $0x204] ss:$16 sps:$4 sm:$0xff]  }
 0x118   :  { %2847 = vmatpush1.bf16.msra.mxu0 %v4846_v15  ;;  %2929 = vmatpush1.bf16.msra.mxu1 %v4849_v25  ;;  %v4943_v15 = vld [vmem:[#allocation2 + $0x20c] ss:$16 sps:$4 sm:$0xff]  }
 0x119   :  { %2848 = vmatprep.subr.bf16.mxu0 %v4854_v26  ;;  %2930 = vmatprep.subr.bf16.mxu1 %v4857_v27  ;;  %v5353_v25 = vld [vmem:[%s5383_s2 + $0x8] sm:$0xff]  ;;  %v4129_v26 = vcombine.low %v5344_v20, %v5344_v20  ;;  %v4938_v27 = vld [vmem:[#allocation2 + $0x200] ss:$16 sps:$4 sm:$0xff]   ;;  %v4952_v20 = vld [vmem:[#allocation2 + $0x244] ss:$16 sps:$4 sm:$0xff]  }
 0x11c   :  { %2849 = vmatpush1.bf16.msra.mxu0 %v4852_v28  ;;  %2931 = vmatpush1.bf16.msra.mxu1 %v4855_v29  ;;  %v4941_v28 = vld [vmem:[#allocation2 + $0x208] ss:$16 sps:$4 sm:$0xff]   ;;  %v4946_v29 = vld [vmem:[#allocation2 + $0x224] ss:$16 sps:$4 sm:$0xff]  }
 0x11d   :  { %2850 = vmatprep.subr.bf16.mxu0 %v4860_v30  ;;  %2932 = vmatprep.subr.bf16.mxu1 %v4863_v31  ;;  %v4949_v30 = vld [vmem:[#allocation2 + $0x22c] ss:$16 sps:$4 sm:$0xff]   ;;  %v4132_v31 = vcombine.high %v5353_v25, %v5353_v25 }
 0x120   :  { %2851 = vmatpush1.bf16.msra.mxu0 %v4858_v32  ;;  %2933 = vmatpush1.bf16.msra.mxu1 %v4861_v33  ;;  %v4944_v32 = vld [vmem:[#allocation2 + $0x220] ss:$16 sps:$4 sm:$0xff]   ;;  %v4947_v33 = vld [vmem:[#allocation2 + $0x228] ss:$16 sps:$4 sm:$0xff]  }
 0x121   :  { %2852 = vmatprep.subr.bf16.mxu0 %v4866_v34  ;;  %2934 = vmatprep.subr.bf16.mxu1 %v4869_v35  ;;  %v4955_v34 = vld [vmem:[#allocation2 + $0x24c] ss:$16 sps:$4 sm:$0xff]   ;;  %v4950_v35 = vld [vmem:[#allocation2 + $0x240] ss:$16 sps:$4 sm:$0xff]  }
 0x124   :  { %2853 = vmatpush1.bf16.msra.mxu0 %v4864_v36  ;;  %2935 = vmatpush1.bf16.msra.mxu1 %v4867_v37  ;;  %v4953_v36 = vld [vmem:[#allocation2 + $0x248] ss:$16 sps:$4 sm:$0xff]   ;;  %v4958_v37 = vld [vmem:[#allocation2 + $0x264] ss:$16 sps:$4 sm:$0xff]  }
 0x125   :  { %2854 = vmatprep.subr.bf16.mxu0 %v4872_v38  ;;  %2936 = vmatprep.subr.bf16.mxu1 %v4875_v39  ;;  %v4961_v38 = vld [vmem:[#allocation2 + $0x26c] ss:$16 sps:$4 sm:$0xff]   ;;  %v4956_v39 = vld [vmem:[#allocation2 + $0x260] ss:$16 sps:$4 sm:$0xff]  }
 0x128   :  { %2855 = vmatpush1.bf16.msra.mxu0 %v4870_v40  ;;  %2937 = vmatpush1.bf16.msra.mxu1 %v4873_v41  ;;  %v4959_v40 = vld [vmem:[#allocation2 + $0x268] ss:$16 sps:$4 sm:$0xff]   ;;  %v4964_v41 = vld [vmem:[#allocation2 + $0x284] ss:$16 sps:$4 sm:$0xff]  }
 0x129   :  { %2856 = vmatprep.subr.bf16.mxu0 %v4878_v42  ;;  %2938 = vmatprep.subr.bf16.mxu1 %v4881_v43  ;;  %v4967_v42 = vld [vmem:[#allocation2 + $0x28c] ss:$16 sps:$4 sm:$0xff]   ;;  %v4962_v43 = vld [vmem:[#allocation2 + $0x280] ss:$16 sps:$4 sm:$0xff]  }
 0x12c   :  { %2857 = vmatpush1.bf16.msra.mxu0 %v4876_v44  ;;  %2939 = vmatpush1.bf16.msra.mxu1 %v4879_v45  ;;  %v4965_v44 = vld [vmem:[#allocation2 + $0x288] ss:$16 sps:$4 sm:$0xff]   ;;  %v4970_v45 = vld [vmem:[#allocation2 + $0x2a4] ss:$16 sps:$4 sm:$0xff]  }
 0x12d   :  { %2858 = vmatprep.subr.bf16.mxu0 %v4884_v46  ;;  %2940 = vmatprep.subr.bf16.mxu1 %v4887_v47  ;;  %v4973_v46 = vld [vmem:[#allocation2 + $0x2ac] ss:$16 sps:$4 sm:$0xff]   ;;  %v4968_v47 = vld [vmem:[#allocation2 + $0x2a0] ss:$16 sps:$4 sm:$0xff]  }
 0x130   :  { %2859 = vmatpush1.bf16.msra.mxu0 %v4882_v48  ;;  %2941 = vmatpush1.bf16.msra.mxu1 %v4885_v49  ;;  %v4971_v48 = vld [vmem:[#allocation2 + $0x2a8] ss:$16 sps:$4 sm:$0xff]   ;;  %v4976_v49 = vld [vmem:[#allocation2 + $0x2c4] ss:$16 sps:$4 sm:$0xff]  }
 0x131   :  { %2860 = vmatprep.subr.bf16.mxu0 %v4890_v50  ;;  %2942 = vmatprep.subr.bf16.mxu1 %v4893_v51  ;;  %v4979_v50 = vld [vmem:[#allocation2 + $0x2cc] ss:$16 sps:$4 sm:$0xff]   ;;  %v4974_v51 = vld [vmem:[#allocation2 + $0x2c0] ss:$16 sps:$4 sm:$0xff]  }
 0x134   :  { %2861 = vmatpush1.bf16.msra.mxu0 %v4888_v52  ;;  %2943 = vmatpush1.bf16.msra.mxu1 %v4891_v53  ;;  %v4977_v52 = vld [vmem:[#allocation2 + $0x2c8] ss:$16 sps:$4 sm:$0xff]   ;;  %v4982_v53 = vld [vmem:[#allocation2 + $0x2e4] ss:$16 sps:$4 sm:$0xff]  }
 0x135   :  { %2862 = vmatprep.subr.bf16.mxu0 %v4896_v54  ;;  %2944 = vmatprep.subr.bf16.mxu1 %v4899_v55  ;;  %v4985_v54 = vld [vmem:[#allocation2 + $0x2ec] ss:$16 sps:$4 sm:$0xff]   ;;  %v4980_v55 = vld [vmem:[#allocation2 + $0x2e0] ss:$16 sps:$4 sm:$0xff]  }
 0x138   :  { %2863 = vmatpush1.bf16.msra.mxu0 %v4894_v56  ;;  %2945 = vmatpush1.bf16.msra.mxu1 %v4897_v57  ;;  %v4983_v56 = vld [vmem:[#allocation2 + $0x2e8] ss:$16 sps:$4 sm:$0xff]   ;;  %v4988_v57 = vld [vmem:[#allocation2 + $0x304] ss:$16 sps:$4 sm:$0xff]  }
 0x139   :  { %2864 = vmatprep.subr.bf16.mxu0 %v4902_v58  ;;  %2946 = vmatprep.subr.bf16.mxu1 %v4905_v59  ;;  %v4991_v58 = vld [vmem:[#allocation2 + $0x30c] ss:$16 sps:$4 sm:$0xff]   ;;  %v4986_v59 = vld [vmem:[#allocation2 + $0x300] ss:$16 sps:$4 sm:$0xff]  }
 0x13c   :  { %2865 = vmatpush1.bf16.msra.mxu0 %v4900_v60  ;;  %2947 = vmatpush1.bf16.msra.mxu1 %v4903_v61  ;;  %v4989_v60 = vld [vmem:[#allocation2 + $0x308] ss:$16 sps:$4 sm:$0xff]   ;;  %v4994_v61 = vld [vmem:[#allocation2 + $0x324] ss:$16 sps:$4 sm:$0xff]  }
 0x13d   :  { %2866 = vmatprep.subr.bf16.mxu0 %v4908_v62  ;;  %2948 = vmatprep.subr.bf16.mxu1 %v4911_v63  ;;  %v4997_v62 = vld [vmem:[#allocation2 + $0x32c] ss:$16 sps:$4 sm:$0xff]   ;;  %v4992_v63 = vld [vmem:[#allocation2 + $0x320] ss:$16 sps:$4 sm:$0xff]  }
 0x140   :  { %2867 = vmatpush1.bf16.msra.mxu0 %v4906_v0  ;;  %2949 = vmatpush1.bf16.msra.mxu1 %v4909_v1  ;;  %v4995_v0 = vld [vmem:[#allocation2 + $0x328] ss:$16 sps:$4 sm:$0xff]   ;;  %v5000_v1 = vld [vmem:[#allocation2 + $0x344] ss:$16 sps:$4 sm:$0xff]  }
 0x141   :  { %2868 = vmatprep.subr.bf16.mxu0 %v4914_v2  ;;  %2950 = vmatprep.subr.bf16.mxu1 %v4917_v3  ;;  %v5003_v2 = vld [vmem:[#allocation2 + $0x34c] ss:$16 sps:$4 sm:$0xff]   ;;  %v4998_v3 = vld [vmem:[#allocation2 + $0x340] ss:$16 sps:$4 sm:$0xff]  }
 0x144   :  { %2869 = vmatpush1.bf16.msra.mxu0 %v4912_v4  ;;  %2951 = vmatpush1.bf16.msra.mxu1 %v4915_v5  ;;  %v5001_v4 = vld [vmem:[#allocation2 + $0x348] ss:$16 sps:$4 sm:$0xff]   ;;  %v5006_v5 = vld [vmem:[#allocation2 + $0x364] ss:$16 sps:$4 sm:$0xff]  }
 0x145   :  { %2870 = vmatprep.subr.bf16.mxu0 %v4920_v6  ;;  %2952 = vmatprep.subr.bf16.mxu1 %v4923_v7  ;;  %v5009_v6 = vld [vmem:[#allocation2 + $0x36c] ss:$16 sps:$4 sm:$0xff]   ;;  %v5004_v7 = vld [vmem:[#allocation2 + $0x360] ss:$16 sps:$4 sm:$0xff]  }
 0x148   :  { %2871 = vmatpush1.bf16.msra.mxu0 %v4918_v8  ;;  %2953 = vmatpush1.bf16.msra.mxu1 %v4921_v9  ;;  %v5007_v8 = vld [vmem:[#allocation2 + $0x368] ss:$16 sps:$4 sm:$0xff]   ;;  %v5012_v9 = vld [vmem:[#allocation2 + $0x384] ss:$16 sps:$4 sm:$0xff]  }
 0x149   :  { %2872 = vmatprep.subr.bf16.mxu0 %v4926_v10  ;;  %2954 = vmatprep.subr.bf16.mxu1 %v4929_v12  ;;  %v5015_v10 = vld [vmem:[#allocation2 + $0x38c] ss:$16 sps:$4 sm:$0xff]   ;;  %v5010_v12 = vld [vmem:[#allocation2 + $0x380] ss:$16 sps:$4 sm:$0xff]  }
 0x14c   :  { %2873 = vmatpush1.bf16.msra.mxu0 %v4924_v16  ;;  %2955 = vmatpush1.bf16.msra.mxu1 %v4927_v17  ;;  %v5013_v16 = vld [vmem:[#allocation2 + $0x388] ss:$16 sps:$4 sm:$0xff]   ;;  %v5018_v17 = vld [vmem:[#allocation2 + $0x3a4] ss:$16 sps:$4 sm:$0xff]  }
 0x14d   :  { %2874 = vmatprep.subr.bf16.mxu0 %v4932_v11  ;;  %2956 = vmatprep.subr.bf16.mxu1 %v4935_v21  ;;  %v5021_v11 = vld [vmem:[#allocation2 + $0x3ac] ss:$16 sps:$4 sm:$0xff]   ;;  %v5016_v21 = vld [vmem:[#allocation2 + $0x3a0] ss:$16 sps:$4 sm:$0xff]  }
 0x150   :  { %2875 = vmatpush1.bf16.msra.mxu0 %v4930_v22  ;;  %2957 = vmatpush1.bf16.msra.mxu1 %v4933_v23  ;;  %v5019_v22 = vld [vmem:[#allocation2 + $0x3a8] ss:$16 sps:$4 sm:$0xff]   ;;  %v5024_v23 = vld [vmem:[#allocation2 + $0x3c4] ss:$16 sps:$4 sm:$0xff]  }
 0x151   :  { %2885 = vmatprep.subr.bf16.mxu0 %v4940_v24  ;;  %2967 = vmatprep.subr.bf16.mxu1 %v4943_v15  ;;  %v5027_v24 = vld [vmem:[#allocation2 + $0x3cc] ss:$16 sps:$4 sm:$0xff]   ;;  %v5022_v15 = vld [vmem:[#allocation2 + $0x3c0] ss:$16 sps:$4 sm:$0xff]  }
 0x153   :  { %2877 = vmatmul.mubr.bf16.vlgmr.msra.gmra.mrb[4].mxu0 %v4129_v26  ;;  %2959 = vmatmul.mubr.bf16.vlgmr.msra.gmra.mrb[4].mxu1 %v4129_v26  ;;  %v5025_v26 = vld [vmem:[#allocation2 + $0x3c8] ss:$16 sps:$4 sm:$0xff]  }
 0x154   :  { %2886 = vmatpush1.bf16.msra.mxu0 %v4938_v27  ;;  %2968 = vmatpush1.bf16.msra.mxu1 %v4941_v28  ;;  %v5030_v27 = vld [vmem:[#allocation2 + $0x3e4] ss:$16 sps:$4 sm:$0xff]   ;;  %v5033_v28 = vld [vmem:[#allocation2 + $0x3ec] ss:$16 sps:$4 sm:$0xff]  }
 0x155   :  { %2887 = vmatprep.subr.bf16.mxu0 %v4946_v29  ;;  %2969 = vmatprep.subr.bf16.mxu1 %v4949_v30  ;;  %v5028_v29 = vld [vmem:[#allocation2 + $0x3e0] ss:$16 sps:$4 sm:$0xff]   ;;  %v5031_v30 = vld [vmem:[#allocation2 + $0x3e8] ss:$16 sps:$4 sm:$0xff]  }
 0x156   :  { %2917 = vmatprep.mubr.bf16.mxu0 %v4132_v31  ;;  %2999 = vmatprep.mubr.bf16.mxu1 %v4132_v31  ;;  %v5038_v31 = vld [vmem:[#allocation2 + $0x804] ss:$16 sps:$4 sm:$0xff]  }
 0x158   :  { %2888 = vmatpush1.bf16.msra.mxu0 %v4944_v32  ;;  %2970 = vmatpush1.bf16.msra.mxu1 %v4947_v33  ;;  %v5041_v32 = vld [vmem:[#allocation2 + $0x80c] ss:$16 sps:$4 sm:$0xff]   ;;  %v4131_v33 = vcombine.low %v5353_v25, %v5353_v25  ;;  %v5048_v25 = vld [vmem:[#allocation2 + $0x840] ss:$16 sps:$4 sm:$0xff]  }
 0x159   :  { %2889 = vmatprep.subr.bf16.mxu0 %v4952_v20  ;;  %2971 = vmatprep.subr.bf16.mxu1 %v4955_v34  ;;  %v5036_v20 = vld [vmem:[#allocation2 + $0x800] ss:$16 sps:$4 sm:$0xff]   ;;  %v5039_v34 = vld [vmem:[#allocation2 + $0x808] ss:$16 sps:$4 sm:$0xff]  }
 0x15c   :  { %2890 = vmatpush1.bf16.msra.mxu0 %v4950_v35  ;;  %2972 = vmatpush1.bf16.msra.mxu1 %v4953_v36  ;;  %v5044_v35 = vld [vmem:[#allocation2 + $0x824] ss:$16 sps:$4 sm:$0xff]   ;;  %v5047_v36 = vld [vmem:[#allocation2 + $0x82c] ss:$16 sps:$4 sm:$0xff]  }
 0x15d   :  { %2891 = vmatprep.subr.bf16.mxu0 %v4958_v37  ;;  %2973 = vmatprep.subr.bf16.mxu1 %v4961_v38  ;;  %v5042_v37 = vld [vmem:[#allocation2 + $0x820] ss:$16 sps:$4 sm:$0xff]   ;;  %v5045_v38 = vld [vmem:[#allocation2 + $0x828] ss:$16 sps:$4 sm:$0xff]  }
 0x160   :  { %2892 = vmatpush1.bf16.msra.mxu0 %v4956_v39  ;;  %2974 = vmatpush1.bf16.msra.mxu1 %v4959_v40  ;;  %v5050_v39 = vld [vmem:[#allocation2 + $0x844] ss:$16 sps:$4 sm:$0xff]   ;;  %v5053_v40 = vld [vmem:[#allocation2 + $0x84c] ss:$16 sps:$4 sm:$0xff]  }
 0x161   :  { %2893 = vmatprep.subr.bf16.mxu0 %v4964_v41  ;;  %2975 = vmatprep.subr.bf16.mxu1 %v4967_v42  ;;  %v5051_v41 = vld [vmem:[#allocation2 + $0x848] ss:$16 sps:$4 sm:$0xff]   ;;  %v5056_v42 = vld [vmem:[#allocation2 + $0x864] ss:$16 sps:$4 sm:$0xff]  }
 0x164   :  { %2894 = vmatpush1.bf16.msra.mxu0 %v4962_v43  ;;  %2976 = vmatpush1.bf16.msra.mxu1 %v4965_v44  ;;  %v5059_v43 = vld [vmem:[#allocation2 + $0x86c] ss:$16 sps:$4 sm:$0xff]   ;;  %v5054_v44 = vld [vmem:[#allocation2 + $0x860] ss:$16 sps:$4 sm:$0xff]  }
 0x165   :  { %2895 = vmatprep.subr.bf16.mxu0 %v4970_v45  ;;  %2977 = vmatprep.subr.bf16.mxu1 %v4973_v46  ;;  %v5057_v45 = vld [vmem:[#allocation2 + $0x868] ss:$16 sps:$4 sm:$0xff]   ;;  %v5062_v46 = vld [vmem:[#allocation2 + $0x884] ss:$16 sps:$4 sm:$0xff]  }
 0x168   :  { %2896 = vmatpush1.bf16.msra.mxu0 %v4968_v47  ;;  %2978 = vmatpush1.bf16.msra.mxu1 %v4971_v48  ;;  %v5065_v47 = vld [vmem:[#allocation2 + $0x88c] ss:$16 sps:$4 sm:$0xff]   ;;  %v5060_v48 = vld [vmem:[#allocation2 + $0x880] ss:$16 sps:$4 sm:$0xff]  }
 0x169   :  { %2897 = vmatprep.subr.bf16.mxu0 %v4976_v49  ;;  %2979 = vmatprep.subr.bf16.mxu1 %v4979_v50  ;;  %v5068_v49 = vld [vmem:[#allocation2 + $0x8a4] ss:$16 sps:$4 sm:$0xff]   ;;  %v5071_v50 = vld [vmem:[#allocation2 + $0x8ac] ss:$16 sps:$4 sm:$0xff]  }
 0x16c   :  { %2898 = vmatpush1.bf16.msra.mxu0 %v4974_v51  ;;  %2980 = vmatpush1.bf16.msra.mxu1 %v4977_v52  ;;  %v5066_v51 = vld [vmem:[#allocation2 + $0x8a0] ss:$16 sps:$4 sm:$0xff]   ;;  %v5069_v52 = vld [vmem:[#allocation2 + $0x8a8] ss:$16 sps:$4 sm:$0xff]  }
 0x16d   :  { %2899 = vmatprep.subr.bf16.mxu0 %v4982_v53  ;;  %2981 = vmatprep.subr.bf16.mxu1 %v4985_v54  ;;  %v5074_v53 = vld [vmem:[#allocation2 + $0x8c4] ss:$16 sps:$4 sm:$0xff]   ;;  %v5077_v54 = vld [vmem:[#allocation2 + $0x8cc] ss:$16 sps:$4 sm:$0xff]  }
 0x170   :  { %2900 = vmatpush1.bf16.msra.mxu0 %v4980_v55  ;;  %2982 = vmatpush1.bf16.msra.mxu1 %v4983_v56  ;;  %v5072_v55 = vld [vmem:[#allocation2 + $0x8c0] ss:$16 sps:$4 sm:$0xff]   ;;  %v5075_v56 = vld [vmem:[#allocation2 + $0x8c8] ss:$16 sps:$4 sm:$0xff]  }
 0x171   :  { %2901 = vmatprep.subr.bf16.mxu0 %v4988_v57  ;;  %2983 = vmatprep.subr.bf16.mxu1 %v4991_v58  ;;  %v5080_v57 = vld [vmem:[#allocation2 + $0x8e4] ss:$16 sps:$4 sm:$0xff]   ;;  %v5083_v58 = vld [vmem:[#allocation2 + $0x8ec] ss:$16 sps:$4 sm:$0xff]  }
 0x174   :  { %2902 = vmatpush1.bf16.msra.mxu0 %v4986_v59  ;;  %2984 = vmatpush1.bf16.msra.mxu1 %v4989_v60  ;;  %v5078_v59 = vld [vmem:[#allocation2 + $0x8e0] ss:$16 sps:$4 sm:$0xff]   ;;  %v5081_v60 = vld [vmem:[#allocation2 + $0x8e8] ss:$16 sps:$4 sm:$0xff]  }
 0x175   :  { %2903 = vmatprep.subr.bf16.mxu0 %v4994_v61  ;;  %2985 = vmatprep.subr.bf16.mxu1 %v4997_v62  ;;  %v5086_v61 = vld [vmem:[#allocation2 + $0x904] ss:$16 sps:$4 sm:$0xff]   ;;  %v5089_v62 = vld [vmem:[#allocation2 + $0x90c] ss:$16 sps:$4 sm:$0xff]  }
 0x178   :  { %2904 = vmatpush1.bf16.msra.mxu0 %v4992_v63  ;;  %2986 = vmatpush1.bf16.msra.mxu1 %v4995_v0  ;;  %v5084_v63 = vld [vmem:[#allocation2 + $0x900] ss:$16 sps:$4 sm:$0xff]   ;;  %v5087_v0 = vld [vmem:[#allocation2 + $0x908] ss:$16 sps:$4 sm:$0xff]  }
 0x179   :  { %2905 = vmatprep.subr.bf16.mxu0 %v5000_v1  ;;  %2987 = vmatprep.subr.bf16.mxu1 %v5003_v2  ;;  %v5092_v1 = vld [vmem:[#allocation2 + $0x924] ss:$16 sps:$4 sm:$0xff]   ;;  %v5095_v2 = vld [vmem:[#allocation2 + $0x92c] ss:$16 sps:$4 sm:$0xff]  }
 0x17c   :  { %2906 = vmatpush1.bf16.msra.mxu0 %v4998_v3  ;;  %2988 = vmatpush1.bf16.msra.mxu1 %v5001_v4  ;;  %v5090_v3 = vld [vmem:[#allocation2 + $0x920] ss:$16 sps:$4 sm:$0xff]   ;;  %v5093_v4 = vld [vmem:[#allocation2 + $0x928] ss:$16 sps:$4 sm:$0xff]  }
 0x17d   :  { %2907 = vmatprep.subr.bf16.mxu0 %v5006_v5  ;;  %2989 = vmatprep.subr.bf16.mxu1 %v5009_v6  ;;  %v5098_v5 = vld [vmem:[#allocation2 + $0x944] ss:$16 sps:$4 sm:$0xff]   ;;  %v5101_v6 = vld [vmem:[#allocation2 + $0x94c] ss:$16 sps:$4 sm:$0xff]  }
 0x180   :  { %2908 = vmatpush1.bf16.msra.mxu0 %v5004_v7  ;;  %2990 = vmatpush1.bf16.msra.mxu1 %v5007_v8  ;;  %v5096_v7 = vld [vmem:[#allocation2 + $0x940] ss:$16 sps:$4 sm:$0xff]   ;;  %v5099_v8 = vld [vmem:[#allocation2 + $0x948] ss:$16 sps:$4 sm:$0xff]  }
 0x181   :  { %2909 = vmatprep.subr.bf16.mxu0 %v5012_v9  ;;  %2991 = vmatprep.subr.bf16.mxu1 %v5015_v10  ;;  %v5104_v9 = vld [vmem:[#allocation2 + $0x964] ss:$16 sps:$4 sm:$0xff]   ;;  %v5107_v10 = vld [vmem:[#allocation2 + $0x96c] ss:$16 sps:$4 sm:$0xff]  }
 0x184   :  { %2910 = vmatpush1.bf16.msra.mxu0 %v5010_v12  ;;  %2992 = vmatpush1.bf16.msra.mxu1 %v5013_v16  ;;  %v5102_v12 = vld [vmem:[#allocation2 + $0x960] ss:$16 sps:$4 sm:$0xff]   ;;  %v5105_v16 = vld [vmem:[#allocation2 + $0x968] ss:$16 sps:$4 sm:$0xff]  }
 0x185   :  { %2911 = vmatprep.subr.bf16.mxu0 %v5018_v17  ;;  %2993 = vmatprep.subr.bf16.mxu1 %v5021_v11  ;;  %v5110_v17 = vld [vmem:[#allocation2 + $0x984] ss:$16 sps:$4 sm:$0xff]   ;;  %v5113_v11 = vld [vmem:[#allocation2 + $0x98c] ss:$16 sps:$4 sm:$0xff]  }
 0x188   :  { %2912 = vmatpush1.bf16.msra.mxu0 %v5016_v21  ;;  %2994 = vmatpush1.bf16.msra.mxu1 %v5019_v22  ;;  %v5108_v21 = vld [vmem:[#allocation2 + $0x980] ss:$16 sps:$4 sm:$0xff]   ;;  %v5111_v22 = vld [vmem:[#allocation2 + $0x988] ss:$16 sps:$4 sm:$0xff]  }
 0x189   :  { %2913 = vmatprep.subr.bf16.mxu0 %v5024_v23  ;;  %2995 = vmatprep.subr.bf16.mxu1 %v5027_v24  ;;  %v5116_v23 = vld [vmem:[#allocation2 + $0x9a4] ss:$16 sps:$4 sm:$0xff]   ;;  %v5119_v24 = vld [vmem:[#allocation2 + $0x9ac] ss:$16 sps:$4 sm:$0xff]  }
 0x18c   :  { %2914 = vmatpush1.bf16.msra.mxu0 %v5022_v15  ;;  %2996 = vmatpush1.bf16.msra.mxu1 %v5025_v26  ;;  %v5114_v15 = vld [vmem:[#allocation2 + $0x9a0] ss:$16 sps:$4 sm:$0xff]   ;;  %v5117_v26 = vld [vmem:[#allocation2 + $0x9a8] ss:$16 sps:$4 sm:$0xff]  }
 0x18d   :  { %2915 = vmatprep.subr.bf16.mxu0 %v5030_v27  ;;  %2997 = vmatprep.subr.bf16.mxu1 %v5033_v28  ;;  %v5122_v27 = vld [vmem:[#allocation2 + $0x9c4] ss:$16 sps:$4 sm:$0xff]   ;;  %v5125_v28 = vld [vmem:[#allocation2 + $0x9cc] ss:$16 sps:$4 sm:$0xff]  }
 0x190   :  { %2916 = vmatpush1.bf16.msra.mxu0 %v5028_v29  ;;  %2998 = vmatpush1.bf16.msra.mxu1 %v5031_v30  ;;  %v5120_v29 = vld [vmem:[#allocation2 + $0x9c0] ss:$16 sps:$4 sm:$0xff]   ;;  %v5123_v30 = vld [vmem:[#allocation2 + $0x9c8] ss:$16 sps:$4 sm:$0xff]  }
 0x191   :  { %3648 = vmatprep.subr.bf16.mxu0 %v5038_v31  ;;  %3730 = vmatprep.subr.bf16.mxu1 %v5041_v32  ;;  %v5128_v31 = vld [vmem:[#allocation2 + $0x9e4] ss:$16 sps:$4 sm:$0xff]   ;;  %v5131_v32 = vld [vmem:[#allocation2 + $0x9ec] ss:$16 sps:$4 sm:$0xff]  }
 0x193   :  { %2918 = vmatmul.mubr.bf16.vlgmr.msra.gmra.mrb[4].mxu0 %v4131_v33  ;;  %3000 = vmatmul.mubr.bf16.vlgmr.msra.gmra.mrb[4].mxu1 %v4131_v33  ;;  %v5126_v33 = vld [vmem:[#allocation2 + $0x9e0] ss:$16 sps:$4 sm:$0xff]  }
 0x194   :  { %3649 = vmatpush1.bf16.msra.mxu0 %v5036_v20  ;;  %3731 = vmatpush1.bf16.msra.mxu1 %v5039_v34  ;;  %v5129_v20 = vld [vmem:[#allocation2 + $0x9e8] ss:$16 sps:$4 sm:$0xff]   ;;  %v5134_v34 = vld [vmem:[#allocation2 + $0xa04] ss:$16 sps:$4 sm:$0xff]  }
 0x195   :  { %3650 = vmatprep.subr.bf16.mxu0 %v5044_v35  ;;  %3732 = vmatprep.subr.bf16.mxu1 %v5047_v36  ;;  %v5137_v35 = vld [vmem:[#allocation2 + $0xa0c] ss:$16 sps:$4 sm:$0xff]   ;;  %v5132_v36 = vld [vmem:[#allocation2 + $0xa00] ss:$16 sps:$4 sm:$0xff]  }
 0x196   :  { %3680 = vmatprep.mubr.bf16.mxu0 %v5316_v13  ;;  %3762 = vmatprep.mubr.bf16.mxu1 %v5316_v13  ;;  %v5063_v13 = vld [vmem:[#allocation2 + $0x888] ss:$16 sps:$4 sm:$0xff]  }
 0x198   :  { %3651 = vmatpush1.bf16.msra.mxu0 %v5042_v37  ;;  %3733 = vmatpush1.bf16.msra.mxu1 %v5045_v38  ;;  %v5135_v37 = vld [vmem:[#allocation2 + $0xa08] ss:$16 sps:$4 sm:$0xff]   ;;  %v5140_v38 = vld [vmem:[#allocation2 + $0xa24] ss:$16 sps:$4 sm:$0xff]  }
 0x199   :  { %3652 = vmatprep.subr.bf16.mxu0 %v5050_v39  ;;  %3734 = vmatprep.subr.bf16.mxu1 %v5053_v40  ;;  %v5143_v39 = vld [vmem:[#allocation2 + $0xa2c] ss:$16 sps:$4 sm:$0xff]   ;;  %v5138_v40 = vld [vmem:[#allocation2 + $0xa20] ss:$16 sps:$4 sm:$0xff]  }
 0x19c   :  { %3653 = vmatpush1.bf16.msra.mxu0 %v5048_v25  ;;  %3735 = vmatpush1.bf16.msra.mxu1 %v5051_v41  ;;  %v5141_v25 = vld [vmem:[#allocation2 + $0xa28] ss:$16 sps:$4 sm:$0xff]   ;;  %v5146_v41 = vld [vmem:[#allocation2 + $0xa44] ss:$16 sps:$4 sm:$0xff]  }
 0x19d   :  { %3654 = vmatprep.subr.bf16.mxu0 %v5056_v42  ;;  %3736 = vmatprep.subr.bf16.mxu1 %v5059_v43  ;;  %v5149_v42 = vld [vmem:[#allocation2 + $0xa4c] ss:$16 sps:$4 sm:$0xff]   ;;  %v5144_v43 = vld [vmem:[#allocation2 + $0xa40] ss:$16 sps:$4 sm:$0xff]  }
 0x1a0   :  { %3655 = vmatpush1.bf16.msra.mxu0 %v5054_v44  ;;  %3737 = vmatpush1.bf16.msra.mxu1 %v5057_v45  ;;  %v5147_v44 = vld [vmem:[#allocation2 + $0xa48] ss:$16 sps:$4 sm:$0xff]   ;;  %v5152_v45 = vld [vmem:[#allocation2 + $0xa64] ss:$16 sps:$4 sm:$0xff]  }
 0x1a1   :  { %3656 = vmatprep.subr.bf16.mxu0 %v5062_v46  ;;  %3738 = vmatprep.subr.bf16.mxu1 %v5065_v47  ;;  %v5150_v46 = vld [vmem:[#allocation2 + $0xa60] ss:$16 sps:$4 sm:$0xff]   ;;  %v5153_v47 = vld [vmem:[#allocation2 + $0xa68] ss:$16 sps:$4 sm:$0xff]  }
 0x1a4   :  { %3657 = vmatpush1.bf16.msra.mxu0 %v5060_v48  ;;  %3739 = vmatpush1.bf16.msra.mxu1 %v5063_v13  ;;  %v5158_v48 = vld [vmem:[#allocation2 + $0xa84] ss:$16 sps:$4 sm:$0xff]   ;;  %v5161_v13 = vld [vmem:[#allocation2 + $0xa8c] ss:$16 sps:$4 sm:$0xff]  }
 0x1a5   :  { %3658 = vmatprep.subr.bf16.mxu0 %v5068_v49  ;;  %3740 = vmatprep.subr.bf16.mxu1 %v5071_v50  ;;  %v5156_v49 = vld [vmem:[#allocation2 + $0xa80] ss:$16 sps:$4 sm:$0xff]   ;;  %v5164_v50 = vld [vmem:[#allocation2 + $0xaa4] ss:$16 sps:$4 sm:$0xff]  }
 0x1a8   :  { %3659 = vmatpush1.bf16.msra.mxu0 %v5066_v51  ;;  %3741 = vmatpush1.bf16.msra.mxu1 %v5069_v52  ;;  %v5167_v51 = vld [vmem:[#allocation2 + $0xaac] ss:$16 sps:$4 sm:$0xff]   ;;  %v5162_v52 = vld [vmem:[#allocation2 + $0xaa0] ss:$16 sps:$4 sm:$0xff]  }
 0x1a9   :  { %3660 = vmatprep.subr.bf16.mxu0 %v5074_v53  ;;  %3742 = vmatprep.subr.bf16.mxu1 %v5077_v54  ;;  %v5165_v53 = vld [vmem:[#allocation2 + $0xaa8] ss:$16 sps:$4 sm:$0xff]   ;;  %v5170_v54 = vld [vmem:[#allocation2 + $0xac4] ss:$16 sps:$4 sm:$0xff]  }
 0x1ac   :  { %3661 = vmatpush1.bf16.msra.mxu0 %v5072_v55  ;;  %3743 = vmatpush1.bf16.msra.mxu1 %v5075_v56  ;;  %v5173_v55 = vld [vmem:[#allocation2 + $0xacc] ss:$16 sps:$4 sm:$0xff]  }
 0x1ad   :  { %3662 = vmatprep.subr.bf16.mxu0 %v5080_v57  ;;  %3744 = vmatprep.subr.bf16.mxu1 %v5083_v58 }
 0x1b0   :  { %3663 = vmatpush1.bf16.msra.mxu0 %v5078_v59  ;;  %3745 = vmatpush1.bf16.msra.mxu1 %v5081_v60 }
 0x1b1   :  { %3664 = vmatprep.subr.bf16.mxu0 %v5086_v61  ;;  %3746 = vmatprep.subr.bf16.mxu1 %v5089_v62  ;;  %v5168_v62 = vld [vmem:[#allocation2 + $0xac0] ss:$16 sps:$4 sm:$0xff]  }
 0x1b4   :  { %3665 = vmatpush1.bf16.msra.mxu0 %v5084_v63  ;;  %3747 = vmatpush1.bf16.msra.mxu1 %v5087_v0 }
 0x1b5   :  { %3666 = vmatprep.subr.bf16.mxu0 %v5092_v1  ;;  %3748 = vmatprep.subr.bf16.mxu1 %v5095_v2 }
 0x1b8   :  { %3667 = vmatpush1.bf16.msra.mxu0 %v5090_v3  ;;  %3749 = vmatpush1.bf16.msra.mxu1 %v5093_v4  ;;  %v5171_v3 = vld [vmem:[#allocation2 + $0xac8] ss:$16 sps:$4 sm:$0xff]  }
 0x1b9   :  { %3668 = vmatprep.subr.bf16.mxu0 %v5098_v5  ;;  %3750 = vmatprep.subr.bf16.mxu1 %v5101_v6  ;;  %v5176_v6 = vld [vmem:[#allocation2 + $0xae4] ss:$16 sps:$4 sm:$0xff]  }
 0x1bc   :  { %3669 = vmatpush1.bf16.msra.mxu0 %v5096_v7  ;;  %3751 = vmatpush1.bf16.msra.mxu1 %v5099_v8  ;;  %v5179_v7 = vld [vmem:[#allocation2 + $0xaec] ss:$16 sps:$4 sm:$0xff]  }
 0x1bd   :  { %3670 = vmatprep.subr.bf16.mxu0 %v5104_v9  ;;  %3752 = vmatprep.subr.bf16.mxu1 %v5107_v10  ;;  %v5174_v10 = vld [vmem:[#allocation2 + $0xae0] ss:$16 sps:$4 sm:$0xff]  }
 0x1c0   :  { %3671 = vmatpush1.bf16.msra.mxu0 %v5102_v12  ;;  %3753 = vmatpush1.bf16.msra.mxu1 %v5105_v16  ;;  %v5177_v12 = vld [vmem:[#allocation2 + $0xae8] ss:$16 sps:$4 sm:$0xff]   ;;  %v5182_v16 = vld [vmem:[#allocation2 + $0xb04] ss:$16 sps:$4 sm:$0xff]  }
 0x1c1   :  { %3672 = vmatprep.subr.bf16.mxu0 %v5110_v17  ;;  %3754 = vmatprep.subr.bf16.mxu1 %v5113_v11  ;;  %v5185_v17 = vld [vmem:[#allocation2 + $0xb0c] ss:$16 sps:$4 sm:$0xff]   ;;  %v5180_v11 = vld [vmem:[#allocation2 + $0xb00] ss:$16 sps:$4 sm:$0xff]  }
 0x1c4   :  { %3673 = vmatpush1.bf16.msra.mxu0 %v5108_v21  ;;  %3755 = vmatpush1.bf16.msra.mxu1 %v5111_v22  ;;  %v5183_v21 = vld [vmem:[#allocation2 + $0xb08] ss:$16 sps:$4 sm:$0xff]   ;;  %v5188_v22 = vld [vmem:[#allocation2 + $0xb24] ss:$16 sps:$4 sm:$0xff]  }
 0x1c5   :  { %3674 = vmatprep.subr.bf16.mxu0 %v5116_v23  ;;  %3756 = vmatprep.subr.bf16.mxu1 %v5119_v24  ;;  %v5191_v23 = vld [vmem:[#allocation2 + $0xb2c] ss:$16 sps:$4 sm:$0xff]   ;;  %v5186_v24 = vld [vmem:[#allocation2 + $0xb20] ss:$16 sps:$4 sm:$0xff]  }
 0x1c8   :  { %3675 = vmatpush1.bf16.msra.mxu0 %v5114_v15  ;;  %3757 = vmatpush1.bf16.msra.mxu1 %v5117_v26  ;;  %v5189_v15 = vld [vmem:[#allocation2 + $0xb28] ss:$16 sps:$4 sm:$0xff]   ;;  %v5194_v26 = vld [vmem:[#allocation2 + $0xb44] ss:$16 sps:$4 sm:$0xff]  }
 0x1c9   :  { %3676 = vmatprep.subr.bf16.mxu0 %v5122_v27  ;;  %3758 = vmatprep.subr.bf16.mxu1 %v5125_v28  ;;  %v5197_v27 = vld [vmem:[#allocation2 + $0xb4c] ss:$16 sps:$4 sm:$0xff]   ;;  %v5192_v28 = vld [vmem:[#allocation2 + $0xb40] ss:$16 sps:$4 sm:$0xff]  }
 0x1cc   :  { %3677 = vmatpush1.bf16.msra.mxu0 %v5120_v29  ;;  %3759 = vmatpush1.bf16.msra.mxu1 %v5123_v30  ;;  %v5195_v29 = vld [vmem:[#allocation2 + $0xb48] ss:$16 sps:$4 sm:$0xff]   ;;  %v5200_v30 = vld [vmem:[#allocation2 + $0xb64] ss:$16 sps:$4 sm:$0xff]  }
 0x1cd   :  { %3678 = vmatprep.subr.bf16.mxu0 %v5128_v31  ;;  %3760 = vmatprep.subr.bf16.mxu1 %v5131_v32  ;;  %v5203_v31 = vld [vmem:[#allocation2 + $0xb6c] ss:$16 sps:$4 sm:$0xff]   ;;  %v5198_v32 = vld [vmem:[#allocation2 + $0xb60] ss:$16 sps:$4 sm:$0xff]  }
 0x1d0   :  { %3679 = vmatpush1.bf16.msra.mxu0 %v5126_v33  ;;  %3761 = vmatpush1.bf16.msra.mxu1 %v5129_v20  ;;  %v5201_v33 = vld [vmem:[#allocation2 + $0xb68] ss:$16 sps:$4 sm:$0xff]   ;;  %v5206_v20 = vld [vmem:[#allocation2 + $0xb84] ss:$16 sps:$4 sm:$0xff]  }
 0x1d1   :  { %3689 = vmatprep.subr.bf16.mxu0 %v5134_v34  ;;  %3771 = vmatprep.subr.bf16.mxu1 %v5137_v35  ;;  %v5209_v34 = vld [vmem:[#allocation2 + $0xb8c] ss:$16 sps:$4 sm:$0xff]   ;;  %v5204_v35 = vld [vmem:[#allocation2 + $0xb80] ss:$16 sps:$4 sm:$0xff]  }
 0x1d3   :  { %3681 = vmatmul.mubr.bf16.vlgmr.msra.gmra.mrb[4].mxu0 %v5322_v14  ;;  %3763 = vmatmul.mubr.bf16.vlgmr.msra.gmra.mrb[4].mxu1 %v5322_v14  ;;  %v5155_v14 = vld [vmem:[#allocation2 + $0xa6c] ss:$16 sps:$4 sm:$0xff]  }
 0x1d4   :  { %3690 = vmatpush1.bf16.msra.mxu0 %v5132_v36  ;;  %3772 = vmatpush1.bf16.msra.mxu1 %v5135_v37  ;;  %v5207_v36 = vld [vmem:[#allocation2 + $0xb88] ss:$16 sps:$4 sm:$0xff]   ;;  %v5212_v37 = vld [vmem:[#allocation2 + $0xba4] ss:$16 sps:$4 sm:$0xff]  }
 0x1d5   :  { %3691 = vmatprep.subr.bf16.mxu0 %v5140_v38  ;;  %3773 = vmatprep.subr.bf16.mxu1 %v5143_v39  ;;  %v5215_v38 = vld [vmem:[#allocation2 + $0xbac] ss:$16 sps:$4 sm:$0xff]   ;;  %v5210_v39 = vld [vmem:[#allocation2 + $0xba0] ss:$16 sps:$4 sm:$0xff]  }
 0x1d6   :  { %3721 = vmatprep.mubr.bf16.mxu0 %v5331_v18  ;;  %3803 = vmatprep.mubr.bf16.mxu1 %v5331_v18  ;;  %v5159_v18 = vld [vmem:[#allocation2 + $0xa88] ss:$16 sps:$4 sm:$0xff]  }
 0x1d8   :  { %3692 = vmatpush1.bf16.msra.mxu0 %v5138_v40  ;;  %3774 = vmatpush1.bf16.msra.mxu1 %v5141_v25  ;;  %v5213_v40 = vld [vmem:[#allocation2 + $0xba8] ss:$16 sps:$4 sm:$0xff]   ;;  %v5218_v25 = vld [vmem:[#allocation2 + $0xbc4] ss:$16 sps:$4 sm:$0xff]  }
 0x1d9   :  { %3693 = vmatprep.subr.bf16.mxu0 %v5146_v41  ;;  %3775 = vmatprep.subr.bf16.mxu1 %v5149_v42  ;;  %v5221_v41 = vld [vmem:[#allocation2 + $0xbcc] ss:$16 sps:$4 sm:$0xff]   ;;  %v5216_v42 = vld [vmem:[#allocation2 + $0xbc0] ss:$16 sps:$4 sm:$0xff]  }
 0x1dc   :  { %3694 = vmatpush1.bf16.msra.mxu0 %v5144_v43  ;;  %3776 = vmatpush1.bf16.msra.mxu1 %v5147_v44  ;;  %v5219_v43 = vld [vmem:[#allocation2 + $0xbc8] ss:$16 sps:$4 sm:$0xff]   ;;  %v5224_v44 = vld [vmem:[#allocation2 + $0xbe4] ss:$16 sps:$4 sm:$0xff]  }
 0x1dd   :  { %3695 = vmatprep.subr.bf16.mxu0 %v5152_v45  ;;  %3777 = vmatprep.subr.bf16.mxu1 %v5155_v14  ;;  %v5227_v45 = vld [vmem:[#allocation2 + $0xbec] ss:$16 sps:$4 sm:$0xff]   ;;  %v5222_v14 = vld [vmem:[#allocation2 + $0xbe0] ss:$16 sps:$4 sm:$0xff]  }
 0x1e0   :  { %3696 = vmatpush1.bf16.msra.mxu0 %v5150_v46  ;;  %3778 = vmatpush1.bf16.msra.mxu1 %v5153_v47  ;;  %v5225_v46 = vld [vmem:[#allocation2 + $0xbe8] ss:$16 sps:$4 sm:$0xff]  }
 0x1e1   :  { %3697 = vmatprep.subr.bf16.mxu0 %v5158_v48  ;;  %3779 = vmatprep.subr.bf16.mxu1 %v5161_v13 }
 0x1e4   :  { %3698 = vmatpush1.bf16.msra.mxu0 %v5156_v49  ;;  %3780 = vmatpush1.bf16.msra.mxu1 %v5159_v18 }
 0x1e5   :  { %3699 = vmatprep.subr.bf16.mxu0 %v5164_v50  ;;  %3781 = vmatprep.subr.bf16.mxu1 %v5167_v51 }
 0x1e6   :  { %v1842_v56 = vpop.f32.mrb[0].mxu0  ;;  %v1924_v57 = vpop.f32.mrb[0].mxu1 }
 0x1e7   :  { %v3812_v58 = vmax.f32 %v1842_v56, 0.0  ;;  %v3814_v59 = vmax.f32 %v1924_v57, 0.0  ;;  %v1844_v60 = vpop.f32.mrb[1].mxu0  ;;  %v1926_v61 = vpop.f32.mrb[1].mxu1 }
 0x1e8   :  { %v3813_v63 = vmax.f32 %v1844_v60, 0.0  ;;  %v3815_v0 = vmax.f32 %v1926_v61, 0.0  ;;  %v1846_v1 = vpop.f32.mrb[2].mxu0  ;;  %v1928_v2 = vpop.f32.mrb[2].mxu1  ;;  %3700 = vmatpush1.bf16.msra.mxu0 %v5162_v52  ;;  %3782 = vmatpush1.bf16.msra.mxu1 %v5165_v53 }
 0x1e9   :  { %v1847_v4 = vpop.f32.mrb[3].mxu0  ;;  %v1929_v5 = vpop.f32.mrb[3].mxu1  ;;  %3701 = vmatprep.subr.bf16.mxu0 %v5170_v54  ;;  %3783 = vmatprep.subr.bf16.mxu1 %v5173_v55 }
 0x1ea   :  { %v4393_v8 = vpack.c.bf16 %v3813_v63, %v3812_v58  ;;  %v4394_v9 = vpack.c.bf16 %v3815_v0, %v3814_v59 }
 0x1ec   :  { %3836 = vst [vmem:[%s5385_s4] sm:$0xff] %v4393_v8  ;;  %3837 = vst [vmem:[%s5385_s4 + $0x8] sm:$0xff] %v4394_v9  ;;  %3702 = vmatpush1.bf16.msra.mxu0 %v5168_v62  ;;  %3784 = vmatpush1.bf16.msra.mxu1 %v5171_v3 }
 0x1ed   :  { %3703 = vmatprep.subr.bf16.mxu0 %v5176_v6  ;;  %3785 = vmatprep.subr.bf16.mxu1 %v5179_v7 }
 0x1f0   :  { %3704 = vmatpush1.bf16.msra.mxu0 %v5174_v10  ;;  %3786 = vmatpush1.bf16.msra.mxu1 %v5177_v12 }
 0x1f1   :  { %3705 = vmatprep.subr.bf16.mxu0 %v5182_v16  ;;  %3787 = vmatprep.subr.bf16.mxu1 %v5185_v17 }
 0x1f4   :  { %3706 = vmatpush1.bf16.msra.mxu0 %v5180_v11  ;;  %3788 = vmatpush1.bf16.msra.mxu1 %v5183_v21 }
 0x1f5   :  { %3707 = vmatprep.subr.bf16.mxu0 %v5188_v22  ;;  %3789 = vmatprep.subr.bf16.mxu1 %v5191_v23 }
 0x1f8   :  { %3708 = vmatpush1.bf16.msra.mxu0 %v5186_v24  ;;  %3790 = vmatpush1.bf16.msra.mxu1 %v5189_v15 }
 0x1f9   :  { %3709 = vmatprep.subr.bf16.mxu0 %v5194_v26  ;;  %3791 = vmatprep.subr.bf16.mxu1 %v5197_v27 }
 0x1fc   :  { %3710 = vmatpush1.bf16.msra.mxu0 %v5192_v28  ;;  %3792 = vmatpush1.bf16.msra.mxu1 %v5195_v29 }
 0x1fd   :  { %3711 = vmatprep.subr.bf16.mxu0 %v5200_v30  ;;  %3793 = vmatprep.subr.bf16.mxu1 %v5203_v31 }
 0x200   :  { %3712 = vmatpush1.bf16.msra.mxu0 %v5198_v32  ;;  %3794 = vmatpush1.bf16.msra.mxu1 %v5201_v33 }
 0x201   :  { %3713 = vmatprep.subr.bf16.mxu0 %v5206_v20  ;;  %3795 = vmatprep.subr.bf16.mxu1 %v5209_v34 }
 0x204   :  { %3714 = vmatpush1.bf16.msra.mxu0 %v5204_v35  ;;  %3796 = vmatpush1.bf16.msra.mxu1 %v5207_v36 }
 0x205   :  { %3715 = vmatprep.subr.bf16.mxu0 %v5212_v37  ;;  %3797 = vmatprep.subr.bf16.mxu1 %v5215_v38 }
 0x208   :  { %3716 = vmatpush1.bf16.msra.mxu0 %v5210_v39  ;;  %3798 = vmatpush1.bf16.msra.mxu1 %v5213_v40 }
 0x209   :  { %3717 = vmatprep.subr.bf16.mxu0 %v5218_v25  ;;  %3799 = vmatprep.subr.bf16.mxu1 %v5221_v41 }
 0x20c   :  { %3718 = vmatpush1.bf16.msra.mxu0 %v5216_v42  ;;  %3800 = vmatpush1.bf16.msra.mxu1 %v5219_v43 }
 0x20d   :  { %3719 = vmatprep.subr.bf16.mxu0 %v5224_v44  ;;  %3801 = vmatprep.subr.bf16.mxu1 %v5227_v45 }
 0x210   :  { %3720 = vmatpush1.bf16.msra.mxu0 %v5222_v14  ;;  %3802 = vmatpush1.bf16.msra.mxu1 %v5225_v46 }
 0x213   :  { %3722 = vmatmul.mubr.bf16.vlgmr.msra.gmra.mrb[4].mxu0 %v5339_v19  ;;  %3804 = vmatmul.mubr.bf16.vlgmr.msra.gmra.mrb[4].mxu1 %v5339_v19 }
 0x2e6   :  { %v3723_v47 = vpop.f32.mrb[4].mxu0  ;;  %v3805_v48 = vpop.f32.mrb[4].mxu1 }
 0x2e7   :  { %v3816_v13 = vmax.f32 %v3723_v47, 0.0  ;;  %v3818_v49 = vmax.f32 %v3805_v48, 0.0  ;;  %v3725_v18 = vpop.f32.mrb[5].mxu0  ;;  %v3807_v50 = vpop.f32.mrb[5].mxu1 }
 0x2e8   :  { %v3817_v51 = vmax.f32 %v3725_v18, 0.0  ;;  %v3819_v52 = vmax.f32 %v3807_v50, 0.0  ;;  %v3727_v53 = vpop.f32.mrb[6].mxu0  ;;  %v3809_v54 = vpop.f32.mrb[6].mxu1 }
 0x2e9   :  { %v3728_v55 = vpop.f32.mrb[7].mxu0  ;;  %v3810_v56 = vpop.f32.mrb[7].mxu1 }
 0x2ea   :  { %v4395_v57 = vpack.c.bf16 %v3817_v51, %v3816_v13  ;;  %v4396_v58 = vpack.c.bf16 %v3819_v52, %v3818_v49 }
 0x2ec   :  { %3854 = vst [vmem:[%s5386_s5] sm:$0xff] %v4395_v57  ;;  %3855 = vst [vmem:[%s5386_s5 + $0x8] sm:$0xff] %v4396_v58 }
 0x2ed   :  { %3864 = vsyncpa [#allocation3], 1 }

// kernel: generator_forward.7
= control target key start
LH: loop header
LB: loop body
LE: loop exit
PB: predicated region body
PF: predicated region fallthrough
CT: control target
= control target key end

     0   :  { %s7808_s3 = inlined_call_operand.vmem [shape: bf16[4,512,512], index: 3, kind: input, shape index: {}]   ;;  %s7809_s1 = inlined_call_operand.vmem [shape: bf16[32,512], index: 1, kind: input, shape index: {}]   ;;  %s7810_s0 = inlined_call_operand.vmem [shape: bf16[32,512], index: 0, kind: input, shape index: {}]   ;;  %s7811_s2 = inlined_call_operand.vmem [shape: bf16[32,512], index: 2, kind: input, shape index: {}]   ;;  %s7812_s4 = inlined_call_operand.vmem [shape: f32[32,512], index: 4, kind: output, shape index: {0}]   ;;  %s7813_s5 = inlined_call_operand.vmem [shape: f32[32,512], index: 5, kind: output, shape index: {1}]  }
   0x1   :  { %v5174_v0 = vld [vmem:[%s7808_s3 + $0xc04] ss:$16 sps:$4 sm:$0xff]   ;;  %v5176_v1 = vld [vmem:[%s7808_s3 + $0xc0c] ss:$16 sps:$4 sm:$0xff]   ;;  %v5178_v2 = vld [vmem:[%s7808_s3 + $0xc00] ss:$16 sps:$4 sm:$0xff]  }
   0x2   :  { %973 = vmatprep.subr.bf16.mxu0 %v5174_v0  ;;  %v5179_v3 = vld [vmem:[%s7808_s3 + $0xc08] ss:$16 sps:$4 sm:$0xff]   ;;  %1079 = vmatprep.subr.bf16.mxu1 %v5176_v1  ;;  %v5180_v4 = vld [vmem:[%s7808_s3 + $0xc24] ss:$16 sps:$4 sm:$0xff]   ;;  %v5182_v5 = vld [vmem:[%s7808_s3 + $0xc2c] ss:$16 sps:$4 sm:$0xff]  }
   0x3   :  { %974 = vmatpush1.bf16.msra.mxu0 %v5178_v2  ;;  %1080 = vmatpush1.bf16.msra.mxu1 %v5179_v3  ;;  %v5184_v6 = vld [vmem:[%s7808_s3 + $0xc20] ss:$16 sps:$4 sm:$0xff]   ;;  %v5185_v7 = vld [vmem:[%s7808_s3 + $0xc28] ss:$16 sps:$4 sm:$0xff]   ;;  %v5186_v8 = vld [vmem:[%s7808_s3 + $0xc44] ss:$16 sps:$4 sm:$0xff]  }
   0x4   :  { %975 = vmatprep.subr.bf16.mxu0 %v5180_v4  ;;  %1081 = vmatprep.subr.bf16.mxu1 %v5182_v5  ;;  %v5188_v9 = vld [vmem:[%s7808_s3 + $0xc4c] ss:$16 sps:$4 sm:$0xff]   ;;  %v5190_v10 = vld [vmem:[%s7808_s3 + $0xc40] ss:$16 sps:$4 sm:$0xff]   ;;  %v5191_v11 = vld [vmem:[%s7808_s3 + $0xc48] ss:$16 sps:$4 sm:$0xff]  }
   0x5   :  { %v5192_v12 = vld [vmem:[%s7808_s3 + $0xc64] ss:$16 sps:$4 sm:$0xff]   ;;  %v5194_v13 = vld [vmem:[%s7808_s3 + $0xc6c] ss:$16 sps:$4 sm:$0xff]   ;;  %v5196_v14 = vld [vmem:[%s7808_s3 + $0xc60] ss:$16 sps:$4 sm:$0xff]  }
   0x6   :  { %v5197_v15 = vld [vmem:[%s7808_s3 + $0xc68] ss:$16 sps:$4 sm:$0xff]   ;;  %v5198_v16 = vld [vmem:[%s7808_s3 + $0xc84] ss:$16 sps:$4 sm:$0xff]   ;;  %v5200_v17 = vld [vmem:[%s7808_s3 + $0xc8c] ss:$16 sps:$4 sm:$0xff]  }
   0x7   :  { %976 = vmatpush1.bf16.msra.mxu0 %v5184_v6  ;;  %1082 = vmatpush1.bf16.msra.mxu1 %v5185_v7  ;;  %v5202_v18 = vld [vmem:[%s7808_s3 + $0xc80] ss:$16 sps:$4 sm:$0xff]   ;;  %v5203_v19 = vld [vmem:[%s7808_s3 + $0xc88] ss:$16 sps:$4 sm:$0xff]   ;;  %v5204_v20 = vld [vmem:[%s7808_s3 + $0xca4] ss:$16 sps:$4 sm:$0xff]  }
   0x8   :  { %977 = vmatprep.subr.bf16.mxu0 %v5186_v8  ;;  %1083 = vmatprep.subr.bf16.mxu1 %v5188_v9  ;;  %v5206_v21 = vld [vmem:[%s7808_s3 + $0xcac] ss:$16 sps:$4 sm:$0xff]   ;;  %v5208_v22 = vld [vmem:[%s7808_s3 + $0xca0] ss:$16 sps:$4 sm:$0xff]   ;;  %v5209_v23 = vld [vmem:[%s7808_s3 + $0xca8] ss:$16 sps:$4 sm:$0xff]  }
   0x9   :  { %v5210_v24 = vld [vmem:[%s7808_s3 + $0xcc4] ss:$16 sps:$4 sm:$0xff]   ;;  %v5212_v25 = vld [vmem:[%s7808_s3 + $0xccc] ss:$16 sps:$4 sm:$0xff]   ;;  %v5214_v26 = vld [vmem:[%s7808_s3 + $0xcc0] ss:$16 sps:$4 sm:$0xff]  }
   0xa   :  { %v5215_v27 = vld [vmem:[%s7808_s3 + $0xcc8] ss:$16 sps:$4 sm:$0xff]   ;;  %v5216_v28 = vld [vmem:[%s7808_s3 + $0xce4] ss:$16 sps:$4 sm:$0xff]   ;;  %v5218_v29 = vld [vmem:[%s7808_s3 + $0xcec] ss:$16 sps:$4 sm:$0xff]  }
   0xb   :  { %978 = vmatpush1.bf16.msra.mxu0 %v5190_v10  ;;  %1084 = vmatpush1.bf16.msra.mxu1 %v5191_v11  ;;  %v5220_v30 = vld [vmem:[%s7808_s3 + $0xce0] ss:$16 sps:$4 sm:$0xff]   ;;  %v5221_v31 = vld [vmem:[%s7808_s3 + $0xce8] ss:$16 sps:$4 sm:$0xff]   ;;  %v5222_v32 = vld [vmem:[%s7808_s3 + $0xd04] ss:$16 sps:$4 sm:$0xff]  }
   0xc   :  { %979 = vmatprep.subr.bf16.mxu0 %v5192_v12  ;;  %1085 = vmatprep.subr.bf16.mxu1 %v5194_v13  ;;  %v5224_v33 = vld [vmem:[%s7808_s3 + $0xd0c] ss:$16 sps:$4 sm:$0xff]   ;;  %v5226_v34 = vld [vmem:[%s7808_s3 + $0xd00] ss:$16 sps:$4 sm:$0xff]   ;;  %v5227_v35 = vld [vmem:[%s7808_s3 + $0xd08] ss:$16 sps:$4 sm:$0xff]  }
   0xd   :  { %v5228_v36 = vld [vmem:[%s7808_s3 + $0xd24] ss:$16 sps:$4 sm:$0xff]   ;;  %v5230_v37 = vld [vmem:[%s7808_s3 + $0xd2c] ss:$16 sps:$4 sm:$0xff]   ;;  %v5232_v38 = vld [vmem:[%s7808_s3 + $0xd20] ss:$16 sps:$4 sm:$0xff]  }
   0xe   :  { %v5233_v39 = vld [vmem:[%s7808_s3 + $0xd28] ss:$16 sps:$4 sm:$0xff]   ;;  %v5234_v40 = vld [vmem:[%s7808_s3 + $0xd44] ss:$16 sps:$4 sm:$0xff]   ;;  %v5236_v41 = vld [vmem:[%s7808_s3 + $0xd4c] ss:$16 sps:$4 sm:$0xff]  }
   0xf   :  { %980 = vmatpush1.bf16.msra.mxu0 %v5196_v14  ;;  %1086 = vmatpush1.bf16.msra.mxu1 %v5197_v15  ;;  %v5238_v42 = vld [vmem:[%s7808_s3 + $0xd40] ss:$16 sps:$4 sm:$0xff]   ;;  %v5239_v43 = vld [vmem:[%s7808_s3 + $0xd48] ss:$16 sps:$4 sm:$0xff]   ;;  %v5240_v44 = vld [vmem:[%s7808_s3 + $0xd64] ss:$16 sps:$4 sm:$0xff]  }
  0x10   :  { %981 = vmatprep.subr.bf16.mxu0 %v5198_v16  ;;  %1087 = vmatprep.subr.bf16.mxu1 %v5200_v17  ;;  %v5242_v45 = vld [vmem:[%s7808_s3 + $0xd6c] ss:$16 sps:$4 sm:$0xff]   ;;  %v5244_v46 = vld [vmem:[%s7808_s3 + $0xd60] ss:$16 sps:$4 sm:$0xff]   ;;  %v5245_v47 = vld [vmem:[%s7808_s3 + $0xd68] ss:$16 sps:$4 sm:$0xff]  }
  0x11   :  { %v5272_v48 = vld [vmem:[%s7809_s1 + $0x4] ss:$16 sps:$4 sm:$0xff]   ;;  %v5248_v50 = vld [vmem:[%s7808_s3 + $0xd8c] ss:$16 sps:$4 sm:$0xff]   ;;  %v5250_v51 = vld [vmem:[%s7808_s3 + $0xd80] ss:$16 sps:$4 sm:$0xff]  }
  0x12   :  { %v5246_v49 = vld [vmem:[%s7808_s3 + $0xd84] ss:$16 sps:$4 sm:$0xff]   ;;  %1005 = vmatprep.mubr.bf16.mxu0 %v5272_v48  ;;  %1111 = vmatprep.mubr.bf16.mxu1 %v5272_v48  ;;  %v5251_v52 = vld [vmem:[%s7808_s3 + $0xd88] ss:$16 sps:$4 sm:$0xff]   ;;  %v5254_v54 = vld [vmem:[%s7808_s3 + $0xdac] ss:$16 sps:$4 sm:$0xff]  }
  0x13   :  { %982 = vmatpush1.bf16.msra.mxu0 %v5202_v18  ;;  %1088 = vmatpush1.bf16.msra.mxu1 %v5203_v19  ;;  %v5252_v53 = vld [vmem:[%s7808_s3 + $0xda4] ss:$16 sps:$4 sm:$0xff]   ;;  %v5256_v55 = vld [vmem:[%s7808_s3 + $0xda0] ss:$16 sps:$4 sm:$0xff]   ;;  %v5257_v56 = vld [vmem:[%s7808_s3 + $0xda8] ss:$16 sps:$4 sm:$0xff]  }
  0x14   :  { %983 = vmatprep.subr.bf16.mxu0 %v5204_v20  ;;  %1089 = vmatprep.subr.bf16.mxu1 %v5206_v21  ;;  %v5258_v57 = vld [vmem:[%s7808_s3 + $0xdc4] ss:$16 sps:$4 sm:$0xff]   ;;  %v5260_v58 = vld [vmem:[%s7808_s3 + $0xdcc] ss:$16 sps:$4 sm:$0xff]   ;;  %v5262_v59 = vld [vmem:[%s7808_s3 + $0xdc0] ss:$16 sps:$4 sm:$0xff]  }
  0x15   :  { %v5263_v60 = vld [vmem:[%s7808_s3 + $0xdc8] ss:$16 sps:$4 sm:$0xff]   ;;  %v5264_v61 = vld [vmem:[%s7808_s3 + $0xde4] ss:$16 sps:$4 sm:$0xff]   ;;  %v5266_v62 = vld [vmem:[%s7808_s3 + $0xdec] ss:$16 sps:$4 sm:$0xff]  }
  0x16   :  { %v5268_v63 = vld [vmem:[%s7808_s3 + $0xde0] ss:$16 sps:$4 sm:$0xff]   ;;  %v5269_v0 = vld [vmem:[%s7808_s3 + $0xde8] ss:$16 sps:$4 sm:$0xff]   ;;  %v5275_v1 = vld [vmem:[%s7808_s3 + $0xe04] ss:$16 sps:$4 sm:$0xff]  }
  0x17   :  { %984 = vmatpush1.bf16.msra.mxu0 %v5208_v22  ;;  %1090 = vmatpush1.bf16.msra.mxu1 %v5209_v23  ;;  %v5278_v2 = vld [vmem:[%s7808_s3 + $0xe0c] ss:$16 sps:$4 sm:$0xff]   ;;  %v5270_v3 = vld [vmem:[%s7809_s1] ss:$16 sps:$4 sm:$0xff]   ;;  %v5276_v5 = vld [vmem:[%s7808_s3 + $0xe08] ss:$16 sps:$4 sm:$0xff]  }
  0x18   :  { %985 = vmatprep.subr.bf16.mxu0 %v5210_v24  ;;  %1091 = vmatprep.subr.bf16.mxu1 %v5212_v25  ;;  %v5273_v4 = vld [vmem:[%s7808_s3 + $0xe00] ss:$16 sps:$4 sm:$0xff]   ;;  %v5281_v6 = vld [vmem:[%s7808_s3 + $0xe24] ss:$16 sps:$4 sm:$0xff]   ;;  %v5284_v7 = vld [vmem:[%s7808_s3 + $0xe2c] ss:$16 sps:$4 sm:$0xff]  }
  0x19   :  { %v5279_v8 = vld [vmem:[%s7808_s3 + $0xe20] ss:$16 sps:$4 sm:$0xff]   ;;  %v5282_v9 = vld [vmem:[%s7808_s3 + $0xe28] ss:$16 sps:$4 sm:$0xff]   ;;  %v5287_v10 = vld [vmem:[%s7808_s3 + $0xe44] ss:$16 sps:$4 sm:$0xff]  }
  0x1a   :  { %v5290_v11 = vld [vmem:[%s7808_s3 + $0xe4c] ss:$16 sps:$4 sm:$0xff]   ;;  %v5285_v12 = vld [vmem:[%s7808_s3 + $0xe40] ss:$16 sps:$4 sm:$0xff]   ;;  %v5288_v13 = vld [vmem:[%s7808_s3 + $0xe48] ss:$16 sps:$4 sm:$0xff]  }
  0x1b   :  { %986 = vmatpush1.bf16.msra.mxu0 %v5214_v26  ;;  %1092 = vmatpush1.bf16.msra.mxu1 %v5215_v27  ;;  %v5293_v14 = vld [vmem:[%s7808_s3 + $0xe64] ss:$16 sps:$4 sm:$0xff]   ;;  %v5296_v15 = vld [vmem:[%s7808_s3 + $0xe6c] ss:$16 sps:$4 sm:$0xff]   ;;  %v5291_v16 = vld [vmem:[%s7808_s3 + $0xe60] ss:$16 sps:$4 sm:$0xff]  }
  0x1c   :  { %987 = vmatprep.subr.bf16.mxu0 %v5216_v28  ;;  %1093 = vmatprep.subr.bf16.mxu1 %v5218_v29  ;;  %v5294_v17 = vld [vmem:[%s7808_s3 + $0xe68] ss:$16 sps:$4 sm:$0xff]   ;;  %v5299_v18 = vld [vmem:[%s7808_s3 + $0xe84] ss:$16 sps:$4 sm:$0xff]   ;;  %v5302_v19 = vld [vmem:[%s7808_s3 + $0xe8c] ss:$16 sps:$4 sm:$0xff]  }
  0x1d   :  { %v5297_v20 = vld [vmem:[%s7808_s3 + $0xe80] ss:$16 sps:$4 sm:$0xff]   ;;  %v5300_v21 = vld [vmem:[%s7808_s3 + $0xe88] ss:$16 sps:$4 sm:$0xff]   ;;  %v5305_v22 = vld [vmem:[%s7808_s3 + $0xea4] ss:$16 sps:$4 sm:$0xff]  }
  0x1e   :  { %v5308_v23 = vld [vmem:[%s7808_s3 + $0xeac] ss:$16 sps:$4 sm:$0xff]   ;;  %v5357_v24 = vld [vmem:[%s7809_s1 + $0x24] ss:$16 sps:$4 sm:$0xff]   ;;  %v5303_v25 = vld [vmem:[%s7808_s3 + $0xea0] ss:$16 sps:$4 sm:$0xff]  }
  0x1f   :  { %988 = vmatpush1.bf16.msra.mxu0 %v5220_v30  ;;  %1094 = vmatpush1.bf16.msra.mxu1 %v5221_v31  ;;  %v5306_v26 = vld [vmem:[%s7808_s3 + $0xea8] ss:$16 sps:$4 sm:$0xff]   ;;  %v5311_v27 = vld [vmem:[%s7808_s3 + $0xec4] ss:$16 sps:$4 sm:$0xff]   ;;  %v5314_v28 = vld [vmem:[%s7808_s3 + $0xecc] ss:$16 sps:$4 sm:$0xff]  }
  0x20   :  { %989 = vmatprep.subr.bf16.mxu0 %v5222_v32  ;;  %1095 = vmatprep.subr.bf16.mxu1 %v5224_v33  ;;  %v5365_v29 = vld [vmem:[%s7809_s1 + $0x20] ss:$16 sps:$4 sm:$0xff]   ;;  %v5312_v31 = vld [vmem:[%s7808_s3 + $0xec8] ss:$16 sps:$4 sm:$0xff]   ;;  %v5317_v32 = vld [vmem:[%s7808_s3 + $0xee4] ss:$16 sps:$4 sm:$0xff]  }
  0x21   :  { %v5309_v30 = vld [vmem:[%s7808_s3 + $0xec0] ss:$16 sps:$4 sm:$0xff]   ;;  %v5320_v33 = vld [vmem:[%s7808_s3 + $0xeec] ss:$16 sps:$4 sm:$0xff]   ;;  %v5336_v48 = vld [vmem:[%s7808_s3 + $0xf48] ss:$16 sps:$4 sm:$0xff]  }
  0x23   :  { %990 = vmatpush1.bf16.msra.mxu0 %v5226_v34  ;;  %1096 = vmatpush1.bf16.msra.mxu1 %v5227_v35  ;;  %v5374_v34 = vld [vmem:[%s7809_s1 + $0xc] ss:$16 sps:$4 sm:$0xff]   ;;  %v5315_v35 = vld [vmem:[%s7808_s3 + $0xee0] ss:$16 sps:$4 sm:$0xff]  }
  0x24   :  { %991 = vmatprep.subr.bf16.mxu0 %v5228_v36  ;;  %1097 = vmatprep.subr.bf16.mxu1 %v5230_v37  ;;  %v5318_v36 = vld [vmem:[%s7808_s3 + $0xee8] ss:$16 sps:$4 sm:$0xff]   ;;  %v5323_v37 = vld [vmem:[%s7808_s3 + $0xf04] ss:$16 sps:$4 sm:$0xff]  }
  0x27   :  { %992 = vmatpush1.bf16.msra.mxu0 %v5232_v38  ;;  %1098 = vmatpush1.bf16.msra.mxu1 %v5233_v39  ;;  %v5326_v38 = vld [vmem:[%s7808_s3 + $0xf0c] ss:$16 sps:$4 sm:$0xff]   ;;  %v5321_v39 = vld [vmem:[%s7808_s3 + $0xf00] ss:$16 sps:$4 sm:$0xff]  }
  0x28   :  { %993 = vmatprep.subr.bf16.mxu0 %v5234_v40  ;;  %1099 = vmatprep.subr.bf16.mxu1 %v5236_v41  ;;  %v5324_v40 = vld [vmem:[%s7808_s3 + $0xf08] ss:$16 sps:$4 sm:$0xff]   ;;  %v5329_v41 = vld [vmem:[%s7808_s3 + $0xf24] ss:$16 sps:$4 sm:$0xff]  }
  0x2b   :  { %994 = vmatpush1.bf16.msra.mxu0 %v5238_v42  ;;  %1100 = vmatpush1.bf16.msra.mxu1 %v5239_v43  ;;  %v5332_v42 = vld [vmem:[%s7808_s3 + $0xf2c] ss:$16 sps:$4 sm:$0xff]   ;;  %v5327_v43 = vld [vmem:[%s7808_s3 + $0xf20] ss:$16 sps:$4 sm:$0xff]  }
  0x2c   :  { %995 = vmatprep.subr.bf16.mxu0 %v5240_v44  ;;  %1101 = vmatprep.subr.bf16.mxu1 %v5242_v45  ;;  %v5330_v44 = vld [vmem:[%s7808_s3 + $0xf28] ss:$16 sps:$4 sm:$0xff]   ;;  %v5335_v45 = vld [vmem:[%s7808_s3 + $0xf44] ss:$16 sps:$4 sm:$0xff]  }
  0x2f   :  { %996 = vmatpush1.bf16.msra.mxu0 %v5244_v46  ;;  %1102 = vmatpush1.bf16.msra.mxu1 %v5245_v47  ;;  %v5338_v46 = vld [vmem:[%s7808_s3 + $0xf4c] ss:$16 sps:$4 sm:$0xff]   ;;  %v5333_v47 = vld [vmem:[%s7808_s3 + $0xf40] ss:$16 sps:$4 sm:$0xff]  }
  0x30   :  { %997 = vmatprep.subr.bf16.mxu0 %v5246_v49  ;;  %1103 = vmatprep.subr.bf16.mxu1 %v5248_v50  ;;  %v5341_v49 = vld [vmem:[%s7808_s3 + $0xf64] ss:$16 sps:$4 sm:$0xff]   ;;  %v5344_v50 = vld [vmem:[%s7808_s3 + $0xf6c] ss:$16 sps:$4 sm:$0xff]  }
  0x33   :  { %998 = vmatpush1.bf16.msra.mxu0 %v5250_v51  ;;  %1104 = vmatpush1.bf16.msra.mxu1 %v5251_v52  ;;  %v5339_v51 = vld [vmem:[%s7808_s3 + $0xf60] ss:$16 sps:$4 sm:$0xff]   ;;  %v5342_v52 = vld [vmem:[%s7808_s3 + $0xf68] ss:$16 sps:$4 sm:$0xff]  }
  0x34   :  { %999 = vmatprep.subr.bf16.mxu0 %v5252_v53  ;;  %1105 = vmatprep.subr.bf16.mxu1 %v5254_v54  ;;  %v5347_v53 = vld [vmem:[%s7808_s3 + $0xf84] ss:$16 sps:$4 sm:$0xff]   ;;  %v5350_v54 = vld [vmem:[%s7808_s3 + $0xf8c] ss:$16 sps:$4 sm:$0xff]  }
  0x37   :  { %1000 = vmatpush1.bf16.msra.mxu0 %v5256_v55  ;;  %1106 = vmatpush1.bf16.msra.mxu1 %v5257_v56  ;;  %v5345_v55 = vld [vmem:[%s7808_s3 + $0xf80] ss:$16 sps:$4 sm:$0xff]   ;;  %v5348_v56 = vld [vmem:[%s7808_s3 + $0xf88] ss:$16 sps:$4 sm:$0xff]  }
  0x38   :  { %1001 = vmatprep.subr.bf16.mxu0 %v5258_v57  ;;  %1107 = vmatprep.subr.bf16.mxu1 %v5260_v58  ;;  %v5353_v57 = vld [vmem:[%s7808_s3 + $0xfa4] ss:$16 sps:$4 sm:$0xff]   ;;  %v5356_v58 = vld [vmem:[%s7808_s3 + $0xfac] ss:$16 sps:$4 sm:$0xff]  }
  0x3b   :  { %1002 = vmatpush1.bf16.msra.mxu0 %v5262_v59  ;;  %1108 = vmatpush1.bf16.msra.mxu1 %v5263_v60  ;;  %v5351_v59 = vld [vmem:[%s7808_s3 + $0xfa0] ss:$16 sps:$4 sm:$0xff]   ;;  %v5354_v60 = vld [vmem:[%s7808_s3 + $0xfa8] ss:$16 sps:$4 sm:$0xff]  }
  0x3c   :  { %1003 = vmatprep.subr.bf16.mxu0 %v5264_v61  ;;  %1109 = vmatprep.subr.bf16.mxu1 %v5266_v62  ;;  %v5361_v61 = vld [vmem:[%s7808_s3 + $0xfc4] ss:$16 sps:$4 sm:$0xff]   ;;  %v5364_v62 = vld [vmem:[%s7808_s3 + $0xfcc] ss:$16 sps:$4 sm:$0xff]  }
  0x3f   :  { %1004 = vmatpush1.bf16.msra.mxu0 %v5268_v63  ;;  %1110 = vmatpush1.bf16.msra.mxu1 %v5269_v0  ;;  %v5359_v63 = vld [vmem:[%s7808_s3 + $0xfc0] ss:$16 sps:$4 sm:$0xff]   ;;  %v5362_v0 = vld [vmem:[%s7808_s3 + $0xfc8] ss:$16 sps:$4 sm:$0xff]  }
  0x40   :  { %1026 = vmatprep.subr.bf16.mxu0 %v5275_v1  ;;  %1132 = vmatprep.subr.bf16.mxu1 %v5278_v2  ;;  %v5368_v1 = vld [vmem:[%s7808_s3 + $0xfe4] ss:$16 sps:$4 sm:$0xff]   ;;  %v5371_v2 = vld [vmem:[%s7808_s3 + $0xfec] ss:$16 sps:$4 sm:$0xff]  }
  0x42   :  { %1006 = vmatmul.mubr.bf16.vlgmr.msra.gmra.mrb[0].mxu0 %v5270_v3  ;;  %1112 = vmatmul.mubr.bf16.vlgmr.msra.gmra.mrb[0].mxu1 %v5270_v3  ;;  %v5366_v3 = vld [vmem:[%s7808_s3 + $0xfe0] ss:$16 sps:$4 sm:$0xff]  }
  0x43   :  { %1027 = vmatpush1.bf16.msra.mxu0 %v5273_v4  ;;  %1133 = vmatpush1.bf16.msra.mxu1 %v5276_v5  ;;  %v5369_v4 = vld [vmem:[%s7808_s3 + $0xfe8] ss:$16 sps:$4 sm:$0xff]   ;;  %v5377_v5 = vld [vmem:[%s7808_s3 + $0x404] ss:$16 sps:$4 sm:$0xff]  }
  0x44   :  { %1028 = vmatprep.subr.bf16.mxu0 %v5281_v6  ;;  %1134 = vmatprep.subr.bf16.mxu1 %v5284_v7  ;;  %v5380_v6 = vld [vmem:[%s7808_s3 + $0x40c] ss:$16 sps:$4 sm:$0xff]   ;;  %v5372_v7 = vld [vmem:[%s7809_s1 + $0x8] ss:$16 sps:$4 sm:$0xff]  }
  0x45   :  { %1015 = vmatprep.mubr.bf16.mxu0 %v5357_v24  ;;  %1121 = vmatprep.mubr.bf16.mxu1 %v5357_v24  ;;  %v5396_v24 = vld [vmem:[%s7808_s3 + $0x468] ss:$16 sps:$4 sm:$0xff]  }
  0x47   :  { %1029 = vmatpush1.bf16.msra.mxu0 %v5279_v8  ;;  %1135 = vmatpush1.bf16.msra.mxu1 %v5282_v9  ;;  %v5375_v8 = vld [vmem:[%s7808_s3 + $0x400] ss:$16 sps:$4 sm:$0xff]   ;;  %v5378_v9 = vld [vmem:[%s7808_s3 + $0x408] ss:$16 sps:$4 sm:$0xff]  }
  0x48   :  { %1030 = vmatprep.subr.bf16.mxu0 %v5287_v10  ;;  %1136 = vmatprep.subr.bf16.mxu1 %v5290_v11  ;;  %v5383_v10 = vld [vmem:[%s7808_s3 + $0x424] ss:$16 sps:$4 sm:$0xff]   ;;  %v5386_v11 = vld [vmem:[%s7808_s3 + $0x42c] ss:$16 sps:$4 sm:$0xff]  }
  0x4a   :  { %1016 = vmatmul.mubr.bf16.gmra.mrb[4].mxu0 %v5365_v29  ;;  %1122 = vmatmul.mubr.bf16.gmra.mrb[4].mxu1 %v5365_v29  ;;  %v5407_v29 = vld [vmem:[%s7808_s3 + $0x4a4] ss:$16 sps:$4 sm:$0xff]  }
  0x4b   :  { %1031 = vmatpush1.bf16.msra.mxu0 %v5285_v12  ;;  %1137 = vmatpush1.bf16.msra.mxu1 %v5288_v13  ;;  %v5459_v12 = vld [vmem:[%s7809_s1 + $0x2c] ss:$16 sps:$4 sm:$0xff]   ;;  %v5381_v13 = vld [vmem:[%s7808_s3 + $0x420] ss:$16 sps:$4 sm:$0xff]  }
  0x4c   :  { %1032 = vmatprep.subr.bf16.mxu0 %v5293_v14  ;;  %1138 = vmatprep.subr.bf16.mxu1 %v5296_v15  ;;  %v5384_v14 = vld [vmem:[%s7808_s3 + $0x428] ss:$16 sps:$4 sm:$0xff]   ;;  %v5389_v15 = vld [vmem:[%s7808_s3 + $0x444] ss:$16 sps:$4 sm:$0xff]  }
  0x4d   :  { %1058 = vmatprep.mubr.bf16.mxu0 %v5374_v34  ;;  %1164 = vmatprep.mubr.bf16.mxu1 %v5374_v34  ;;  %v5416_v34 = vld [vmem:[%s7808_s3 + $0x4cc] ss:$16 sps:$4 sm:$0xff]  }
  0x4f   :  { %1033 = vmatpush1.bf16.msra.mxu0 %v5291_v16  ;;  %1139 = vmatpush1.bf16.msra.mxu1 %v5294_v17  ;;  %v5392_v16 = vld [vmem:[%s7808_s3 + $0x44c] ss:$16 sps:$4 sm:$0xff]   ;;  %v5387_v17 = vld [vmem:[%s7808_s3 + $0x440] ss:$16 sps:$4 sm:$0xff]  }
  0x50   :  { %1034 = vmatprep.subr.bf16.mxu0 %v5299_v18  ;;  %1140 = vmatprep.subr.bf16.mxu1 %v5302_v19  ;;  %v5390_v18 = vld [vmem:[%s7808_s3 + $0x448] ss:$16 sps:$4 sm:$0xff]  }
  0x51   :  { %v5467_v19 = vld [vmem:[%s7809_s1 + $0x28] ss:$16 sps:$4 sm:$0xff]  }
  0x53   :  { %1035 = vmatpush1.bf16.msra.mxu0 %v5297_v20  ;;  %1141 = vmatpush1.bf16.msra.mxu1 %v5300_v21  ;;  %v5395_v20 = vld [vmem:[%s7808_s3 + $0x464] ss:$16 sps:$4 sm:$0xff]   ;;  %v5398_v21 = vld [vmem:[%s7808_s3 + $0x46c] ss:$16 sps:$4 sm:$0xff]  }
  0x54   :  { %1036 = vmatprep.subr.bf16.mxu0 %v5305_v22  ;;  %1142 = vmatprep.subr.bf16.mxu1 %v5308_v23  ;;  %v5476_v22 = vld [vmem:[%s7810_s0 + $0x4] ss:$16 sps:$4 sm:$0xff]   ;;  %v5393_v23 = vld [vmem:[%s7808_s3 + $0x460] ss:$16 sps:$4 sm:$0xff]  }
  0x57   :  { %1037 = vmatpush1.bf16.msra.mxu0 %v5303_v25  ;;  %1143 = vmatpush1.bf16.msra.mxu1 %v5306_v26  ;;  %v5401_v25 = vld [vmem:[%s7808_s3 + $0x484] ss:$16 sps:$4 sm:$0xff]   ;;  %v5404_v26 = vld [vmem:[%s7808_s3 + $0x48c] ss:$16 sps:$4 sm:$0xff]  }
  0x58   :  { %1038 = vmatprep.subr.bf16.mxu0 %v5311_v27  ;;  %1144 = vmatprep.subr.bf16.mxu1 %v5314_v28  ;;  %v5399_v27 = vld [vmem:[%s7808_s3 + $0x480] ss:$16 sps:$4 sm:$0xff]   ;;  %v5402_v28 = vld [vmem:[%s7808_s3 + $0x488] ss:$16 sps:$4 sm:$0xff]  }
  0x5b   :  { %1039 = vmatpush1.bf16.msra.mxu0 %v5309_v30  ;;  %1145 = vmatpush1.bf16.msra.mxu1 %v5312_v31  ;;  %v5410_v30 = vld [vmem:[%s7808_s3 + $0x4ac] ss:$16 sps:$4 sm:$0xff]   ;;  %v5405_v31 = vld [vmem:[%s7808_s3 + $0x4a0] ss:$16 sps:$4 sm:$0xff]  }
  0x5c   :  { %1040 = vmatprep.subr.bf16.mxu0 %v5317_v32  ;;  %1146 = vmatprep.subr.bf16.mxu1 %v5320_v33  ;;  %v5408_v32 = vld [vmem:[%s7808_s3 + $0x4a8] ss:$16 sps:$4 sm:$0xff]   ;;  %v5413_v33 = vld [vmem:[%s7808_s3 + $0x4c4] ss:$16 sps:$4 sm:$0xff]  }
  0x5f   :  { %1041 = vmatpush1.bf16.msra.mxu0 %v5315_v35  ;;  %1147 = vmatpush1.bf16.msra.mxu1 %v5318_v36  ;;  %v5411_v35 = vld [vmem:[%s7808_s3 + $0x4c0] ss:$16 sps:$4 sm:$0xff]   ;;  %v5414_v36 = vld [vmem:[%s7808_s3 + $0x4c8] ss:$16 sps:$4 sm:$0xff]  }
  0x60   :  { %1042 = vmatprep.subr.bf16.mxu0 %v5323_v37  ;;  %1148 = vmatprep.subr.bf16.mxu1 %v5326_v38  ;;  %v5419_v37 = vld [vmem:[%s7808_s3 + $0x4e4] ss:$16 sps:$4 sm:$0xff]   ;;  %v5422_v38 = vld [vmem:[%s7808_s3 + $0x4ec] ss:$16 sps:$4 sm:$0xff]  }
  0x63   :  { %1043 = vmatpush1.bf16.msra.mxu0 %v5321_v39  ;;  %1149 = vmatpush1.bf16.msra.mxu1 %v5324_v40  ;;  %v5417_v39 = vld [vmem:[%s7808_s3 + $0x4e0] ss:$16 sps:$4 sm:$0xff]   ;;  %v5420_v40 = vld [vmem:[%s7808_s3 + $0x4e8] ss:$16 sps:$4 sm:$0xff]  }
  0x64   :  { %1044 = vmatprep.subr.bf16.mxu0 %v5329_v41  ;;  %1150 = vmatprep.subr.bf16.mxu1 %v5332_v42  ;;  %v5425_v41 = vld [vmem:[%s7808_s3 + $0x504] ss:$16 sps:$4 sm:$0xff]   ;;  %v5428_v42 = vld [vmem:[%s7808_s3 + $0x50c] ss:$16 sps:$4 sm:$0xff]  }
  0x67   :  { %1045 = vmatpush1.bf16.msra.mxu0 %v5327_v43  ;;  %1151 = vmatpush1.bf16.msra.mxu1 %v5330_v44  ;;  %v5423_v43 = vld [vmem:[%s7808_s3 + $0x500] ss:$16 sps:$4 sm:$0xff]   ;;  %v5426_v44 = vld [vmem:[%s7808_s3 + $0x508] ss:$16 sps:$4 sm:$0xff]  }
  0x68   :  { %1046 = vmatprep.subr.bf16.mxu0 %v5335_v45  ;;  %1152 = vmatprep.subr.bf16.mxu1 %v5338_v46  ;;  %v5431_v45 = vld [vmem:[%s7808_s3 + $0x524] ss:$16 sps:$4 sm:$0xff]   ;;  %v5434_v46 = vld [vmem:[%s7808_s3 + $0x52c] ss:$16 sps:$4 sm:$0xff]  }
  0x6b   :  { %1047 = vmatpush1.bf16.msra.mxu0 %v5333_v47  ;;  %1153 = vmatpush1.bf16.msra.mxu1 %v5336_v48  ;;  %v5429_v47 = vld [vmem:[%s7808_s3 + $0x520] ss:$16 sps:$4 sm:$0xff]   ;;  %v5432_v48 = vld [vmem:[%s7808_s3 + $0x528] ss:$16 sps:$4 sm:$0xff]  }
  0x6c   :  { %1048 = vmatprep.subr.bf16.mxu0 %v5341_v49  ;;  %1154 = vmatprep.subr.bf16.mxu1 %v5344_v50  ;;  %v5437_v49 = vld [vmem:[%s7808_s3 + $0x544] ss:$16 sps:$4 sm:$0xff]   ;;  %v5440_v50 = vld [vmem:[%s7808_s3 + $0x54c] ss:$16 sps:$4 sm:$0xff]  }
  0x6f   :  { %1049 = vmatpush1.bf16.msra.mxu0 %v5339_v51  ;;  %1155 = vmatpush1.bf16.msra.mxu1 %v5342_v52  ;;  %v5435_v51 = vld [vmem:[%s7808_s3 + $0x540] ss:$16 sps:$4 sm:$0xff]   ;;  %v5438_v52 = vld [vmem:[%s7808_s3 + $0x548] ss:$16 sps:$4 sm:$0xff]  }
  0x70   :  { %1050 = vmatprep.subr.bf16.mxu0 %v5347_v53  ;;  %1156 = vmatprep.subr.bf16.mxu1 %v5350_v54  ;;  %v5443_v53 = vld [vmem:[%s7808_s3 + $0x564] ss:$16 sps:$4 sm:$0xff]   ;;  %v5446_v54 = vld [vmem:[%s7808_s3 + $0x56c] ss:$16 sps:$4 sm:$0xff]  }
  0x73   :  { %1051 = vmatpush1.bf16.msra.mxu0 %v5345_v55  ;;  %1157 = vmatpush1.bf16.msra.mxu1 %v5348_v56  ;;  %v5441_v55 = vld [vmem:[%s7808_s3 + $0x560] ss:$16 sps:$4 sm:$0xff]   ;;  %v5444_v56 = vld [vmem:[%s7808_s3 + $0x568] ss:$16 sps:$4 sm:$0xff]  }
  0x74   :  { %1052 = vmatprep.subr.bf16.mxu0 %v5353_v57  ;;  %1158 = vmatprep.subr.bf16.mxu1 %v5356_v58  ;;  %v5449_v57 = vld [vmem:[%s7808_s3 + $0x584] ss:$16 sps:$4 sm:$0xff]   ;;  %v5452_v58 = vld [vmem:[%s7808_s3 + $0x58c] ss:$16 sps:$4 sm:$0xff]  }
  0x77   :  { %1053 = vmatpush1.bf16.msra.mxu0 %v5351_v59  ;;  %1159 = vmatpush1.bf16.msra.mxu1 %v5354_v60  ;;  %v5447_v59 = vld [vmem:[%s7808_s3 + $0x580] ss:$16 sps:$4 sm:$0xff]   ;;  %v5450_v60 = vld [vmem:[%s7808_s3 + $0x588] ss:$16 sps:$4 sm:$0xff]  }
  0x78   :  { %1054 = vmatprep.subr.bf16.mxu0 %v5361_v61  ;;  %1160 = vmatprep.subr.bf16.mxu1 %v5364_v62  ;;  %v5455_v61 = vld [vmem:[%s7808_s3 + $0x5a4] ss:$16 sps:$4 sm:$0xff]   ;;  %v5458_v62 = vld [vmem:[%s7808_s3 + $0x5ac] ss:$16 sps:$4 sm:$0xff]  }
  0x7b   :  { %1055 = vmatpush1.bf16.msra.mxu0 %v5359_v63  ;;  %1161 = vmatpush1.bf16.msra.mxu1 %v5362_v0  ;;  %v5453_v63 = vld [vmem:[%s7808_s3 + $0x5a0] ss:$16 sps:$4 sm:$0xff]   ;;  %v5456_v0 = vld [vmem:[%s7808_s3 + $0x5a8] ss:$16 sps:$4 sm:$0xff]  }
  0x7c   :  { %1056 = vmatprep.subr.bf16.mxu0 %v5368_v1  ;;  %1162 = vmatprep.subr.bf16.mxu1 %v5371_v2  ;;  %v5463_v1 = vld [vmem:[%s7808_s3 + $0x5c4] ss:$16 sps:$4 sm:$0xff]   ;;  %v5466_v2 = vld [vmem:[%s7808_s3 + $0x5cc] ss:$16 sps:$4 sm:$0xff]  }
  0x7f   :  { %1057 = vmatpush1.bf16.msra.mxu0 %v5366_v3  ;;  %1163 = vmatpush1.bf16.msra.mxu1 %v5369_v4  ;;  %v5461_v3 = vld [vmem:[%s7808_s3 + $0x5c0] ss:$16 sps:$4 sm:$0xff]   ;;  %v5464_v4 = vld [vmem:[%s7808_s3 + $0x5c8] ss:$16 sps:$4 sm:$0xff]  }
  0x80   :  { %1865 = vmatprep.subr.bf16.mxu0 %v5377_v5  ;;  %1971 = vmatprep.subr.bf16.mxu1 %v5380_v6  ;;  %v5470_v5 = vld [vmem:[%s7808_s3 + $0x5e4] ss:$16 sps:$4 sm:$0xff]   ;;  %v5473_v6 = vld [vmem:[%s7808_s3 + $0x5ec] ss:$16 sps:$4 sm:$0xff]  }
  0x82   :  { %1059 = vmatmul.mubr.bf16.vlgmr.msra.gmra.mrb[0].mxu0 %v5372_v7  ;;  %1165 = vmatmul.mubr.bf16.vlgmr.msra.gmra.mrb[0].mxu1 %v5372_v7  ;;  %v5468_v7 = vld [vmem:[%s7808_s3 + $0x5e0] ss:$16 sps:$4 sm:$0xff]  }
  0x83   :  { %1866 = vmatpush1.bf16.msra.mxu0 %v5375_v8  ;;  %1972 = vmatpush1.bf16.msra.mxu1 %v5378_v9  ;;  %v5471_v8 = vld [vmem:[%s7808_s3 + $0x5e8] ss:$16 sps:$4 sm:$0xff]   ;;  %v5479_v9 = vld [vmem:[%s7808_s3 + $0x604] ss:$16 sps:$4 sm:$0xff]  }
  0x84   :  { %1867 = vmatprep.subr.bf16.mxu0 %v5383_v10  ;;  %1973 = vmatprep.subr.bf16.mxu1 %v5386_v11  ;;  %v5482_v10 = vld [vmem:[%s7808_s3 + $0x60c] ss:$16 sps:$4 sm:$0xff]   ;;  %v5474_v11 = vld [vmem:[%s7810_s0] ss:$16 sps:$4 sm:$0xff]  }
  0x85   :  { %1068 = vmatprep.mubr.bf16.mxu0 %v5459_v12  ;;  %1174 = vmatprep.mubr.bf16.mxu1 %v5459_v12  ;;  %v5477_v12 = vld [vmem:[%s7808_s3 + $0x600] ss:$16 sps:$4 sm:$0xff]  }
  0x87   :  { %1868 = vmatpush1.bf16.msra.mxu0 %v5381_v13  ;;  %1974 = vmatpush1.bf16.msra.mxu1 %v5384_v14  ;;  %v5480_v13 = vld [vmem:[%s7808_s3 + $0x608] ss:$16 sps:$4 sm:$0xff]   ;;  %v5485_v14 = vld [vmem:[%s7808_s3 + $0x624] ss:$16 sps:$4 sm:$0xff]  }
  0x88   :  { %1869 = vmatprep.subr.bf16.mxu0 %v5389_v15  ;;  %1975 = vmatprep.subr.bf16.mxu1 %v5392_v16  ;;  %v5488_v15 = vld [vmem:[%s7808_s3 + $0x62c] ss:$16 sps:$4 sm:$0xff]   ;;  %v5561_v16 = vld [vmem:[%s7810_s0 + $0x24] ss:$16 sps:$4 sm:$0xff]  }
  0x8a   :  { %1069 = vmatmul.mubr.bf16.gmra.mrb[4].mxu0 %v5467_v19  ;;  %1175 = vmatmul.mubr.bf16.gmra.mrb[4].mxu1 %v5467_v19  ;;  %v5491_v19 = vld [vmem:[%s7808_s3 + $0x644] ss:$16 sps:$4 sm:$0xff]  }
  0x8b   :  { %1870 = vmatpush1.bf16.msra.mxu0 %v5387_v17  ;;  %1976 = vmatpush1.bf16.msra.mxu1 %v5390_v18  ;;  %v5483_v17 = vld [vmem:[%s7808_s3 + $0x620] ss:$16 sps:$4 sm:$0xff]   ;;  %v5486_v18 = vld [vmem:[%s7808_s3 + $0x628] ss:$16 sps:$4 sm:$0xff]  }
  0x8c   :  { %1871 = vmatprep.subr.bf16.mxu0 %v5395_v20  ;;  %1977 = vmatprep.subr.bf16.mxu1 %v5398_v21  ;;  %v5494_v20 = vld [vmem:[%s7808_s3 + $0x64c] ss:$16 sps:$4 sm:$0xff]   ;;  %v5489_v21 = vld [vmem:[%s7808_s3 + $0x640] ss:$16 sps:$4 sm:$0xff]  }
  0x8d   :  { %1897 = vmatprep.mubr.bf16.mxu0 %v5476_v22  ;;  %2003 = vmatprep.mubr.bf16.mxu1 %v5476_v22  ;;  %v5492_v22 = vld [vmem:[%s7808_s3 + $0x648] ss:$16 sps:$4 sm:$0xff]  }
  0x8f   :  { %1872 = vmatpush1.bf16.msra.mxu0 %v5393_v23  ;;  %1978 = vmatpush1.bf16.msra.mxu1 %v5396_v24  ;;  %v5563_v23 = vld [vmem:[%s7810_s0 + $0x20] ss:$16 sps:$4 sm:$0xff]   ;;  %v5497_v24 = vld [vmem:[%s7808_s3 + $0x664] ss:$16 sps:$4 sm:$0xff]  }
  0x90   :  { %1873 = vmatprep.subr.bf16.mxu0 %v5401_v25  ;;  %1979 = vmatprep.subr.bf16.mxu1 %v5404_v26  ;;  %v5500_v25 = vld [vmem:[%s7808_s3 + $0x66c] ss:$16 sps:$4 sm:$0xff]  }
  0x91   :  { %v5578_v26 = vld [vmem:[%s7810_s0 + $0xc] ss:$16 sps:$4 sm:$0xff]  }
  0x93   :  { %1874 = vmatpush1.bf16.msra.mxu0 %v5399_v27  ;;  %1980 = vmatpush1.bf16.msra.mxu1 %v5402_v28  ;;  %v5495_v27 = vld [vmem:[%s7808_s3 + $0x660] ss:$16 sps:$4 sm:$0xff]   ;;  %v5498_v28 = vld [vmem:[%s7808_s3 + $0x668] ss:$16 sps:$4 sm:$0xff]  }
  0x94   :  { %1875 = vmatprep.subr.bf16.mxu0 %v5407_v29  ;;  %1981 = vmatprep.subr.bf16.mxu1 %v5410_v30  ;;  %v5503_v29 = vld [vmem:[%s7808_s3 + $0x684] ss:$16 sps:$4 sm:$0xff]   ;;  %v5506_v30 = vld [vmem:[%s7808_s3 + $0x68c] ss:$16 sps:$4 sm:$0xff]  }
  0x97   :  { %1876 = vmatpush1.bf16.msra.mxu0 %v5405_v31  ;;  %1982 = vmatpush1.bf16.msra.mxu1 %v5408_v32  ;;  %v5501_v31 = vld [vmem:[%s7808_s3 + $0x680] ss:$16 sps:$4 sm:$0xff]   ;;  %v5504_v32 = vld [vmem:[%s7808_s3 + $0x688] ss:$16 sps:$4 sm:$0xff]  }
  0x98   :  { %1877 = vmatprep.subr.bf16.mxu0 %v5413_v33  ;;  %1983 = vmatprep.subr.bf16.mxu1 %v5416_v34  ;;  %v5509_v33 = vld [vmem:[%s7808_s3 + $0x6a4] ss:$16 sps:$4 sm:$0xff]   ;;  %v5512_v34 = vld [vmem:[%s7808_s3 + $0x6ac] ss:$16 sps:$4 sm:$0xff]  }
  0x9b   :  { %1878 = vmatpush1.bf16.msra.mxu0 %v5411_v35  ;;  %1984 = vmatpush1.bf16.msra.mxu1 %v5414_v36  ;;  %v5507_v35 = vld [vmem:[%s7808_s3 + $0x6a0] ss:$16 sps:$4 sm:$0xff]   ;;  %v5510_v36 = vld [vmem:[%s7808_s3 + $0x6a8] ss:$16 sps:$4 sm:$0xff]  }
  0x9c   :  { %1879 = vmatprep.subr.bf16.mxu0 %v5419_v37  ;;  %1985 = vmatprep.subr.bf16.mxu1 %v5422_v38  ;;  %v5515_v37 = vld [vmem:[%s7808_s3 + $0x6c4] ss:$16 sps:$4 sm:$0xff]   ;;  %v5518_v38 = vld [vmem:[%s7808_s3 + $0x6cc] ss:$16 sps:$4 sm:$0xff]  }
  0x9f   :  { %1880 = vmatpush1.bf16.msra.mxu0 %v5417_v39  ;;  %1986 = vmatpush1.bf16.msra.mxu1 %v5420_v40  ;;  %v5513_v39 = vld [vmem:[%s7808_s3 + $0x6c0] ss:$16 sps:$4 sm:$0xff]   ;;  %v5516_v40 = vld [vmem:[%s7808_s3 + $0x6c8] ss:$16 sps:$4 sm:$0xff]  }
  0xa0   :  { %1881 = vmatprep.subr.bf16.mxu0 %v5425_v41  ;;  %1987 = vmatprep.subr.bf16.mxu1 %v5428_v42  ;;  %v5521_v41 = vld [vmem:[%s7808_s3 + $0x6e4] ss:$16 sps:$4 sm:$0xff]   ;;  %v5524_v42 = vld [vmem:[%s7808_s3 + $0x6ec] ss:$16 sps:$4 sm:$0xff]  }
  0xa3   :  { %1882 = vmatpush1.bf16.msra.mxu0 %v5423_v43  ;;  %1988 = vmatpush1.bf16.msra.mxu1 %v5426_v44  ;;  %v5519_v43 = vld [vmem:[%s7808_s3 + $0x6e0] ss:$16 sps:$4 sm:$0xff]   ;;  %v5522_v44 = vld [vmem:[%s7808_s3 + $0x6e8] ss:$16 sps:$4 sm:$0xff]  }
  0xa4   :  { %1883 = vmatprep.subr.bf16.mxu0 %v5431_v45  ;;  %1989 = vmatprep.subr.bf16.mxu1 %v5434_v46  ;;  %v5527_v45 = vld [vmem:[%s7808_s3 + $0x704] ss:$16 sps:$4 sm:$0xff]   ;;  %v5530_v46 = vld [vmem:[%s7808_s3 + $0x70c] ss:$16 sps:$4 sm:$0xff]  }
  0xa7   :  { %1884 = vmatpush1.bf16.msra.mxu0 %v5429_v47  ;;  %1990 = vmatpush1.bf16.msra.mxu1 %v5432_v48  ;;  %v5525_v47 = vld [vmem:[%s7808_s3 + $0x700] ss:$16 sps:$4 sm:$0xff]   ;;  %v5528_v48 = vld [vmem:[%s7808_s3 + $0x708] ss:$16 sps:$4 sm:$0xff]  }
  0xa8   :  { %1885 = vmatprep.subr.bf16.mxu0 %v5437_v49  ;;  %1991 = vmatprep.subr.bf16.mxu1 %v5440_v50  ;;  %v5533_v49 = vld [vmem:[%s7808_s3 + $0x724] ss:$16 sps:$4 sm:$0xff]   ;;  %v5536_v50 = vld [vmem:[%s7808_s3 + $0x72c] ss:$16 sps:$4 sm:$0xff]  }
  0xab   :  { %1886 = vmatpush1.bf16.msra.mxu0 %v5435_v51  ;;  %1992 = vmatpush1.bf16.msra.mxu1 %v5438_v52  ;;  %v5531_v51 = vld [vmem:[%s7808_s3 + $0x720] ss:$16 sps:$4 sm:$0xff]   ;;  %v5534_v52 = vld [vmem:[%s7808_s3 + $0x728] ss:$16 sps:$4 sm:$0xff]  }
  0xac   :  { %1887 = vmatprep.subr.bf16.mxu0 %v5443_v53  ;;  %1993 = vmatprep.subr.bf16.mxu1 %v5446_v54  ;;  %v5539_v53 = vld [vmem:[%s7808_s3 + $0x744] ss:$16 sps:$4 sm:$0xff]   ;;  %v5542_v54 = vld [vmem:[%s7808_s3 + $0x74c] ss:$16 sps:$4 sm:$0xff]  }
  0xaf   :  { %1888 = vmatpush1.bf16.msra.mxu0 %v5441_v55  ;;  %1994 = vmatpush1.bf16.msra.mxu1 %v5444_v56  ;;  %v5537_v55 = vld [vmem:[%s7808_s3 + $0x740] ss:$16 sps:$4 sm:$0xff]   ;;  %v5540_v56 = vld [vmem:[%s7808_s3 + $0x748] ss:$16 sps:$4 sm:$0xff]  }
  0xb0   :  { %1889 = vmatprep.subr.bf16.mxu0 %v5449_v57  ;;  %1995 = vmatprep.subr.bf16.mxu1 %v5452_v58  ;;  %v5545_v57 = vld [vmem:[%s7808_s3 + $0x764] ss:$16 sps:$4 sm:$0xff]   ;;  %v5548_v58 = vld [vmem:[%s7808_s3 + $0x76c] ss:$16 sps:$4 sm:$0xff]  }
  0xb3   :  { %1890 = vmatpush1.bf16.msra.mxu0 %v5447_v59  ;;  %1996 = vmatpush1.bf16.msra.mxu1 %v5450_v60  ;;  %v5543_v59 = vld [vmem:[%s7808_s3 + $0x760] ss:$16 sps:$4 sm:$0xff]   ;;  %v5546_v60 = vld [vmem:[%s7808_s3 + $0x768] ss:$16 sps:$4 sm:$0xff]  }
  0xb4   :  { %1891 = vmatprep.subr.bf16.mxu0 %v5455_v61  ;;  %1997 = vmatprep.subr.bf16.mxu1 %v5458_v62  ;;  %v5551_v61 = vld [vmem:[%s7808_s3 + $0x784] ss:$16 sps:$4 sm:$0xff]   ;;  %v5554_v62 = vld [vmem:[%s7808_s3 + $0x78c] ss:$16 sps:$4 sm:$0xff]  }
  0xb7   :  { %1892 = vmatpush1.bf16.msra.mxu0 %v5453_v63  ;;  %1998 = vmatpush1.bf16.msra.mxu1 %v5456_v0  ;;  %v5549_v63 = vld [vmem:[%s7808_s3 + $0x780] ss:$16 sps:$4 sm:$0xff]   ;;  %v5552_v0 = vld [vmem:[%s7808_s3 + $0x788] ss:$16 sps:$4 sm:$0xff]  }
  0xb8   :  { %1893 = vmatprep.subr.bf16.mxu0 %v5463_v1  ;;  %1999 = vmatprep.subr.bf16.mxu1 %v5466_v2  ;;  %v5557_v1 = vld [vmem:[%s7808_s3 + $0x7a4] ss:$16 sps:$4 sm:$0xff]   ;;  %v5560_v2 = vld [vmem:[%s7808_s3 + $0x7ac] ss:$16 sps:$4 sm:$0xff]  }
  0xbb   :  { %1894 = vmatpush1.bf16.msra.mxu0 %v5461_v3  ;;  %2000 = vmatpush1.bf16.msra.mxu1 %v5464_v4  ;;  %v5555_v3 = vld [vmem:[%s7808_s3 + $0x7a0] ss:$16 sps:$4 sm:$0xff]   ;;  %v5558_v4 = vld [vmem:[%s7808_s3 + $0x7a8] ss:$16 sps:$4 sm:$0xff]  }
  0xbc   :  { %1895 = vmatprep.subr.bf16.mxu0 %v5470_v5  ;;  %2001 = vmatprep.subr.bf16.mxu1 %v5473_v6  ;;  %v5566_v5 = vld [vmem:[%s7808_s3 + $0x7c4] ss:$16 sps:$4 sm:$0xff]   ;;  %v5569_v6 = vld [vmem:[%s7808_s3 + $0x7cc] ss:$16 sps:$4 sm:$0xff]  }
  0xbf   :  { %1896 = vmatpush1.bf16.msra.mxu0 %v5468_v7  ;;  %2002 = vmatpush1.bf16.msra.mxu1 %v5471_v8  ;;  %v5564_v7 = vld [vmem:[%s7808_s3 + $0x7c0] ss:$16 sps:$4 sm:$0xff]   ;;  %v5567_v8 = vld [vmem:[%s7808_s3 + $0x7c8] ss:$16 sps:$4 sm:$0xff]  }
  0xc0   :  { %1918 = vmatprep.subr.bf16.mxu0 %v5479_v9  ;;  %2024 = vmatprep.subr.bf16.mxu1 %v5482_v10  ;;  %v5572_v9 = vld [vmem:[%s7808_s3 + $0x7e4] ss:$16 sps:$4 sm:$0xff]   ;;  %v5575_v10 = vld [vmem:[%s7808_s3 + $0x7ec] ss:$16 sps:$4 sm:$0xff]  }
  0xc2   :  { %1898 = vmatmul.mubr.bf16.vlgmr.msra.gmra.mrb[0].mxu0 %v5474_v11  ;;  %2004 = vmatmul.mubr.bf16.vlgmr.msra.gmra.mrb[0].mxu1 %v5474_v11  ;;  %v5570_v11 = vld [vmem:[%s7808_s3 + $0x7e0] ss:$16 sps:$4 sm:$0xff]  }
  0xc3   :  { %1919 = vmatpush1.bf16.msra.mxu0 %v5477_v12  ;;  %2025 = vmatpush1.bf16.msra.mxu1 %v5480_v13  ;;  %v5573_v12 = vld [vmem:[%s7808_s3 + $0x7e8] ss:$16 sps:$4 sm:$0xff]   ;;  %v5581_v13 = vld [vmem:[%s7808_s3 + $0x4] ss:$16 sps:$4 sm:$0xff]  }
  0xc4   :  { %1920 = vmatprep.subr.bf16.mxu0 %v5485_v14  ;;  %2026 = vmatprep.subr.bf16.mxu1 %v5488_v15  ;;  %v5584_v14 = vld [vmem:[%s7808_s3 + $0xc] ss:$16 sps:$4 sm:$0xff]   ;;  %v5576_v15 = vld [vmem:[%s7810_s0 + $0x8] ss:$16 sps:$4 sm:$0xff]  }
  0xc5   :  { %1907 = vmatprep.mubr.bf16.mxu0 %v5561_v16  ;;  %2013 = vmatprep.mubr.bf16.mxu1 %v5561_v16  ;;  %v5579_v16 = vld [vmem:[%s7808_s3] ss:$16 sps:$4 sm:$0xff]  }
  0xc7   :  { %1921 = vmatpush1.bf16.msra.mxu0 %v5483_v17  ;;  %2027 = vmatpush1.bf16.msra.mxu1 %v5486_v18  ;;  %v5582_v17 = vld [vmem:[%s7808_s3 + $0x8] ss:$16 sps:$4 sm:$0xff]   ;;  %v5587_v18 = vld [vmem:[%s7808_s3 + $0x24] ss:$16 sps:$4 sm:$0xff]  }
  0xc8   :  { %1922 = vmatprep.subr.bf16.mxu0 %v5491_v19  ;;  %2028 = vmatprep.subr.bf16.mxu1 %v5494_v20  ;;  %v5590_v19 = vld [vmem:[%s7808_s3 + $0x2c] ss:$16 sps:$4 sm:$0xff]  }
  0xc9   :  { %v5591_v20 = vld [vmem:[%s7810_s0 + $0x2c] ss:$16 sps:$4 sm:$0xff]  }
  0xca   :  { %1908 = vmatmul.mubr.bf16.gmra.mrb[4].mxu0 %v5563_v23  ;;  %2014 = vmatmul.mubr.bf16.gmra.mrb[4].mxu1 %v5563_v23  ;;  %v5596_v23 = vld [vmem:[%s7808_s3 + $0x44] ss:$16 sps:$4 sm:$0xff]  }
  0xcb   :  { %1923 = vmatpush1.bf16.msra.mxu0 %v5489_v21  ;;  %2029 = vmatpush1.bf16.msra.mxu1 %v5492_v22  ;;  %v5585_v21 = vld [vmem:[%s7808_s3 + $0x20] ss:$16 sps:$4 sm:$0xff]   ;;  %v5588_v22 = vld [vmem:[%s7808_s3 + $0x28] ss:$16 sps:$4 sm:$0xff]  }
  0xcc   :  { %1924 = vmatprep.subr.bf16.mxu0 %v5497_v24  ;;  %2030 = vmatprep.subr.bf16.mxu1 %v5500_v25  ;;  %v5599_v24 = vld [vmem:[%s7808_s3 + $0x4c] ss:$16 sps:$4 sm:$0xff]   ;;  %v5593_v25 = vld [vmem:[%s7810_s0 + $0x28] ss:$16 sps:$4 sm:$0xff]  }
  0xcd   :  { %1950 = vmatprep.mubr.bf16.mxu0 %v5578_v26  ;;  %2056 = vmatprep.mubr.bf16.mxu1 %v5578_v26  ;;  %v5594_v26 = vld [vmem:[%s7808_s3 + $0x40] ss:$16 sps:$4 sm:$0xff]  }
  0xcf   :  { %1925 = vmatpush1.bf16.msra.mxu0 %v5495_v27  ;;  %2031 = vmatpush1.bf16.msra.mxu1 %v5498_v28  ;;  %v5597_v27 = vld [vmem:[%s7808_s3 + $0x48] ss:$16 sps:$4 sm:$0xff]   ;;  %v5602_v28 = vld [vmem:[%s7808_s3 + $0x64] ss:$16 sps:$4 sm:$0xff]  }
  0xd0   :  { %1926 = vmatprep.subr.bf16.mxu0 %v5503_v29  ;;  %2032 = vmatprep.subr.bf16.mxu1 %v5506_v30  ;;  %v5605_v29 = vld [vmem:[%s7808_s3 + $0x6c] ss:$16 sps:$4 sm:$0xff]   ;;  %v5680_v30 = vld [vmem:[%s7811_s2 + $0x4] ss:$16 sps:$4 sm:$0xff]  }
  0xd3   :  { %1927 = vmatpush1.bf16.msra.mxu0 %v5501_v31  ;;  %2033 = vmatpush1.bf16.msra.mxu1 %v5504_v32  ;;  %v5600_v31 = vld [vmem:[%s7808_s3 + $0x60] ss:$16 sps:$4 sm:$0xff]   ;;  %v5603_v32 = vld [vmem:[%s7808_s3 + $0x68] ss:$16 sps:$4 sm:$0xff]  }
  0xd4   :  { %1928 = vmatprep.subr.bf16.mxu0 %v5509_v33  ;;  %2034 = vmatprep.subr.bf16.mxu1 %v5512_v34  ;;  %v5608_v33 = vld [vmem:[%s7808_s3 + $0x84] ss:$16 sps:$4 sm:$0xff]   ;;  %v5611_v34 = vld [vmem:[%s7808_s3 + $0x8c] ss:$16 sps:$4 sm:$0xff]  }
  0xd7   :  { %1929 = vmatpush1.bf16.msra.mxu0 %v5507_v35  ;;  %2035 = vmatpush1.bf16.msra.mxu1 %v5510_v36  ;;  %v5606_v35 = vld [vmem:[%s7808_s3 + $0x80] ss:$16 sps:$4 sm:$0xff]   ;;  %v5609_v36 = vld [vmem:[%s7808_s3 + $0x88] ss:$16 sps:$4 sm:$0xff]  }
  0xd8   :  { %1930 = vmatprep.subr.bf16.mxu0 %v5515_v37  ;;  %2036 = vmatprep.subr.bf16.mxu1 %v5518_v38  ;;  %v5614_v37 = vld [vmem:[%s7808_s3 + $0xa4] ss:$16 sps:$4 sm:$0xff]   ;;  %v5617_v38 = vld [vmem:[%s7808_s3 + $0xac] ss:$16 sps:$4 sm:$0xff]  }
  0xdb   :  { %1931 = vmatpush1.bf16.msra.mxu0 %v5513_v39  ;;  %2037 = vmatpush1.bf16.msra.mxu1 %v5516_v40  ;;  %v5612_v39 = vld [vmem:[%s7808_s3 + $0xa0] ss:$16 sps:$4 sm:$0xff]   ;;  %v5615_v40 = vld [vmem:[%s7808_s3 + $0xa8] ss:$16 sps:$4 sm:$0xff]  }
  0xdc   :  { %1932 = vmatprep.subr.bf16.mxu0 %v5521_v41  ;;  %2038 = vmatprep.subr.bf16.mxu1 %v5524_v42  ;;  %v5620_v41 = vld [vmem:[%s7808_s3 + $0xc4] ss:$16 sps:$4 sm:$0xff]   ;;  %v5623_v42 = vld [vmem:[%s7808_s3 + $0xcc] ss:$16 sps:$4 sm:$0xff]  }
  0xdf   :  { %1933 = vmatpush1.bf16.msra.mxu0 %v5519_v43  ;;  %2039 = vmatpush1.bf16.msra.mxu1 %v5522_v44  ;;  %v5618_v43 = vld [vmem:[%s7808_s3 + $0xc0] ss:$16 sps:$4 sm:$0xff]   ;;  %v5621_v44 = vld [vmem:[%s7808_s3 + $0xc8] ss:$16 sps:$4 sm:$0xff]  }
  0xe0   :  { %1934 = vmatprep.subr.bf16.mxu0 %v5527_v45  ;;  %2040 = vmatprep.subr.bf16.mxu1 %v5530_v46  ;;  %v5626_v45 = vld [vmem:[%s7808_s3 + $0xe4] ss:$16 sps:$4 sm:$0xff]   ;;  %v5629_v46 = vld [vmem:[%s7808_s3 + $0xec] ss:$16 sps:$4 sm:$0xff]  }
  0xe3   :  { %1935 = vmatpush1.bf16.msra.mxu0 %v5525_v47  ;;  %2041 = vmatpush1.bf16.msra.mxu1 %v5528_v48  ;;  %v5624_v47 = vld [vmem:[%s7808_s3 + $0xe0] ss:$16 sps:$4 sm:$0xff]   ;;  %v5627_v48 = vld [vmem:[%s7808_s3 + $0xe8] ss:$16 sps:$4 sm:$0xff]  }
  0xe4   :  { %1936 = vmatprep.subr.bf16.mxu0 %v5533_v49  ;;  %2042 = vmatprep.subr.bf16.mxu1 %v5536_v50  ;;  %v5632_v49 = vld [vmem:[%s7808_s3 + $0x104] ss:$16 sps:$4 sm:$0xff]   ;;  %v5635_v50 = vld [vmem:[%s7808_s3 + $0x10c] ss:$16 sps:$4 sm:$0xff]  }
  0xe7   :  { %1937 = vmatpush1.bf16.msra.mxu0 %v5531_v51  ;;  %2043 = vmatpush1.bf16.msra.mxu1 %v5534_v52  ;;  %v5630_v51 = vld [vmem:[%s7808_s3 + $0x100] ss:$16 sps:$4 sm:$0xff]   ;;  %v5633_v52 = vld [vmem:[%s7808_s3 + $0x108] ss:$16 sps:$4 sm:$0xff]  }
  0xe8   :  { %1938 = vmatprep.subr.bf16.mxu0 %v5539_v53  ;;  %2044 = vmatprep.subr.bf16.mxu1 %v5542_v54  ;;  %v5638_v53 = vld [vmem:[%s7808_s3 + $0x124] ss:$16 sps:$4 sm:$0xff]   ;;  %v5641_v54 = vld [vmem:[%s7808_s3 + $0x12c] ss:$16 sps:$4 sm:$0xff]  }
  0xeb   :  { %1939 = vmatpush1.bf16.msra.mxu0 %v5537_v55  ;;  %2045 = vmatpush1.bf16.msra.mxu1 %v5540_v56  ;;  %v5636_v55 = vld [vmem:[%s7808_s3 + $0x120] ss:$16 sps:$4 sm:$0xff]   ;;  %v5639_v56 = vld [vmem:[%s7808_s3 + $0x128] ss:$16 sps:$4 sm:$0xff]  }
  0xec   :  { %1940 = vmatprep.subr.bf16.mxu0 %v5545_v57  ;;  %2046 = vmatprep.subr.bf16.mxu1 %v5548_v58  ;;  %v5644_v57 = vld [vmem:[%s7808_s3 + $0x144] ss:$16 sps:$4 sm:$0xff]   ;;  %v5647_v58 = vld [vmem:[%s7808_s3 + $0x14c] ss:$16 sps:$4 sm:$0xff]  }
  0xef   :  { %1941 = vmatpush1.bf16.msra.mxu0 %v5543_v59  ;;  %2047 = vmatpush1.bf16.msra.mxu1 %v5546_v60  ;;  %v5642_v59 = vld [vmem:[%s7808_s3 + $0x140] ss:$16 sps:$4 sm:$0xff]   ;;  %v5645_v60 = vld [vmem:[%s7808_s3 + $0x148] ss:$16 sps:$4 sm:$0xff]  }
  0xf0   :  { %1942 = vmatprep.subr.bf16.mxu0 %v5551_v61  ;;  %2048 = vmatprep.subr.bf16.mxu1 %v5554_v62  ;;  %v5650_v61 = vld [vmem:[%s7808_s3 + $0x164] ss:$16 sps:$4 sm:$0xff]   ;;  %v5653_v62 = vld [vmem:[%s7808_s3 + $0x16c] ss:$16 sps:$4 sm:$0xff]  }
  0xf3   :  { %1943 = vmatpush1.bf16.msra.mxu0 %v5549_v63  ;;  %2049 = vmatpush1.bf16.msra.mxu1 %v5552_v0  ;;  %v5648_v63 = vld [vmem:[%s7808_s3 + $0x160] ss:$16 sps:$4 sm:$0xff]   ;;  %v5651_v0 = vld [vmem:[%s7808_s3 + $0x168] ss:$16 sps:$4 sm:$0xff]  }
  0xf4   :  { %1944 = vmatprep.subr.bf16.mxu0 %v5557_v1  ;;  %2050 = vmatprep.subr.bf16.mxu1 %v5560_v2  ;;  %v5656_v1 = vld [vmem:[%s7808_s3 + $0x184] ss:$16 sps:$4 sm:$0xff]   ;;  %v5659_v2 = vld [vmem:[%s7808_s3 + $0x18c] ss:$16 sps:$4 sm:$0xff]  }
  0xf7   :  { %1945 = vmatpush1.bf16.msra.mxu0 %v5555_v3  ;;  %2051 = vmatpush1.bf16.msra.mxu1 %v5558_v4  ;;  %v5654_v3 = vld [vmem:[%s7808_s3 + $0x180] ss:$16 sps:$4 sm:$0xff]   ;;  %v5657_v4 = vld [vmem:[%s7808_s3 + $0x188] ss:$16 sps:$4 sm:$0xff]  }
  0xf8   :  { %1946 = vmatprep.subr.bf16.mxu0 %v5566_v5  ;;  %2052 = vmatprep.subr.bf16.mxu1 %v5569_v6  ;;  %v5662_v5 = vld [vmem:[%s7808_s3 + $0x1a4] ss:$16 sps:$4 sm:$0xff]   ;;  %v5665_v6 = vld [vmem:[%s7808_s3 + $0x1ac] ss:$16 sps:$4 sm:$0xff]  }
  0xfb   :  { %1947 = vmatpush1.bf16.msra.mxu0 %v5564_v7  ;;  %2053 = vmatpush1.bf16.msra.mxu1 %v5567_v8  ;;  %v5660_v7 = vld [vmem:[%s7808_s3 + $0x1a0] ss:$16 sps:$4 sm:$0xff]   ;;  %v5663_v8 = vld [vmem:[%s7808_s3 + $0x1a8] ss:$16 sps:$4 sm:$0xff]  }
  0xfc   :  { %1948 = vmatprep.subr.bf16.mxu0 %v5572_v9  ;;  %2054 = vmatprep.subr.bf16.mxu1 %v5575_v10  ;;  %v5668_v9 = vld [vmem:[%s7808_s3 + $0x1c4] ss:$16 sps:$4 sm:$0xff]   ;;  %v5671_v10 = vld [vmem:[%s7808_s3 + $0x1cc] ss:$16 sps:$4 sm:$0xff]  }
  0xff   :  { %1949 = vmatpush1.bf16.msra.mxu0 %v5570_v11  ;;  %2055 = vmatpush1.bf16.msra.mxu1 %v5573_v12  ;;  %v5666_v11 = vld [vmem:[%s7808_s3 + $0x1c0] ss:$16 sps:$4 sm:$0xff]   ;;  %v5669_v12 = vld [vmem:[%s7808_s3 + $0x1c8] ss:$16 sps:$4 sm:$0xff]  }
 0x100   :  { %3022 = vmatprep.subr.bf16.mxu0 %v5581_v13  ;;  %3128 = vmatprep.subr.bf16.mxu1 %v5584_v14  ;;  %v5674_v13 = vld [vmem:[%s7808_s3 + $0x1e4] ss:$16 sps:$4 sm:$0xff]   ;;  %v5677_v14 = vld [vmem:[%s7808_s3 + $0x1ec] ss:$16 sps:$4 sm:$0xff]  }
 0x102   :  { %1951 = vmatmul.mubr.bf16.vlgmr.msra.gmra.mrb[0].mxu0 %v5576_v15  ;;  %2057 = vmatmul.mubr.bf16.vlgmr.msra.gmra.mrb[0].mxu1 %v5576_v15  ;;  %v5672_v15 = vld [vmem:[%s7808_s3 + $0x1e0] ss:$16 sps:$4 sm:$0xff]  }
 0x103   :  { %3023 = vmatpush1.bf16.msra.mxu0 %v5579_v16  ;;  %3129 = vmatpush1.bf16.msra.mxu1 %v5582_v17  ;;  %v5675_v16 = vld [vmem:[%s7808_s3 + $0x1e8] ss:$16 sps:$4 sm:$0xff]   ;;  %v5678_v17 = vld [vmem:[%s7811_s2] ss:$16 sps:$4 sm:$0xff]  }
 0x104   :  { %3024 = vmatprep.subr.bf16.mxu0 %v5587_v18  ;;  %3130 = vmatprep.subr.bf16.mxu1 %v5590_v19  ;;  %v5683_v18 = vld [vmem:[%s7808_s3 + $0x204] ss:$16 sps:$4 sm:$0xff]   ;;  %v5686_v19 = vld [vmem:[%s7808_s3 + $0x20c] ss:$16 sps:$4 sm:$0xff]  }
 0x105   :  { %1960 = vmatprep.mubr.bf16.mxu0 %v5591_v20  ;;  %2066 = vmatprep.mubr.bf16.mxu1 %v5591_v20  ;;  %v5681_v20 = vld [vmem:[%s7808_s3 + $0x200] ss:$16 sps:$4 sm:$0xff]  }
 0x107   :  { %3025 = vmatpush1.bf16.msra.mxu0 %v5585_v21  ;;  %3131 = vmatpush1.bf16.msra.mxu1 %v5588_v22  ;;  %v5684_v21 = vld [vmem:[%s7808_s3 + $0x208] ss:$16 sps:$4 sm:$0xff]   ;;  %v5689_v22 = vld [vmem:[%s7808_s3 + $0x224] ss:$16 sps:$4 sm:$0xff]  }
 0x108   :  { %3026 = vmatprep.subr.bf16.mxu0 %v5596_v23  ;;  %3132 = vmatprep.subr.bf16.mxu1 %v5599_v24  ;;  %v5692_v23 = vld [vmem:[%s7808_s3 + $0x22c] ss:$16 sps:$4 sm:$0xff]   ;;  %v5765_v24 = vld [vmem:[%s7811_s2 + $0x24] ss:$16 sps:$4 sm:$0xff]  }
 0x10a   :  { %1961 = vmatmul.mubr.bf16.gmra.mrb[4].mxu0 %v5593_v25  ;;  %2067 = vmatmul.mubr.bf16.gmra.mrb[4].mxu1 %v5593_v25  ;;  %v5687_v25 = vld [vmem:[%s7808_s3 + $0x220] ss:$16 sps:$4 sm:$0xff]  }
 0x10b   :  { %3027 = vmatpush1.bf16.msra.mxu0 %v5594_v26  ;;  %3133 = vmatpush1.bf16.msra.mxu1 %v5597_v27  ;;  %v5690_v26 = vld [vmem:[%s7808_s3 + $0x228] ss:$16 sps:$4 sm:$0xff]   ;;  %v5695_v27 = vld [vmem:[%s7808_s3 + $0x244] ss:$16 sps:$4 sm:$0xff]  }
 0x10c   :  { %3028 = vmatprep.subr.bf16.mxu0 %v5602_v28  ;;  %3134 = vmatprep.subr.bf16.mxu1 %v5605_v29  ;;  %v5698_v28 = vld [vmem:[%s7808_s3 + $0x24c] ss:$16 sps:$4 sm:$0xff]   ;;  %v5773_v29 = vld [vmem:[%s7811_s2 + $0x20] ss:$16 sps:$4 sm:$0xff]  }
 0x10d   :  { %3054 = vmatprep.mubr.bf16.mxu0 %v5680_v30  ;;  %3160 = vmatprep.mubr.bf16.mxu1 %v5680_v30  ;;  %v5693_v30 = vld [vmem:[%s7808_s3 + $0x240] ss:$16 sps:$4 sm:$0xff]  }
 0x10f   :  { %3029 = vmatpush1.bf16.msra.mxu0 %v5600_v31  ;;  %3135 = vmatpush1.bf16.msra.mxu1 %v5603_v32  ;;  %v5696_v31 = vld [vmem:[%s7808_s3 + $0x248] ss:$16 sps:$4 sm:$0xff]   ;;  %v5701_v32 = vld [vmem:[%s7808_s3 + $0x264] ss:$16 sps:$4 sm:$0xff]  }
 0x110   :  { %3030 = vmatprep.subr.bf16.mxu0 %v5608_v33  ;;  %3136 = vmatprep.subr.bf16.mxu1 %v5611_v34  ;;  %v5704_v33 = vld [vmem:[%s7808_s3 + $0x26c] ss:$16 sps:$4 sm:$0xff]  }
 0x111   :  { %v5782_v34 = vld [vmem:[%s7811_s2 + $0xc] ss:$16 sps:$4 sm:$0xff]  }
 0x113   :  { %3031 = vmatpush1.bf16.msra.mxu0 %v5606_v35  ;;  %3137 = vmatpush1.bf16.msra.mxu1 %v5609_v36  ;;  %v5699_v35 = vld [vmem:[%s7808_s3 + $0x260] ss:$16 sps:$4 sm:$0xff]   ;;  %v5702_v36 = vld [vmem:[%s7808_s3 + $0x268] ss:$16 sps:$4 sm:$0xff]  }
 0x114   :  { %3032 = vmatprep.subr.bf16.mxu0 %v5614_v37  ;;  %3138 = vmatprep.subr.bf16.mxu1 %v5617_v38  ;;  %v5707_v37 = vld [vmem:[%s7808_s3 + $0x284] ss:$16 sps:$4 sm:$0xff]   ;;  %v5710_v38 = vld [vmem:[%s7808_s3 + $0x28c] ss:$16 sps:$4 sm:$0xff]  }
 0x117   :  { %3033 = vmatpush1.bf16.msra.mxu0 %v5612_v39  ;;  %3139 = vmatpush1.bf16.msra.mxu1 %v5615_v40  ;;  %v5705_v39 = vld [vmem:[%s7808_s3 + $0x280] ss:$16 sps:$4 sm:$0xff]   ;;  %v5708_v40 = vld [vmem:[%s7808_s3 + $0x288] ss:$16 sps:$4 sm:$0xff]  }
 0x118   :  { %3034 = vmatprep.subr.bf16.mxu0 %v5620_v41  ;;  %3140 = vmatprep.subr.bf16.mxu1 %v5623_v42  ;;  %v5713_v41 = vld [vmem:[%s7808_s3 + $0x2a4] ss:$16 sps:$4 sm:$0xff]   ;;  %v5716_v42 = vld [vmem:[%s7808_s3 + $0x2ac] ss:$16 sps:$4 sm:$0xff]  }
 0x11b   :  { %3035 = vmatpush1.bf16.msra.mxu0 %v5618_v43  ;;  %3141 = vmatpush1.bf16.msra.mxu1 %v5621_v44  ;;  %v5711_v43 = vld [vmem:[%s7808_s3 + $0x2a0] ss:$16 sps:$4 sm:$0xff]   ;;  %v5714_v44 = vld [vmem:[%s7808_s3 + $0x2a8] ss:$16 sps:$4 sm:$0xff]  }
 0x11c   :  { %3036 = vmatprep.subr.bf16.mxu0 %v5626_v45  ;;  %3142 = vmatprep.subr.bf16.mxu1 %v5629_v46  ;;  %v5719_v45 = vld [vmem:[%s7808_s3 + $0x2c4] ss:$16 sps:$4 sm:$0xff]   ;;  %v5722_v46 = vld [vmem:[%s7808_s3 + $0x2cc] ss:$16 sps:$4 sm:$0xff]  }
 0x11f   :  { %3037 = vmatpush1.bf16.msra.mxu0 %v5624_v47  ;;  %3143 = vmatpush1.bf16.msra.mxu1 %v5627_v48  ;;  %v5717_v47 = vld [vmem:[%s7808_s3 + $0x2c0] ss:$16 sps:$4 sm:$0xff]   ;;  %v5720_v48 = vld [vmem:[%s7808_s3 + $0x2c8] ss:$16 sps:$4 sm:$0xff]  }
 0x120   :  { %3038 = vmatprep.subr.bf16.mxu0 %v5632_v49  ;;  %3144 = vmatprep.subr.bf16.mxu1 %v5635_v50  ;;  %v5725_v49 = vld [vmem:[%s7808_s3 + $0x2e4] ss:$16 sps:$4 sm:$0xff]   ;;  %v5728_v50 = vld [vmem:[%s7808_s3 + $0x2ec] ss:$16 sps:$4 sm:$0xff]  }
 0x123   :  { %3039 = vmatpush1.bf16.msra.mxu0 %v5630_v51  ;;  %3145 = vmatpush1.bf16.msra.mxu1 %v5633_v52  ;;  %v5723_v51 = vld [vmem:[%s7808_s3 + $0x2e0] ss:$16 sps:$4 sm:$0xff]   ;;  %v5726_v52 = vld [vmem:[%s7808_s3 + $0x2e8] ss:$16 sps:$4 sm:$0xff]  }
 0x124   :  { %3040 = vmatprep.subr.bf16.mxu0 %v5638_v53  ;;  %3146 = vmatprep.subr.bf16.mxu1 %v5641_v54  ;;  %v5731_v53 = vld [vmem:[%s7808_s3 + $0x304] ss:$16 sps:$4 sm:$0xff]   ;;  %v5734_v54 = vld [vmem:[%s7808_s3 + $0x30c] ss:$16 sps:$4 sm:$0xff]  }
 0x127   :  { %3041 = vmatpush1.bf16.msra.mxu0 %v5636_v55  ;;  %3147 = vmatpush1.bf16.msra.mxu1 %v5639_v56  ;;  %v5729_v55 = vld [vmem:[%s7808_s3 + $0x300] ss:$16 sps:$4 sm:$0xff]   ;;  %v5732_v56 = vld [vmem:[%s7808_s3 + $0x308] ss:$16 sps:$4 sm:$0xff]  }
 0x128   :  { %3042 = vmatprep.subr.bf16.mxu0 %v5644_v57  ;;  %3148 = vmatprep.subr.bf16.mxu1 %v5647_v58  ;;  %v5737_v57 = vld [vmem:[%s7808_s3 + $0x324] ss:$16 sps:$4 sm:$0xff]   ;;  %v5740_v58 = vld [vmem:[%s7808_s3 + $0x32c] ss:$16 sps:$4 sm:$0xff]  }
 0x12b   :  { %3043 = vmatpush1.bf16.msra.mxu0 %v5642_v59  ;;  %3149 = vmatpush1.bf16.msra.mxu1 %v5645_v60  ;;  %v5735_v59 = vld [vmem:[%s7808_s3 + $0x320] ss:$16 sps:$4 sm:$0xff]   ;;  %v5738_v60 = vld [vmem:[%s7808_s3 + $0x328] ss:$16 sps:$4 sm:$0xff]  }
 0x12c   :  { %3044 = vmatprep.subr.bf16.mxu0 %v5650_v61  ;;  %3150 = vmatprep.subr.bf16.mxu1 %v5653_v62  ;;  %v5743_v61 = vld [vmem:[%s7808_s3 + $0x344] ss:$16 sps:$4 sm:$0xff]   ;;  %v5746_v62 = vld [vmem:[%s7808_s3 + $0x34c] ss:$16 sps:$4 sm:$0xff]  }
 0x12f   :  { %3045 = vmatpush1.bf16.msra.mxu0 %v5648_v63  ;;  %3151 = vmatpush1.bf16.msra.mxu1 %v5651_v0  ;;  %v5741_v63 = vld [vmem:[%s7808_s3 + $0x340] ss:$16 sps:$4 sm:$0xff]   ;;  %v5744_v0 = vld [vmem:[%s7808_s3 + $0x348] ss:$16 sps:$4 sm:$0xff]  }
 0x130   :  { %3046 = vmatprep.subr.bf16.mxu0 %v5656_v1  ;;  %3152 = vmatprep.subr.bf16.mxu1 %v5659_v2  ;;  %v5749_v1 = vld [vmem:[%s7808_s3 + $0x364] ss:$16 sps:$4 sm:$0xff]   ;;  %v5752_v2 = vld [vmem:[%s7808_s3 + $0x36c] ss:$16 sps:$4 sm:$0xff]  }
 0x133   :  { %3047 = vmatpush1.bf16.msra.mxu0 %v5654_v3  ;;  %3153 = vmatpush1.bf16.msra.mxu1 %v5657_v4  ;;  %v5747_v3 = vld [vmem:[%s7808_s3 + $0x360] ss:$16 sps:$4 sm:$0xff]   ;;  %v5750_v4 = vld [vmem:[%s7808_s3 + $0x368] ss:$16 sps:$4 sm:$0xff]  }
 0x134   :  { %3048 = vmatprep.subr.bf16.mxu0 %v5662_v5  ;;  %3154 = vmatprep.subr.bf16.mxu1 %v5665_v6  ;;  %v5755_v5 = vld [vmem:[%s7808_s3 + $0x384] ss:$16 sps:$4 sm:$0xff]   ;;  %v5758_v6 = vld [vmem:[%s7808_s3 + $0x38c] ss:$16 sps:$4 sm:$0xff]  }
 0x137   :  { %3049 = vmatpush1.bf16.msra.mxu0 %v5660_v7  ;;  %3155 = vmatpush1.bf16.msra.mxu1 %v5663_v8  ;;  %v5753_v7 = vld [vmem:[%s7808_s3 + $0x380] ss:$16 sps:$4 sm:$0xff]   ;;  %v5756_v8 = vld [vmem:[%s7808_s3 + $0x388] ss:$16 sps:$4 sm:$0xff]  }
 0x138   :  { %3050 = vmatprep.subr.bf16.mxu0 %v5668_v9  ;;  %3156 = vmatprep.subr.bf16.mxu1 %v5671_v10  ;;  %v5761_v9 = vld [vmem:[%s7808_s3 + $0x3a4] ss:$16 sps:$4 sm:$0xff]   ;;  %v5764_v10 = vld [vmem:[%s7808_s3 + $0x3ac] ss:$16 sps:$4 sm:$0xff]  }
 0x13b   :  { %3051 = vmatpush1.bf16.msra.mxu0 %v5666_v11  ;;  %3157 = vmatpush1.bf16.msra.mxu1 %v5669_v12  ;;  %v5759_v11 = vld [vmem:[%s7808_s3 + $0x3a0] ss:$16 sps:$4 sm:$0xff]   ;;  %v5762_v12 = vld [vmem:[%s7808_s3 + $0x3a8] ss:$16 sps:$4 sm:$0xff]  }
 0x13c   :  { %3052 = vmatprep.subr.bf16.mxu0 %v5674_v13  ;;  %3158 = vmatprep.subr.bf16.mxu1 %v5677_v14  ;;  %v5769_v13 = vld [vmem:[%s7808_s3 + $0x3c4] ss:$16 sps:$4 sm:$0xff]   ;;  %v5772_v14 = vld [vmem:[%s7808_s3 + $0x3cc] ss:$16 sps:$4 sm:$0xff]  }
 0x13f   :  { %3053 = vmatpush1.bf16.msra.mxu0 %v5672_v15  ;;  %3159 = vmatpush1.bf16.msra.mxu1 %v5675_v16  ;;  %v5767_v15 = vld [vmem:[%s7808_s3 + $0x3c0] ss:$16 sps:$4 sm:$0xff]   ;;  %v5770_v16 = vld [vmem:[%s7808_s3 + $0x3c8] ss:$16 sps:$4 sm:$0xff]  }
 0x140   :  { %3075 = vmatprep.subr.bf16.mxu0 %v5683_v18  ;;  %3181 = vmatprep.subr.bf16.mxu1 %v5686_v19  ;;  %v5779_v18 = vld [vmem:[%s7808_s3 + $0x3ec] ss:$16 sps:$4 sm:$0xff]   ;;  %v5774_v19 = vld [vmem:[%s7808_s3 + $0x3e0] ss:$16 sps:$4 sm:$0xff]  }
 0x142   :  { %3055 = vmatmul.mubr.bf16.vlgmr.msra.gmra.mrb[8].mxu0 %v5678_v17  ;;  %3161 = vmatmul.mubr.bf16.vlgmr.msra.gmra.mrb[8].mxu1 %v5678_v17  ;;  %v5776_v17 = vld [vmem:[%s7808_s3 + $0x3e4] ss:$16 sps:$4 sm:$0xff]  }
 0x143   :  { %3076 = vmatpush1.bf16.msra.mxu0 %v5681_v20  ;;  %3182 = vmatpush1.bf16.msra.mxu1 %v5684_v21  ;;  %v5777_v20 = vld [vmem:[%s7808_s3 + $0x3e8] ss:$16 sps:$4 sm:$0xff]   ;;  %v5785_v21 = vld [vmem:[%s7808_s3 + $0x804] ss:$16 sps:$4 sm:$0xff]  }
 0x144   :  { %3077 = vmatprep.subr.bf16.mxu0 %v5689_v22  ;;  %3183 = vmatprep.subr.bf16.mxu1 %v5692_v23  ;;  %v5788_v22 = vld [vmem:[%s7808_s3 + $0x80c] ss:$16 sps:$4 sm:$0xff]   ;;  %v5780_v23 = vld [vmem:[%s7811_s2 + $0x8] ss:$16 sps:$4 sm:$0xff]  }
 0x145   :  { %3064 = vmatprep.mubr.bf16.mxu0 %v5765_v24  ;;  %3170 = vmatprep.mubr.bf16.mxu1 %v5765_v24  ;;  %v5783_v24 = vld [vmem:[%s7808_s3 + $0x800] ss:$16 sps:$4 sm:$0xff]  }
 0x147   :  { %3078 = vmatpush1.bf16.msra.mxu0 %v5687_v25  ;;  %3184 = vmatpush1.bf16.msra.mxu1 %v5690_v26  ;;  %v5786_v25 = vld [vmem:[%s7808_s3 + $0x808] ss:$16 sps:$4 sm:$0xff]   ;;  %v5791_v26 = vld [vmem:[%s7808_s3 + $0x824] ss:$16 sps:$4 sm:$0xff]  }
 0x148   :  { %3079 = vmatprep.subr.bf16.mxu0 %v5695_v27  ;;  %3185 = vmatprep.subr.bf16.mxu1 %v5698_v28  ;;  %v5794_v27 = vld [vmem:[%s7808_s3 + $0x82c] ss:$16 sps:$4 sm:$0xff]  }
 0x149   :  { %v5867_v28 = vld [vmem:[%s7811_s2 + $0x2c] ss:$16 sps:$4 sm:$0xff]  }
 0x14a   :  { %3065 = vmatmul.mubr.bf16.gmra.mrb[12].mxu0 %v5773_v29  ;;  %3171 = vmatmul.mubr.bf16.gmra.mrb[12].mxu1 %v5773_v29  ;;  %v5789_v29 = vld [vmem:[%s7808_s3 + $0x820] ss:$16 sps:$4 sm:$0xff]  }
 0x14b   :  { %3080 = vmatpush1.bf16.msra.mxu0 %v5693_v30  ;;  %3186 = vmatpush1.bf16.msra.mxu1 %v5696_v31  ;;  %v5792_v30 = vld [vmem:[%s7808_s3 + $0x828] ss:$16 sps:$4 sm:$0xff]   ;;  %v5797_v31 = vld [vmem:[%s7808_s3 + $0x844] ss:$16 sps:$4 sm:$0xff]  }
 0x14c   :  { %3081 = vmatprep.subr.bf16.mxu0 %v5701_v32  ;;  %3187 = vmatprep.subr.bf16.mxu1 %v5704_v33  ;;  %v5800_v32 = vld [vmem:[%s7808_s3 + $0x84c] ss:$16 sps:$4 sm:$0xff]   ;;  %v5875_v33 = vld [vmem:[%s7811_s2 + $0x28] ss:$16 sps:$4 sm:$0xff]  }
 0x14d   :  { %3107 = vmatprep.mubr.bf16.mxu0 %v5782_v34  ;;  %3213 = vmatprep.mubr.bf16.mxu1 %v5782_v34  ;;  %v5795_v34 = vld [vmem:[%s7808_s3 + $0x840] ss:$16 sps:$4 sm:$0xff]  }
 0x14f   :  { %3082 = vmatpush1.bf16.msra.mxu0 %v5699_v35  ;;  %3188 = vmatpush1.bf16.msra.mxu1 %v5702_v36  ;;  %v5798_v35 = vld [vmem:[%s7808_s3 + $0x848] ss:$16 sps:$4 sm:$0xff]   ;;  %v5803_v36 = vld [vmem:[%s7808_s3 + $0x864] ss:$16 sps:$4 sm:$0xff]  }
 0x150   :  { %3083 = vmatprep.subr.bf16.mxu0 %v5707_v37  ;;  %3189 = vmatprep.subr.bf16.mxu1 %v5710_v38  ;;  %v5806_v37 = vld [vmem:[%s7808_s3 + $0x86c] ss:$16 sps:$4 sm:$0xff]   ;;  %v5801_v38 = vld [vmem:[%s7808_s3 + $0x860] ss:$16 sps:$4 sm:$0xff]  }
 0x153   :  { %3084 = vmatpush1.bf16.msra.mxu0 %v5705_v39  ;;  %3190 = vmatpush1.bf16.msra.mxu1 %v5708_v40  ;;  %v5804_v39 = vld [vmem:[%s7808_s3 + $0x868] ss:$16 sps:$4 sm:$0xff]   ;;  %v5809_v40 = vld [vmem:[%s7808_s3 + $0x884] ss:$16 sps:$4 sm:$0xff]  }
 0x154   :  { %3085 = vmatprep.subr.bf16.mxu0 %v5713_v41  ;;  %3191 = vmatprep.subr.bf16.mxu1 %v5716_v42  ;;  %v5812_v41 = vld [vmem:[%s7808_s3 + $0x88c] ss:$16 sps:$4 sm:$0xff]   ;;  %v6042_v42 = vld [vmem:[%s7810_s0 + $0x4] ss:$16 sps:$4 sm:$0xff]  }
 0x157   :  { %3086 = vmatpush1.bf16.msra.mxu0 %v5711_v43  ;;  %3192 = vmatpush1.bf16.msra.mxu1 %v5714_v44  ;;  %v5807_v43 = vld [vmem:[%s7808_s3 + $0x880] ss:$16 sps:$4 sm:$0xff]   ;;  %v5810_v44 = vld [vmem:[%s7808_s3 + $0x888] ss:$16 sps:$4 sm:$0xff]  }
 0x158   :  { %3087 = vmatprep.subr.bf16.mxu0 %v5719_v45  ;;  %3193 = vmatprep.subr.bf16.mxu1 %v5722_v46  ;;  %v5815_v45 = vld [vmem:[%s7808_s3 + $0x8a4] ss:$16 sps:$4 sm:$0xff]   ;;  %v5818_v46 = vld [vmem:[%s7808_s3 + $0x8ac] ss:$16 sps:$4 sm:$0xff]  }
 0x15b   :  { %3088 = vmatpush1.bf16.msra.mxu0 %v5717_v47  ;;  %3194 = vmatpush1.bf16.msra.mxu1 %v5720_v48  ;;  %v5813_v47 = vld [vmem:[%s7808_s3 + $0x8a0] ss:$16 sps:$4 sm:$0xff]   ;;  %v5816_v48 = vld [vmem:[%s7808_s3 + $0x8a8] ss:$16 sps:$4 sm:$0xff]  }
 0x15c   :  { %3089 = vmatprep.subr.bf16.mxu0 %v5725_v49  ;;  %3195 = vmatprep.subr.bf16.mxu1 %v5728_v50  ;;  %v5821_v49 = vld [vmem:[%s7808_s3 + $0x8c4] ss:$16 sps:$4 sm:$0xff]   ;;  %v5824_v50 = vld [vmem:[%s7808_s3 + $0x8cc] ss:$16 sps:$4 sm:$0xff]  }
 0x15f   :  { %3090 = vmatpush1.bf16.msra.mxu0 %v5723_v51  ;;  %3196 = vmatpush1.bf16.msra.mxu1 %v5726_v52  ;;  %v5819_v51 = vld [vmem:[%s7808_s3 + $0x8c0] ss:$16 sps:$4 sm:$0xff]   ;;  %v5822_v52 = vld [vmem:[%s7808_s3 + $0x8c8] ss:$16 sps:$4 sm:$0xff]  }
 0x160   :  { %3091 = vmatprep.subr.bf16.mxu0 %v5731_v53  ;;  %3197 = vmatprep.subr.bf16.mxu1 %v5734_v54  ;;  %v5827_v53 = vld [vmem:[%s7808_s3 + $0x8e4] ss:$16 sps:$4 sm:$0xff]   ;;  %v5830_v54 = vld [vmem:[%s7808_s3 + $0x8ec] ss:$16 sps:$4 sm:$0xff]  }
 0x163   :  { %3092 = vmatpush1.bf16.msra.mxu0 %v5729_v55  ;;  %3198 = vmatpush1.bf16.msra.mxu1 %v5732_v56  ;;  %v5825_v55 = vld [vmem:[%s7808_s3 + $0x8e0] ss:$16 sps:$4 sm:$0xff]   ;;  %v5828_v56 = vld [vmem:[%s7808_s3 + $0x8e8] ss:$16 sps:$4 sm:$0xff]  }
 0x164   :  { %3093 = vmatprep.subr.bf16.mxu0 %v5737_v57  ;;  %3199 = vmatprep.subr.bf16.mxu1 %v5740_v58  ;;  %v5833_v57 = vld [vmem:[%s7808_s3 + $0x904] ss:$16 sps:$4 sm:$0xff]   ;;  %v5836_v58 = vld [vmem:[%s7808_s3 + $0x90c] ss:$16 sps:$4 sm:$0xff]  }
 0x167   :  { %3094 = vmatpush1.bf16.msra.mxu0 %v5735_v59  ;;  %3200 = vmatpush1.bf16.msra.mxu1 %v5738_v60  ;;  %v5831_v59 = vld [vmem:[%s7808_s3 + $0x900] ss:$16 sps:$4 sm:$0xff]   ;;  %v5834_v60 = vld [vmem:[%s7808_s3 + $0x908] ss:$16 sps:$4 sm:$0xff]  }
 0x168   :  { %3095 = vmatprep.subr.bf16.mxu0 %v5743_v61  ;;  %3201 = vmatprep.subr.bf16.mxu1 %v5746_v62  ;;  %v5839_v61 = vld [vmem:[%s7808_s3 + $0x924] ss:$16 sps:$4 sm:$0xff]   ;;  %v5842_v62 = vld [vmem:[%s7808_s3 + $0x92c] ss:$16 sps:$4 sm:$0xff]  }
 0x16b   :  { %3096 = vmatpush1.bf16.msra.mxu0 %v5741_v63  ;;  %3202 = vmatpush1.bf16.msra.mxu1 %v5744_v0  ;;  %v5837_v63 = vld [vmem:[%s7808_s3 + $0x920] ss:$16 sps:$4 sm:$0xff]   ;;  %v5840_v0 = vld [vmem:[%s7808_s3 + $0x928] ss:$16 sps:$4 sm:$0xff]  }
 0x16c   :  { %3097 = vmatprep.subr.bf16.mxu0 %v5749_v1  ;;  %3203 = vmatprep.subr.bf16.mxu1 %v5752_v2  ;;  %v5845_v1 = vld [vmem:[%s7808_s3 + $0x944] ss:$16 sps:$4 sm:$0xff]   ;;  %v5848_v2 = vld [vmem:[%s7808_s3 + $0x94c] ss:$16 sps:$4 sm:$0xff]  }
 0x16f   :  { %3098 = vmatpush1.bf16.msra.mxu0 %v5747_v3  ;;  %3204 = vmatpush1.bf16.msra.mxu1 %v5750_v4  ;;  %v5843_v3 = vld [vmem:[%s7808_s3 + $0x940] ss:$16 sps:$4 sm:$0xff]   ;;  %v5846_v4 = vld [vmem:[%s7808_s3 + $0x948] ss:$16 sps:$4 sm:$0xff]  }
 0x170   :  { %3099 = vmatprep.subr.bf16.mxu0 %v5755_v5  ;;  %3205 = vmatprep.subr.bf16.mxu1 %v5758_v6  ;;  %v5851_v5 = vld [vmem:[%s7808_s3 + $0x964] ss:$16 sps:$4 sm:$0xff]   ;;  %v5854_v6 = vld [vmem:[%s7808_s3 + $0x96c] ss:$16 sps:$4 sm:$0xff]  }
 0x173   :  { %3100 = vmatpush1.bf16.msra.mxu0 %v5753_v7  ;;  %3206 = vmatpush1.bf16.msra.mxu1 %v5756_v8  ;;  %v5849_v7 = vld [vmem:[%s7808_s3 + $0x960] ss:$16 sps:$4 sm:$0xff]   ;;  %v5852_v8 = vld [vmem:[%s7808_s3 + $0x968] ss:$16 sps:$4 sm:$0xff]  }
 0x174   :  { %3101 = vmatprep.subr.bf16.mxu0 %v5761_v9  ;;  %3207 = vmatprep.subr.bf16.mxu1 %v5764_v10  ;;  %v5857_v9 = vld [vmem:[%s7808_s3 + $0x984] ss:$16 sps:$4 sm:$0xff]   ;;  %v5860_v10 = vld [vmem:[%s7808_s3 + $0x98c] ss:$16 sps:$4 sm:$0xff]  }
 0x177   :  { %3102 = vmatpush1.bf16.msra.mxu0 %v5759_v11  ;;  %3208 = vmatpush1.bf16.msra.mxu1 %v5762_v12  ;;  %v5855_v11 = vld [vmem:[%s7808_s3 + $0x980] ss:$16 sps:$4 sm:$0xff]   ;;  %v5858_v12 = vld [vmem:[%s7808_s3 + $0x988] ss:$16 sps:$4 sm:$0xff]  }
 0x178   :  { %3103 = vmatprep.subr.bf16.mxu0 %v5769_v13  ;;  %3209 = vmatprep.subr.bf16.mxu1 %v5772_v14  ;;  %v5863_v13 = vld [vmem:[%s7808_s3 + $0x9a4] ss:$16 sps:$4 sm:$0xff]   ;;  %v5866_v14 = vld [vmem:[%s7808_s3 + $0x9ac] ss:$16 sps:$4 sm:$0xff]  }
 0x17b   :  { %3104 = vmatpush1.bf16.msra.mxu0 %v5767_v15  ;;  %3210 = vmatpush1.bf16.msra.mxu1 %v5770_v16  ;;  %v5861_v15 = vld [vmem:[%s7808_s3 + $0x9a0] ss:$16 sps:$4 sm:$0xff]   ;;  %v5864_v16 = vld [vmem:[%s7808_s3 + $0x9a8] ss:$16 sps:$4 sm:$0xff]  }
 0x17c   :  { %3105 = vmatprep.subr.bf16.mxu0 %v5776_v17  ;;  %3211 = vmatprep.subr.bf16.mxu1 %v5779_v18  ;;  %v5871_v17 = vld [vmem:[%s7808_s3 + $0x9c4] ss:$16 sps:$4 sm:$0xff]   ;;  %v5874_v18 = vld [vmem:[%s7808_s3 + $0x9cc] ss:$16 sps:$4 sm:$0xff]  }
 0x17f   :  { %3106 = vmatpush1.bf16.msra.mxu0 %v5774_v19  ;;  %3212 = vmatpush1.bf16.msra.mxu1 %v5777_v20  ;;  %v5869_v19 = vld [vmem:[%s7808_s3 + $0x9c0] ss:$16 sps:$4 sm:$0xff]   ;;  %v5872_v20 = vld [vmem:[%s7808_s3 + $0x9c8] ss:$16 sps:$4 sm:$0xff]  }
 0x180   :  { %3874 = vmatprep.subr.bf16.mxu0 %v5785_v21  ;;  %3980 = vmatprep.subr.bf16.mxu1 %v5788_v22  ;;  %v5878_v21 = vld [vmem:[%s7808_s3 + $0x9e4] ss:$16 sps:$4 sm:$0xff]   ;;  %v5881_v22 = vld [vmem:[%s7808_s3 + $0x9ec] ss:$16 sps:$4 sm:$0xff]  }
 0x182   :  { %3108 = vmatmul.mubr.bf16.vlgmr.msra.gmra.mrb[8].mxu0 %v5780_v23  ;;  %3214 = vmatmul.mubr.bf16.vlgmr.msra.gmra.mrb[8].mxu1 %v5780_v23  ;;  %v5876_v23 = vld [vmem:[%s7808_s3 + $0x9e0] ss:$16 sps:$4 sm:$0xff]  }
 0x183   :  { %3875 = vmatpush1.bf16.msra.mxu0 %v5783_v24  ;;  %3981 = vmatpush1.bf16.msra.mxu1 %v5786_v25  ;;  %v5879_v24 = vld [vmem:[%s7808_s3 + $0x9e8] ss:$16 sps:$4 sm:$0xff]   ;;  %v5884_v25 = vld [vmem:[%s7808_s3 + $0xa04] ss:$16 sps:$4 sm:$0xff]  }
 0x184   :  { %3876 = vmatprep.subr.bf16.mxu0 %v5791_v26  ;;  %3982 = vmatprep.subr.bf16.mxu1 %v5794_v27  ;;  %v5887_v26 = vld [vmem:[%s7808_s3 + $0xa0c] ss:$16 sps:$4 sm:$0xff]   ;;  %v5882_v27 = vld [vmem:[%s7808_s3 + $0xa00] ss:$16 sps:$4 sm:$0xff]  }
 0x185   :  { %3117 = vmatprep.mubr.bf16.mxu0 %v5867_v28  ;;  %3223 = vmatprep.mubr.bf16.mxu1 %v5867_v28  ;;  %v5885_v28 = vld [vmem:[%s7808_s3 + $0xa08] ss:$16 sps:$4 sm:$0xff]  }
 0x187   :  { %3877 = vmatpush1.bf16.msra.mxu0 %v5789_v29  ;;  %3983 = vmatpush1.bf16.msra.mxu1 %v5792_v30  ;;  %v5890_v29 = vld [vmem:[%s7808_s3 + $0xa24] ss:$16 sps:$4 sm:$0xff]   ;;  %v5893_v30 = vld [vmem:[%s7808_s3 + $0xa2c] ss:$16 sps:$4 sm:$0xff]  }
 0x188   :  { %3878 = vmatprep.subr.bf16.mxu0 %v5797_v31  ;;  %3984 = vmatprep.subr.bf16.mxu1 %v5800_v32  ;;  %v6043_v31 = vld [vmem:[%s7810_s0] ss:$16 sps:$4 sm:$0xff]  }
 0x189   :  { %v5888_v32 = vld [vmem:[%s7808_s3 + $0xa20] ss:$16 sps:$4 sm:$0xff]  }
 0x18a   :  { %3118 = vmatmul.mubr.bf16.gmra.mrb[12].mxu0 %v5875_v33  ;;  %3224 = vmatmul.mubr.bf16.gmra.mrb[12].mxu1 %v5875_v33  ;;  %v5891_v33 = vld [vmem:[%s7808_s3 + $0xa28] ss:$16 sps:$4 sm:$0xff]  }
 0x18b   :  { %3879 = vmatpush1.bf16.msra.mxu0 %v5795_v34  ;;  %3985 = vmatpush1.bf16.msra.mxu1 %v5798_v35  ;;  %v5896_v34 = vld [vmem:[%s7808_s3 + $0xa44] ss:$16 sps:$4 sm:$0xff]   ;;  %v5899_v35 = vld [vmem:[%s7808_s3 + $0xa4c] ss:$16 sps:$4 sm:$0xff]  }
 0x18c   :  { %3880 = vmatprep.subr.bf16.mxu0 %v5803_v36  ;;  %3986 = vmatprep.subr.bf16.mxu1 %v5806_v37  ;;  %v6044_v36 = vld [vmem:[%s7810_s0 + $0x24] ss:$16 sps:$4 sm:$0xff]   ;;  %v5894_v37 = vld [vmem:[%s7808_s3 + $0xa40] ss:$16 sps:$4 sm:$0xff]  }
 0x18d   :  { %3906 = vmatprep.mubr.bf16.mxu0 %v6042_v42  ;;  %4012 = vmatprep.mubr.bf16.mxu1 %v6042_v42  ;;  %v5900_v42 = vld [vmem:[%s7808_s3 + $0xa60] ss:$16 sps:$4 sm:$0xff]  }
 0x18f   :  { %3881 = vmatpush1.bf16.msra.mxu0 %v5801_v38  ;;  %3987 = vmatpush1.bf16.msra.mxu1 %v5804_v39  ;;  %v5897_v38 = vld [vmem:[%s7808_s3 + $0xa48] ss:$16 sps:$4 sm:$0xff]   ;;  %v5902_v39 = vld [vmem:[%s7808_s3 + $0xa64] ss:$16 sps:$4 sm:$0xff]  }
 0x190   :  { %3882 = vmatprep.subr.bf16.mxu0 %v5809_v40  ;;  %3988 = vmatprep.subr.bf16.mxu1 %v5812_v41  ;;  %v5905_v40 = vld [vmem:[%s7808_s3 + $0xa6c] ss:$16 sps:$4 sm:$0xff]   ;;  %v6045_v41 = vld [vmem:[%s7810_s0 + $0x20] ss:$16 sps:$4 sm:$0xff]  }
 0x193   :  { %3883 = vmatpush1.bf16.msra.mxu0 %v5807_v43  ;;  %3989 = vmatpush1.bf16.msra.mxu1 %v5810_v44  ;;  %v5903_v43 = vld [vmem:[%s7808_s3 + $0xa68] ss:$16 sps:$4 sm:$0xff]   ;;  %v5908_v44 = vld [vmem:[%s7808_s3 + $0xa84] ss:$16 sps:$4 sm:$0xff]  }
 0x194   :  { %3884 = vmatprep.subr.bf16.mxu0 %v5815_v45  ;;  %3990 = vmatprep.subr.bf16.mxu1 %v5818_v46  ;;  %v5911_v45 = vld [vmem:[%s7808_s3 + $0xa8c] ss:$16 sps:$4 sm:$0xff]  }
 0x195   :  { %v6046_v46 = vld [vmem:[%s7810_s0 + $0xc] ss:$16 sps:$4 sm:$0xff]  }
 0x197   :  { %3885 = vmatpush1.bf16.msra.mxu0 %v5813_v47  ;;  %3991 = vmatpush1.bf16.msra.mxu1 %v5816_v48  ;;  %v5906_v47 = vld [vmem:[%s7808_s3 + $0xa80] ss:$16 sps:$4 sm:$0xff]   ;;  %v5909_v48 = vld [vmem:[%s7808_s3 + $0xa88] ss:$16 sps:$4 sm:$0xff]  }
 0x198   :  { %3886 = vmatprep.subr.bf16.mxu0 %v5821_v49  ;;  %3992 = vmatprep.subr.bf16.mxu1 %v5824_v50  ;;  %v5914_v49 = vld [vmem:[%s7808_s3 + $0xaa4] ss:$16 sps:$4 sm:$0xff]   ;;  %v5917_v50 = vld [vmem:[%s7808_s3 + $0xaac] ss:$16 sps:$4 sm:$0xff]  }
 0x19b   :  { %3887 = vmatpush1.bf16.msra.mxu0 %v5819_v51  ;;  %3993 = vmatpush1.bf16.msra.mxu1 %v5822_v52  ;;  %v5912_v51 = vld [vmem:[%s7808_s3 + $0xaa0] ss:$16 sps:$4 sm:$0xff]   ;;  %v5915_v52 = vld [vmem:[%s7808_s3 + $0xaa8] ss:$16 sps:$4 sm:$0xff]  }
 0x19c   :  { %3888 = vmatprep.subr.bf16.mxu0 %v5827_v53  ;;  %3994 = vmatprep.subr.bf16.mxu1 %v5830_v54  ;;  %v5920_v53 = vld [vmem:[%s7808_s3 + $0xac4] ss:$16 sps:$4 sm:$0xff]   ;;  %v5923_v54 = vld [vmem:[%s7808_s3 + $0xacc] ss:$16 sps:$4 sm:$0xff]  }
 0x19f   :  { %3889 = vmatpush1.bf16.msra.mxu0 %v5825_v55  ;;  %3995 = vmatpush1.bf16.msra.mxu1 %v5828_v56 }
 0x1a0   :  { %3890 = vmatprep.subr.bf16.mxu0 %v5833_v57  ;;  %3996 = vmatprep.subr.bf16.mxu1 %v5836_v58 }
 0x1a3   :  { %3891 = vmatpush1.bf16.msra.mxu0 %v5831_v59  ;;  %3997 = vmatpush1.bf16.msra.mxu1 %v5834_v60 }
 0x1a4   :  { %3892 = vmatprep.subr.bf16.mxu0 %v5839_v61  ;;  %3998 = vmatprep.subr.bf16.mxu1 %v5842_v62  ;;  %v5918_v61 = vld [vmem:[%s7808_s3 + $0xac0] ss:$16 sps:$4 sm:$0xff]   ;;  %v5921_v62 = vld [vmem:[%s7808_s3 + $0xac8] ss:$16 sps:$4 sm:$0xff]  }
 0x1a7   :  { %3893 = vmatpush1.bf16.msra.mxu0 %v5837_v63  ;;  %3999 = vmatpush1.bf16.msra.mxu1 %v5840_v0 }
 0x1a8   :  { %3894 = vmatprep.subr.bf16.mxu0 %v5845_v1  ;;  %4000 = vmatprep.subr.bf16.mxu1 %v5848_v2  ;;  %v5926_v1 = vld [vmem:[%s7808_s3 + $0xae4] ss:$16 sps:$4 sm:$0xff]   ;;  %v5929_v2 = vld [vmem:[%s7808_s3 + $0xaec] ss:$16 sps:$4 sm:$0xff]  }
 0x1ab   :  { %3895 = vmatpush1.bf16.msra.mxu0 %v5843_v3  ;;  %4001 = vmatpush1.bf16.msra.mxu1 %v5846_v4  ;;  %v5924_v3 = vld [vmem:[%s7808_s3 + $0xae0] ss:$16 sps:$4 sm:$0xff]   ;;  %v5927_v4 = vld [vmem:[%s7808_s3 + $0xae8] ss:$16 sps:$4 sm:$0xff]  }
 0x1ac   :  { %3896 = vmatprep.subr.bf16.mxu0 %v5851_v5  ;;  %4002 = vmatprep.subr.bf16.mxu1 %v5854_v6  ;;  %v5932_v5 = vld [vmem:[%s7808_s3 + $0xb04] ss:$16 sps:$4 sm:$0xff]   ;;  %v5935_v6 = vld [vmem:[%s7808_s3 + $0xb0c] ss:$16 sps:$4 sm:$0xff]  }
 0x1af   :  { %3897 = vmatpush1.bf16.msra.mxu0 %v5849_v7  ;;  %4003 = vmatpush1.bf16.msra.mxu1 %v5852_v8 }
 0x1b0   :  { %3898 = vmatprep.subr.bf16.mxu0 %v5857_v9  ;;  %4004 = vmatprep.subr.bf16.mxu1 %v5860_v10 }
 0x1b3   :  { %3899 = vmatpush1.bf16.msra.mxu0 %v5855_v11  ;;  %4005 = vmatpush1.bf16.msra.mxu1 %v5858_v12 }
 0x1b4   :  { %3900 = vmatprep.subr.bf16.mxu0 %v5863_v13  ;;  %4006 = vmatprep.subr.bf16.mxu1 %v5866_v14  ;;  %v5930_v13 = vld [vmem:[%s7808_s3 + $0xb00] ss:$16 sps:$4 sm:$0xff]   ;;  %v5933_v14 = vld [vmem:[%s7808_s3 + $0xb08] ss:$16 sps:$4 sm:$0xff]  }
 0x1b7   :  { %3901 = vmatpush1.bf16.msra.mxu0 %v5861_v15  ;;  %4007 = vmatpush1.bf16.msra.mxu1 %v5864_v16 }
 0x1b8   :  { %3902 = vmatprep.subr.bf16.mxu0 %v5871_v17  ;;  %4008 = vmatprep.subr.bf16.mxu1 %v5874_v18  ;;  %v5938_v18 = vld [vmem:[%s7808_s3 + $0xb24] ss:$16 sps:$4 sm:$0xff]  }
 0x1bb   :  { %3903 = vmatpush1.bf16.msra.mxu0 %v5869_v19  ;;  %4009 = vmatpush1.bf16.msra.mxu1 %v5872_v20  ;;  %v5941_v19 = vld [vmem:[%s7808_s3 + $0xb2c] ss:$16 sps:$4 sm:$0xff]  }
 0x1bc   :  { %3904 = vmatprep.subr.bf16.mxu0 %v5878_v21  ;;  %4010 = vmatprep.subr.bf16.mxu1 %v5881_v22 }
 0x1bf   :  { %3905 = vmatpush1.bf16.msra.mxu0 %v5876_v23  ;;  %4011 = vmatpush1.bf16.msra.mxu1 %v5879_v24  ;;  %v5936_v23 = vld [vmem:[%s7808_s3 + $0xb20] ss:$16 sps:$4 sm:$0xff]   ;;  %v5939_v24 = vld [vmem:[%s7808_s3 + $0xb28] ss:$16 sps:$4 sm:$0xff]  }
 0x1c0   :  { %3927 = vmatprep.subr.bf16.mxu0 %v5884_v25  ;;  %4033 = vmatprep.subr.bf16.mxu1 %v5887_v26  ;;  %v5944_v26 = vld [vmem:[%s7808_s3 + $0xb44] ss:$16 sps:$4 sm:$0xff]  }
 0x1c2   :  { %3907 = vmatmul.mubr.bf16.vlgmr.msra.gmra.mrb[8].mxu0 %v6043_v31  ;;  %4013 = vmatmul.mubr.bf16.vlgmr.msra.gmra.mrb[8].mxu1 %v6043_v31  ;;  %v5942_v31 = vld [vmem:[%s7808_s3 + $0xb40] ss:$16 sps:$4 sm:$0xff]  }
 0x1c3   :  { %3928 = vmatpush1.bf16.msra.mxu0 %v5882_v27  ;;  %4034 = vmatpush1.bf16.msra.mxu1 %v5885_v28  ;;  %v5947_v27 = vld [vmem:[%s7808_s3 + $0xb4c] ss:$16 sps:$4 sm:$0xff]  }
 0x1c4   :  { %3929 = vmatprep.subr.bf16.mxu0 %v5890_v29  ;;  %4035 = vmatprep.subr.bf16.mxu1 %v5893_v30 }
 0x1c5   :  { %3916 = vmatprep.mubr.bf16.mxu0 %v6044_v36  ;;  %4022 = vmatprep.mubr.bf16.mxu1 %v6044_v36 }
 0x1c7   :  { %3930 = vmatpush1.bf16.msra.mxu0 %v5888_v32  ;;  %4036 = vmatpush1.bf16.msra.mxu1 %v5891_v33  ;;  %v5945_v32 = vld [vmem:[%s7808_s3 + $0xb48] ss:$16 sps:$4 sm:$0xff]  }
 0x1c8   :  { %3931 = vmatprep.subr.bf16.mxu0 %v5896_v34  ;;  %4037 = vmatprep.subr.bf16.mxu1 %v5899_v35  ;;  %v5950_v34 = vld [vmem:[%s7808_s3 + $0xb64] ss:$16 sps:$4 sm:$0xff]   ;;  %v5953_v35 = vld [vmem:[%s7808_s3 + $0xb6c] ss:$16 sps:$4 sm:$0xff]  }
 0x1ca   :  { %3917 = vmatmul.mubr.bf16.gmra.mrb[12].mxu0 %v6045_v41  ;;  %4023 = vmatmul.mubr.bf16.gmra.mrb[12].mxu1 %v6045_v41 }
 0x1cb   :  { %3932 = vmatpush1.bf16.msra.mxu0 %v5894_v37  ;;  %4038 = vmatpush1.bf16.msra.mxu1 %v5897_v38 }
 0x1cc   :  { %3933 = vmatprep.subr.bf16.mxu0 %v5902_v39  ;;  %4039 = vmatprep.subr.bf16.mxu1 %v5905_v40  ;;  %v5948_v39 = vld [vmem:[%s7808_s3 + $0xb60] ss:$16 sps:$4 sm:$0xff]   ;;  %v5951_v40 = vld [vmem:[%s7808_s3 + $0xb68] ss:$16 sps:$4 sm:$0xff]  }
 0x1cd   :  { %3959 = vmatprep.mubr.bf16.mxu0 %v6046_v46  ;;  %4065 = vmatprep.mubr.bf16.mxu1 %v6046_v46 }
 0x1cf   :  { %3934 = vmatpush1.bf16.msra.mxu0 %v5900_v42  ;;  %4040 = vmatpush1.bf16.msra.mxu1 %v5903_v43  ;;  %v5956_v42 = vld [vmem:[%s7808_s3 + $0xb84] ss:$16 sps:$4 sm:$0xff]   ;;  %v5959_v43 = vld [vmem:[%s7808_s3 + $0xb8c] ss:$16 sps:$4 sm:$0xff]  }
 0x1d0   :  { %3935 = vmatprep.subr.bf16.mxu0 %v5908_v44  ;;  %4041 = vmatprep.subr.bf16.mxu1 %v5911_v45 }
 0x1d3   :  { %3936 = vmatpush1.bf16.msra.mxu0 %v5906_v47  ;;  %4042 = vmatpush1.bf16.msra.mxu1 %v5909_v48  ;;  %v5954_v47 = vld [vmem:[%s7808_s3 + $0xb80] ss:$16 sps:$4 sm:$0xff]   ;;  %v5957_v48 = vld [vmem:[%s7808_s3 + $0xb88] ss:$16 sps:$4 sm:$0xff]  }
 0x1d4   :  { %3937 = vmatprep.subr.bf16.mxu0 %v5914_v49  ;;  %4043 = vmatprep.subr.bf16.mxu1 %v5917_v50  ;;  %v5962_v49 = vld [vmem:[%s7808_s3 + $0xba4] ss:$16 sps:$4 sm:$0xff]   ;;  %v5965_v50 = vld [vmem:[%s7808_s3 + $0xbac] ss:$16 sps:$4 sm:$0xff]  }
 0x1d5   :  { %v1952_v55 = vpop.f32.mrb[0].mxu0  ;;  %v2058_v56 = vpop.f32.mrb[0].mxu1 }
 0x1d6   :  { %5978 = vtanh.f32 %v1952_v55  ;;  %v1954_v57 = vpop.f32.mrb[1].mxu0  ;;  %v2060_v58 = vpop.f32.mrb[1].mxu1  ;;  %v5966_v55 = vld [vmem:[%s7808_s3 + $0xbc0] ss:$16 sps:$4 sm:$0xff]  }
 0x1d7   :  { %5980 = vtanh.f32 %v2058_v56  ;;  %v1956_v59 = vpop.f32.mrb[2].mxu0  ;;  %v2062_v60 = vpop.f32.mrb[2].mxu1  ;;  %3938 = vmatpush1.bf16.msra.mxu0 %v5912_v51  ;;  %4044 = vmatpush1.bf16.msra.mxu1 %v5915_v52  ;;  %v5960_v51 = vld [vmem:[%s7808_s3 + $0xba0] ss:$16 sps:$4 sm:$0xff]   ;;  %v5963_v52 = vld [vmem:[%s7808_s3 + $0xba8] ss:$16 sps:$4 sm:$0xff]  }
 0x1d8   :  { %5982 = vtanh.f32 %v1954_v57  ;;  %v1958_v63 = vpop.f32.mrb[3].mxu0  ;;  %v2064_v0 = vpop.f32.mrb[3].mxu1  ;;  %3939 = vmatprep.subr.bf16.mxu0 %v5920_v53  ;;  %4045 = vmatprep.subr.bf16.mxu1 %v5923_v54  ;;  %v5968_v53 = vld [vmem:[%s7808_s3 + $0xbc4] ss:$16 sps:$4 sm:$0xff]   ;;  %v5971_v54 = vld [vmem:[%s7808_s3 + $0xbcc] ss:$16 sps:$4 sm:$0xff]  }
 0x1d9   :  { %5984 = vtanh.f32 %v2060_v58  ;;  %v5969_v56 = vld [vmem:[%s7808_s3 + $0xbc8] ss:$16 sps:$4 sm:$0xff]   ;;  %v5974_v57 = vld [vmem:[%s7808_s3 + $0xbe4] ss:$16 sps:$4 sm:$0xff]   ;;  %v5977_v58 = vld [vmem:[%s7808_s3 + $0xbec] ss:$16 sps:$4 sm:$0xff]  }
 0x1da   :  { %5986 = vtanh.f32 %v1956_v59  ;;  %v5972_v59 = vld [vmem:[%s7808_s3 + $0xbe0] ss:$16 sps:$4 sm:$0xff]  }
 0x1db   :  { %5988 = vtanh.f32 %v2062_v60  ;;  %3940 = vmatpush1.bf16.msra.mxu0 %v5918_v61  ;;  %4046 = vmatpush1.bf16.msra.mxu1 %v5921_v62  ;;  %v5975_v60 = vld [vmem:[%s7808_s3 + $0xbe8] ss:$16 sps:$4 sm:$0xff]   ;;  %v6048_v62 = vld [vmem:[%s7810_s0 + $0x2c] ss:$16 sps:$4 sm:$0xff]  }
 0x1dc   :  { %5990 = vtanh.f32 %v1958_v63  ;;  %3941 = vmatprep.subr.bf16.mxu0 %v5926_v1  ;;  %4047 = vmatprep.subr.bf16.mxu1 %v5929_v2  ;;  %v6047_v61 = vld [vmem:[%s7810_s0 + $0x8] ss:$16 sps:$4 sm:$0xff]  }
 0x1dd   :  { %5992 = vtanh.f32 %v2064_v0  ;;  %v1962_v7 = vpop.f32.mrb[4].mxu0  ;;  %v2068_v8 = vpop.f32.mrb[4].mxu1  ;;  %v6049_v63 = vld [vmem:[%s7810_s0 + $0x28] ss:$16 sps:$4 sm:$0xff]  }
 0x1de   :  { %5994 = vtanh.f32 %v1962_v7  ;;  %v1964_v9 = vpop.f32.mrb[5].mxu0  ;;  %v2070_v10 = vpop.f32.mrb[5].mxu1 }
 0x1df   :  { %5996 = vtanh.f32 %v2068_v8  ;;  %v1966_v11 = vpop.f32.mrb[6].mxu0  ;;  %v2072_v12 = vpop.f32.mrb[6].mxu1  ;;  %3942 = vmatpush1.bf16.msra.mxu0 %v5924_v3  ;;  %4048 = vmatpush1.bf16.msra.mxu1 %v5927_v4 }
 0x1e0   :  { %v5979_v15 = vpop.eup %5978  ;;  %5998 = vtanh.f32 %v1964_v9  ;;  %v1968_v16 = vpop.f32.mrb[7].mxu0  ;;  %3943 = vmatprep.subr.bf16.mxu0 %v5932_v5  ;;  %4049 = vmatprep.subr.bf16.mxu1 %v5935_v6 }
 0x1e1   :  { %v2074_v17 = vpop.f32.mrb[7].mxu1  ;;  %v5981_v20 = vpop.eup %5980  ;;  %4118 = vst [vmem:[%s7812_s4] sm:$0xff] %v5979_v15  ;;  %6000 = vtanh.f32 %v2070_v10 }
 0x1e2   :  { %v5983_v21 = vpop.eup %5982  ;;  %4120 = vst [vmem:[%s7812_s4 + $0x10] sm:$0xff] %v5981_v20  ;;  %6002 = vtanh.f32 %v1966_v11 }
 0x1e3   :  { %v5985_v22 = vpop.eup %5984  ;;  %4119 = vst [vmem:[%s7812_s4 + $0x8] sm:$0xff] %v5983_v21  ;;  %6004 = vtanh.f32 %v2072_v12  ;;  %3944 = vmatpush1.bf16.msra.mxu0 %v5930_v13  ;;  %4050 = vmatpush1.bf16.msra.mxu1 %v5933_v14 }
 0x1e4   :  { %v5987_v25 = vpop.eup %5986  ;;  %4121 = vst [vmem:[%s7812_s4 + $0x18] sm:$0xff] %v5985_v22  ;;  %6006 = vtanh.f32 %v1968_v16  ;;  %3945 = vmatprep.subr.bf16.mxu0 %v5938_v18  ;;  %4051 = vmatprep.subr.bf16.mxu1 %v5941_v19 }
 0x1e5   :  { %v5989_v28 = vpop.eup %5988  ;;  %4122 = vst [vmem:[%s7812_s4 + $0x20] sm:$0xff] %v5987_v25  ;;  %6008 = vtanh.f32 %v2074_v17 }
 0x1e6   :  { %v5991_v29 = vpop.eup %5990  ;;  %4124 = vst [vmem:[%s7812_s4 + $0x30] sm:$0xff] %v5989_v28 }
 0x1e7   :  { %v5993_v30 = vpop.eup %5992  ;;  %4123 = vst [vmem:[%s7812_s4 + $0x28] sm:$0xff] %v5991_v29  ;;  %3946 = vmatpush1.bf16.msra.mxu0 %v5936_v23  ;;  %4052 = vmatpush1.bf16.msra.mxu1 %v5939_v24 }
 0x1e8   :  { %v5995_v33 = vpop.eup %5994  ;;  %4125 = vst [vmem:[%s7812_s4 + $0x38] sm:$0xff] %v5993_v30  ;;  %3947 = vmatprep.subr.bf16.mxu0 %v5944_v26  ;;  %4053 = vmatprep.subr.bf16.mxu1 %v5947_v27 }
 0x1e9   :  { %v5997_v36 = vpop.eup %5996  ;;  %4126 = vst [vmem:[%s7812_s4 + $0x40] sm:$0xff] %v5995_v33 }
 0x1ea   :  { %v5999_v37 = vpop.eup %5998  ;;  %4128 = vst [vmem:[%s7812_s4 + $0x50] sm:$0xff] %v5997_v36 }
 0x1eb   :  { %v6001_v38 = vpop.eup %6000  ;;  %4127 = vst [vmem:[%s7812_s4 + $0x48] sm:$0xff] %v5999_v37  ;;  %3948 = vmatpush1.bf16.msra.mxu0 %v5942_v31  ;;  %4054 = vmatpush1.bf16.msra.mxu1 %v5945_v32 }
 0x1ec   :  { %v6003_v41 = vpop.eup %6002  ;;  %4129 = vst [vmem:[%s7812_s4 + $0x58] sm:$0xff] %v6001_v38  ;;  %3949 = vmatprep.subr.bf16.mxu0 %v5950_v34  ;;  %4055 = vmatprep.subr.bf16.mxu1 %v5953_v35 }
 0x1ed   :  { %v6005_v44 = vpop.eup %6004  ;;  %4130 = vst [vmem:[%s7812_s4 + $0x60] sm:$0xff] %v6003_v41 }
 0x1ee   :  { %v6007_v45 = vpop.eup %6006  ;;  %4132 = vst [vmem:[%s7812_s4 + $0x70] sm:$0xff] %v6005_v44 }
 0x1ef   :  { %v6009_v46 = vpop.eup %6008  ;;  %4131 = vst [vmem:[%s7812_s4 + $0x68] sm:$0xff] %v6007_v45  ;;  %3950 = vmatpush1.bf16.msra.mxu0 %v5948_v39  ;;  %4056 = vmatpush1.bf16.msra.mxu1 %v5951_v40 }
 0x1f0   :  { %4133 = vst [vmem:[%s7812_s4 + $0x78] sm:$0xff] %v6009_v46  ;;  %3951 = vmatprep.subr.bf16.mxu0 %v5956_v42  ;;  %4057 = vmatprep.subr.bf16.mxu1 %v5959_v43 }
 0x1f3   :  { %3952 = vmatpush1.bf16.msra.mxu0 %v5954_v47  ;;  %4058 = vmatpush1.bf16.msra.mxu1 %v5957_v48 }
 0x1f4   :  { %3953 = vmatprep.subr.bf16.mxu0 %v5962_v49  ;;  %4059 = vmatprep.subr.bf16.mxu1 %v5965_v50 }
 0x1f7   :  { %3954 = vmatpush1.bf16.msra.mxu0 %v5960_v51  ;;  %4060 = vmatpush1.bf16.msra.mxu1 %v5963_v52 }
 0x1f8   :  { %3955 = vmatprep.subr.bf16.mxu0 %v5968_v53  ;;  %4061 = vmatprep.subr.bf16.mxu1 %v5971_v54 }
 0x1fb   :  { %3956 = vmatpush1.bf16.msra.mxu0 %v5966_v55  ;;  %4062 = vmatpush1.bf16.msra.mxu1 %v5969_v56 }
 0x1fc   :  { %3957 = vmatprep.subr.bf16.mxu0 %v5974_v57  ;;  %4063 = vmatprep.subr.bf16.mxu1 %v5977_v58 }
 0x1ff   :  { %3958 = vmatpush1.bf16.msra.mxu0 %v5972_v59  ;;  %4064 = vmatpush1.bf16.msra.mxu1 %v5975_v60 }
 0x202   :  { %3960 = vmatmul.mubr.bf16.vlgmr.msra.gmra.mrb[8].mxu0 %v6047_v61  ;;  %4066 = vmatmul.mubr.bf16.vlgmr.msra.gmra.mrb[8].mxu1 %v6047_v61 }
 0x203   :  { %3969 = vmatprep.mubr.bf16.mxu0 %v6048_v62  ;;  %4075 = vmatprep.mubr.bf16.mxu1 %v6048_v62 }
 0x20a   :  { %3970 = vmatmul.mubr.bf16.gmra.mrb[12].mxu0 %v6049_v63  ;;  %4076 = vmatmul.mubr.bf16.gmra.mrb[12].mxu1 %v6049_v63 }
 0x2d5   :  { %v3961_v0 = vpop.f32.mrb[8].mxu0  ;;  %v4067_v1 = vpop.f32.mrb[8].mxu1 }
 0x2d6   :  { %6010 = vtanh.f32 %v3961_v0  ;;  %v3963_v2 = vpop.f32.mrb[9].mxu0  ;;  %v4069_v3 = vpop.f32.mrb[9].mxu1 }
 0x2d7   :  { %6012 = vtanh.f32 %v4067_v1  ;;  %v3965_v4 = vpop.f32.mrb[10].mxu0  ;;  %v4071_v5 = vpop.f32.mrb[10].mxu1 }
 0x2d8   :  { %6014 = vtanh.f32 %v3963_v2  ;;  %v3967_v6 = vpop.f32.mrb[11].mxu0  ;;  %v4073_v7 = vpop.f32.mrb[11].mxu1 }
 0x2d9   :  { %6016 = vtanh.f32 %v4069_v3 }
 0x2da   :  { %6018 = vtanh.f32 %v3965_v4 }
 0x2db   :  { %6020 = vtanh.f32 %v4071_v5 }
 0x2dc   :  { %6022 = vtanh.f32 %v3967_v6 }
 0x2dd   :  { %6024 = vtanh.f32 %v4073_v7  ;;  %v3971_v8 = vpop.f32.mrb[12].mxu0  ;;  %v4077_v9 = vpop.f32.mrb[12].mxu1 }
 0x2de   :  { %6026 = vtanh.f32 %v3971_v8  ;;  %v3973_v10 = vpop.f32.mrb[13].mxu0  ;;  %v4079_v11 = vpop.f32.mrb[13].mxu1 }
 0x2df   :  { %6028 = vtanh.f32 %v4077_v9  ;;  %v3975_v12 = vpop.f32.mrb[14].mxu0  ;;  %v4081_v13 = vpop.f32.mrb[14].mxu1 }
 0x2e0   :  { %v6011_v14 = vpop.eup %6010  ;;  %6030 = vtanh.f32 %v3973_v10  ;;  %v3977_v15 = vpop.f32.mrb[15].mxu0 }
 0x2e1   :  { %v4083_v16 = vpop.f32.mrb[15].mxu1  ;;  %v6013_v17 = vpop.eup %6012  ;;  %4134 = vst [vmem:[%s7813_s5] sm:$0xff] %v6011_v14  ;;  %6032 = vtanh.f32 %v4079_v11 }
 0x2e2   :  { %v6015_v18 = vpop.eup %6014  ;;  %4136 = vst [vmem:[%s7813_s5 + $0x10] sm:$0xff] %v6013_v17  ;;  %6034 = vtanh.f32 %v3975_v12 }
 0x2e3   :  { %v6017_v19 = vpop.eup %6016  ;;  %4135 = vst [vmem:[%s7813_s5 + $0x8] sm:$0xff] %v6015_v18  ;;  %6036 = vtanh.f32 %v4081_v13 }
 0x2e4   :  { %v6019_v20 = vpop.eup %6018  ;;  %4137 = vst [vmem:[%s7813_s5 + $0x18] sm:$0xff] %v6017_v19  ;;  %6038 = vtanh.f32 %v3977_v15 }
 0x2e5   :  { %v6021_v21 = vpop.eup %6020  ;;  %4138 = vst [vmem:[%s7813_s5 + $0x20] sm:$0xff] %v6019_v20  ;;  %6040 = vtanh.f32 %v4083_v16 }
 0x2e6   :  { %v6023_v22 = vpop.eup %6022  ;;  %4140 = vst [vmem:[%s7813_s5 + $0x30] sm:$0xff] %v6021_v21 }
 0x2e7   :  { %v6025_v23 = vpop.eup %6024  ;;  %4139 = vst [vmem:[%s7813_s5 + $0x28] sm:$0xff] %v6023_v22 }
 0x2e8   :  { %v6027_v24 = vpop.eup %6026  ;;  %4141 = vst [vmem:[%s7813_s5 + $0x38] sm:$0xff] %v6025_v23 }
 0x2e9   :  { %v6029_v25 = vpop.eup %6028  ;;  %4142 = vst [vmem:[%s7813_s5 + $0x40] sm:$0xff] %v6027_v24 }
 0x2ea   :  { %v6031_v26 = vpop.eup %6030  ;;  %4144 = vst [vmem:[%s7813_s5 + $0x50] sm:$0xff] %v6029_v25 }
 0x2eb   :  { %v6033_v27 = vpop.eup %6032  ;;  %4143 = vst [vmem:[%s7813_s5 + $0x48] sm:$0xff] %v6031_v26 }
 0x2ec   :  { %v6035_v28 = vpop.eup %6034  ;;  %4145 = vst [vmem:[%s7813_s5 + $0x58] sm:$0xff] %v6033_v27 }
 0x2ed   :  { %v6037_v29 = vpop.eup %6036  ;;  %4146 = vst [vmem:[%s7813_s5 + $0x60] sm:$0xff] %v6035_v28 }
 0x2ee   :  { %v6039_v30 = vpop.eup %6038  ;;  %4148 = vst [vmem:[%s7813_s5 + $0x70] sm:$0xff] %v6037_v29 }
 0x2ef   :  { %v6041_v31 = vpop.eup %6040  ;;  %4147 = vst [vmem:[%s7813_s5 + $0x68] sm:$0xff] %v6039_v30 }
 0x2f0   :  { %4149 = vst [vmem:[%s7813_s5 + $0x78] sm:$0xff] %v6041_v31 }

</bundles_post_ra>
